<compile_context>
chip_gen: v6e
topology: v6e:2x2x1
jax: 0.10.0
libtpu: 0.0.40
codegen_flags: <defaults>
</compile_context>

<pallas_src>
import functools

import jax
import jax.numpy as jnp
from jax import lax
from jax.experimental import pallas as pl
from jax.experimental.pallas import tpu as pltpu


_TM = 1024          # row tile over M = N*H*W for the channels-last matmul kernels
_TM_UP = 512        # row tile for the fused mask-head + convex-upsample kernel
_TR = 512           # row tile over image-1 pixels for the HW x HW correlation kernels
_CORR_VMEM = 48 * 1024 * 1024   # raised scoped-VMEM budget for the correlation calls


def _parallel(n):
    return pltpu.CompilerParams(dimension_semantics=("parallel",) * n)


# ----------------------------------------------------------------------------
# Pallas kernels
# ----------------------------------------------------------------------------

def _mm_kernel(x_ref, w_ref, b_ref, o_ref, *, act):
    # x (TM, K) bf16, w (K, N) bf16, b (1, N) f32, o (TM, N).  bf16 MXU, f32 acc.
    y = jnp.dot(x_ref[...], w_ref[...], preferred_element_type=jnp.float32)
    y = y + b_ref[...]
    if act == "tanh_relu":                     # cnet split: tanh(net) | relu(inp)
        h = y.shape[-1] // 2
        o_ref[:, :h] = jnp.tanh(y[:, :h]).astype(o_ref.dtype)
        o_ref[:, h:] = jnp.maximum(y[:, h:], 0.0).astype(o_ref.dtype)
    else:
        if act == "relu":
            y = jnp.maximum(y, 0.0)
        elif act == "tanh":
            y = jnp.tanh(y)
        o_ref[...] = y.astype(o_ref.dtype)


def _corr_kernel(fa_ref, fbt_ref, o_ref, *, scale):
    # fa (1, TR, C) bf16, fbt (1, C, HW) bf16 -> o (1, TR, HW) bf16 (corr only).
    c = jnp.dot(fa_ref[0], fbt_ref[0], preferred_element_type=jnp.float32) * scale
    o_ref[0] = c.astype(o_ref.dtype)


def _corr_stats_kernel(fa_ref, fbt_ref, rmax_ref, rsum_ref, cmax_ref, csum_ref,
                       *, scale, hw):
    # ONE matmul per row tile: emit per-row (dim=2) max / sum-exp for this tile and
    # accumulate the per-column (dim=1) max / sum-exp online across row tiles.
    r = pl.program_id(1)
    c = jnp.dot(fa_ref[0], fbt_ref[0], preferred_element_type=jnp.float32) * scale

    # row (dim=2) softmax stats for this tile
    rm = jnp.max(c, axis=-1, keepdims=True)                  # (TR, 1)
    rmax_ref[0] = rm
    rsum_ref[0] = jnp.sum(jnp.exp(c - rm), axis=-1, keepdims=True)

    # column (dim=1) softmax stats, online (flash-style rescale); mask pad rows.
    tr = c.shape[0]
    rows = lax.broadcasted_iota(jnp.int32, (tr, 1), 0) + r * tr
    c_m = jnp.where(rows < hw, c, -jnp.inf)
    cm_tile = jnp.max(c_m, axis=0, keepdims=True)            # (1, HW)
    cs_tile = jnp.sum(jnp.exp(c_m - cm_tile), axis=0, keepdims=True)

    @pl.when(r == 0)
    def _():
        cmax_ref[0] = jnp.full(cm_tile.shape, -jnp.inf, jnp.float32)
        csum_ref[0] = jnp.zeros(cs_tile.shape, jnp.float32)

    old_m = cmax_ref[0]
    old_s = csum_ref[0]
    new_m = jnp.maximum(old_m, cm_tile)
    csum_ref[0] = old_s * jnp.exp(old_m - new_m) + cs_tile * jnp.exp(cm_tile - new_m)
    cmax_ref[0] = new_m


def _dual_softmax_kernel(fa_ref, fbt_ref, rmax_ref, rsum_ref, cmax_ref, csum_ref,
                         o_ref, *, scale):
    # softmax(dim=2) * softmax(dim=1) of the global correlation, row-tiled:
    #   out = exp(2C - rmax_i - cmax_j) / (rsum_i * csum_j)   (exp arg <= 0)
    c = jnp.dot(fa_ref[0], fbt_ref[0], preferred_element_type=jnp.float32) * scale
    e = jnp.exp(2.0 * c - rmax_ref[0] - cmax_ref[0])
    inv_r = pl.reciprocal(rsum_ref[0], approx=True)
    inv_c = pl.reciprocal(csum_ref[0], approx=True)
    o_ref[0] = (e * inv_r * inv_c).astype(o_ref.dtype)        # bf16 store


def _sk_update_kernel(motion_ref, inp_ref, net_ref,
                      enc_w_ref, enc_b_ref,
                      agg_w_ref, agg_b_ref,
                      gru_w_ref, gru_b_ref,
                      fh_w_ref, fh_b_ref,
                      net_o_ref, df_o_ref):
    # Fused SKUpdate 1x1 chain; all intermediates stay in VMEM/vregs; K-packed matmuls.
    inp = inp_ref[...]                            # (TM, 128) bf16
    net = net_ref[...]                            # (TM, 128) bf16

    # TODO(synk): SKMotionEncoder6 source not provided; single 1x1 substitute over
    # the packed [corr(81) | flow(2) | 0(45)] input (K=128, lane aligned).
    mf = jnp.dot(motion_ref[...], enc_w_ref[...], preferred_element_type=jnp.float32)
    mf = jnp.maximum(mf + enc_b_ref[...], 0.0)
    mf_b = mf.astype(jnp.bfloat16)

    # TODO(synk): GGAM aggregator source not provided; 1x1 substitute (packed K=256).
    mfg = jnp.dot(jnp.concatenate([inp, mf_b], axis=-1), agg_w_ref[...],
                  preferred_element_type=jnp.float32)
    mfg = jnp.maximum(mfg + agg_b_ref[...], 0.0)
    mfg_b = mfg.astype(jnp.bfloat16)

    # TODO(synk): PCBlock4 GRU source not provided; tanh([net|inp|mf|mfg] @ Wg)
    # substitute; one K=512 matmul keeps the 256-deep v6e/v7x MXU full.
    g = jnp.dot(jnp.concatenate([net, inp, mf_b, mfg_b], axis=-1), gru_w_ref[...],
                preferred_element_type=jnp.float32)
    net_new = jnp.tanh(g + gru_b_ref[...])
    net_o_ref[...] = net_new.astype(net_o_ref.dtype)

    # flow head (128 -> 2), lane-padded to 128 output columns for dense stores.
    df = jnp.dot(net_new.astype(jnp.bfloat16), fh_w_ref[...],
                 preferred_element_type=jnp.float32) + fh_b_ref[...]
    df_o_ref[...] = df


def _mask_up_kernel(xcol_ref, fl_ref, w1_ref, b1_ref, w2_ref, b2_ref, o_ref):
    # Fused: mask head (Conv2d(128,256,3) as im2col matmul -> ReLU -> Conv2d(256,576,1),
    # x0.25, columns lane-padded to 9x128) + convex upsampling softmax/weighted sum.
    h = jnp.dot(xcol_ref[...], w1_ref[...], preferred_element_type=jnp.float32)
    h = jnp.maximum(h + b1_ref[...], 0.0).astype(jnp.bfloat16)
    m = 0.25 * (jnp.dot(h, w2_ref[...], preferred_element_type=jnp.float32) + b2_ref[...])

    fl = fl_ref[...]                                              # (TM, 18) f32
    taps = [m[:, k * 128:(k + 1) * 128] for k in range(9)]        # 128-lane aligned
    mmax = taps[0]
    for k in range(1, 9):
        mmax = jnp.maximum(mmax, taps[k])
    exps = [jnp.exp(t - mmax) for t in taps]
    denom = exps[0]
    for k in range(1, 9):
        denom = denom + exps[k]
    inv = pl.reciprocal(denom, approx=False)                      # exact (reaches output)
    for c in range(2):
        acc = exps[0] * fl[:, c:c + 1]
        for k in range(1, 9):
            acc = acc + exps[k] * fl[:, 2 * k + c:2 * k + c + 1]
        o_ref[:, c * 128:(c + 1) * 128] = acc * inv


# ----------------------------------------------------------------------------
# Wrappers
# ----------------------------------------------------------------------------

def mm(x, w, b, act=None, out_dtype=jnp.float32):
    # channels-last 1x1 conv: (M, K) @ (K, N) + b, M-tiled, bf16 MXU.
    M, K = x.shape
    Nout = w.shape[1]
    tm = min(_TM, M)
    return pl.pallas_call(
        functools.partial(_mm_kernel, act=act),
        out_shape=jax.ShapeDtypeStruct((M, Nout), out_dtype),
        grid=(pl.cdiv(M, tm),),
        in_specs=[pl.BlockSpec((tm, K), lambda i: (i, 0)),
                  pl.BlockSpec((K, Nout), lambda i: (0, 0)),
                  pl.BlockSpec((1, Nout), lambda i: (0, 0))],
        out_specs=pl.BlockSpec((tm, Nout), lambda i: (i, 0)),
        compiler_params=_parallel(1),
    )(x.astype(jnp.bfloat16), w, b)


def corr_volume(f1, f2, N, HW):
    # (N, HW, C) x (N, HW, C) -> (N, HW, HW) correlation volume, bf16 output.
    C = f1.shape[-1]
    scale = 1.0 / (float(C) ** 0.5)
    f1r = f1.reshape(N, HW, C)
    f2t = jnp.transpose(f2.reshape(N, HW, C), (0, 2, 1))     # (N, C, HW)
    tr = min(_TR, HW)
    return pl.pallas_call(
        functools.partial(_corr_kernel, scale=scale),
        out_shape=jax.ShapeDtypeStruct((N, HW, HW), jnp.bfloat16),
        grid=(N, pl.cdiv(HW, tr)),
        in_specs=[pl.BlockSpec((1, tr, C), lambda n, r: (n, r, 0)),
                  pl.BlockSpec((1, C, HW), lambda n, r: (n, 0, 0))],
        out_specs=pl.BlockSpec((1, tr, HW), lambda n, r: (n, r, 0)),
        compiler_params=pltpu.CompilerParams(
            dimension_semantics=("parallel", "parallel"),
            vmem_limit_bytes=_CORR_VMEM),
        cost_estimate=pl.CostEstimate(
            flops=int(2 * N * HW * HW * C), transcendentals=0,
            bytes_accessed=int(2 * N * HW * C * 2 + N * HW * HW * 2)),
    )(f1r, f2t)


def dual_softmax_corr(f1, f2, N, HW):
    # softCorrMap = softmax(C, dim=2) * softmax(C, dim=1), C = f1 f2^T / sqrt(C).
    # Streaming / row-tiled: ONE fused stats pass (online column stats) + one final pass.
    C = f1.shape[-1]
    scale = 1.0 / (float(C) ** 0.5)
    f1r = f1.reshape(N, HW, C)
    f2t = jnp.transpose(f2.reshape(N, HW, C), (0, 2, 1))     # (N, C, HW)
    tr = min(_TR, HW)
    R = pl.cdiv(HW, tr)

    rmax, rsum, cmax, csum = pl.pallas_call(
        functools.partial(_corr_stats_kernel, scale=scale, hw=HW),
        out_shape=(jax.ShapeDtypeStruct((N, HW, 1), jnp.float32),
                   jax.ShapeDtypeStruct((N, HW, 1), jnp.float32),
                   jax.ShapeDtypeStruct((N, 1, HW), jnp.float32),
                   jax.ShapeDtypeStruct((N, 1, HW), jnp.float32)),
        grid=(N, R),
        in_specs=[pl.BlockSpec((1, tr, C), lambda n, r: (n, r, 0)),
                  pl.BlockSpec((1, C, HW), lambda n, r: (n, 0, 0))],
        out_specs=(pl.BlockSpec((1, tr, 1), lambda n, r: (n, r, 0)),
                   pl.BlockSpec((1, tr, 1), lambda n, r: (n, r, 0)),
                   pl.BlockSpec((1, 1, HW), lambda n, r: (n, 0, 0)),     # accumulator
                   pl.BlockSpec((1, 1, HW), lambda n, r: (n, 0, 0))),    # accumulator
        compiler_params=pltpu.CompilerParams(
            dimension_semantics=("parallel", "arbitrary"),
            vmem_limit_bytes=_CORR_VMEM),
        cost_estimate=pl.CostEstimate(
            flops=int(2 * N * HW * HW * C),
            transcendentals=int(2 * N * HW * HW),
            bytes_accessed=int(2 * N * HW * C * 2 + 4 * N * HW * 4)),
    )(f1r, f2t)

    return pl.pallas_call(
        functools.partial(_dual_softmax_kernel, scale=scale),
        out_shape=jax.ShapeDtypeStruct((N, HW, HW), jnp.bfloat16),       # bf16 store
        grid=(N, R),
        in_specs=[pl.BlockSpec((1, tr, C), lambda n, r: (n, r, 0)),
                  pl.BlockSpec((1, C, HW), lambda n, r: (n, 0, 0)),
                  pl.BlockSpec((1, tr, 1), lambda n, r: (n, r, 0)),
                  pl.BlockSpec((1, tr, 1), lambda n, r: (n, r, 0)),
                  pl.BlockSpec((1, 1, HW), lambda n, r: (n, 0, 0)),
                  pl.BlockSpec((1, 1, HW), lambda n, r: (n, 0, 0))],
        out_specs=pl.BlockSpec((1, tr, HW), lambda n, r: (n, r, 0)),
        compiler_params=pltpu.CompilerParams(
            dimension_semantics=("parallel", "parallel"),
            vmem_limit_bytes=_CORR_VMEM),
        cost_estimate=pl.CostEstimate(
            flops=int(2 * N * HW * HW * C + 4 * N * HW * HW),
            transcendentals=int(N * HW * HW),
            bytes_accessed=int(2 * N * HW * C * 2 + N * HW * HW * 2)),
    )(f1r, f2t, rmax, rsum, cmax, csum)


def sk_update(params, motion_in, inp_b, net_b, M):
    tm = min(_TM, M)
    nblk = lambda i: (i, 0)
    wblk = lambda i: (0, 0)
    net_new, df = pl.pallas_call(
        _sk_update_kernel,
        out_shape=(jax.ShapeDtypeStruct((M, 128), jnp.bfloat16),
                   jax.ShapeDtypeStruct((M, 128), jnp.float32)),
        grid=(pl.cdiv(M, tm),),
        in_specs=[pl.BlockSpec((tm, 128), nblk),    # motion_in = [corr|flow|0]
                  pl.BlockSpec((tm, 128), nblk),    # inp
                  pl.BlockSpec((tm, 128), nblk),    # net
                  pl.BlockSpec((128, 128), wblk),   # enc_w  (packed)
                  pl.BlockSpec((1, 128), wblk),
                  pl.BlockSpec((256, 128), wblk),   # agg_w  (packed)
                  pl.BlockSpec((1, 128), wblk),
                  pl.BlockSpec((512, 128), wblk),   # gru_w  (packed)
                  pl.BlockSpec((1, 128), wblk),
                  pl.BlockSpec((128, 128), wblk),   # fh_w   (lane-padded)
                  pl.BlockSpec((1, 128), wblk)],
        out_specs=(pl.BlockSpec((tm, 128), nblk),
                   pl.BlockSpec((tm, 128), nblk)),
        compiler_params=_parallel(1),
    )(motion_in, inp_b, net_b,
      params["enc_w"], params["enc_b"],
      params["agg_w"], params["agg_b"],
      params["gru_w"], params["gru_b"],
      params["fh_w"], params["fh_b"])
    return net_new, df[:, :2]


def mask_convex_upsample(params, net_b, flow, N, H, W):
    # Fused SKUpdate mask head (x0.25) + GAFlow.upsample_flow convex combination;
    # the (M, 9*64) mask never leaves VMEM.
    M = N * H * W
    # TODO(synk): im2col still built wrapper-side; an in-kernel halo-DMA 3x3 conv
    # would remove this extra ~9x HBM pass.
    x = net_b.reshape(N, H, W, 128)
    xp = jnp.pad(x, ((0, 0), (1, 1), (1, 1), (0, 0)))
    cols = [xp[:, ky:ky + H, kx:kx + W, :] for ky in range(3) for kx in range(3)]
    xcol = jnp.concatenate(cols, axis=-1).reshape(M, 9 * 128)

    # F.unfold(8*flow, [3,3], padding=1) taps, channels interleaved as (k, c).
    fp = jnp.pad(8.0 * flow, ((0, 0), (1, 1), (1, 1), (0, 0)))          # (N,H+2,W+2,2)
    taps = [fp[:, ky:ky + H, kx:kx + W, :] for ky in range(3) for kx in range(3)]
    flows = jnp.concatenate(taps, axis=-1).reshape(M, 18)               # (M, 9*2)

    tm = min(_TM_UP, M)
    out = pl.pallas_call(
        _mask_up_kernel,
        out_shape=jax.ShapeDtypeStruct((M, 256), jnp.float32),
        grid=(pl.cdiv(M, tm),),
        in_specs=[pl.BlockSpec((tm, 1152), lambda i: (i, 0)),
                  pl.BlockSpec((tm, 18), lambda i: (i, 0)),
                  pl.BlockSpec((1152, 256), lambda i: (0, 0)),
                  pl.BlockSpec((1, 256), lambda i: (0, 0)),
                  pl.BlockSpec((256, 1152), lambda i: (0, 0)),
                  pl.BlockSpec((1, 1152), lambda i: (0, 0))],
        out_specs=pl.BlockSpec((tm, 256), lambda i: (i, 0)),
        compiler_params=_parallel(1),
        cost_estimate=pl.CostEstimate(
            flops=int(2 * M * 1152 * 256 + 2 * M * 256 * 1152),
            transcendentals=int(M * 1152),
            bytes_accessed=int(M * 1152 * 2 + M * 18 * 4 + M * 256 * 4)),
    )(xcol, flows, params["mask1_w"], params["mask1_b"],
      params["mask2_w"], params["mask2_b"])

    out = out.reshape(N, H, W, 2, 128)[..., :64].reshape(N, H, W, 2, 8, 8)
    out = jnp.transpose(out, (0, 3, 1, 4, 2, 5))                        # (N,2,H,8,W,8)
    return out.reshape(N, 2, 8 * H, 8 * W)


# ----------------------------------------------------------------------------
# Plain-JAX helpers (glue)
# ----------------------------------------------------------------------------

def coords_grid(batch, ht, wd):
    ys, xs = jnp.meshgrid(jnp.arange(ht, dtype=jnp.float32),
                          jnp.arange(wd, dtype=jnp.float32), indexing="ij")
    coords = jnp.stack([xs, ys], axis=-1)                   # (H, W, 2): (x, y)
    return jnp.broadcast_to(coords[None], (batch, ht, wd, 2))


def corr_lookup(corr_vol, coords, H, W, r=4):
    # TODO(synk): CorrBlock (4-level pyramid + bilinear grid_sample) not provided;
    # single-level nearest-neighbour (2r+1)^2 window lookup via one XLA gather.
    N = coords.shape[0]
    HW = H * W
    cx = jnp.round(coords[..., 0]).astype(jnp.int32).reshape(N, HW)
    cy = jnp.round(coords[..., 1]).astype(jnp.int32).reshape(N, HW)
    dy, dx = jnp.meshgrid(jnp.arange(-r, r + 1), jnp.arange(-r, r + 1), indexing="ij")
    dy = dy.reshape(-1)
    dx = dx.reshape(-1)
    yy = jnp.clip(cy[:, :, None] + dy[None, None, :], 0, H - 1)
    xx = jnp.clip(cx[:, :, None] + dx[None, None, :], 0, W - 1)
    idx = yy * W + xx                                        # (N, HW, 81)
    samp = jnp.take_along_axis(corr_vol, idx, axis=2)        # (N, HW, 81) bf16
    return samp.reshape(N * HW, 81)


# ----------------------------------------------------------------------------
# GAFlow forward
# ----------------------------------------------------------------------------

def gaflow_forward(params, image1, image2, iters=3):
    N, _, Hi, Wi = image1.shape
    H, W = Hi // 8, Wi // 8
    HW = H * W
    M = N * HW

    img1 = jnp.transpose(2.0 * image1 - 1.0, (0, 2, 3, 1))   # single NCHW->NHWC
    img2 = jnp.transpose(2.0 * image2 - 1.0, (0, 2, 3, 1))

    def s2d(img):                                            # (N,Hi,Wi,3) -> (M,192) bf16
        x = img.reshape(N, H, 8, W, 8, 3)
        x = jnp.transpose(x, (0, 1, 3, 2, 4, 5)).reshape(M, 192)
        return x.astype(jnp.bfloat16)

    x1 = s2d(img1)
    x2 = s2d(img2)

    # TODO(synk): fnet (BasicConvEncoder+POLAUpdate) / cnet (BasicEncoder) / GCL
    # sources not provided; substituted with space-to-depth(8) + Pallas projections.
    fmap1 = mm(x1, params["fnet_w"], params["fnet_b"], act="relu", out_dtype=jnp.bfloat16)
    fmap2 = mm(x2, params["fnet_w"], params["fnet_b"], act="relu", out_dtype=jnp.bfloat16)
    gcl1 = mm(fmap1, params["gcl_w"], params["gcl_b"], out_dtype=jnp.bfloat16)
    gcl2 = mm(fmap2, params["gcl_w"], params["gcl_b"], out_dtype=jnp.bfloat16)
    cnet = mm(x1, params["cnet_w"], params["cnet_b"], act="tanh_relu", out_dtype=jnp.bfloat16)
    net = cnet[:, :128]                                      # tanh'd hidden state
    inp = cnet[:, 128:]                                      # relu'd context

    # correlation volume (corr only) from GCL features
    corr_vol = corr_volume(gcl1, gcl2, N, HW)                # (N, HW, HW) bf16
    # sintel branch: global correlation + dual softmax from fnet features
    softCorrMap = dual_softmax_corr(fmap1, fmap2, N, HW)     # (N, HW, HW) bf16

    coords0 = coords_grid(N, H, W)
    coords1 = coords_grid(N, H, W)

    flow_predictions = []
    for _itr in range(iters):
        corr = corr_lookup(corr_vol, coords1, H, W, r=4)     # (M, 81)
        flow = coords1 - coords0                             # (N, H, W, 2)
        motion_in = jnp.concatenate(
            [corr, flow.reshape(M, 2).astype(jnp.bfloat16),
             jnp.zeros((M, 45), jnp.bfloat16)], axis=-1)     # packed (M, 128)
        net, dflow = sk_update(params, motion_in, inp, net, M)
        coords1 = coords1 + dflow.reshape(N, H, W, 2)
        flow_up = mask_convex_upsample(params, net, coords1 - coords0, N, H, W)
        flow_predictions.append(flow_up)

    return flow_predictions, softCorrMap


# ----------------------------------------------------------------------------
# Main
# ----------------------------------------------------------------------------

if __name__ == "__main__":
    key = jax.random.PRNGKey(0)
    keys = jax.random.split(key, 20)

    def _init(k, shape, fan_in):
        w = (1.0 / jnp.sqrt(jnp.float32(fan_in))) * jax.random.normal(
            k, shape, dtype=jnp.float32)
        return w.astype(jnp.bfloat16)

    def _bias(c):
        return jnp.zeros((1, c), jnp.float32)

    # flow head (128 -> 2), lane-padded to 128 output columns
    fh_w2 = _init(keys[9], (128, 2), 128).astype(jnp.float32)
    fh_w = jnp.pad(fh_w2, ((0, 0), (0, 126))).astype(jnp.bfloat16)

    # motion encoder: packed [corr(81) | flow(2) | 0(45)] -> 128
    enc_wc = _init(keys[3], (81, 128), 83)
    enc_wf = _init(keys[4], (2, 128), 83)
    enc_w = jnp.concatenate([enc_wc, enc_wf, jnp.zeros((45, 128), jnp.bfloat16)], axis=0)

    # aggregator: packed [inp | mf] -> 128 ; GRU: packed [net | inp | mf | mfg] -> 128
    agg_w = jnp.concatenate([_init(keys[5], (128, 128), 256),
                             _init(keys[6], (128, 128), 256)], axis=0)
    gru_w = jnp.concatenate([_init(keys[7], (128, 128), 512),
                             _init(keys[8], (128, 128), 512),
                             _init(keys[10], (128, 128), 512),
                             _init(keys[11], (128, 128), 512)], axis=0)

    # mask head: Conv2d(128,256,3) -> ReLU -> Conv2d(256,576,1); second conv's 576
    # output columns padded to 9 x 128 so each softmax tap is 128-lane aligned.
    mask2_w_raw = _init(keys[13], (256, 576), 256)
    mask2_w = jnp.pad(mask2_w_raw.reshape(256, 9, 64),
                      ((0, 0), (0, 0), (0, 64))).reshape(256, 1152)

    params = {
        "fnet_w": _init(keys[0], (192, 256), 192), "fnet_b": _bias(256),
        "gcl_w": _init(keys[1], (256, 256), 256), "gcl_b": _bias(256),
        "cnet_w": _init(keys[2], (192, 256), 192), "cnet_b": _bias(256),
        "enc_w": enc_w, "enc_b": _bias(128),
        "agg_w": agg_w, "agg_b": _bias(128),
        "gru_w": gru_w, "gru_b": _bias(128),
        "fh_w": fh_w, "fh_b": _bias(128),
        "mask1_w": _init(keys[12], (1152, 256), 9 * 128), "mask1_b": _bias(256),
        "mask2_w": mask2_w, "mask2_b": _bias(1152),
    }

    image1 = jax.random.uniform(keys[18], (2, 3, 64, 64), dtype=jnp.float32)
    image2 = jax.random.uniform(keys[19], (2, 3, 64, 64), dtype=jnp.float32)

    fwd = jax.jit(gaflow_forward, static_argnames=("iters",))
    flow_preds, softCorrMap = fwd(params, image1, image2, iters=3)
    jax.block_until_ready(flow_preds[-1])
    jax.block_until_ready(softCorrMap)

    assert flow_preds[-1].shape == (2, 2, 64, 64)
    assert softCorrMap.shape == (2, 64, 64)
    print("KERNEL_OK")
</pallas_src>

<mosaic_0001>
module attributes {stable_mosaic.version = 11 : i64} {
  func.func @_mm_kernel(%arg0: i32, %arg1: memref<128x192xbf16, #tpu.memory_space<vmem>>, %arg2: memref<192x256xbf16, #tpu.memory_space<vmem>>, %arg3: memref<1x256xf32, #tpu.memory_space<vmem>>, %arg4: memref<128x256xbf16, #tpu.memory_space<vmem>>) attributes {dimension_semantics = [#tpu.dimension_semantics<parallel>], iteration_bounds = array<i64: 1>, scalar_prefetch = 0 : i64, scratch_operands = 0 : i64, tpu.core_type = #tpu.core_type<tc>, window_params = [{transform_indices = @transform_0, window_bounds = array<i64: 128, 192>}, {pipeline_mode = #tpu.pipeline_mode<synchronous>, transform_indices = @transform_1, window_bounds = array<i64: 192, 256>}, {pipeline_mode = #tpu.pipeline_mode<synchronous>, transform_indices = @transform_2, window_bounds = array<i64: 1, 256>}, {transform_indices = @transform_3, window_bounds = array<i64: 128, 256>}]} {
    %c0 = arith.constant 0 : index
    %c0_0 = arith.constant 0 : index
    %0 = vector.load %arg1[%c0, %c0_0] : memref<128x192xbf16, #tpu.memory_space<vmem>>, vector<128x192xbf16>
    %c0_1 = arith.constant 0 : index
    %c0_2 = arith.constant 0 : index
    %1 = vector.load %arg2[%c0_1, %c0_2] : memref<192x256xbf16, #tpu.memory_space<vmem>>, vector<192x256xbf16>
    %cst = arith.constant dense<0.000000e+00> : vector<128x256xf32>
    %2 = tpu.matmul %0, %1, %cst {dimension_numbers = #tpu.dot_dimension_numbers<[1], [0], [0], [1], [0, 0, 1, 1], [], []>} : vector<128x192xbf16>, vector<192x256xbf16>, vector<128x256xf32> -> vector<128x256xf32>
    %c0_3 = arith.constant 0 : index
    %c0_4 = arith.constant 0 : index
    %3 = vector.load %arg3[%c0_3, %c0_4] : memref<1x256xf32, #tpu.memory_space<vmem>>, vector<1x256xf32>
    %4 = vector.broadcast %3 : vector<1x256xf32> to vector<128x256xf32>
    %5 = arith.addf %2, %4 : vector<128x256xf32>
    %cst_5 = arith.constant 0.000000e+00 : f32
    %6 = vector.broadcast %cst_5 : f32 to vector<128x256xf32>
    %7 = arith.maximumf %5, %6 : vector<128x256xf32>
    %8 = arith.truncf %7 : vector<128x256xf32> to vector<128x256xbf16>
    %c0_6 = arith.constant 0 : index
    %c0_7 = arith.constant 0 : index
    %9 = vector.load %arg4[%c0_6, %c0_7] : memref<128x256xbf16, #tpu.memory_space<vmem>>, vector<128x256xbf16>
    tpu.vector_store %arg4[%c0_6, %c0_7], %8 {strides = array<i32>} : memref<128x256xbf16, #tpu.memory_space<vmem>>, vector<128x256xbf16>,
    return
  }
  func.func @transform_0(%arg0: i32) -> (i32, i32) {
    %c0_i32 = arith.constant 0 : i32
    %c0_i32_0 = arith.constant 0 : i32
    return %arg0, %c0_i32 : i32, i32
  }
  func.func @transform_1(%arg0: i32) -> (i32, i32) {
    %c0_i32 = arith.constant 0 : i32
    %c0_i32_0 = arith.constant 0 : i32
    %c0_i32_1 = arith.constant 0 : i32
    return %c0_i32, %c0_i32_0 : i32, i32
  }
  func.func @transform_2(%arg0: i32) -> (i32, i32) {
    %c0_i32 = arith.constant 0 : i32
    %c0_i32_0 = arith.constant 0 : i32
    %c0_i32_1 = arith.constant 0 : i32
    return %c0_i32, %c0_i32_0 : i32, i32
  }
  func.func @transform_3(%arg0: i32) -> (i32, i32) {
    %c0_i32 = arith.constant 0 : i32
    %c0_i32_0 = arith.constant 0 : i32
    return %arg0, %c0_i32 : i32, i32
  }
}

module attributes {stable_mosaic.version = 11 : i64} {
  func.func @_mm_kernel(%arg0: i32, %arg1: memref<128x256xbf16, #tpu.memory_space<vmem>>, %arg2: memref<256x256xbf16, #tpu.memory_space<vmem>>, %arg3: memref<1x256xf32, #tpu.memory_space<vmem>>, %arg4: memref<128x256xbf16, #tpu.memory_space<vmem>>) attributes {dimension_semantics = [#tpu.dimension_semantics<parallel>], iteration_bounds = array<i64: 1>, scalar_prefetch = 0 : i64, scratch_operands = 0 : i64, tpu.core_type = #tpu.core_type<tc>, window_params = [{transform_indices = @transform_0, window_bounds = array<i64: 128, 256>}, {pipeline_mode = #tpu.pipeline_mode<synchronous>, transform_indices = @transform_1, window_bounds = array<i64: 256, 256>}, {pipeline_mode = #tpu.pipeline_mode<synchronous>, transform_indices = @transform_2, window_bounds = array<i64: 1, 256>}, {transform_indices = @transform_3, window_bounds = array<i64: 128, 256>}]} {
    %c0 = arith.constant 0 : index
    %c0_0 = arith.constant 0 : index
    %0 = vector.load %arg1[%c0, %c0_0] : memref<128x256xbf16, #tpu.memory_space<vmem>>, vector<128x256xbf16>
    %c0_1 = arith.constant 0 : index
    %c0_2 = arith.constant 0 : index
    %1 = vector.load %arg2[%c0_1, %c0_2] : memref<256x256xbf16, #tpu.memory_space<vmem>>, vector<256x256xbf16>
    %cst = arith.constant dense<0.000000e+00> : vector<128x256xf32>
    %2 = tpu.matmul %0, %1, %cst {dimension_numbers = #tpu.dot_dimension_numbers<[1], [0], [0], [1], [0, 0, 1, 1], [], []>} : vector<128x256xbf16>, vector<256x256xbf16>, vector<128x256xf32> -> vector<128x256xf32>
    %c0_3 = arith.constant 0 : index
    %c0_4 = arith.constant 0 : index
    %3 = vector.load %arg3[%c0_3, %c0_4] : memref<1x256xf32, #tpu.memory_space<vmem>>, vector<1x256xf32>
    %4 = vector.broadcast %3 : vector<1x256xf32> to vector<128x256xf32>
    %5 = arith.addf %2, %4 : vector<128x256xf32>
    %6 = arith.truncf %5 : vector<128x256xf32> to vector<128x256xbf16>
    %c0_5 = arith.constant 0 : index
    %c0_6 = arith.constant 0 : index
    %7 = vector.load %arg4[%c0_5, %c0_6] : memref<128x256xbf16, #tpu.memory_space<vmem>>, vector<128x256xbf16>
    tpu.vector_store %arg4[%c0_5, %c0_6], %6 {strides = array<i32>} : memref<128x256xbf16, #tpu.memory_space<vmem>>, vector<128x256xbf16>,
    return
  }
  func.func @transform_0(%arg0: i32) -> (i32, i32) {
    %c0_i32 = arith.constant 0 : i32
    %c0_i32_0 = arith.constant 0 : i32
    return %arg0, %c0_i32 : i32, i32
  }
  func.func @transform_1(%arg0: i32) -> (i32, i32) {
    %c0_i32 = arith.constant 0 : i32
    %c0_i32_0 = arith.constant 0 : i32
    %c0_i32_1 = arith.constant 0 : i32
    return %c0_i32, %c0_i32_0 : i32, i32
  }
  func.func @transform_2(%arg0: i32) -> (i32, i32) {
    %c0_i32 = arith.constant 0 : i32
    %c0_i32_0 = arith.constant 0 : i32
    %c0_i32_1 = arith.constant 0 : i32
    return %c0_i32, %c0_i32_0 : i32, i32
  }
  func.func @transform_3(%arg0: i32) -> (i32, i32) {
    %c0_i32 = arith.constant 0 : i32
    %c0_i32_0 = arith.constant 0 : i32
    return %arg0, %c0_i32 : i32, i32
  }
}

module attributes {stable_mosaic.version = 11 : i64} {
  func.func @_corr_kernel(%arg0: i32, %arg1: i32, %arg2: memref<1x64x256xbf16, #tpu.memory_space<vmem>>, %arg3: memref<1x256x64xbf16, #tpu.memory_space<vmem>>, %arg4: memref<1x64x64xbf16, #tpu.memory_space<vmem>>) attributes {dimension_semantics = [#tpu.dimension_semantics<parallel>, #tpu.dimension_semantics<parallel>], iteration_bounds = array<i64: 2, 1>, scalar_prefetch = 0 : i64, scratch_operands = 0 : i64, tpu.core_type = #tpu.core_type<tc>, window_params = [{transform_indices = @transform_0, window_bounds = array<i64: 1, 64, 256>}, {transform_indices = @transform_1, window_bounds = array<i64: 1, 256, 64>}, {transform_indices = @transform_2, window_bounds = array<i64: 1, 64, 64>}]} {
    %c0 = arith.constant 0 : index
    %c0_0 = arith.constant 0 : index
    %c0_1 = arith.constant 0 : index
    %0 = vector.load %arg2[%c0, %c0_0, %c0_1] : memref<1x64x256xbf16, #tpu.memory_space<vmem>>, vector<1x64x256xbf16>
    %1 = vector.shape_cast %0 : vector<1x64x256xbf16> to vector<64x256xbf16>
    %c0_2 = arith.constant 0 : index
    %c0_3 = arith.constant 0 : index
    %c0_4 = arith.constant 0 : index
    %2 = vector.load %arg3[%c0_2, %c0_3, %c0_4] : memref<1x256x64xbf16, #tpu.memory_space<vmem>>, vector<1x256x64xbf16>
    %3 = vector.shape_cast %2 : vector<1x256x64xbf16> to vector<256x64xbf16>
    %cst = arith.constant dense<0.000000e+00> : vector<64x64xf32>
    %4 = tpu.matmul %1, %3, %cst {dimension_numbers = #tpu.dot_dimension_numbers<[1], [0], [0], [1], [0, 0, 1, 1], [], []>} : vector<64x256xbf16>, vector<256x64xbf16>, vector<64x64xf32> -> vector<64x64xf32>
    %cst_5 = arith.constant 6.250000e-02 : f32
    %5 = vector.broadcast %cst_5 : f32 to vector<64x64xf32>
    %6 = arith.mulf %4, %5 : vector<64x64xf32>
    %7 = arith.truncf %6 : vector<64x64xf32> to vector<64x64xbf16>
    %c0_6 = arith.constant 0 : index
    %c0_7 = arith.constant 0 : index
    %c0_8 = arith.constant 0 : index
    %8 = vector.load %arg4[%c0_6, %c0_7, %c0_8] : memref<1x64x64xbf16, #tpu.memory_space<vmem>>, vector<1x64x64xbf16>
    %9 = vector.shape_cast %8 : vector<1x64x64xbf16> to vector<64x64xbf16>
    %10 = vector.shape_cast %7 : vector<64x64xbf16> to vector<1x64x64xbf16>
    tpu.vector_store %arg4[%c0_6, %c0_7, %c0_8], %10 {strides = array<i32>} : memref<1x64x64xbf16, #tpu.memory_space<vmem>>, vector<1x64x64xbf16>,
    return
  }
  func.func @transform_0(%arg0: i32, %arg1: i32) -> (i32, i32, i32) {
    %c0_i32 = arith.constant 0 : i32
    %c0_i32_0 = arith.constant 0 : i32
    return %arg0, %arg1, %c0_i32 : i32, i32, i32
  }
  func.func @transform_1(%arg0: i32, %arg1: i32) -> (i32, i32, i32) {
    %c0_i32 = arith.constant 0 : i32
    %c0_i32_0 = arith.constant 0 : i32
    %c0_i32_1 = arith.constant 0 : i32
    return %arg0, %c0_i32, %c0_i32_0 : i32, i32, i32
  }
  func.func @transform_2(%arg0: i32, %arg1: i32) -> (i32, i32, i32) {
    %c0_i32 = arith.constant 0 : i32
    %c0_i32_0 = arith.constant 0 : i32
    return %arg0, %arg1, %c0_i32 : i32, i32, i32
  }
}

module attributes {stable_mosaic.version = 11 : i64} {
  func.func @_mm_kernel(%arg0: i32, %arg1: memref<128x192xbf16, #tpu.memory_space<vmem>>, %arg2: memref<192x256xbf16, #tpu.memory_space<vmem>>, %arg3: memref<1x256xf32, #tpu.memory_space<vmem>>, %arg4: memref<128x256xbf16, #tpu.memory_space<vmem>>) attributes {dimension_semantics = [#tpu.dimension_semantics<parallel>], iteration_bounds = array<i64: 1>, scalar_prefetch = 0 : i64, scratch_operands = 0 : i64, tpu.core_type = #tpu.core_type<tc>, window_params = [{transform_indices = @transform_0, window_bounds = array<i64: 128, 192>}, {pipeline_mode = #tpu.pipeline_mode<synchronous>, transform_indices = @transform_1, window_bounds = array<i64: 192, 256>}, {pipeline_mode = #tpu.pipeline_mode<synchronous>, transform_indices = @transform_2, window_bounds = array<i64: 1, 256>}, {transform_indices = @transform_3, window_bounds = array<i64: 128, 256>}]} {
    %c0 = arith.constant 0 : index
    %c0_0 = arith.constant 0 : index
    %0 = vector.load %arg1[%c0, %c0_0] : memref<128x192xbf16, #tpu.memory_space<vmem>>, vector<128x192xbf16>
    %c0_1 = arith.constant 0 : index
    %c0_2 = arith.constant 0 : index
    %1 = vector.load %arg2[%c0_1, %c0_2] : memref<192x256xbf16, #tpu.memory_space<vmem>>, vector<192x256xbf16>
    %cst = arith.constant dense<0.000000e+00> : vector<128x256xf32>
    %2 = tpu.matmul %0, %1, %cst {dimension_numbers = #tpu.dot_dimension_numbers<[1], [0], [0], [1], [0, 0, 1, 1], [], []>} : vector<128x192xbf16>, vector<192x256xbf16>, vector<128x256xf32> -> vector<128x256xf32>
    %c0_3 = arith.constant 0 : index
    %c0_4 = arith.constant 0 : index
    %3 = vector.load %arg3[%c0_3, %c0_4] : memref<1x256xf32, #tpu.memory_space<vmem>>, vector<1x256xf32>
    %4 = vector.broadcast %3 : vector<1x256xf32> to vector<128x256xf32>
    %5 = arith.addf %2, %4 : vector<128x256xf32>
    %6 = vector.extract_strided_slice %5 {offsets = [0, 0], sizes = [128, 128], strides = [1, 1]} : vector<128x256xf32> to vector<128x128xf32>
    %7 = math.tanh %6 : vector<128x128xf32>
    %8 = arith.truncf %7 : vector<128x128xf32> to vector<128x128xbf16>
    %c0_5 = arith.constant 0 : index
    %c0_6 = arith.constant 0 : index
    %9 = vector.load %arg4[%c0_5, %c0_6] : memref<128x256xbf16, #tpu.memory_space<vmem>>, vector<128x128xbf16>
    tpu.vector_store %arg4[%c0_5, %c0_6], %8 {strides = array<i32>} : memref<128x256xbf16, #tpu.memory_space<vmem>>, vector<128x128xbf16>,
    %10 = vector.extract_strided_slice %5 {offsets = [0, 128], sizes = [128, 128], strides = [1, 1]} : vector<128x256xf32> to vector<128x128xf32>
    %cst_7 = arith.constant 0.000000e+00 : f32
    %11 = vector.broadcast %cst_7 : f32 to vector<128x128xf32>
    %12 = arith.maximumf %10, %11 : vector<128x128xf32>
    %13 = arith.truncf %12 : vector<128x128xf32> to vector<128x128xbf16>
    %c0_8 = arith.constant 0 : index
    %c128 = arith.constant 128 : index
    %14 = vector.load %arg4[%c0_8, %c128] : memref<128x256xbf16, #tpu.memory_space<vmem>>, vector<128x128xbf16>
    tpu.vector_store %arg4[%c0_8, %c128], %13 {strides = array<i32>} : memref<128x256xbf16, #tpu.memory_space<vmem>>, vector<128x128xbf16>,
    return
  }
  func.func @transform_0(%arg0: i32) -> (i32, i32) {
    %c0_i32 = arith.constant 0 : i32
    %c0_i32_0 = arith.constant 0 : i32
    return %arg0, %c0_i32 : i32, i32
  }
  func.func @transform_1(%arg0: i32) -> (i32, i32) {
    %c0_i32 = arith.constant 0 : i32
    %c0_i32_0 = arith.constant 0 : i32
    %c0_i32_1 = arith.constant 0 : i32
    return %c0_i32, %c0_i32_0 : i32, i32
  }
  func.func @transform_2(%arg0: i32) -> (i32, i32) {
    %c0_i32 = arith.constant 0 : i32
    %c0_i32_0 = arith.constant 0 : i32
    %c0_i32_1 = arith.constant 0 : i32
    return %c0_i32, %c0_i32_0 : i32, i32
  }
  func.func @transform_3(%arg0: i32) -> (i32, i32) {
    %c0_i32 = arith.constant 0 : i32
    %c0_i32_0 = arith.constant 0 : i32
    return %arg0, %c0_i32 : i32, i32
  }
}

module attributes {stable_mosaic.version = 11 : i64} {
  func.func @_sk_update_kernel(%arg0: i32, %arg1: memref<128x128xbf16, #tpu.memory_space<vmem>>, %arg2: memref<128x128xbf16, #tpu.memory_space<vmem>>, %arg3: memref<128x128xbf16, #tpu.memory_space<vmem>>, %arg4: memref<128x128xbf16, #tpu.memory_space<vmem>>, %arg5: memref<1x128xf32, #tpu.memory_space<vmem>>, %arg6: memref<256x128xbf16, #tpu.memory_space<vmem>>, %arg7: memref<1x128xf32, #tpu.memory_space<vmem>>, %arg8: memref<512x128xbf16, #tpu.memory_space<vmem>>, %arg9: memref<1x128xf32, #tpu.memory_space<vmem>>, %arg10: memref<128x128xbf16, #tpu.memory_space<vmem>>, %arg11: memref<1x128xf32, #tpu.memory_space<vmem>>, %arg12: memref<128x128xbf16, #tpu.memory_space<vmem>>, %arg13: memref<128x128xf32, #tpu.memory_space<vmem>>) attributes {dimension_semantics = [#tpu.dimension_semantics<parallel>], iteration_bounds = array<i64: 1>, scalar_prefetch = 0 : i64, scratch_operands = 0 : i64, tpu.core_type = #tpu.core_type<tc>, window_params = [{transform_indices = @transform_0, window_bounds = array<i64: 128, 128>}, {transform_indices = @transform_1, window_bounds = array<i64: 128, 128>}, {transform_indices = @transform_2, window_bounds = array<i64: 128, 128>}, {pipeline_mode = #tpu.pipeline_mode<synchronous>, transform_indices = @transform_3, window_bounds = array<i64: 128, 128>}, {pipeline_mode = #tpu.pipeline_mode<synchronous>, transform_indices = @transform_4, window_bounds = array<i64: 1, 128>}, {pipeline_mode = #tpu.pipeline_mode<synchronous>, transform_indices = @transform_5, window_bounds = array<i64: 256, 128>}, {pipeline_mode = #tpu.pipeline_mode<synchronous>, transform_indices = @transform_6, window_bounds = array<i64: 1, 128>}, {pipeline_mode = #tpu.pipeline_mode<synchronous>, transform_indices = @transform_7, window_bounds = array<i64: 512, 128>}, {pipeline_mode = #tpu.pipeline_mode<synchronous>, transform_indices = @transform_8, window_bounds = array<i64: 1, 128>}, {pipeline_mode = #tpu.pipeline_mode<synchronous>, transform_indices = @transform_9, window_bounds = array<i64: 128, 128>}, {pipeline_mode = #tpu.pipeline_mode<synchronous>, transform_indices = @transform_10, window_bounds = array<i64: 1, 128>}, {transform_indices = @transform_11, window_bounds = array<i64: 128, 128>}, {transform_indices = @transform_12, window_bounds = array<i64: 128, 128>}]} {
    %c0 = arith.constant 0 : index
    %c0_0 = arith.constant 0 : index
    %0 = vector.load %arg2[%c0, %c0_0] : memref<128x128xbf16, #tpu.memory_space<vmem>>, vector<128x128xbf16>
    %c0_1 = arith.constant 0 : index
    %c0_2 = arith.constant 0 : index
    %1 = vector.load %arg3[%c0_1, %c0_2] : memref<128x128xbf16, #tpu.memory_space<vmem>>, vector<128x128xbf16>
    %c0_3 = arith.constant 0 : index
    %c0_4 = arith.constant 0 : index
    %2 = vector.load %arg1[%c0_3, %c0_4] : memref<128x128xbf16, #tpu.memory_space<vmem>>, vector<128x128xbf16>
    %c0_5 = arith.constant 0 : index
    %c0_6 = arith.constant 0 : index
    %3 = vector.load %arg4[%c0_5, %c0_6] : memref<128x128xbf16, #tpu.memory_space<vmem>>, vector<128x128xbf16>
    %cst = arith.constant dense<0.000000e+00> : vector<128x128xf32>
    %4 = tpu.matmul %2, %3, %cst {dimension_numbers = #tpu.dot_dimension_numbers<[1], [0], [0], [1], [0, 0, 1, 1], [], []>} : vector<128x128xbf16>, vector<128x128xbf16>, vector<128x128xf32> -> vector<128x128xf32>
    %c0_7 = arith.constant 0 : index
    %c0_8 = arith.constant 0 : index
    %5 = vector.load %arg5[%c0_7, %c0_8] : memref<1x128xf32, #tpu.memory_space<vmem>>, vector<1x128xf32>
    %6 = vector.broadcast %5 : vector<1x128xf32> to vector<128x128xf32>
    %7 = arith.addf %4, %6 : vector<128x128xf32>
    %cst_9 = arith.constant 0.000000e+00 : f32
    %8 = vector.broadcast %cst_9 : f32 to vector<128x128xf32>
    %9 = arith.maximumf %7, %8 : vector<128x128xf32>
    %10 = arith.truncf %9 : vector<128x128xf32> to vector<128x128xbf16>
    %11 = tpu.concatenate %0, %10 in 1 : vector<128x128xbf16>, vector<128x128xbf16> -> vector<128x256xbf16>
    %c0_10 = arith.constant 0 : index
    %c0_11 = arith.constant 0 : index
    %12 = vector.load %arg6[%c0_10, %c0_11] : memref<256x128xbf16, #tpu.memory_space<vmem>>, vector<256x128xbf16>
    %cst_12 = arith.constant dense<0.000000e+00> : vector<128x128xf32>
    %13 = tpu.matmul %11, %12, %cst_12 {dimension_numbers = #tpu.dot_dimension_numbers<[1], [0], [0], [1], [0, 0, 1, 1], [], []>} : vector<128x256xbf16>, vector<256x128xbf16>, vector<128x128xf32> -> vector<128x128xf32>
    %c0_13 = arith.constant 0 : index
    %c0_14 = arith.constant 0 : index
    %14 = vector.load %arg7[%c0_13, %c0_14] : memref<1x128xf32, #tpu.memory_space<vmem>>, vector<1x128xf32>
    %15 = vector.broadcast %14 : vector<1x128xf32> to vector<128x128xf32>
    %16 = arith.addf %13, %15 : vector<128x128xf32>
    %cst_15 = arith.constant 0.000000e+00 : f32
    %17 = vector.broadcast %cst_15 : f32 to vector<128x128xf32>
    %18 = arith.maximumf %16, %17 : vector<128x128xf32>
    %19 = arith.truncf %18 : vector<128x128xf32> to vector<128x128xbf16>
    %20 = tpu.concatenate %1, %0, %10, %19 in 1 : vector<128x128xbf16>, vector<128x128xbf16>, vector<128x128xbf16>, vector<128x128xbf16> -> vector<128x512xbf16>
    %c0_16 = arith.constant 0 : index
    %c0_17 = arith.constant 0 : index
    %21 = vector.load %arg8[%c0_16, %c0_17] : memref<512x128xbf16, #tpu.memory_space<vmem>>, vector<512x128xbf16>
    %cst_18 = arith.constant dense<0.000000e+00> : vector<128x128xf32>
    %22 = tpu.matmul %20, %21, %cst_18 {dimension_numbers = #tpu.dot_dimension_numbers<[1], [0], [0], [1], [0, 0, 1, 1], [], []>} : vector<128x512xbf16>, vector<512x128xbf16>, vector<128x128xf32> -> vector<128x128xf32>
    %c0_19 = arith.constant 0 : index
    %c0_20 = arith.constant 0 : index
    %23 = vector.load %arg9[%c0_19, %c0_20] : memref<1x128xf32, #tpu.memory_space<vmem>>, vector<1x128xf32>
    %24 = vector.broadcast %23 : vector<1x128xf32> to vector<128x128xf32>
    %25 = arith.addf %22, %24 : vector<128x128xf32>
    %26 = math.tanh %25 : vector<128x128xf32>
    %27 = arith.truncf %26 : vector<128x128xf32> to vector<128x128xbf16>
    %c0_21 = arith.constant 0 : index
    %c0_22 = arith.constant 0 : index
    %28 = vector.load %arg12[%c0_21, %c0_22] : memref<128x128xbf16, #tpu.memory_space<vmem>>, vector<128x128xbf16>
    tpu.vector_store %arg12[%c0_21, %c0_22], %27 {strides = array<i32>} : memref<128x128xbf16, #tpu.memory_space<vmem>>, vector<128x128xbf16>,
    %29 = arith.truncf %26 : vector<128x128xf32> to vector<128x128xbf16>
    %c0_23 = arith.constant 0 : index
    %c0_24 = arith.constant 0 : index
    %30 = vector.load %arg10[%c0_23, %c0_24] : memref<128x128xbf16, #tpu.memory_space<vmem>>, vector<128x128xbf16>
    %cst_25 = arith.constant dense<0.000000e+00> : vector<128x128xf32>
    %31 = tpu.matmul %29, %30, %cst_25 {dimension_numbers = #tpu.dot_dimension_numbers<[1], [0], [0], [1], [0, 0, 1, 1], [], []>} : vector<128x128xbf16>, vector<128x128xbf16>, vector<128x128xf32> -> vector<128x128xf32>
    %c0_26 = arith.constant 0 : index
    %c0_27 = arith.constant 0 : index
    %32 = vector.load %arg11[%c0_26, %c0_27] : memref<1x128xf32, #tpu.memory_space<vmem>>, vector<1x128xf32>
    %33 = vector.broadcast %32 : vector<1x128xf32> to vector<128x128xf32>
    %34 = arith.addf %31, %33 : vector<128x128xf32>
    %c0_28 = arith.constant 0 : index
    %c0_29 = arith.constant 0 : index
    %35 = vector.load %arg13[%c0_28, %c0_29] : memref<128x128xf32, #tpu.memory_space<vmem>>, vector<128x128xf32>
    tpu.vector_store %arg13[%c0_28, %c0_29], %34 {strides = array<i32>} : memref<128x128xf32, #tpu.memory_space<vmem>>, vector<128x128xf32>,
    return
  }
  func.func @transform_0(%arg0: i32) -> (i32, i32) {
    %c0_i32 = arith.constant 0 : i32
    %c0_i32_0 = arith.constant 0 : i32
    return %arg0, %c0_i32 : i32, i32
  }
  func.func @transform_1(%arg0: i32) -> (i32, i32) {
    %c0_i32 = arith.constant 0 : i32
    %c0_i32_0 = arith.constant 0 : i32
    return %arg0, %c0_i32 : i32, i32
  }
  func.func @transform_2(%arg0: i32) -> (i32, i32) {
    %c0_i32 = arith.constant 0 : i32
    %c0_i32_0 = arith.constant 0 : i32
    return %arg0, %c0_i32 : i32, i32
  }
  func.func @transform_3(%arg0: i32) -> (i32, i32) {
    %c0_i32 = arith.constant 0 : i32
    %c0_i32_0 = arith.constant 0 : i32
    %c0_i32_1 = arith.constant 0 : i32
    return %c0_i32, %c0_i32_0 : i32, i32
  }
  func.func @transform_4(%arg0: i32) -> (i32, i32) {
    %c0_i32 = arith.constant 0 : i32
    %c0_i32_0 = arith.constant 0 : i32
    %c0_i32_1 = arith.constant 0 : i32
    return %c0_i32, %c0_i32_0 : i32, i32
  }
  func.func @transform_5(%arg0: i32) -> (i32, i32) {
    %c0_i32 = arith.constant 0 : i32
    %c0_i32_0 = arith.constant 0 : i32
    %c0_i32_1 = arith.constant 0 : i32
    return %c0_i32, %c0_i32_0 : i32, i32
  }
  func.func @transform_6(%arg0: i32) -> (i32, i32) {
    %c0_i32 = arith.constant 0 : i32
    %c0_i32_0 = arith.constant 0 : i32
    %c0_i32_1 = arith.constant 0 : i32
    return %c0_i32, %c0_i32_0 : i32, i32
  }
  func.func @transform_7(%arg0: i32) -> (i32, i32) {
    %c0_i32 = arith.constant 0 : i32
    %c0_i32_0 = arith.constant 0 : i32
    %c0_i32_1 = arith.constant 0 : i32
    return %c0_i32, %c0_i32_0 : i32, i32
  }
  func.func @transform_8(%arg0: i32) -> (i32, i32) {
    %c0_i32 = arith.constant 0 : i32
    %c0_i32_0 = arith.constant 0 : i32
    %c0_i32_1 = arith.constant 0 : i32
    return %c0_i32, %c0_i32_0 : i32, i32
  }
  func.func @transform_9(%arg0: i32) -> (i32, i32) {
    %c0_i32 = arith.constant 0 : i32
    %c0_i32_0 = arith.constant 0 : i32
    %c0_i32_1 = arith.constant 0 : i32
    return %c0_i32, %c0_i32_0 : i32, i32
  }
  func.func @transform_10(%arg0: i32) -> (i32, i32) {
    %c0_i32 = arith.constant 0 : i32
    %c0_i32_0 = arith.constant 0 : i32
    %c0_i32_1 = arith.constant 0 : i32
    return %c0_i32, %c0_i32_0 : i32, i32
  }
  func.func @transform_11(%arg0: i32) -> (i32, i32) {
    %c0_i32 = arith.constant 0 : i32
    %c0_i32_0 = arith.constant 0 : i32
    return %arg0, %c0_i32 : i32, i32
  }
  func.func @transform_12(%arg0: i32) -> (i32, i32) {
    %c0_i32 = arith.constant 0 : i32
    %c0_i32_0 = arith.constant 0 : i32
    return %arg0, %c0_i32 : i32, i32
  }
}

module attributes {stable_mosaic.version = 11 : i64} {
  func.func @_corr_stats_kernel(%arg0: i32, %arg1: i32, %arg2: memref<1x64x256xbf16, #tpu.memory_space<vmem>>, %arg3: memref<1x256x64xbf16, #tpu.memory_space<vmem>>, %arg4: memref<1x64x1xf32, #tpu.memory_space<vmem>>, %arg5: memref<1x64x1xf32, #tpu.memory_space<vmem>>, %arg6: memref<1x1x64xf32, #tpu.memory_space<vmem>>, %arg7: memref<1x1x64xf32, #tpu.memory_space<vmem>>) attributes {dimension_semantics = [#tpu.dimension_semantics<parallel>, #tpu.dimension_semantics<arbitrary>], iteration_bounds = array<i64: 2, 1>, scalar_prefetch = 0 : i64, scratch_operands = 0 : i64, tpu.core_type = #tpu.core_type<tc>, window_params = [{transform_indices = @transform_0, window_bounds = array<i64: 1, 64, 256>}, {transform_indices = @transform_1, window_bounds = array<i64: 1, 256, 64>}, {transform_indices = @transform_2, window_bounds = array<i64: 1, 64, 1>}, {transform_indices = @transform_3, window_bounds = array<i64: 1, 64, 1>}, {transform_indices = @transform_4, window_bounds = array<i64: 1, 1, 64>}, {transform_indices = @transform_5, window_bounds = array<i64: 1, 1, 64>}]} {
    %c0 = arith.constant 0 : index
    %c0_0 = arith.constant 0 : index
    %c0_1 = arith.constant 0 : index
    %0 = vector.load %arg2[%c0, %c0_0, %c0_1] : memref<1x64x256xbf16, #tpu.memory_space<vmem>>, vector<1x64x256xbf16>
    %1 = vector.shape_cast %0 : vector<1x64x256xbf16> to vector<64x256xbf16>
    %c0_2 = arith.constant 0 : index
    %c0_3 = arith.constant 0 : index
    %c0_4 = arith.constant 0 : index
    %2 = vector.load %arg3[%c0_2, %c0_3, %c0_4] : memref<1x256x64xbf16, #tpu.memory_space<vmem>>, vector<1x256x64xbf16>
    %3 = vector.shape_cast %2 : vector<1x256x64xbf16> to vector<256x64xbf16>
    %cst = arith.constant dense<0.000000e+00> : vector<64x64xf32>
    %4 = tpu.matmul %1, %3, %cst {dimension_numbers = #tpu.dot_dimension_numbers<[1], [0], [0], [1], [0, 0, 1, 1], [], []>} : vector<64x256xbf16>, vector<256x64xbf16>, vector<64x64xf32> -> vector<64x64xf32>
    %cst_5 = arith.constant 6.250000e-02 : f32
    %5 = vector.broadcast %cst_5 : f32 to vector<64x64xf32>
    %6 = arith.mulf %4, %5 : vector<64x64xf32>
    %cst_6 = arith.constant dense<0xFF800000> : vector<64xf32>
    %7 = vector.multi_reduction <maximumf>, %6, %cst_6 [1] : vector<64x64xf32> to vector<64xf32>
    %8 = vector.shape_cast %7 : vector<64xf32> to vector<64x1xf32>
    %c0_7 = arith.constant 0 : index
    %c0_8 = arith.constant 0 : index
    %c0_9 = arith.constant 0 : index
    %9 = vector.load %arg4[%c0_7, %c0_8, %c0_9] : memref<1x64x1xf32, #tpu.memory_space<vmem>>, vector<1x64x1xf32>
    %10 = vector.shape_cast %9 : vector<1x64x1xf32> to vector<64x1xf32>
    %11 = vector.shape_cast %8 : vector<64x1xf32> to vector<1x64x1xf32>
    tpu.vector_store %arg4[%c0_7, %c0_8, %c0_9], %11 {strides = array<i32>} : memref<1x64x1xf32, #tpu.memory_space<vmem>>, vector<1x64x1xf32>,
    %12 = vector.broadcast %8 : vector<64x1xf32> to vector<64x64xf32>
    %13 = arith.subf %6, %12 : vector<64x64xf32>
    %14 = math.exp %13 : vector<64x64xf32>
    %cst_10 = arith.constant dense<0.000000e+00> : vector<64xf32>
    %15 = vector.multi_reduction <add>, %14, %cst_10 [1] : vector<64x64xf32> to vector<64xf32>
    %16 = vector.shape_cast %15 : vector<64xf32> to vector<64x1xf32>
    %c0_11 = arith.constant 0 : index
    %c0_12 = arith.constant 0 : index
    %c0_13 = arith.constant 0 : index
    %17 = vector.load %arg5[%c0_11, %c0_12, %c0_13] : memref<1x64x1xf32, #tpu.memory_space<vmem>>, vector<1x64x1xf32>
    %18 = vector.shape_cast %17 : vector<1x64x1xf32> to vector<64x1xf32>
    %19 = vector.shape_cast %16 : vector<64x1xf32> to vector<1x64x1xf32>
    tpu.vector_store %arg5[%c0_11, %c0_12, %c0_13], %19 {strides = array<i32>} : memref<1x64x1xf32, #tpu.memory_space<vmem>>, vector<1x64x1xf32>,
    %20 = tpu.iota {dimensions = array<i32: 0>} : vector<64x1xi32>
    %c64_i32 = arith.constant 64 : i32
    %21 = arith.muli %arg1, %c64_i32 : i32
    %22 = vector.broadcast %21 : i32 to vector<64x1xi32>
    %23 = arith.addi %20, %22 : vector<64x1xi32>
    %c64_i32_14 = arith.constant 64 : i32
    %24 = vector.broadcast %c64_i32_14 : i32 to vector<64x1xi32>
    %25 = arith.cmpi slt, %23, %24 : vector<64x1xi32>
    %cst_15 = arith.constant 0xFF800000 : f32
    %26 = vector.shape_cast %25 : vector<64x1xi1> to vector<64x1xi1>
    %27 = vector.broadcast %26 : vector<64x1xi1> to vector<64x64xi1>
    %28 = vector.broadcast %cst_15 : f32 to vector<64x64xf32>
    %29 = arith.select %27, %6, %28 : vector<64x64xi1>, vector<64x64xf32>
    %cst_16 = arith.constant dense<0xFF800000> : vector<64xf32>
    %30 = vector.multi_reduction <maximumf>, %29, %cst_16 [0] : vector<64x64xf32> to vector<64xf32>
    %31 = vector.shape_cast %30 : vector<64xf32> to vector<1x64xf32>
    %32 = vector.broadcast %31 : vector<1x64xf32> to vector<64x64xf32>
    %33 = arith.subf %29, %32 : vector<64x64xf32>
    %34 = math.exp %33 : vector<64x64xf32>
    %cst_17 = arith.constant dense<0.000000e+00> : vector<64xf32>
    %35 = vector.multi_reduction <add>, %34, %cst_17 [0] : vector<64x64xf32> to vector<64xf32>
    %36 = vector.shape_cast %35 : vector<64xf32> to vector<1x64xf32>
    %c0_i32 = arith.constant 0 : i32
    %37 = arith.cmpi eq, %arg1, %c0_i32 : i32
    %38 = arith.extui %37 : i1 to i32
    %c0_i32_18 = arith.constant 0 : i32
    %39 = arith.cmpi ne, %38, %c0_i32_18 : i32
    scf.if %39 {
      %cst_31 = arith.constant 0xFF800000 : f32
      %58 = vector.broadcast %cst_31 : f32 to vector<1x64xf32>
      %c0_32 = arith.constant 0 : index
      %c0_33 = arith.constant 0 : index
      %c0_34 = arith.constant 0 : index
      %59 = vector.load %arg6[%c0_32, %c0_33, %c0_34] : memref<1x1x64xf32, #tpu.memory_space<vmem>>, vector<1x1x64xf32>
      %60 = vector.shape_cast %59 : vector<1x1x64xf32> to vector<1x64xf32>
      %61 = vector.shape_cast %58 : vector<1x64xf32> to vector<1x1x64xf32>
      tpu.vector_store %arg6[%c0_32, %c0_33, %c0_34], %61 {strides = array<i32>} : memref<1x1x64xf32, #tpu.memory_space<vmem>>, vector<1x1x64xf32>,
      %cst_35 = arith.constant 0.000000e+00 : f32
      %62 = vector.broadcast %cst_35 : f32 to vector<1x64xf32>
      %c0_36 = arith.constant 0 : index
      %c0_37 = arith.constant 0 : index
      %c0_38 = arith.constant 0 : index
      %63 = vector.load %arg7[%c0_36, %c0_37, %c0_38] : memref<1x1x64xf32, #tpu.memory_space<vmem>>, vector<1x1x64xf32>
      %64 = vector.shape_cast %63 : vector<1x1x64xf32> to vector<1x64xf32>
      %65 = vector.shape_cast %62 : vector<1x64xf32> to vector<1x1x64xf32>
      tpu.vector_store %arg7[%c0_36, %c0_37, %c0_38], %65 {strides = array<i32>} : memref<1x1x64xf32, #tpu.memory_space<vmem>>, vector<1x1x64xf32>,
    } else {
    }
    %c0_19 = arith.constant 0 : index
    %c0_20 = arith.constant 0 : index
    %c0_21 = arith.constant 0 : index
    %40 = vector.load %arg6[%c0_19, %c0_20, %c0_21] : memref<1x1x64xf32, #tpu.memory_space<vmem>>, vector<1x1x64xf32>
    %41 = vector.shape_cast %40 : vector<1x1x64xf32> to vector<1x64xf32>
    %c0_22 = arith.constant 0 : index
    %c0_23 = arith.constant 0 : index
    %c0_24 = arith.constant 0 : index
    %42 = vector.load %arg7[%c0_22, %c0_23, %c0_24] : memref<1x1x64xf32, #tpu.memory_space<vmem>>, vector<1x1x64xf32>
    %43 = vector.shape_cast %42 : vector<1x1x64xf32> to vector<1x64xf32>
    %44 = arith.maximumf %41, %31 : vector<1x64xf32>
    %45 = arith.subf %41, %44 : vector<1x64xf32>
    %46 = math.exp %45 : vector<1x64xf32>
    %47 = arith.mulf %43, %46 : vector<1x64xf32>
    %48 = arith.subf %31, %44 : vector<1x64xf32>
    %49 = math.exp %48 : vector<1x64xf32>
    %50 = arith.mulf %36, %49 : vector<1x64xf32>
    %51 = arith.addf %47, %50 : vector<1x64xf32>
    %c0_25 = arith.constant 0 : index
    %c0_26 = arith.constant 0 : index
    %c0_27 = arith.constant 0 : index
    %52 = vector.load %arg7[%c0_25, %c0_26, %c0_27] : memref<1x1x64xf32, #tpu.memory_space<vmem>>, vector<1x1x64xf32>
    %53 = vector.shape_cast %52 : vector<1x1x64xf32> to vector<1x64xf32>
    %54 = vector.shape_cast %51 : vector<1x64xf32> to vector<1x1x64xf32>
    tpu.vector_store %arg7[%c0_25, %c0_26, %c0_27], %54 {strides = array<i32>} : memref<1x1x64xf32, #tpu.memory_space<vmem>>, vector<1x1x64xf32>,
    %c0_28 = arith.constant 0 : index
    %c0_29 = arith.constant 0 : index
    %c0_30 = arith.constant 0 : index
    %55 = vector.load %arg6[%c0_28, %c0_29, %c0_30] : memref<1x1x64xf32, #tpu.memory_space<vmem>>, vector<1x1x64xf32>
    %56 = vector.shape_cast %55 : vector<1x1x64xf32> to vector<1x64xf32>
    %57 = vector.shape_cast %44 : vector<1x64xf32> to vector<1x1x64xf32>
    tpu.vector_store %arg6[%c0_28, %c0_29, %c0_30], %57 {strides = array<i32>} : memref<1x1x64xf32, #tpu.memory_space<vmem>>, vector<1x1x64xf32>,
    return
  }
  func.func @transform_0(%arg0: i32, %arg1: i32) -> (i32, i32, i32) {
    %c0_i32 = arith.constant 0 : i32
    %c0_i32_0 = arith.constant 0 : i32
    return %arg0, %arg1, %c0_i32 : i32, i32, i32
  }
  func.func @transform_1(%arg0: i32, %arg1: i32) -> (i32, i32, i32) {
    %c0_i32 = arith.constant 0 : i32
    %c0_i32_0 = arith.constant 0 : i32
    %c0_i32_1 = arith.constant 0 : i32
    return %arg0, %c0_i32, %c0_i32_0 : i32, i32, i32
  }
  func.func @transform_2(%arg0: i32, %arg1: i32) -> (i32, i32, i32) {
    %c0_i32 = arith.constant 0 : i32
    %c0_i32_0 = arith.constant 0 : i32
    return %arg0, %arg1, %c0_i32 : i32, i32, i32
  }
  func.func @transform_3(%arg0: i32, %arg1: i32) -> (i32, i32, i32) {
    %c0_i32 = arith.constant 0 : i32
    %c0_i32_0 = arith.constant 0 : i32
    return %arg0, %arg1, %c0_i32 : i32, i32, i32
  }
  func.func @transform_4(%arg0: i32, %arg1: i32) -> (i32, i32, i32) {
    %c0_i32 = arith.constant 0 : i32
    %c0_i32_0 = arith.constant 0 : i32
    %c0_i32_1 = arith.constant 0 : i32
    return %arg0, %c0_i32, %c0_i32_0 : i32, i32, i32
  }
  func.func @transform_5(%arg0: i32, %arg1: i32) -> (i32, i32, i32) {
    %c0_i32 = arith.constant 0 : i32
    %c0_i32_0 = arith.constant 0 : i32
    %c0_i32_1 = arith.constant 0 : i32
    return %arg0, %c0_i32, %c0_i32_0 : i32, i32, i32
  }
}

module attributes {stable_mosaic.version = 11 : i64} {
  func.func @_dual_softmax_kernel(%arg0: i32, %arg1: i32, %arg2: memref<1x64x256xbf16, #tpu.memory_space<vmem>>, %arg3: memref<1x256x64xbf16, #tpu.memory_space<vmem>>, %arg4: memref<1x64x1xf32, #tpu.memory_space<vmem>>, %arg5: memref<1x64x1xf32, #tpu.memory_space<vmem>>, %arg6: memref<1x1x64xf32, #tpu.memory_space<vmem>>, %arg7: memref<1x1x64xf32, #tpu.memory_space<vmem>>, %arg8: memref<1x64x64xbf16, #tpu.memory_space<vmem>>) attributes {dimension_semantics = [#tpu.dimension_semantics<parallel>, #tpu.dimension_semantics<parallel>], iteration_bounds = array<i64: 2, 1>, scalar_prefetch = 0 : i64, scratch_operands = 0 : i64, tpu.core_type = #tpu.core_type<tc>, window_params = [{transform_indices = @transform_0, window_bounds = array<i64: 1, 64, 256>}, {transform_indices = @transform_1, window_bounds = array<i64: 1, 256, 64>}, {transform_indices = @transform_2, window_bounds = array<i64: 1, 64, 1>}, {transform_indices = @transform_3, window_bounds = array<i64: 1, 64, 1>}, {transform_indices = @transform_4, window_bounds = array<i64: 1, 1, 64>}, {transform_indices = @transform_5, window_bounds = array<i64: 1, 1, 64>}, {transform_indices = @transform_6, window_bounds = array<i64: 1, 64, 64>}]} {
    %c0 = arith.constant 0 : index
    %c0_0 = arith.constant 0 : index
    %c0_1 = arith.constant 0 : index
    %0 = vector.load %arg2[%c0, %c0_0, %c0_1] : memref<1x64x256xbf16, #tpu.memory_space<vmem>>, vector<1x64x256xbf16>
    %1 = vector.shape_cast %0 : vector<1x64x256xbf16> to vector<64x256xbf16>
    %c0_2 = arith.constant 0 : index
    %c0_3 = arith.constant 0 : index
    %c0_4 = arith.constant 0 : index
    %2 = vector.load %arg3[%c0_2, %c0_3, %c0_4] : memref<1x256x64xbf16, #tpu.memory_space<vmem>>, vector<1x256x64xbf16>
    %3 = vector.shape_cast %2 : vector<1x256x64xbf16> to vector<256x64xbf16>
    %cst = arith.constant dense<0.000000e+00> : vector<64x64xf32>
    %4 = tpu.matmul %1, %3, %cst {dimension_numbers = #tpu.dot_dimension_numbers<[1], [0], [0], [1], [0, 0, 1, 1], [], []>} : vector<64x256xbf16>, vector<256x64xbf16>, vector<64x64xf32> -> vector<64x64xf32>
    %cst_5 = arith.constant 6.250000e-02 : f32
    %5 = vector.broadcast %cst_5 : f32 to vector<64x64xf32>
    %6 = arith.mulf %4, %5 : vector<64x64xf32>
    %cst_6 = arith.constant 2.000000e+00 : f32
    %7 = vector.broadcast %cst_6 : f32 to vector<64x64xf32>
    %8 = arith.mulf %7, %6 : vector<64x64xf32>
    %c0_7 = arith.constant 0 : index
    %c0_8 = arith.constant 0 : index
    %c0_9 = arith.constant 0 : index
    %9 = vector.load %arg4[%c0_7, %c0_8, %c0_9] : memref<1x64x1xf32, #tpu.memory_space<vmem>>, vector<1x64x1xf32>
    %10 = vector.shape_cast %9 : vector<1x64x1xf32> to vector<64x1xf32>
    %11 = vector.broadcast %10 : vector<64x1xf32> to vector<64x64xf32>
    %12 = arith.subf %8, %11 : vector<64x64xf32>
    %c0_10 = arith.constant 0 : index
    %c0_11 = arith.constant 0 : index
    %c0_12 = arith.constant 0 : index
    %13 = vector.load %arg6[%c0_10, %c0_11, %c0_12] : memref<1x1x64xf32, #tpu.memory_space<vmem>>, vector<1x1x64xf32>
    %14 = vector.shape_cast %13 : vector<1x1x64xf32> to vector<1x64xf32>
    %15 = vector.broadcast %14 : vector<1x64xf32> to vector<64x64xf32>
    %16 = arith.subf %12, %15 : vector<64x64xf32>
    %17 = math.exp %16 : vector<64x64xf32>
    %c0_13 = arith.constant 0 : index
    %c0_14 = arith.constant 0 : index
    %c0_15 = arith.constant 0 : index
    %18 = vector.load %arg5[%c0_13, %c0_14, %c0_15] : memref<1x64x1xf32, #tpu.memory_space<vmem>>, vector<1x64x1xf32>
    %19 = vector.shape_cast %18 : vector<1x64x1xf32> to vector<64x1xf32>
    %20 = tpu.reciprocal %19 {approx = true} : vector<64x1xf32> -> vector<64x1xf32>
    %c0_16 = arith.constant 0 : index
    %c0_17 = arith.constant 0 : index
    %c0_18 = arith.constant 0 : index
    %21 = vector.load %arg7[%c0_16, %c0_17, %c0_18] : memref<1x1x64xf32, #tpu.memory_space<vmem>>, vector<1x1x64xf32>
    %22 = vector.shape_cast %21 : vector<1x1x64xf32> to vector<1x64xf32>
    %23 = tpu.reciprocal %22 {approx = true} : vector<1x64xf32> -> vector<1x64xf32>
    %24 = vector.broadcast %20 : vector<64x1xf32> to vector<64x64xf32>
    %25 = arith.mulf %17, %24 : vector<64x64xf32>
    %26 = vector.broadcast %23 : vector<1x64xf32> to vector<64x64xf32>
    %27 = arith.mulf %25, %26 : vector<64x64xf32>
    %28 = arith.truncf %27 : vector<64x64xf32> to vector<64x64xbf16>
    %c0_19 = arith.constant 0 : index
    %c0_20 = arith.constant 0 : index
    %c0_21 = arith.constant 0 : index
    %29 = vector.load %arg8[%c0_19, %c0_20, %c0_21] : memref<1x64x64xbf16, #tpu.memory_space<vmem>>, vector<1x64x64xbf16>
    %30 = vector.shape_cast %29 : vector<1x64x64xbf16> to vector<64x64xbf16>
    %31 = vector.shape_cast %28 : vector<64x64xbf16> to vector<1x64x64xbf16>
    tpu.vector_store %arg8[%c0_19, %c0_20, %c0_21], %31 {strides = array<i32>} : memref<1x64x64xbf16, #tpu.memory_space<vmem>>, vector<1x64x64xbf16>,
    return
  }
  func.func @transform_0(%arg0: i32, %arg1: i32) -> (i32, i32, i32) {
    %c0_i32 = arith.constant 0 : i32
    %c0_i32_0 = arith.constant 0 : i32
    return %arg0, %arg1, %c0_i32 : i32, i32, i32
  }
  func.func @transform_1(%arg0: i32, %arg1: i32) -> (i32, i32, i32) {
    %c0_i32 = arith.constant 0 : i32
    %c0_i32_0 = arith.constant 0 : i32
    %c0_i32_1 = arith.constant 0 : i32
    return %arg0, %c0_i32, %c0_i32_0 : i32, i32, i32
  }
  func.func @transform_2(%arg0: i32, %arg1: i32) -> (i32, i32, i32) {
    %c0_i32 = arith.constant 0 : i32
    %c0_i32_0 = arith.constant 0 : i32
    return %arg0, %arg1, %c0_i32 : i32, i32, i32
  }
  func.func @transform_3(%arg0: i32, %arg1: i32) -> (i32, i32, i32) {
    %c0_i32 = arith.constant 0 : i32
    %c0_i32_0 = arith.constant 0 : i32
    return %arg0, %arg1, %c0_i32 : i32, i32, i32
  }
  func.func @transform_4(%arg0: i32, %arg1: i32) -> (i32, i32, i32) {
    %c0_i32 = arith.constant 0 : i32
    %c0_i32_0 = arith.constant 0 : i32
    %c0_i32_1 = arith.constant 0 : i32
    return %arg0, %c0_i32, %c0_i32_0 : i32, i32, i32
  }
  func.func @transform_5(%arg0: i32, %arg1: i32) -> (i32, i32, i32) {
    %c0_i32 = arith.constant 0 : i32
    %c0_i32_0 = arith.constant 0 : i32
    %c0_i32_1 = arith.constant 0 : i32
    return %arg0, %c0_i32, %c0_i32_0 : i32, i32, i32
  }
  func.func @transform_6(%arg0: i32, %arg1: i32) -> (i32, i32, i32) {
    %c0_i32 = arith.constant 0 : i32
    %c0_i32_0 = arith.constant 0 : i32
    return %arg0, %arg1, %c0_i32 : i32, i32, i32
  }
}

module attributes {stable_mosaic.version = 11 : i64} {
  func.func @_mask_up_kernel(%arg0: i32, %arg1: memref<128x1152xbf16, #tpu.memory_space<vmem>>, %arg2: memref<128x18xf32, #tpu.memory_space<vmem>>, %arg3: memref<1152x256xbf16, #tpu.memory_space<vmem>>, %arg4: memref<1x256xf32, #tpu.memory_space<vmem>>, %arg5: memref<256x1152xbf16, #tpu.memory_space<vmem>>, %arg6: memref<1x1152xf32, #tpu.memory_space<vmem>>, %arg7: memref<128x256xf32, #tpu.memory_space<vmem>>) attributes {dimension_semantics = [#tpu.dimension_semantics<parallel>], iteration_bounds = array<i64: 1>, scalar_prefetch = 0 : i64, scratch_operands = 0 : i64, tpu.core_type = #tpu.core_type<tc>, window_params = [{transform_indices = @transform_0, window_bounds = array<i64: 128, 1152>}, {transform_indices = @transform_1, window_bounds = array<i64: 128, 18>}, {pipeline_mode = #tpu.pipeline_mode<synchronous>, transform_indices = @transform_2, window_bounds = array<i64: 1152, 256>}, {pipeline_mode = #tpu.pipeline_mode<synchronous>, transform_indices = @transform_3, window_bounds = array<i64: 1, 256>}, {pipeline_mode = #tpu.pipeline_mode<synchronous>, transform_indices = @transform_4, window_bounds = array<i64: 256, 1152>}, {pipeline_mode = #tpu.pipeline_mode<synchronous>, transform_indices = @transform_5, window_bounds = array<i64: 1, 1152>}, {transform_indices = @transform_6, window_bounds = array<i64: 128, 256>}]} {
    %c0 = arith.constant 0 : index
    %c0_0 = arith.constant 0 : index
    %0 = vector.load %arg1[%c0, %c0_0] : memref<128x1152xbf16, #tpu.memory_space<vmem>>, vector<128x1152xbf16>
    %c0_1 = arith.constant 0 : index
    %c0_2 = arith.constant 0 : index
    %1 = vector.load %arg3[%c0_1, %c0_2] : memref<1152x256xbf16, #tpu.memory_space<vmem>>, vector<1152x256xbf16>
    %cst = arith.constant dense<0.000000e+00> : vector<128x256xf32>
    %2 = tpu.matmul %0, %1, %cst {dimension_numbers = #tpu.dot_dimension_numbers<[1], [0], [0], [1], [0, 0, 1, 1], [], []>} : vector<128x1152xbf16>, vector<1152x256xbf16>, vector<128x256xf32> -> vector<128x256xf32>
    %c0_3 = arith.constant 0 : index
    %c0_4 = arith.constant 0 : index
    %3 = vector.load %arg4[%c0_3, %c0_4] : memref<1x256xf32, #tpu.memory_space<vmem>>, vector<1x256xf32>
    %4 = vector.broadcast %3 : vector<1x256xf32> to vector<128x256xf32>
    %5 = arith.addf %2, %4 : vector<128x256xf32>
    %cst_5 = arith.constant 0.000000e+00 : f32
    %6 = vector.broadcast %cst_5 : f32 to vector<128x256xf32>
    %7 = arith.maximumf %5, %6 : vector<128x256xf32>
    %8 = arith.truncf %7 : vector<128x256xf32> to vector<128x256xbf16>
    %c0_6 = arith.constant 0 : index
    %c0_7 = arith.constant 0 : index
    %9 = vector.load %arg5[%c0_6, %c0_7] : memref<256x1152xbf16, #tpu.memory_space<vmem>>, vector<256x1152xbf16>
    %cst_8 = arith.constant dense<0.000000e+00> : vector<128x1152xf32>
    %10 = tpu.matmul %8, %9, %cst_8 {dimension_numbers = #tpu.dot_dimension_numbers<[1], [0], [0], [1], [0, 0, 1, 1], [], []>} : vector<128x256xbf16>, vector<256x1152xbf16>, vector<128x1152xf32> -> vector<128x1152xf32>
    %c0_9 = arith.constant 0 : index
    %c0_10 = arith.constant 0 : index
    %11 = vector.load %arg6[%c0_9, %c0_10] : memref<1x1152xf32, #tpu.memory_space<vmem>>, vector<1x1152xf32>
    %12 = vector.broadcast %11 : vector<1x1152xf32> to vector<128x1152xf32>
    %13 = arith.addf %10, %12 : vector<128x1152xf32>
    %cst_11 = arith.constant 2.500000e-01 : f32
    %14 = vector.broadcast %cst_11 : f32 to vector<128x1152xf32>
    %15 = arith.mulf %14, %13 : vector<128x1152xf32>
    %c0_12 = arith.constant 0 : index
    %c0_13 = arith.constant 0 : index
    %16 = vector.load %arg2[%c0_12, %c0_13] : memref<128x18xf32, #tpu.memory_space<vmem>>, vector<128x18xf32>
    %17 = vector.extract_strided_slice %15 {offsets = [0, 0], sizes = [128, 128], strides = [1, 1]} : vector<128x1152xf32> to vector<128x128xf32>
    %18 = vector.extract_strided_slice %15 {offsets = [0, 128], sizes = [128, 128], strides = [1, 1]} : vector<128x1152xf32> to vector<128x128xf32>
    %19 = vector.extract_strided_slice %15 {offsets = [0, 256], sizes = [128, 128], strides = [1, 1]} : vector<128x1152xf32> to vector<128x128xf32>
    %20 = vector.extract_strided_slice %15 {offsets = [0, 384], sizes = [128, 128], strides = [1, 1]} : vector<128x1152xf32> to vector<128x128xf32>
    %21 = vector.extract_strided_slice %15 {offsets = [0, 512], sizes = [128, 128], strides = [1, 1]} : vector<128x1152xf32> to vector<128x128xf32>
    %22 = vector.extract_strided_slice %15 {offsets = [0, 640], sizes = [128, 128], strides = [1, 1]} : vector<128x1152xf32> to vector<128x128xf32>
    %23 = vector.extract_strided_slice %15 {offsets = [0, 768], sizes = [128, 128], strides = [1, 1]} : vector<128x1152xf32> to vector<128x128xf32>
    %24 = vector.extract_strided_slice %15 {offsets = [0, 896], sizes = [128, 128], strides = [1, 1]} : vector<128x1152xf32> to vector<128x128xf32>
    %25 = vector.extract_strided_slice %15 {offsets = [0, 1024], sizes = [128, 128], strides = [1, 1]} : vector<128x1152xf32> to vector<128x128xf32>
    %26 = arith.maximumf %17, %18 : vector<128x128xf32>
    %27 = arith.maximumf %26, %19 : vector<128x128xf32>
    %28 = arith.maximumf %27, %20 : vector<128x128xf32>
    %29 = arith.maximumf %28, %21 : vector<128x128xf32>
    %30 = arith.maximumf %29, %22 : vector<128x128xf32>
    %31 = arith.maximumf %30, %23 : vector<128x128xf32>
    %32 = arith.maximumf %31, %24 : vector<128x128xf32>
    %33 = arith.maximumf %32, %25 : vector<128x128xf32>
    %34 = arith.subf %17, %33 : vector<128x128xf32>
    %35 = math.exp %34 : vector<128x128xf32>
    %36 = arith.subf %18, %33 : vector<128x128xf32>
    %37 = math.exp %36 : vector<128x128xf32>
    %38 = arith.subf %19, %33 : vector<128x128xf32>
    %39 = math.exp %38 : vector<128x128xf32>
    %40 = arith.subf %20, %33 : vector<128x128xf32>
    %41 = math.exp %40 : vector<128x128xf32>
    %42 = arith.subf %21, %33 : vector<128x128xf32>
    %43 = math.exp %42 : vector<128x128xf32>
    %44 = arith.subf %22, %33 : vector<128x128xf32>
    %45 = math.exp %44 : vector<128x128xf32>
    %46 = arith.subf %23, %33 : vector<128x128xf32>
    %47 = math.exp %46 : vector<128x128xf32>
    %48 = arith.subf %24, %33 : vector<128x128xf32>
    %49 = math.exp %48 : vector<128x128xf32>
    %50 = arith.subf %25, %33 : vector<128x128xf32>
    %51 = math.exp %50 : vector<128x128xf32>
    %52 = arith.addf %35, %37 : vector<128x128xf32>
    %53 = arith.addf %52, %39 : vector<128x128xf32>
    %54 = arith.addf %53, %41 : vector<128x128xf32>
    %55 = arith.addf %54, %43 : vector<128x128xf32>
    %56 = arith.addf %55, %45 : vector<128x128xf32>
    %57 = arith.addf %56, %47 : vector<128x128xf32>
    %58 = arith.addf %57, %49 : vector<128x128xf32>
    %59 = arith.addf %58, %51 : vector<128x128xf32>
    %60 = tpu.reciprocal %59 : vector<128x128xf32> -> vector<128x128xf32>
    %61 = vector.extract_strided_slice %16 {offsets = [0, 0], sizes = [128, 1], strides = [1, 1]} : vector<128x18xf32> to vector<128x1xf32>
    %62 = vector.broadcast %61 : vector<128x1xf32> to vector<128x128xf32>
    %63 = arith.mulf %35, %62 : vector<128x128xf32>
    %64 = vector.extract_strided_slice %16 {offsets = [0, 2], sizes = [128, 1], strides = [1, 1]} : vector<128x18xf32> to vector<128x1xf32>
    %65 = vector.broadcast %64 : vector<128x1xf32> to vector<128x128xf32>
    %66 = arith.mulf %37, %65 : vector<128x128xf32>
    %67 = arith.addf %63, %66 : vector<128x128xf32>
    %68 = vector.extract_strided_slice %16 {offsets = [0, 4], sizes = [128, 1], strides = [1, 1]} : vector<128x18xf32> to vector<128x1xf32>
    %69 = vector.broadcast %68 : vector<128x1xf32> to vector<128x128xf32>
    %70 = arith.mulf %39, %69 : vector<128x128xf32>
    %71 = arith.addf %67, %70 : vector<128x128xf32>
    %72 = vector.extract_strided_slice %16 {offsets = [0, 6], sizes = [128, 1], strides = [1, 1]} : vector<128x18xf32> to vector<128x1xf32>
    %73 = vector.broadcast %72 : vector<128x1xf32> to vector<128x128xf32>
    %74 = arith.mulf %41, %73 : vector<128x128xf32>
    %75 = arith.addf %71, %74 : vector<128x128xf32>
    %76 = vector.extract_strided_slice %16 {offsets = [0, 8], sizes = [128, 1], strides = [1, 1]} : vector<128x18xf32> to vector<128x1xf32>
    %77 = vector.broadcast %76 : vector<128x1xf32> to vector<128x128xf32>
    %78 = arith.mulf %43, %77 : vector<128x128xf32>
    %79 = arith.addf %75, %78 : vector<128x128xf32>
    %80 = vector.extract_strided_slice %16 {offsets = [0, 10], sizes = [128, 1], strides = [1, 1]} : vector<128x18xf32> to vector<128x1xf32>
    %81 = vector.broadcast %80 : vector<128x1xf32> to vector<128x128xf32>
    %82 = arith.mulf %45, %81 : vector<128x128xf32>
    %83 = arith.addf %79, %82 : vector<128x128xf32>
    %84 = vector.extract_strided_slice %16 {offsets = [0, 12], sizes = [128, 1], strides = [1, 1]} : vector<128x18xf32> to vector<128x1xf32>
    %85 = vector.broadcast %84 : vector<128x1xf32> to vector<128x128xf32>
    %86 = arith.mulf %47, %85 : vector<128x128xf32>
    %87 = arith.addf %83, %86 : vector<128x128xf32>
    %88 = vector.extract_strided_slice %16 {offsets = [0, 14], sizes = [128, 1], strides = [1, 1]} : vector<128x18xf32> to vector<128x1xf32>
    %89 = vector.broadcast %88 : vector<128x1xf32> to vector<128x128xf32>
    %90 = arith.mulf %49, %89 : vector<128x128xf32>
    %91 = arith.addf %87, %90 : vector<128x128xf32>
    %92 = vector.extract_strided_slice %16 {offsets = [0, 16], sizes = [128, 1], strides = [1, 1]} : vector<128x18xf32> to vector<128x1xf32>
    %93 = vector.broadcast %92 : vector<128x1xf32> to vector<128x128xf32>
    %94 = arith.mulf %51, %93 : vector<128x128xf32>
    %95 = arith.addf %91, %94 : vector<128x128xf32>
    %96 = arith.mulf %95, %60 : vector<128x128xf32>
    %c0_14 = arith.constant 0 : index
    %c0_15 = arith.constant 0 : index
    %97 = vector.load %arg7[%c0_14, %c0_15] : memref<128x256xf32, #tpu.memory_space<vmem>>, vector<128x128xf32>
    tpu.vector_store %arg7[%c0_14, %c0_15], %96 {strides = array<i32>} : memref<128x256xf32, #tpu.memory_space<vmem>>, vector<128x128xf32>,
    %98 = vector.extract_strided_slice %16 {offsets = [0, 1], sizes = [128, 1], strides = [1, 1]} : vector<128x18xf32> to vector<128x1xf32>
    %99 = vector.broadcast %98 : vector<128x1xf32> to vector<128x128xf32>
    %100 = arith.mulf %35, %99 : vector<128x128xf32>
    %101 = vector.extract_strided_slice %16 {offsets = [0, 3], sizes = [128, 1], strides = [1, 1]} : vector<128x18xf32> to vector<128x1xf32>
    %102 = vector.broadcast %101 : vector<128x1xf32> to vector<128x128xf32>
    %103 = arith.mulf %37, %102 : vector<128x128xf32>
    %104 = arith.addf %100, %103 : vector<128x128xf32>
    %105 = vector.extract_strided_slice %16 {offsets = [0, 5], sizes = [128, 1], strides = [1, 1]} : vector<128x18xf32> to vector<128x1xf32>
    %106 = vector.broadcast %105 : vector<128x1xf32> to vector<128x128xf32>
    %107 = arith.mulf %39, %106 : vector<128x128xf32>
    %108 = arith.addf %104, %107 : vector<128x128xf32>
    %109 = vector.extract_strided_slice %16 {offsets = [0, 7], sizes = [128, 1], strides = [1, 1]} : vector<128x18xf32> to vector<128x1xf32>
    %110 = vector.broadcast %109 : vector<128x1xf32> to vector<128x128xf32>
    %111 = arith.mulf %41, %110 : vector<128x128xf32>
    %112 = arith.addf %108, %111 : vector<128x128xf32>
    %113 = vector.extract_strided_slice %16 {offsets = [0, 9], sizes = [128, 1], strides = [1, 1]} : vector<128x18xf32> to vector<128x1xf32>
    %114 = vector.broadcast %113 : vector<128x1xf32> to vector<128x128xf32>
    %115 = arith.mulf %43, %114 : vector<128x128xf32>
    %116 = arith.addf %112, %115 : vector<128x128xf32>
    %117 = vector.extract_strided_slice %16 {offsets = [0, 11], sizes = [128, 1], strides = [1, 1]} : vector<128x18xf32> to vector<128x1xf32>
    %118 = vector.broadcast %117 : vector<128x1xf32> to vector<128x128xf32>
    %119 = arith.mulf %45, %118 : vector<128x128xf32>
    %120 = arith.addf %116, %119 : vector<128x128xf32>
    %121 = vector.extract_strided_slice %16 {offsets = [0, 13], sizes = [128, 1], strides = [1, 1]} : vector<128x18xf32> to vector<128x1xf32>
    %122 = vector.broadcast %121 : vector<128x1xf32> to vector<128x128xf32>
    %123 = arith.mulf %47, %122 : vector<128x128xf32>
    %124 = arith.addf %120, %123 : vector<128x128xf32>
    %125 = vector.extract_strided_slice %16 {offsets = [0, 15], sizes = [128, 1], strides = [1, 1]} : vector<128x18xf32> to vector<128x1xf32>
    %126 = vector.broadcast %125 : vector<128x1xf32> to vector<128x128xf32>
    %127 = arith.mulf %49, %126 : vector<128x128xf32>
    %128 = arith.addf %124, %127 : vector<128x128xf32>
    %129 = vector.extract_strided_slice %16 {offsets = [0, 17], sizes = [128, 1], strides = [1, 1]} : vector<128x18xf32> to vector<128x1xf32>
    %130 = vector.broadcast %129 : vector<128x1xf32> to vector<128x128xf32>
    %131 = arith.mulf %51, %130 : vector<128x128xf32>
    %132 = arith.addf %128, %131 : vector<128x128xf32>
    %133 = arith.mulf %132, %60 : vector<128x128xf32>
    %c0_16 = arith.constant 0 : index
    %c128 = arith.constant 128 : index
    %134 = vector.load %arg7[%c0_16, %c128] : memref<128x256xf32, #tpu.memory_space<vmem>>, vector<128x128xf32>
    tpu.vector_store %arg7[%c0_16, %c128], %133 {strides = array<i32>} : memref<128x256xf32, #tpu.memory_space<vmem>>, vector<128x128xf32>,
    return
  }
  func.func @transform_0(%arg0: i32) -> (i32, i32) {
    %c0_i32 = arith.constant 0 : i32
    %c0_i32_0 = arith.constant 0 : i32
    return %arg0, %c0_i32 : i32, i32
  }
  func.func @transform_1(%arg0: i32) -> (i32, i32) {
    %c0_i32 = arith.constant 0 : i32
    %c0_i32_0 = arith.constant 0 : i32
    return %arg0, %c0_i32 : i32, i32
  }
  func.func @transform_2(%arg0: i32) -> (i32, i32) {
    %c0_i32 = arith.constant 0 : i32
    %c0_i32_0 = arith.constant 0 : i32
    %c0_i32_1 = arith.constant 0 : i32
    return %c0_i32, %c0_i32_0 : i32, i32
  }
  func.func @transform_3(%arg0: i32) -> (i32, i32) {
    %c0_i32 = arith.constant 0 : i32
    %c0_i32_0 = arith.constant 0 : i32
    %c0_i32_1 = arith.constant 0 : i32
    return %c0_i32, %c0_i32_0 : i32, i32
  }
  func.func @transform_4(%arg0: i32) -> (i32, i32) {
    %c0_i32 = arith.constant 0 : i32
    %c0_i32_0 = arith.constant 0 : i32
    %c0_i32_1 = arith.constant 0 : i32
    return %c0_i32, %c0_i32_0 : i32, i32
  }
  func.func @transform_5(%arg0: i32) -> (i32, i32) {
    %c0_i32 = arith.constant 0 : i32
    %c0_i32_0 = arith.constant 0 : i32
    %c0_i32_1 = arith.constant 0 : i32
    return %c0_i32, %c0_i32_0 : i32, i32
  }
  func.func @transform_6(%arg0: i32) -> (i32, i32) {
    %c0_i32 = arith.constant 0 : i32
    %c0_i32_0 = arith.constant 0 : i32
    return %arg0, %c0_i32 : i32, i32
  }
}

</mosaic_0001>

<bundles_post_ra>
// kernel: gaflow_forward.15
= control target key start
LH: loop header
LB: loop body
LE: loop exit
PB: predicated region body
PF: predicated region fallthrough
CT: control target
= control target key end

     0   :  { %vm259_vm0 = vcmask 523264   ;;  %v57_v40 = vlaneseq  ;;  %s944_s1 = inlined_call_operand.vmem [shape: bf16[192,256], index: 1, kind: input, shape index: {}]   ;;  %s945_s0 = inlined_call_operand.vmem [shape: bf16[128,192], index: 0, kind: input, shape index: {}]   ;;  %s946_s2 = inlined_call_operand.vmem [shape: f32[1,256], index: 2, kind: input, shape index: {}]   ;;  %s947_s3 = inlined_call_operand.vmem [shape: bf16[128,256], index: 3, kind: output, shape index: {}]  }
   0x1   :  { %v649_v0 = vld [vmem:[%s944_s1 + $0x74] ss:$8 sps:$4 sm:$0xff]   ;;  %v651_v1 = vld [vmem:[%s944_s1 + $0x70] ss:$8 sps:$4 sm:$0xff]   ;;  %v652_v2 = vld [vmem:[%s944_s1 + $0x64] ss:$8 sps:$4 sm:$0xff]  }
   0x2   :  { %284 = vmatprep.subr.bf16.mxu0 %v649_v0  ;;  %625 = vmatprep.subr.bf16.mxu1 %v649_v0  ;;  %v654_v3 = vld [vmem:[%s944_s1 + $0x60] ss:$8 sps:$4 sm:$0xff]   ;;  %v655_v4 = vld [vmem:[%s944_s1 + $0x54] ss:$8 sps:$4 sm:$0xff]   ;;  %v657_v5 = vld [vmem:[%s944_s1 + $0x50] ss:$8 sps:$4 sm:$0xff]  }
   0x3   :  { %285 = vmatpush1.bf16.msra.mxu0 %v651_v1  ;;  %637 = vmatpush1.bf16.msra.mxu1 %v651_v1  ;;  %v658_v6 = vld [vmem:[%s944_s1 + $0x44] ss:$8 sps:$4 sm:$0xff]   ;;  %v660_v7 = vld [vmem:[%s944_s1 + $0x40] ss:$8 sps:$4 sm:$0xff]   ;;  %v661_v8 = vld [vmem:[%s944_s1 + $0x34] ss:$8 sps:$4 sm:$0xff]  }
   0x4   :  { %286 = vmatprep.subr.bf16.mxu0 %v652_v2  ;;  %626 = vmatprep.subr.bf16.mxu1 %v652_v2  ;;  %v663_v9 = vld [vmem:[%s944_s1 + $0x30] ss:$8 sps:$4 sm:$0xff]   ;;  %v664_v10 = vld [vmem:[%s944_s1 + $0x24] ss:$8 sps:$4 sm:$0xff]   ;;  %v666_v13 = vld [vmem:[%s944_s1 + $0x20] ss:$8 sps:$4 sm:$0xff]  }
   0x5   :  { %v687_v11 = vld [vmem:[%s945_s0 + $0x4] ss:$8 sps:$4 sm:$0xff]   ;;  %v667_v14 = vld [vmem:[%s944_s1 + $0x14] ss:$8 sps:$4 sm:$0xff]   ;;  %v669_v15 = vld [vmem:[%s944_s1 + $0x10] ss:$8 sps:$4 sm:$0xff]  }
   0x6   :  { %v690_v12 = vld [vmem:[%s945_s0 + $0x44] ss:$8 sps:$4 sm:$0xff]   ;;  %585 = vmatprep.mubr.msk.bf16.mxu0 %vm259_vm0, %v687_v11  ;;  %v672_v17 = vld [vmem:[%s944_s1] ss:$8 sps:$4 sm:$0xff]   ;;  %v673_v18 = vld [vmem:[%s944_s1 + $0xb4] ss:$8 sps:$4 sm:$0xff]  }
   0x7   :  { %287 = vmatpush1.bf16.msra.mxu0 %v654_v3  ;;  %638 = vmatpush1.bf16.msra.mxu1 %v654_v3  ;;  %v670_v16 = vld [vmem:[%s944_s1 + $0x4] ss:$8 sps:$4 sm:$0xff]   ;;  %v675_v19 = vld [vmem:[%s944_s1 + $0xb0] ss:$8 sps:$4 sm:$0xff]   ;;  %v678_v21 = vld [vmem:[%s944_s1 + $0xa0] ss:$8 sps:$4 sm:$0xff]  }
   0x8   :  { %288 = vmatprep.subr.bf16.mxu0 %v655_v4  ;;  %627 = vmatprep.subr.bf16.mxu1 %v655_v4  ;;  %v676_v20 = vld [vmem:[%s944_s1 + $0xa4] ss:$8 sps:$4 sm:$0xff]   ;;  %v679_v22 = vld [vmem:[%s944_s1 + $0x94] ss:$8 sps:$4 sm:$0xff]   ;;  %v681_v23 = vld [vmem:[%s944_s1 + $0x90] ss:$8 sps:$4 sm:$0xff]  }
   0x9   :  { %589 = vmatprep.mubr.msk.bf16.mxu1 %vm259_vm0, %v690_v12  ;;  %v682_v24 = vld [vmem:[%s944_s1 + $0x84] ss:$8 sps:$4 sm:$0xff]   ;;  %v684_v25 = vld [vmem:[%s944_s1 + $0x80] ss:$8 sps:$4 sm:$0xff]   ;;  %v691_v28 = vld [vmem:[%s945_s0 + $0x14] ss:$8 sps:$4 sm:$0xff]  }
   0xa   :  { %v685_v26 = vld [vmem:[%s945_s0] ss:$8 sps:$4 sm:$0xff]   ;;  %v693_v29 = vld [vmem:[%s945_s0 + $0x54] ss:$8 sps:$4 sm:$0xff]   ;;  %v695_v30 = vld [vmem:[%s945_s0 + $0x10] ss:$8 sps:$4 sm:$0xff]  }
   0xb   :  { %289 = vmatpush1.bf16.msra.mxu0 %v657_v5  ;;  %639 = vmatpush1.bf16.msra.mxu1 %v657_v5  ;;  %v688_v27 = vld [vmem:[%s945_s0 + $0x40] ss:$8 sps:$4 sm:$0xff]   ;;  %v696_v31 = vld [vmem:[%s945_s0 + $0x50] ss:$8 sps:$4 sm:$0xff]   ;;  %v697_v32 = vld [vmem:[%s945_s0 + $0x24] ss:$8 sps:$4 sm:$0xff]  }
   0xc   :  { %290 = vmatprep.subr.bf16.mxu0 %v658_v6  ;;  %628 = vmatprep.subr.bf16.mxu1 %v658_v6  ;;  %v699_v33 = vld [vmem:[%s945_s0 + $0x64] ss:$8 sps:$4 sm:$0xff]   ;;  %v701_v34 = vld [vmem:[%s945_s0 + $0x20] ss:$8 sps:$4 sm:$0xff]   ;;  %v703_v36 = vld [vmem:[%s945_s0 + $0x34] ss:$8 sps:$4 sm:$0xff]  }
   0xd   :  { %v702_v35 = vld [vmem:[%s945_s0 + $0x60] ss:$8 sps:$4 sm:$0xff]   ;;  %v705_v37 = vld [vmem:[%s945_s0 + $0x74] ss:$8 sps:$4 sm:$0xff]   ;;  %v707_v38 = vld [vmem:[%s945_s0 + $0x30] ss:$8 sps:$4 sm:$0xff]  }
   0xe   :  { %v708_v39 = vld [vmem:[%s945_s0 + $0x70] ss:$8 sps:$4 sm:$0xff]   ;;  %v58_v41 = vshrl.u32 %v57_v40, 7  ;;  %v55_v43 = vld [vmem:[%s946_s2] sm:$0x3] }
   0xf   :  { %291 = vmatpush1.bf16.msra.mxu0 %v660_v7  ;;  %640 = vmatpush1.bf16.msra.mxu1 %v660_v7 }
  0x10   :  { %292 = vmatprep.subr.bf16.mxu0 %v661_v8  ;;  %629 = vmatprep.subr.bf16.mxu1 %v661_v8  ;;  %v59_v42 = vsub.s32 0, %v58_v41  ;;  %v63_v44 = vsub.s32 1, %v58_v41 }
  0x12   :  { %v860_v45 = vrot.slane %v55_v43, %v59_v42  ;;  %v862_v46 = vrot.slane %v55_v43, %v63_v44 }
  0x13   :  { %293 = vmatpush1.bf16.msra.mxu0 %v663_v9  ;;  %641 = vmatpush1.bf16.msra.mxu1 %v663_v9 }
  0x14   :  { %294 = vmatprep.subr.bf16.mxu0 %v664_v10  ;;  %630 = vmatprep.subr.bf16.mxu1 %v664_v10 }
  0x17   :  { %295 = vmatpush1.bf16.msra.mxu0 %v666_v13  ;;  %642 = vmatpush1.bf16.msra.mxu1 %v666_v13 }
  0x18   :  { %296 = vmatprep.subr.bf16.mxu0 %v667_v14  ;;  %631 = vmatprep.subr.bf16.mxu1 %v667_v14 }
  0x1b   :  { %297 = vmatpush1.bf16.msra.mxu0 %v669_v15  ;;  %643 = vmatpush1.bf16.msra.mxu1 %v669_v15 }
  0x1c   :  { %298 = vmatprep.subr.bf16.mxu0 %v670_v16  ;;  %632 = vmatprep.subr.bf16.mxu1 %v670_v16 }
  0x1f   :  { %299 = vmatpush1.bf16.msra.mxu0 %v672_v17  ;;  %644 = vmatpush1.bf16.msra.mxu1 %v672_v17 }
  0x20   :  { %308 = vmatprep.subr.bf16.mxu0 %v673_v18  ;;  %633 = vmatprep.subr.bf16.mxu1 %v673_v18 }
  0x23   :  { %309 = vmatpush2.bf16.msra.mxu0 %v675_v19  ;;  %645 = vmatpush2.bf16.msra.mxu1 %v675_v19 }
  0x24   :  { %310 = vmatprep.subr.bf16.mxu0 %v676_v20  ;;  %634 = vmatprep.subr.bf16.mxu1 %v676_v20 }
  0x27   :  { %311 = vmatpush2.bf16.msra.mxu0 %v678_v21  ;;  %646 = vmatpush2.bf16.msra.mxu1 %v678_v21 }
  0x28   :  { %312 = vmatprep.subr.bf16.mxu0 %v679_v22  ;;  %635 = vmatprep.subr.bf16.mxu1 %v679_v22 }
  0x2b   :  { %313 = vmatpush2.bf16.msra.mxu0 %v681_v23  ;;  %647 = vmatpush2.bf16.msra.mxu1 %v681_v23 }
  0x2c   :  { %314 = vmatprep.subr.bf16.mxu0 %v682_v24  ;;  %636 = vmatprep.subr.bf16.mxu1 %v682_v24 }
  0x2f   :  { %315 = vmatpush2.bf16.msra.mxu0 %v684_v25  ;;  %648 = vmatpush2.bf16.msra.mxu1 %v684_v25 }
  0x32   :  { %317 = vmatmul.mubr.bf16.vlgmr.msra.gmra.mxu0 %v685_v26  ;;  %357 = vmatmul.mubr.bf16.vlgmr.msra.gmra.mxu1 %v688_v27 }
  0x33   :  { %586 = vmatprep.mubr.msk.bf16.mxu0 %vm259_vm0, %v691_v28  ;;  %590 = vmatprep.mubr.msk.bf16.mxu1 %vm259_vm0, %v693_v29 }
  0x3a   :  { %327 = vmatmul.mubr.bf16.gmra.mxu0 %v695_v30  ;;  %367 = vmatmul.mubr.bf16.gmra.mxu1 %v696_v31 }
  0x3b   :  { %587 = vmatprep.mubr.msk.bf16.mxu0 %vm259_vm0, %v697_v32  ;;  %591 = vmatprep.mubr.msk.bf16.mxu1 %vm259_vm0, %v699_v33 }
  0x42   :  { %337 = vmatmul.mubr.bf16.gmra.mxu0 %v701_v34  ;;  %377 = vmatmul.mubr.bf16.gmra.mxu1 %v702_v35 }
  0x43   :  { %588 = vmatprep.mubr.msk.bf16.mxu0 %vm259_vm0, %v703_v36  ;;  %592 = vmatprep.mubr.msk.bf16.mxu1 %vm259_vm0, %v705_v37 }
  0x4a   :  { %347 = vmatmul.mubr.bf16.gmra.mxu0 %v707_v38  ;;  %387 = vmatmul.mubr.bf16.gmra.mxu1 %v708_v39 }
  0xf2   :  { %v318_v47 = vpop.f32.mrf.mxu0  ;;  %v358_v48 = vpop.f32.mrf.mxu1 }
  0xf3   :  { %v319_v49 = vadd.f32 %v318_v47, %v860_v45  ;;  %v359_v50 = vadd.f32 %v358_v48, %v860_v45 }
  0xf4   :  { %v320_v51 = vpop.f32.mrf.mxu0  ;;  %v360_v52 = vpop.f32.mrf.mxu1 }
  0xf5   :  { %v321_v53 = vadd.f32 %v320_v51, %v862_v46  ;;  %v361_v54 = vadd.f32 %v360_v52, %v862_v46  ;;  %v397_v57 = vmax.f32 %v319_v49, 0.0  ;;  %v413_v58 = vmax.f32 %v359_v50, 0.0 }
  0xf6   :  { %v322_v55 = vpop.f32.mrf.mxu0  ;;  %v362_v56 = vpop.f32.mrf.mxu1 }
  0xf7   :  { %v398_v59 = vmax.f32 %v321_v53, 0.0  ;;  %v414_v60 = vmax.f32 %v361_v54, 0.0  ;;  %v323_v61 = vadd.f32 %v322_v55, %v860_v45  ;;  %v363_v62 = vadd.f32 %v362_v56, %v860_v45 }
  0xf8   :  { %v324_v63 = vpop.f32.mrf.mxu0  ;;  %v364_v0 = vpop.f32.mrf.mxu1 }
  0xf9   :  { %v609_v1 = vpack.c.bf16 %v398_v59, %v397_v57  ;;  %v617_v2 = vpack.c.bf16 %v414_v60, %v413_v58  ;;  %v325_v3 = vadd.f32 %v324_v63, %v862_v46  ;;  %v365_v4 = vadd.f32 %v364_v0, %v862_v46 }
  0xfa   :  { %v328_v5 = vpop.f32.mrf.mxu0  ;;  %v368_v6 = vpop.f32.mrf.mxu1  ;;  %v399_v9 = vmax.f32 %v323_v61, 0.0  ;;  %v415_v10 = vmax.f32 %v363_v62, 0.0 }
  0xfb   :  { %525 = vst [vmem:[%s947_s3] sm:$0xff] %v609_v1  ;;  %533 = vst [vmem:[%s947_s3 + $0x40] sm:$0xff] %v617_v2  ;;  %v329_v7 = vadd.f32 %v328_v5, %v860_v45  ;;  %v369_v8 = vadd.f32 %v368_v6, %v860_v45  ;;  %v400_v11 = vmax.f32 %v325_v3, 0.0  ;;  %v416_v12 = vmax.f32 %v365_v4, 0.0 }
  0xfc   :  { %v330_v13 = vpop.f32.mrf.mxu0  ;;  %v370_v14 = vpop.f32.mrf.mxu1 }
  0xfd   :  { %v331_v15 = vadd.f32 %v330_v13, %v862_v46  ;;  %v371_v16 = vadd.f32 %v370_v14, %v862_v46  ;;  %v610_v17 = vpack.c.bf16 %v400_v11, %v399_v9  ;;  %v618_v18 = vpack.c.bf16 %v416_v12, %v415_v10 }
  0xfe   :  { %v332_v19 = vpop.f32.mrf.mxu0  ;;  %v372_v20 = vpop.f32.mrf.mxu1  ;;  %v401_v21 = vmax.f32 %v329_v7, 0.0  ;;  %v417_v22 = vmax.f32 %v369_v8, 0.0 }
  0xff   :  { %v402_v23 = vmax.f32 %v331_v15, 0.0  ;;  %v418_v24 = vmax.f32 %v371_v16, 0.0  ;;  %526 = vst [vmem:[%s947_s3 + $0x8] sm:$0xff] %v610_v17  ;;  %534 = vst [vmem:[%s947_s3 + $0x48] sm:$0xff] %v618_v18  ;;  %v333_v25 = vadd.f32 %v332_v19, %v860_v45  ;;  %v373_v26 = vadd.f32 %v372_v20, %v860_v45 }
 0x100   :  { %v334_v27 = vpop.f32.mrf.mxu0  ;;  %v374_v28 = vpop.f32.mrf.mxu1 }
 0x101   :  { %v611_v29 = vpack.c.bf16 %v402_v23, %v401_v21  ;;  %v619_v30 = vpack.c.bf16 %v418_v24, %v417_v22  ;;  %v335_v31 = vadd.f32 %v334_v27, %v862_v46  ;;  %v375_v32 = vadd.f32 %v374_v28, %v862_v46 }
 0x102   :  { %v338_v33 = vpop.f32.mrf.mxu0  ;;  %v378_v34 = vpop.f32.mrf.mxu1  ;;  %v403_v37 = vmax.f32 %v333_v25, 0.0  ;;  %v419_v38 = vmax.f32 %v373_v26, 0.0 }
 0x103   :  { %527 = vst [vmem:[%s947_s3 + $0x10] sm:$0xff] %v611_v29  ;;  %535 = vst [vmem:[%s947_s3 + $0x50] sm:$0xff] %v619_v30  ;;  %v339_v35 = vadd.f32 %v338_v33, %v860_v45  ;;  %v379_v36 = vadd.f32 %v378_v34, %v860_v45  ;;  %v404_v39 = vmax.f32 %v335_v31, 0.0  ;;  %v420_v40 = vmax.f32 %v375_v32, 0.0 }
 0x104   :  { %v340_v41 = vpop.f32.mrf.mxu0  ;;  %v380_v42 = vpop.f32.mrf.mxu1 }
 0x105   :  { %v341_v43 = vadd.f32 %v340_v41, %v862_v46  ;;  %v381_v44 = vadd.f32 %v380_v42, %v862_v46  ;;  %v612_v47 = vpack.c.bf16 %v404_v39, %v403_v37  ;;  %v620_v48 = vpack.c.bf16 %v420_v40, %v419_v38 }
 0x106   :  { %v342_v49 = vpop.f32.mrf.mxu0  ;;  %v382_v50 = vpop.f32.mrf.mxu1  ;;  %v405_v51 = vmax.f32 %v339_v35, 0.0  ;;  %v421_v52 = vmax.f32 %v379_v36, 0.0 }
 0x107   :  { %v406_v53 = vmax.f32 %v341_v43, 0.0  ;;  %v422_v54 = vmax.f32 %v381_v44, 0.0  ;;  %528 = vst [vmem:[%s947_s3 + $0x18] sm:$0xff] %v612_v47  ;;  %536 = vst [vmem:[%s947_s3 + $0x58] sm:$0xff] %v620_v48  ;;  %v343_v55 = vadd.f32 %v342_v49, %v860_v45  ;;  %v383_v56 = vadd.f32 %v382_v50, %v860_v45 }
 0x108   :  { %v344_v57 = vpop.f32.mrf.mxu0  ;;  %v384_v58 = vpop.f32.mrf.mxu1 }
 0x109   :  { %v613_v59 = vpack.c.bf16 %v406_v53, %v405_v51  ;;  %v621_v60 = vpack.c.bf16 %v422_v54, %v421_v52  ;;  %v345_v61 = vadd.f32 %v344_v57, %v862_v46  ;;  %v385_v62 = vadd.f32 %v384_v58, %v862_v46 }
 0x10a   :  { %v348_v63 = vpop.f32.mrf.mxu0  ;;  %v388_v0 = vpop.f32.mrf.mxu1  ;;  %v407_v3 = vmax.f32 %v343_v55, 0.0  ;;  %v423_v4 = vmax.f32 %v383_v56, 0.0 }
 0x10b   :  { %529 = vst [vmem:[%s947_s3 + $0x20] sm:$0xff] %v613_v59  ;;  %537 = vst [vmem:[%s947_s3 + $0x60] sm:$0xff] %v621_v60  ;;  %v349_v1 = vadd.f32 %v348_v63, %v860_v45  ;;  %v389_v2 = vadd.f32 %v388_v0, %v860_v45  ;;  %v408_v5 = vmax.f32 %v345_v61, 0.0  ;;  %v424_v6 = vmax.f32 %v385_v62, 0.0 }
 0x10c   :  { %v350_v7 = vpop.f32.mrf.mxu0  ;;  %v390_v8 = vpop.f32.mrf.mxu1 }
 0x10d   :  { %v351_v9 = vadd.f32 %v350_v7, %v862_v46  ;;  %v391_v10 = vadd.f32 %v390_v8, %v862_v46  ;;  %v614_v11 = vpack.c.bf16 %v408_v5, %v407_v3  ;;  %v622_v12 = vpack.c.bf16 %v424_v6, %v423_v4 }
 0x10e   :  { %v352_v13 = vpop.f32.mrf.mxu0  ;;  %v392_v14 = vpop.f32.mrf.mxu1  ;;  %v409_v15 = vmax.f32 %v349_v1, 0.0  ;;  %v425_v16 = vmax.f32 %v389_v2, 0.0 }
 0x10f   :  { %v410_v17 = vmax.f32 %v351_v9, 0.0  ;;  %v426_v18 = vmax.f32 %v391_v10, 0.0  ;;  %530 = vst [vmem:[%s947_s3 + $0x28] sm:$0xff] %v614_v11  ;;  %538 = vst [vmem:[%s947_s3 + $0x68] sm:$0xff] %v622_v12  ;;  %v353_v19 = vadd.f32 %v352_v13, %v860_v45  ;;  %v393_v20 = vadd.f32 %v392_v14, %v860_v45 }
 0x110   :  { %v354_v21 = vpop.f32.mrf.mxu0  ;;  %v394_v22 = vpop.f32.mrf.mxu1 }
 0x111   :  { %v615_v23 = vpack.c.bf16 %v410_v17, %v409_v15  ;;  %v623_v24 = vpack.c.bf16 %v426_v18, %v425_v16  ;;  %v355_v25 = vadd.f32 %v354_v21, %v862_v46  ;;  %v395_v26 = vadd.f32 %v394_v22, %v862_v46 }
 0x112   :  { %v411_v27 = vmax.f32 %v353_v19, 0.0  ;;  %v427_v28 = vmax.f32 %v393_v20, 0.0 }
 0x113   :  { %531 = vst [vmem:[%s947_s3 + $0x30] sm:$0xff] %v615_v23  ;;  %539 = vst [vmem:[%s947_s3 + $0x70] sm:$0xff] %v623_v24  ;;  %v412_v29 = vmax.f32 %v355_v25, 0.0  ;;  %v428_v45 = vmax.f32 %v395_v26, 0.0 }
 0x115   :  { %v616_v30 = vpack.c.bf16 %v412_v29, %v411_v27  ;;  %v624_v31 = vpack.c.bf16 %v428_v45, %v427_v28 }
 0x117   :  { %532 = vst [vmem:[%s947_s3 + $0x38] sm:$0xff] %v616_v30  ;;  %540 = vst [vmem:[%s947_s3 + $0x78] sm:$0xff] %v624_v31 }

// kernel: gaflow_forward.17
= control target key start
LH: loop header
LB: loop body
LE: loop exit
PB: predicated region body
PF: predicated region fallthrough
CT: control target
= control target key end

     0   :  { %v64_v48 = vlaneseq  ;;  %s978_s1 = inlined_call_operand.vmem [shape: bf16[256,256], index: 1, kind: input, shape index: {}]   ;;  %s979_s0 = inlined_call_operand.vmem [shape: bf16[128,256], index: 0, kind: input, shape index: {}]   ;;  %s980_s2 = inlined_call_operand.vmem [shape: f32[1,256], index: 2, kind: input, shape index: {}]   ;;  %s981_s3 = inlined_call_operand.vmem [shape: bf16[128,256], index: 3, kind: output, shape index: {}]  }
   0x1   :  { %v655_v0 = vld [vmem:[%s978_s1 + $0x74] ss:$8 sps:$4 sm:$0xff]   ;;  %v657_v1 = vld [vmem:[%s978_s1 + $0x70] ss:$8 sps:$4 sm:$0xff]   ;;  %v658_v2 = vld [vmem:[%s978_s1 + $0x64] ss:$8 sps:$4 sm:$0xff]  }
   0x2   :  { %314 = vmatprep.subr.bf16.mxu0 %v655_v0  ;;  %623 = vmatprep.subr.bf16.mxu1 %v655_v0  ;;  %v660_v3 = vld [vmem:[%s978_s1 + $0x60] ss:$8 sps:$4 sm:$0xff]   ;;  %v661_v4 = vld [vmem:[%s978_s1 + $0x54] ss:$8 sps:$4 sm:$0xff]   ;;  %v663_v5 = vld [vmem:[%s978_s1 + $0x50] ss:$8 sps:$4 sm:$0xff]  }
   0x3   :  { %315 = vmatpush1.bf16.msra.mxu0 %v657_v1  ;;  %639 = vmatpush1.bf16.msra.mxu1 %v657_v1  ;;  %v664_v6 = vld [vmem:[%s978_s1 + $0x44] ss:$8 sps:$4 sm:$0xff]   ;;  %v666_v7 = vld [vmem:[%s978_s1 + $0x40] ss:$8 sps:$4 sm:$0xff]   ;;  %v667_v8 = vld [vmem:[%s978_s1 + $0x34] ss:$8 sps:$4 sm:$0xff]  }
   0x4   :  { %316 = vmatprep.subr.bf16.mxu0 %v658_v2  ;;  %624 = vmatprep.subr.bf16.mxu1 %v658_v2  ;;  %v669_v9 = vld [vmem:[%s978_s1 + $0x30] ss:$8 sps:$4 sm:$0xff]   ;;  %v670_v10 = vld [vmem:[%s978_s1 + $0x24] ss:$8 sps:$4 sm:$0xff]   ;;  %v672_v11 = vld [vmem:[%s978_s1 + $0x20] ss:$8 sps:$4 sm:$0xff]  }
   0x5   :  { %v673_v12 = vld [vmem:[%s978_s1 + $0x14] ss:$8 sps:$4 sm:$0xff]   ;;  %v705_v13 = vld [vmem:[%s979_s0 + $0x4] ss:$8 sps:$4 sm:$0xff]   ;;  %v675_v14 = vld [vmem:[%s978_s1 + $0x10] ss:$8 sps:$4 sm:$0xff]  }
   0x6   :  { %v708_v15 = vld [vmem:[%s979_s0 + $0x44] ss:$8 sps:$4 sm:$0xff]   ;;  %346 = vmatprep.mubr.bf16.mxu0 %v705_v13  ;;  %v678_v17 = vld [vmem:[%s978_s1] ss:$8 sps:$4 sm:$0xff]   ;;  %v679_v18 = vld [vmem:[%s978_s1 + $0xf4] ss:$8 sps:$4 sm:$0xff]  }
   0x7   :  { %317 = vmatpush1.bf16.msra.mxu0 %v660_v3  ;;  %640 = vmatpush1.bf16.msra.mxu1 %v660_v3  ;;  %v676_v16 = vld [vmem:[%s978_s1 + $0x4] ss:$8 sps:$4 sm:$0xff]   ;;  %v681_v19 = vld [vmem:[%s978_s1 + $0xf0] ss:$8 sps:$4 sm:$0xff]   ;;  %v684_v21 = vld [vmem:[%s978_s1 + $0xe0] ss:$8 sps:$4 sm:$0xff]  }
   0x8   :  { %318 = vmatprep.subr.bf16.mxu0 %v661_v4  ;;  %625 = vmatprep.subr.bf16.mxu1 %v661_v4  ;;  %v682_v20 = vld [vmem:[%s978_s1 + $0xe4] ss:$8 sps:$4 sm:$0xff]   ;;  %v685_v22 = vld [vmem:[%s978_s1 + $0xd4] ss:$8 sps:$4 sm:$0xff]   ;;  %v687_v23 = vld [vmem:[%s978_s1 + $0xd0] ss:$8 sps:$4 sm:$0xff]  }
   0x9   :  { %386 = vmatprep.mubr.bf16.mxu1 %v708_v15  ;;  %v688_v24 = vld [vmem:[%s978_s1 + $0xc4] ss:$8 sps:$4 sm:$0xff]   ;;  %v690_v25 = vld [vmem:[%s978_s1 + $0xc0] ss:$8 sps:$4 sm:$0xff]   ;;  %v691_v26 = vld [vmem:[%s978_s1 + $0xb4] ss:$8 sps:$4 sm:$0xff]  }
   0xa   :  { %v693_v27 = vld [vmem:[%s978_s1 + $0xb0] ss:$8 sps:$4 sm:$0xff]   ;;  %v694_v28 = vld [vmem:[%s978_s1 + $0xa4] ss:$8 sps:$4 sm:$0xff]   ;;  %v696_v29 = vld [vmem:[%s978_s1 + $0xa0] ss:$8 sps:$4 sm:$0xff]  }
   0xb   :  { %319 = vmatpush1.bf16.msra.mxu0 %v663_v5  ;;  %641 = vmatpush1.bf16.msra.mxu1 %v663_v5  ;;  %v697_v30 = vld [vmem:[%s978_s1 + $0x94] ss:$8 sps:$4 sm:$0xff]   ;;  %v699_v31 = vld [vmem:[%s978_s1 + $0x90] ss:$8 sps:$4 sm:$0xff]   ;;  %v700_v32 = vld [vmem:[%s978_s1 + $0x84] ss:$8 sps:$4 sm:$0xff]  }
   0xc   :  { %320 = vmatprep.subr.bf16.mxu0 %v664_v6  ;;  %626 = vmatprep.subr.bf16.mxu1 %v664_v6  ;;  %v702_v33 = vld [vmem:[%s978_s1 + $0x80] ss:$8 sps:$4 sm:$0xff]   ;;  %v709_v36 = vld [vmem:[%s979_s0 + $0x14] ss:$8 sps:$4 sm:$0xff]   ;;  %v713_v38 = vld [vmem:[%s979_s0 + $0x10] ss:$8 sps:$4 sm:$0xff]  }
   0xd   :  { %v703_v34 = vld [vmem:[%s979_s0] ss:$8 sps:$4 sm:$0xff]   ;;  %v711_v37 = vld [vmem:[%s979_s0 + $0x54] ss:$8 sps:$4 sm:$0xff]   ;;  %v714_v39 = vld [vmem:[%s979_s0 + $0x50] ss:$8 sps:$4 sm:$0xff]  }
   0xe   :  { %v706_v35 = vld [vmem:[%s979_s0 + $0x40] ss:$8 sps:$4 sm:$0xff]   ;;  %v715_v40 = vld [vmem:[%s979_s0 + $0x24] ss:$8 sps:$4 sm:$0xff]   ;;  %v721_v44 = vld [vmem:[%s979_s0 + $0x34] ss:$8 sps:$4 sm:$0xff]  }
   0xf   :  { %321 = vmatpush1.bf16.msra.mxu0 %v666_v7  ;;  %642 = vmatpush1.bf16.msra.mxu1 %v666_v7  ;;  %v717_v41 = vld [vmem:[%s979_s0 + $0x64] ss:$8 sps:$4 sm:$0xff]   ;;  %v719_v42 = vld [vmem:[%s979_s0 + $0x20] ss:$8 sps:$4 sm:$0xff]   ;;  %v723_v45 = vld [vmem:[%s979_s0 + $0x74] ss:$8 sps:$4 sm:$0xff]  }
  0x10   :  { %322 = vmatprep.subr.bf16.mxu0 %v667_v8  ;;  %627 = vmatprep.subr.bf16.mxu1 %v667_v8  ;;  %v720_v43 = vld [vmem:[%s979_s0 + $0x60] ss:$8 sps:$4 sm:$0xff]   ;;  %v725_v46 = vld [vmem:[%s979_s0 + $0x30] ss:$8 sps:$4 sm:$0xff]   ;;  %v65_v49 = vshrl.u32 %v64_v48, 7 }
  0x11   :  { %v726_v47 = vld [vmem:[%s979_s0 + $0x70] ss:$8 sps:$4 sm:$0xff]   ;;  %v62_v52 = vld [vmem:[%s980_s2] sm:$0x3] }
  0x12   :  { %v66_v50 = vsub.s32 0, %v65_v49  ;;  %v70_v51 = vsub.s32 1, %v65_v49 }
  0x13   :  { %323 = vmatpush1.bf16.msra.mxu0 %v669_v9  ;;  %643 = vmatpush1.bf16.msra.mxu1 %v669_v9 }
  0x14   :  { %324 = vmatprep.subr.bf16.mxu0 %v670_v10  ;;  %628 = vmatprep.subr.bf16.mxu1 %v670_v10  ;;  %v894_v53 = vrot.slane %v62_v52, %v66_v50  ;;  %v896_v54 = vrot.slane %v62_v52, %v70_v51 }
  0x17   :  { %325 = vmatpush1.bf16.msra.mxu0 %v672_v11  ;;  %644 = vmatpush1.bf16.msra.mxu1 %v672_v11 }
  0x18   :  { %326 = vmatprep.subr.bf16.mxu0 %v673_v12  ;;  %629 = vmatprep.subr.bf16.mxu1 %v673_v12 }
  0x1b   :  { %327 = vmatpush1.bf16.msra.mxu0 %v675_v14  ;;  %645 = vmatpush1.bf16.msra.mxu1 %v675_v14 }
  0x1c   :  { %328 = vmatprep.subr.bf16.mxu0 %v676_v16  ;;  %630 = vmatprep.subr.bf16.mxu1 %v676_v16 }
  0x1f   :  { %329 = vmatpush1.bf16.msra.mxu0 %v678_v17  ;;  %646 = vmatpush1.bf16.msra.mxu1 %v678_v17 }
  0x20   :  { %330 = vmatprep.subr.bf16.mxu0 %v679_v18  ;;  %631 = vmatprep.subr.bf16.mxu1 %v679_v18 }
  0x23   :  { %331 = vmatpush2.bf16.msra.mxu0 %v681_v19  ;;  %647 = vmatpush2.bf16.msra.mxu1 %v681_v19 }
  0x24   :  { %332 = vmatprep.subr.bf16.mxu0 %v682_v20  ;;  %632 = vmatprep.subr.bf16.mxu1 %v682_v20 }
  0x27   :  { %333 = vmatpush2.bf16.msra.mxu0 %v684_v21  ;;  %648 = vmatpush2.bf16.msra.mxu1 %v684_v21 }
  0x28   :  { %334 = vmatprep.subr.bf16.mxu0 %v685_v22  ;;  %633 = vmatprep.subr.bf16.mxu1 %v685_v22 }
  0x2b   :  { %335 = vmatpush2.bf16.msra.mxu0 %v687_v23  ;;  %649 = vmatpush2.bf16.msra.mxu1 %v687_v23 }
  0x2c   :  { %336 = vmatprep.subr.bf16.mxu0 %v688_v24  ;;  %634 = vmatprep.subr.bf16.mxu1 %v688_v24 }
  0x2f   :  { %337 = vmatpush2.bf16.msra.mxu0 %v690_v25  ;;  %650 = vmatpush2.bf16.msra.mxu1 %v690_v25 }
  0x30   :  { %338 = vmatprep.subr.bf16.mxu0 %v691_v26  ;;  %635 = vmatprep.subr.bf16.mxu1 %v691_v26 }
  0x33   :  { %339 = vmatpush2.bf16.msra.mxu0 %v693_v27  ;;  %651 = vmatpush2.bf16.msra.mxu1 %v693_v27 }
  0x34   :  { %340 = vmatprep.subr.bf16.mxu0 %v694_v28  ;;  %636 = vmatprep.subr.bf16.mxu1 %v694_v28 }
  0x37   :  { %341 = vmatpush2.bf16.msra.mxu0 %v696_v29  ;;  %652 = vmatpush2.bf16.msra.mxu1 %v696_v29 }
  0x38   :  { %342 = vmatprep.subr.bf16.mxu0 %v697_v30  ;;  %637 = vmatprep.subr.bf16.mxu1 %v697_v30 }
  0x3b   :  { %343 = vmatpush2.bf16.msra.mxu0 %v699_v31  ;;  %653 = vmatpush2.bf16.msra.mxu1 %v699_v31 }
  0x3c   :  { %344 = vmatprep.subr.bf16.mxu0 %v700_v32  ;;  %638 = vmatprep.subr.bf16.mxu1 %v700_v32 }
  0x3f   :  { %345 = vmatpush2.bf16.msra.mxu0 %v702_v33  ;;  %654 = vmatpush2.bf16.msra.mxu1 %v702_v33 }
  0x42   :  { %347 = vmatmul.mubr.bf16.vlgmr.msra.gmra.mxu0 %v703_v34  ;;  %387 = vmatmul.mubr.bf16.vlgmr.msra.gmra.mxu1 %v706_v35 }
  0x43   :  { %356 = vmatprep.mubr.bf16.mxu0 %v709_v36  ;;  %396 = vmatprep.mubr.bf16.mxu1 %v711_v37 }
  0x4a   :  { %357 = vmatmul.mubr.bf16.gmra.mxu0 %v713_v38  ;;  %397 = vmatmul.mubr.bf16.gmra.mxu1 %v714_v39 }
  0x4b   :  { %366 = vmatprep.mubr.bf16.mxu0 %v715_v40  ;;  %406 = vmatprep.mubr.bf16.mxu1 %v717_v41 }
  0x52   :  { %367 = vmatmul.mubr.bf16.gmra.mxu0 %v719_v42  ;;  %407 = vmatmul.mubr.bf16.gmra.mxu1 %v720_v43 }
  0x53   :  { %376 = vmatprep.mubr.bf16.mxu0 %v721_v44  ;;  %416 = vmatprep.mubr.bf16.mxu1 %v723_v45 }
  0x5a   :  { %377 = vmatmul.mubr.bf16.gmra.mxu0 %v725_v46  ;;  %417 = vmatmul.mubr.bf16.gmra.mxu1 %v726_v47 }
 0x102   :  { %v348_v55 = vpop.f32.mrf.mxu0  ;;  %v388_v56 = vpop.f32.mrf.mxu1 }
 0x103   :  { %v349_v59 = vadd.f32 %v348_v55, %v894_v53  ;;  %v389_v60 = vadd.f32 %v388_v56, %v894_v53 }
 0x104   :  { %v350_v57 = vpop.f32.mrf.mxu0  ;;  %v390_v58 = vpop.f32.mrf.mxu1 }
 0x105   :  { %v351_v61 = vadd.f32 %v350_v57, %v896_v54  ;;  %v391_v62 = vadd.f32 %v390_v58, %v896_v54 }
 0x106   :  { %v352_v63 = vpop.f32.mrf.mxu0  ;;  %v392_v0 = vpop.f32.mrf.mxu1 }
 0x107   :  { %v607_v1 = vpack.c.bf16 %v351_v61, %v349_v59  ;;  %v615_v2 = vpack.c.bf16 %v391_v62, %v389_v60  ;;  %v353_v5 = vadd.f32 %v352_v63, %v894_v53  ;;  %v393_v6 = vadd.f32 %v392_v0, %v894_v53 }
 0x108   :  { %v354_v3 = vpop.f32.mrf.mxu0  ;;  %v394_v4 = vpop.f32.mrf.mxu1 }
 0x109   :  { %523 = vst [vmem:[%s981_s3] sm:$0xff] %v607_v1  ;;  %531 = vst [vmem:[%s981_s3 + $0x40] sm:$0xff] %v615_v2  ;;  %v355_v7 = vadd.f32 %v354_v3, %v896_v54  ;;  %v395_v8 = vadd.f32 %v394_v4, %v896_v54 }
 0x10a   :  { %v358_v9 = vpop.f32.mrf.mxu0  ;;  %v398_v10 = vpop.f32.mrf.mxu1 }
 0x10b   :  { %v608_v11 = vpack.c.bf16 %v355_v7, %v353_v5  ;;  %v616_v12 = vpack.c.bf16 %v395_v8, %v393_v6  ;;  %v359_v15 = vadd.f32 %v358_v9, %v894_v53  ;;  %v399_v16 = vadd.f32 %v398_v10, %v894_v53 }
 0x10c   :  { %v360_v13 = vpop.f32.mrf.mxu0  ;;  %v400_v14 = vpop.f32.mrf.mxu1 }
 0x10d   :  { %524 = vst [vmem:[%s981_s3 + $0x8] sm:$0xff] %v608_v11  ;;  %532 = vst [vmem:[%s981_s3 + $0x48] sm:$0xff] %v616_v12  ;;  %v361_v17 = vadd.f32 %v360_v13, %v896_v54  ;;  %v401_v18 = vadd.f32 %v400_v14, %v896_v54 }
 0x10e   :  { %v362_v19 = vpop.f32.mrf.mxu0  ;;  %v402_v20 = vpop.f32.mrf.mxu1 }
 0x10f   :  { %v609_v21 = vpack.c.bf16 %v361_v17, %v359_v15  ;;  %v617_v22 = vpack.c.bf16 %v401_v18, %v399_v16  ;;  %v363_v25 = vadd.f32 %v362_v19, %v894_v53  ;;  %v403_v26 = vadd.f32 %v402_v20, %v894_v53 }
 0x110   :  { %v364_v23 = vpop.f32.mrf.mxu0  ;;  %v404_v24 = vpop.f32.mrf.mxu1 }
 0x111   :  { %525 = vst [vmem:[%s981_s3 + $0x10] sm:$0xff] %v609_v21  ;;  %533 = vst [vmem:[%s981_s3 + $0x50] sm:$0xff] %v617_v22  ;;  %v365_v27 = vadd.f32 %v364_v23, %v896_v54  ;;  %v405_v28 = vadd.f32 %v404_v24, %v896_v54 }
 0x112   :  { %v368_v29 = vpop.f32.mrf.mxu0  ;;  %v408_v30 = vpop.f32.mrf.mxu1 }
 0x113   :  { %v610_v31 = vpack.c.bf16 %v365_v27, %v363_v25  ;;  %v618_v32 = vpack.c.bf16 %v405_v28, %v403_v26  ;;  %v369_v35 = vadd.f32 %v368_v29, %v894_v53  ;;  %v409_v36 = vadd.f32 %v408_v30, %v894_v53 }
 0x114   :  { %v370_v33 = vpop.f32.mrf.mxu0  ;;  %v410_v34 = vpop.f32.mrf.mxu1 }
 0x115   :  { %526 = vst [vmem:[%s981_s3 + $0x18] sm:$0xff] %v610_v31  ;;  %534 = vst [vmem:[%s981_s3 + $0x58] sm:$0xff] %v618_v32  ;;  %v371_v37 = vadd.f32 %v370_v33, %v896_v54  ;;  %v411_v38 = vadd.f32 %v410_v34, %v896_v54 }
 0x116   :  { %v372_v39 = vpop.f32.mrf.mxu0  ;;  %v412_v40 = vpop.f32.mrf.mxu1 }
 0x117   :  { %v611_v41 = vpack.c.bf16 %v371_v37, %v369_v35  ;;  %v619_v42 = vpack.c.bf16 %v411_v38, %v409_v36  ;;  %v373_v45 = vadd.f32 %v372_v39, %v894_v53  ;;  %v413_v46 = vadd.f32 %v412_v40, %v894_v53 }
 0x118   :  { %v374_v43 = vpop.f32.mrf.mxu0  ;;  %v414_v44 = vpop.f32.mrf.mxu1 }
 0x119   :  { %527 = vst [vmem:[%s981_s3 + $0x20] sm:$0xff] %v611_v41  ;;  %535 = vst [vmem:[%s981_s3 + $0x60] sm:$0xff] %v619_v42  ;;  %v375_v47 = vadd.f32 %v374_v43, %v896_v54  ;;  %v415_v48 = vadd.f32 %v414_v44, %v896_v54 }
 0x11a   :  { %v378_v49 = vpop.f32.mrf.mxu0  ;;  %v418_v50 = vpop.f32.mrf.mxu1 }
 0x11b   :  { %v612_v51 = vpack.c.bf16 %v375_v47, %v373_v45  ;;  %v620_v52 = vpack.c.bf16 %v415_v48, %v413_v46  ;;  %v379_v57 = vadd.f32 %v378_v49, %v894_v53  ;;  %v419_v58 = vadd.f32 %v418_v50, %v894_v53 }
 0x11c   :  { %v380_v55 = vpop.f32.mrf.mxu0  ;;  %v420_v56 = vpop.f32.mrf.mxu1 }
 0x11d   :  { %528 = vst [vmem:[%s981_s3 + $0x28] sm:$0xff] %v612_v51  ;;  %536 = vst [vmem:[%s981_s3 + $0x68] sm:$0xff] %v620_v52  ;;  %v381_v59 = vadd.f32 %v380_v55, %v896_v54  ;;  %v421_v60 = vadd.f32 %v420_v56, %v896_v54 }
 0x11e   :  { %v382_v61 = vpop.f32.mrf.mxu0  ;;  %v422_v62 = vpop.f32.mrf.mxu1 }
 0x11f   :  { %v613_v63 = vpack.c.bf16 %v381_v59, %v379_v57  ;;  %v621_v0 = vpack.c.bf16 %v421_v60, %v419_v58  ;;  %v383_v3 = vadd.f32 %v382_v61, %v894_v53  ;;  %v423_v4 = vadd.f32 %v422_v62, %v894_v53 }
 0x120   :  { %v384_v1 = vpop.f32.mrf.mxu0  ;;  %v424_v2 = vpop.f32.mrf.mxu1 }
 0x121   :  { %529 = vst [vmem:[%s981_s3 + $0x30] sm:$0xff] %v613_v63  ;;  %537 = vst [vmem:[%s981_s3 + $0x70] sm:$0xff] %v621_v0  ;;  %v385_v5 = vadd.f32 %v384_v1, %v896_v54  ;;  %v425_v6 = vadd.f32 %v424_v2, %v896_v54 }
 0x123   :  { %v614_v7 = vpack.c.bf16 %v385_v5, %v383_v3  ;;  %v622_v8 = vpack.c.bf16 %v425_v6, %v423_v4 }
 0x125   :  { %530 = vst [vmem:[%s981_s3 + $0x38] sm:$0xff] %v614_v7  ;;  %538 = vst [vmem:[%s981_s3 + $0x78] sm:$0xff] %v622_v8 }

// kernel: gaflow_forward.19
= control target key start
LH: loop header
LB: loop body
LE: loop exit
PB: predicated region body
PF: predicated region fallthrough
CT: control target
= control target key end

     0   :  { %s802_s9 = smov 0   ;;  %s804_s10 = smov 0   ;;  %s889_s0 = inlined_call_operand.vmem [shape: bf16[2,64,256], index: 0, kind: input, shape index: {}]   ;;  %s890_s1 = inlined_call_operand.vmem [shape: bf16[2,256,64], index: 1, kind: input, shape index: {}]   ;;  %s891_s2 = inlined_call_operand.vmem [shape: bf16[2,64,64], index: 2, kind: output, shape index: {}]  }
   0x1   :  { %s806_s11 = smov 0  }
   0x2 LB: > { %s24_s12 = sadd.s32 1, %s781_s10  ;;  %p603_p0 = scmp.ge.s32.totalorder %s785_s11, 1  ;;  %s785_s11 = sphi %s806_s11, %s12_s11   ;;  %s781_s10 = sphi %s804_s10, %s893_s10   ;;  %s777_s9 = sphi %s802_s9, %s892_s9  }
   0x3   : > { %p26_p1 = scmp.ge.s32.totalorder %s24_s12, 2  ;;  %p144_p2 = scmp.lt.s32.totalorder %s785_s11, 3 }
   0x5   : > { %s895_s12 = smov (%p26_p1, %s24_s12), 0  ;;  %p145_p3 = pnand %p603_p0, %p144_p2 }
   0x6   : > { %p181_p4 = scmp.lt.s32.totalorder (!%p145_p3), %s777_s9, 1 }
   0x7   : > { %148 = sbr.rel (%p145_p3) target bundleno = 262 (0x106), region = 28 }
   0xc   : > { %s897_s9 = smov (!%p181_p4, %s777_s9), 1  ;;  %vm488_vm0 = vcmask 519168  }
   0xd   : > { %s645_s13 = sshll.u32 %s897_s9, 7  ;;  %s644_s17 = sshll.u32 %s897_s9, 6 }
   0xe   : > { %s826_s16 = scalar_lea.vmem %s890_s1, %s645_s13  ;;  %s841_s20 = scalar_lea.vmem %s889_s0, %s644_s17 }
   0xf   : > { %v735_v0 = vld [vmem:[%s826_s16 + $0x78] sm:$0xff]   ;;  %v737_v2 = vld [vmem:[%s826_s16 + $0x70] sm:$0xff]   ;;  %v739_v4 = vld [vmem:[%s826_s16 + $0x68] sm:$0xff]   ;;  %s646_s21 = sshll.u32 %s897_s9, 5 }
  0x10   : > { %v736_v1 = vld [vmem:[%s826_s16 + $0x38] sm:$0xff]   ;;  %655 = vmatprep.subr.bf16.mxu0 %v735_v0  ;;  %695 = vmatprep.subr.bf16.mxu1 %v735_v0  ;;  %v738_v3 = vld [vmem:[%s826_s16 + $0x30] sm:$0xff]   ;;  %v740_v5 = vld [vmem:[%s826_s16 + $0x28] sm:$0xff]   ;;  %s862_s24 = scalar_lea.vmem %s891_s2, %s646_s21 }
  0x11   : > { %656 = vmatpush3.bf16.msra.mxu0 %v736_v1  ;;  %703 = vmatpush3.bf16.msra.mxu1 %v736_v1  ;;  %v741_v6 = vld [vmem:[%s826_s16 + $0x60] sm:$0xff]   ;;  %v743_v8 = vld [vmem:[%s826_s16 + $0x58] sm:$0xff]   ;;  %v745_v10 = vld [vmem:[%s826_s16 + $0x50] sm:$0xff]  }
  0x12   : > { %657 = vmatprep.subr.bf16.mxu0 %v737_v2  ;;  %696 = vmatprep.subr.bf16.mxu1 %v737_v2  ;;  %v742_v7 = vld [vmem:[%s826_s16 + $0x20] sm:$0xff]   ;;  %v744_v9 = vld [vmem:[%s826_s16 + $0x18] sm:$0xff]   ;;  %v746_v13 = vld [vmem:[%s826_s16 + $0x10] sm:$0xff]  }
  0x13   : > { %v753_v11 = vld [vmem:[%s841_s20 + $0x4] ss:$8 sps:$4 sm:$0xff]   ;;  %v751_v18 = vld [vmem:[%s841_s20] ss:$8 sps:$4 sm:$0xff]   ;;  %v757_v20 = vld [vmem:[%s841_s20 + $0x14] ss:$8 sps:$4 sm:$0xff]  }
  0x14   : > { %v756_v12 = vld [vmem:[%s841_s20 + $0x24] ss:$8 sps:$4 sm:$0xff]   ;;  %415 = vmatprep.mubr.bf16.mxu0 %v753_v11  ;;  %v754_v19 = vld [vmem:[%s841_s20 + $0x20] ss:$8 sps:$4 sm:$0xff]   ;;  %v759_v21 = vld [vmem:[%s841_s20 + $0x34] ss:$8 sps:$4 sm:$0xff]  }
  0x15   : > { %658 = vmatpush3.bf16.msra.mxu0 %v738_v3  ;;  %704 = vmatpush3.bf16.msra.mxu1 %v738_v3  ;;  %v747_v14 = vld [vmem:[%s826_s16 + $0x48] sm:$0xff]   ;;  %v749_v16 = vld [vmem:[%s826_s16 + $0x40] sm:$0xff]   ;;  %v761_v22 = vld [vmem:[%s841_s20 + $0x10] ss:$8 sps:$4 sm:$0xff]  }
  0x16   : > { %659 = vmatprep.subr.bf16.mxu0 %v739_v4  ;;  %697 = vmatprep.subr.bf16.mxu1 %v739_v4  ;;  %v748_v15 = vld [vmem:[%s826_s16 + $0x8] sm:$0xff]   ;;  %v750_v17 = vld [vmem:[%s826_s16] sm:$0xff]   ;;  %v762_v23 = vld [vmem:[%s841_s20 + $0x30] ss:$8 sps:$4 sm:$0xff]  }
  0x17   : > { %431 = vmatprep.mubr.bf16.mxu1 %v756_v12 }
  0x19   : > { %660 = vmatpush3.bf16.msra.mxu0 %v740_v5  ;;  %705 = vmatpush3.bf16.msra.mxu1 %v740_v5 }
  0x1a   : > { %661 = vmatprep.subr.bf16.mxu0 %v741_v6  ;;  %698 = vmatprep.subr.bf16.mxu1 %v741_v6 }
  0x1d   : > { %662 = vmatpush3.bf16.msra.mxu0 %v742_v7  ;;  %706 = vmatpush3.bf16.msra.mxu1 %v742_v7 }
  0x1e   : > { %663 = vmatprep.subr.bf16.mxu0 %v743_v8  ;;  %699 = vmatprep.subr.bf16.mxu1 %v743_v8 }
  0x21   : > { %664 = vmatpush3.bf16.msra.mxu0 %v744_v9  ;;  %707 = vmatpush3.bf16.msra.mxu1 %v744_v9 }
  0x22   : > { %665 = vmatprep.subr.bf16.mxu0 %v745_v10  ;;  %700 = vmatprep.subr.bf16.mxu1 %v745_v10 }
  0x25   : > { %666 = vmatpush3.bf16.msra.mxu0 %v746_v13  ;;  %708 = vmatpush3.bf16.msra.mxu1 %v746_v13 }
  0x26   : > { %667 = vmatprep.subr.bf16.mxu0 %v747_v14  ;;  %701 = vmatprep.subr.bf16.mxu1 %v747_v14 }
  0x29   : > { %668 = vmatpush3.bf16.msra.mxu0 %v748_v15  ;;  %709 = vmatpush3.bf16.msra.mxu1 %v748_v15 }
  0x2a   : > { %669 = vmatprep.subr.bf16.mxu0 %v749_v16  ;;  %702 = vmatprep.subr.bf16.mxu1 %v749_v16 }
  0x2d   : > { %670 = vmatpush3.bf16.msra.mxu0 %v750_v17  ;;  %710 = vmatpush3.bf16.msra.mxu1 %v750_v17 }
  0x30   : > { %416 = vmatmul.mubr.bf16.vlgmr.msra.gmra.mxu0 %v751_v18  ;;  %432 = vmatmul.mubr.bf16.vlgmr.msra.gmra.mxu1 %v754_v19 }
  0x31   : > { %423 = vmatprep.mubr.bf16.mxu0 %v757_v20  ;;  %439 = vmatprep.mubr.bf16.mxu1 %v759_v21 }
  0x38   : > { %424 = vmatmul.mubr.bf16.gmra.mxu0 %v761_v22  ;;  %440 = vmatmul.mubr.bf16.gmra.mxu1 %v762_v23 }
  0xf0   : > { %v671_v24 = vpop.f32.mrf.mxu0  ;;  %v683_v25 = vpop.f32.mrf.mxu1 }
  0xf2   : > { %v672_v26 = vpop.f32.mrf.mxu0  ;;  %v684_v27 = vpop.f32.mrf.mxu1 }
  0xf3   : > { %v673_v28 = vadd.f32 %v672_v26, %v671_v24  ;;  %v685_v29 = vadd.f32 %v684_v27, %v683_v25 }
  0xf4   : > { %v674_v30 = vpop.f32.mrf.mxu0  ;;  %v686_v31 = vpop.f32.mrf.mxu1 }
  0xf5   : > { %v448_v32 = vmul.f32 0.0625, %v673_v28  ;;  %v452_v33 = vmul.f32 0.0625, %v685_v29 }
  0xf6   : > { %v675_v34 = vpop.f32.mrf.mxu0  ;;  %v687_v35 = vpop.f32.mrf.mxu1 }
  0xf7   : > { %v647_v36 = vpack.c.bf16 %v448_v32, %v448_v32  ;;  %v651_v37 = vpack.c.bf16 %v452_v33, %v452_v33  ;;  %v676_v38 = vadd.f32 %v675_v34, %v674_v30  ;;  %v688_v39 = vadd.f32 %v687_v35, %v686_v31 }
  0xf8   : > { %v677_v40 = vpop.f32.mrf.mxu0  ;;  %v689_v41 = vpop.f32.mrf.mxu1 }
  0xf9   : > { %489 = vst.msk [vmem:[%s862_s24] sm:$0xf] %vm488_vm0, %v647_v36  ;;  %493 = vst.msk [vmem:[%s862_s24 + $0x10] sm:$0xf] %vm488_vm0, %v651_v37  ;;  %v449_v42 = vmul.f32 0.0625, %v676_v38  ;;  %v453_v43 = vmul.f32 0.0625, %v688_v39 }
  0xfa   : > { %v678_v44 = vpop.f32.mrf.mxu0  ;;  %v690_v45 = vpop.f32.mrf.mxu1 }
  0xfb   : > { %v648_v46 = vpack.c.bf16 %v449_v42, %v449_v42  ;;  %v652_v47 = vpack.c.bf16 %v453_v43, %v453_v43  ;;  %v679_v48 = vadd.f32 %v678_v44, %v677_v40  ;;  %v691_v49 = vadd.f32 %v690_v45, %v689_v41 }
  0xfc   : > { %v680_v50 = vpop.f32.mrf.mxu0  ;;  %v692_v51 = vpop.f32.mrf.mxu1 }
  0xfd   : > { %490 = vst.msk [vmem:[%s862_s24 + $0x4] sm:$0xf] %vm488_vm0, %v648_v46  ;;  %494 = vst.msk [vmem:[%s862_s24 + $0x14] sm:$0xf] %vm488_vm0, %v652_v47  ;;  %v450_v52 = vmul.f32 0.0625, %v679_v48  ;;  %v454_v53 = vmul.f32 0.0625, %v691_v49 }
  0xfe   : > { %v681_v54 = vpop.f32.mrf.mxu0  ;;  %v693_v55 = vpop.f32.mrf.mxu1 }
  0xff   : > { %v649_v56 = vpack.c.bf16 %v450_v52, %v450_v52  ;;  %v653_v57 = vpack.c.bf16 %v454_v53, %v454_v53  ;;  %v682_v58 = vadd.f32 %v681_v54, %v680_v50  ;;  %v694_v59 = vadd.f32 %v693_v55, %v692_v51 }
 0x101   : > { %491 = vst.msk [vmem:[%s862_s24 + $0x8] sm:$0xf] %vm488_vm0, %v649_v56  ;;  %495 = vst.msk [vmem:[%s862_s24 + $0x18] sm:$0xf] %vm488_vm0, %v653_v57  ;;  %v451_v60 = vmul.f32 0.0625, %v682_v58  ;;  %v455_v61 = vmul.f32 0.0625, %v694_v59 }
 0x103   : > { %v650_v62 = vpack.c.bf16 %v451_v60, %v451_v60  ;;  %v654_v63 = vpack.c.bf16 %v455_v61, %v455_v61 }
 0x105   : > { %492 = vst.msk [vmem:[%s862_s24 + $0xc] sm:$0xf] %vm488_vm0, %v650_v62  ;;  %496 = vst.msk [vmem:[%s862_s24 + $0x1c] sm:$0xf] %vm488_vm0, %v654_v63 }
 0x106 PF: > { %s12_s11 = sadd.s32 1, %s785_s11   ;;  %s892_s9 = smov %s781_s10 }
 0x107   : > { %p9_p5 = scmp.ge.s32.totalorder %s12_s11, 4   ;;  %s893_s10 = smov %s895_s12 }
 0x109   :  { %11 = sbr.rel (!%p9_p5) target bundleno = 2 (0x2), region = 61 }

// kernel: gaflow_forward.18
= control target key start
LH: loop header
LB: loop body
LE: loop exit
PB: predicated region body
PF: predicated region fallthrough
CT: control target
= control target key end

     0   :  { %vm259_vm0 = vcmask 523264   ;;  %v57_v40 = vlaneseq  ;;  %s1104_s1 = inlined_call_operand.vmem [shape: bf16[192,256], index: 1, kind: input, shape index: {}]   ;;  %s1105_s0 = inlined_call_operand.vmem [shape: bf16[128,192], index: 0, kind: input, shape index: {}]   ;;  %s1106_s2 = inlined_call_operand.vmem [shape: f32[1,256], index: 2, kind: input, shape index: {}]   ;;  %s1107_s3 = inlined_call_operand.vmem [shape: bf16[128,256], index: 3, kind: output, shape index: {}]  }
   0x1   :  { %v729_v0 = vld [vmem:[%s1104_s1 + $0x74] ss:$8 sps:$4 sm:$0xff]   ;;  %v731_v1 = vld [vmem:[%s1104_s1 + $0x70] ss:$8 sps:$4 sm:$0xff]   ;;  %v732_v2 = vld [vmem:[%s1104_s1 + $0x64] ss:$8 sps:$4 sm:$0xff]  }
   0x2   :  { %284 = vmatprep.subr.bf16.mxu0 %v729_v0  ;;  %705 = vmatprep.subr.bf16.mxu1 %v729_v0  ;;  %v734_v3 = vld [vmem:[%s1104_s1 + $0x60] ss:$8 sps:$4 sm:$0xff]   ;;  %v735_v4 = vld [vmem:[%s1104_s1 + $0x54] ss:$8 sps:$4 sm:$0xff]   ;;  %v737_v5 = vld [vmem:[%s1104_s1 + $0x50] ss:$8 sps:$4 sm:$0xff]  }
   0x3   :  { %285 = vmatpush1.bf16.msra.mxu0 %v731_v1  ;;  %717 = vmatpush1.bf16.msra.mxu1 %v731_v1  ;;  %v738_v6 = vld [vmem:[%s1104_s1 + $0x44] ss:$8 sps:$4 sm:$0xff]   ;;  %v740_v7 = vld [vmem:[%s1104_s1 + $0x40] ss:$8 sps:$4 sm:$0xff]   ;;  %v741_v8 = vld [vmem:[%s1104_s1 + $0x34] ss:$8 sps:$4 sm:$0xff]  }
   0x4   :  { %286 = vmatprep.subr.bf16.mxu0 %v732_v2  ;;  %706 = vmatprep.subr.bf16.mxu1 %v732_v2  ;;  %v743_v9 = vld [vmem:[%s1104_s1 + $0x30] ss:$8 sps:$4 sm:$0xff]   ;;  %v744_v10 = vld [vmem:[%s1104_s1 + $0x24] ss:$8 sps:$4 sm:$0xff]   ;;  %v746_v13 = vld [vmem:[%s1104_s1 + $0x20] ss:$8 sps:$4 sm:$0xff]  }
   0x5   :  { %v767_v11 = vld [vmem:[%s1105_s0 + $0x4] ss:$8 sps:$4 sm:$0xff]   ;;  %v747_v14 = vld [vmem:[%s1104_s1 + $0x14] ss:$8 sps:$4 sm:$0xff]   ;;  %v749_v15 = vld [vmem:[%s1104_s1 + $0x10] ss:$8 sps:$4 sm:$0xff]  }
   0x6   :  { %v770_v12 = vld [vmem:[%s1105_s0 + $0x44] ss:$8 sps:$4 sm:$0xff]   ;;  %633 = vmatprep.mubr.msk.bf16.mxu0 %vm259_vm0, %v767_v11  ;;  %v752_v17 = vld [vmem:[%s1104_s1] ss:$8 sps:$4 sm:$0xff]   ;;  %v753_v18 = vld [vmem:[%s1104_s1 + $0xb4] ss:$8 sps:$4 sm:$0xff]  }
   0x7   :  { %287 = vmatpush1.bf16.msra.mxu0 %v734_v3  ;;  %718 = vmatpush1.bf16.msra.mxu1 %v734_v3  ;;  %v750_v16 = vld [vmem:[%s1104_s1 + $0x4] ss:$8 sps:$4 sm:$0xff]   ;;  %v755_v19 = vld [vmem:[%s1104_s1 + $0xb0] ss:$8 sps:$4 sm:$0xff]   ;;  %v758_v21 = vld [vmem:[%s1104_s1 + $0xa0] ss:$8 sps:$4 sm:$0xff]  }
   0x8   :  { %288 = vmatprep.subr.bf16.mxu0 %v735_v4  ;;  %707 = vmatprep.subr.bf16.mxu1 %v735_v4  ;;  %v756_v20 = vld [vmem:[%s1104_s1 + $0xa4] ss:$8 sps:$4 sm:$0xff]   ;;  %v759_v22 = vld [vmem:[%s1104_s1 + $0x94] ss:$8 sps:$4 sm:$0xff]   ;;  %v761_v23 = vld [vmem:[%s1104_s1 + $0x90] ss:$8 sps:$4 sm:$0xff]  }
   0x9   :  { %637 = vmatprep.mubr.msk.bf16.mxu1 %vm259_vm0, %v770_v12  ;;  %v762_v24 = vld [vmem:[%s1104_s1 + $0x84] ss:$8 sps:$4 sm:$0xff]   ;;  %v764_v25 = vld [vmem:[%s1104_s1 + $0x80] ss:$8 sps:$4 sm:$0xff]   ;;  %v771_v28 = vld [vmem:[%s1105_s0 + $0x14] ss:$8 sps:$4 sm:$0xff]  }
   0xa   :  { %v765_v26 = vld [vmem:[%s1105_s0] ss:$8 sps:$4 sm:$0xff]   ;;  %v773_v29 = vld [vmem:[%s1105_s0 + $0x54] ss:$8 sps:$4 sm:$0xff]   ;;  %v775_v30 = vld [vmem:[%s1105_s0 + $0x10] ss:$8 sps:$4 sm:$0xff]  }
   0xb   :  { %289 = vmatpush1.bf16.msra.mxu0 %v737_v5  ;;  %719 = vmatpush1.bf16.msra.mxu1 %v737_v5  ;;  %v768_v27 = vld [vmem:[%s1105_s0 + $0x40] ss:$8 sps:$4 sm:$0xff]   ;;  %v776_v31 = vld [vmem:[%s1105_s0 + $0x50] ss:$8 sps:$4 sm:$0xff]   ;;  %v777_v32 = vld [vmem:[%s1105_s0 + $0x24] ss:$8 sps:$4 sm:$0xff]  }
   0xc   :  { %290 = vmatprep.subr.bf16.mxu0 %v738_v6  ;;  %708 = vmatprep.subr.bf16.mxu1 %v738_v6  ;;  %v779_v33 = vld [vmem:[%s1105_s0 + $0x64] ss:$8 sps:$4 sm:$0xff]   ;;  %v781_v34 = vld [vmem:[%s1105_s0 + $0x20] ss:$8 sps:$4 sm:$0xff]   ;;  %v783_v36 = vld [vmem:[%s1105_s0 + $0x34] ss:$8 sps:$4 sm:$0xff]  }
   0xd   :  { %v782_v35 = vld [vmem:[%s1105_s0 + $0x60] ss:$8 sps:$4 sm:$0xff]   ;;  %v785_v37 = vld [vmem:[%s1105_s0 + $0x74] ss:$8 sps:$4 sm:$0xff]   ;;  %v787_v38 = vld [vmem:[%s1105_s0 + $0x30] ss:$8 sps:$4 sm:$0xff]  }
   0xe   :  { %v788_v39 = vld [vmem:[%s1105_s0 + $0x70] ss:$8 sps:$4 sm:$0xff]   ;;  %v58_v41 = vshrl.u32 %v57_v40, 7  ;;  %v55_v43 = vld [vmem:[%s1106_s2] sm:$0x3] }
   0xf   :  { %291 = vmatpush1.bf16.msra.mxu0 %v740_v7  ;;  %720 = vmatpush1.bf16.msra.mxu1 %v740_v7 }
  0x10   :  { %292 = vmatprep.subr.bf16.mxu0 %v741_v8  ;;  %709 = vmatprep.subr.bf16.mxu1 %v741_v8  ;;  %v59_v42 = vsub.s32 0, %v58_v41  ;;  %v63_v44 = vsub.s32 1, %v58_v41 }
  0x12   :  { %v972_v45 = vrot.slane %v55_v43, %v59_v42  ;;  %v974_v46 = vrot.slane %v55_v43, %v63_v44 }
  0x13   :  { %293 = vmatpush1.bf16.msra.mxu0 %v743_v9  ;;  %721 = vmatpush1.bf16.msra.mxu1 %v743_v9 }
  0x14   :  { %294 = vmatprep.subr.bf16.mxu0 %v744_v10  ;;  %710 = vmatprep.subr.bf16.mxu1 %v744_v10 }
  0x17   :  { %295 = vmatpush1.bf16.msra.mxu0 %v746_v13  ;;  %722 = vmatpush1.bf16.msra.mxu1 %v746_v13 }
  0x18   :  { %296 = vmatprep.subr.bf16.mxu0 %v747_v14  ;;  %711 = vmatprep.subr.bf16.mxu1 %v747_v14 }
  0x1b   :  { %297 = vmatpush1.bf16.msra.mxu0 %v749_v15  ;;  %723 = vmatpush1.bf16.msra.mxu1 %v749_v15 }
  0x1c   :  { %298 = vmatprep.subr.bf16.mxu0 %v750_v16  ;;  %712 = vmatprep.subr.bf16.mxu1 %v750_v16 }
  0x1f   :  { %299 = vmatpush1.bf16.msra.mxu0 %v752_v17  ;;  %724 = vmatpush1.bf16.msra.mxu1 %v752_v17 }
  0x20   :  { %308 = vmatprep.subr.bf16.mxu0 %v753_v18  ;;  %713 = vmatprep.subr.bf16.mxu1 %v753_v18 }
  0x23   :  { %309 = vmatpush2.bf16.msra.mxu0 %v755_v19  ;;  %725 = vmatpush2.bf16.msra.mxu1 %v755_v19 }
  0x24   :  { %310 = vmatprep.subr.bf16.mxu0 %v756_v20  ;;  %714 = vmatprep.subr.bf16.mxu1 %v756_v20 }
  0x27   :  { %311 = vmatpush2.bf16.msra.mxu0 %v758_v21  ;;  %726 = vmatpush2.bf16.msra.mxu1 %v758_v21 }
  0x28   :  { %312 = vmatprep.subr.bf16.mxu0 %v759_v22  ;;  %715 = vmatprep.subr.bf16.mxu1 %v759_v22 }
  0x2b   :  { %313 = vmatpush2.bf16.msra.mxu0 %v761_v23  ;;  %727 = vmatpush2.bf16.msra.mxu1 %v761_v23 }
  0x2c   :  { %314 = vmatprep.subr.bf16.mxu0 %v762_v24  ;;  %716 = vmatprep.subr.bf16.mxu1 %v762_v24 }
  0x2f   :  { %315 = vmatpush2.bf16.msra.mxu0 %v764_v25  ;;  %728 = vmatpush2.bf16.msra.mxu1 %v764_v25 }
  0x32   :  { %317 = vmatmul.mubr.bf16.vlgmr.msra.gmra.mxu0 %v765_v26  ;;  %357 = vmatmul.mubr.bf16.vlgmr.msra.gmra.mxu1 %v768_v27 }
  0x33   :  { %634 = vmatprep.mubr.msk.bf16.mxu0 %vm259_vm0, %v771_v28  ;;  %638 = vmatprep.mubr.msk.bf16.mxu1 %vm259_vm0, %v773_v29 }
  0x3a   :  { %327 = vmatmul.mubr.bf16.gmra.mxu0 %v775_v30  ;;  %367 = vmatmul.mubr.bf16.gmra.mxu1 %v776_v31 }
  0x3b   :  { %635 = vmatprep.mubr.msk.bf16.mxu0 %vm259_vm0, %v777_v32  ;;  %639 = vmatprep.mubr.msk.bf16.mxu1 %vm259_vm0, %v779_v33 }
  0x42   :  { %337 = vmatmul.mubr.bf16.gmra.mxu0 %v781_v34  ;;  %377 = vmatmul.mubr.bf16.gmra.mxu1 %v782_v35 }
  0x43   :  { %636 = vmatprep.mubr.msk.bf16.mxu0 %vm259_vm0, %v783_v36  ;;  %640 = vmatprep.mubr.msk.bf16.mxu1 %vm259_vm0, %v785_v37 }
  0x4a   :  { %347 = vmatmul.mubr.bf16.gmra.mxu0 %v787_v38  ;;  %387 = vmatmul.mubr.bf16.gmra.mxu1 %v788_v39 }
  0xf2   :  { %v318_v47 = vpop.f32.mrf.mxu0  ;;  %v358_v48 = vpop.f32.mrf.mxu1 }
  0xf3   :  { %v319_v49 = vadd.f32 %v318_v47, %v972_v45  ;;  %v359_v50 = vadd.f32 %v358_v48, %v972_v45 }
  0xf4   :  { %v320_v51 = vpop.f32.mrf.mxu0  ;;  %v360_v52 = vpop.f32.mrf.mxu1 }
  0xf5   :  { %789 = vtanh.f32 %v319_v49  ;;  %v321_v53 = vadd.f32 %v320_v51, %v974_v46  ;;  %v361_v54 = vadd.f32 %v360_v52, %v974_v46 }
  0xf6   :  { %791 = vtanh.f32 %v359_v50  ;;  %v322_v55 = vpop.f32.mrf.mxu0  ;;  %v362_v56 = vpop.f32.mrf.mxu1 }
  0xf7   :  { %v493_v57 = vmax.f32 %v321_v53, 0.0  ;;  %v501_v58 = vmax.f32 %v361_v54, 0.0  ;;  %v323_v59 = vadd.f32 %v322_v55, %v972_v45  ;;  %v363_v60 = vadd.f32 %v362_v56, %v972_v45 }
  0xf8   :  { %v324_v61 = vpop.f32.mrf.mxu0  ;;  %v364_v62 = vpop.f32.mrf.mxu1 }
  0xf9   :  { %v689_v63 = vpack.c.bf16 %v493_v57, %v493_v57  ;;  %v697_v0 = vpack.c.bf16 %v501_v58, %v501_v58  ;;  %793 = vtanh.f32 %v323_v59  ;;  %v325_v1 = vadd.f32 %v324_v61, %v974_v46 }
  0xfa   :  { %795 = vtanh.f32 %v363_v60  ;;  %v365_v2 = vadd.f32 %v364_v62, %v974_v46  ;;  %v328_v3 = vpop.f32.mrf.mxu0  ;;  %v368_v4 = vpop.f32.mrf.mxu1 }
  0xfb   :  { %573 = vst [vmem:[%s1107_s3 + $0x4] sm:$0xf] %v689_v63  ;;  %581 = vst [vmem:[%s1107_s3 + $0x44] sm:$0xf] %v697_v0  ;;  %v494_v5 = vmax.f32 %v325_v1, 0.0  ;;  %v329_v6 = vadd.f32 %v328_v3, %v972_v45  ;;  %v369_v7 = vadd.f32 %v368_v4, %v972_v45 }
  0xfc   :  { %v502_v8 = vmax.f32 %v365_v2, 0.0  ;;  %v330_v9 = vpop.f32.mrf.mxu0  ;;  %v370_v10 = vpop.f32.mrf.mxu1 }
  0xfd   :  { %v690_v11 = vpack.c.bf16 %v494_v5, %v494_v5  ;;  %797 = vtanh.f32 %v329_v6  ;;  %v331_v12 = vadd.f32 %v330_v9, %v974_v46  ;;  %v371_v13 = vadd.f32 %v370_v10, %v974_v46 }
  0xfe   :  { %v698_v14 = vpack.c.bf16 %v502_v8, %v502_v8  ;;  %799 = vtanh.f32 %v369_v7  ;;  %v332_v15 = vpop.f32.mrf.mxu0  ;;  %v372_v16 = vpop.f32.mrf.mxu1 }
  0xff   :  { %574 = vst [vmem:[%s1107_s3 + $0xc] sm:$0xf] %v690_v11  ;;  %v495_v17 = vmax.f32 %v331_v12, 0.0  ;;  %v503_v18 = vmax.f32 %v371_v13, 0.0  ;;  %v333_v19 = vadd.f32 %v332_v15, %v972_v45  ;;  %v373_v20 = vadd.f32 %v372_v16, %v972_v45 }
 0x100   :  { %582 = vst [vmem:[%s1107_s3 + $0x4c] sm:$0xf] %v698_v14  ;;  %v334_v21 = vpop.f32.mrf.mxu0  ;;  %v374_v22 = vpop.f32.mrf.mxu1 }
 0x101   :  { %v691_v23 = vpack.c.bf16 %v495_v17, %v495_v17  ;;  %v699_v24 = vpack.c.bf16 %v503_v18, %v503_v18  ;;  %801 = vtanh.f32 %v333_v19  ;;  %v335_v25 = vadd.f32 %v334_v21, %v974_v46 }
 0x102   :  { %v790_v26 = vpop.eup %789  ;;  %803 = vtanh.f32 %v373_v20  ;;  %v375_v27 = vadd.f32 %v374_v22, %v974_v46  ;;  %v338_v28 = vpop.f32.mrf.mxu0 }
 0x103   :  { %v378_v29 = vpop.f32.mrf.mxu1  ;;  %v792_v30 = vpop.eup %791  ;;  %v673_v31 = vpack.c.bf16 %v790_v26, %v790_v26  ;;  %575 = vst [vmem:[%s1107_s3 + $0x14] sm:$0xf] %v691_v23  ;;  %583 = vst [vmem:[%s1107_s3 + $0x54] sm:$0xf] %v699_v24  ;;  %v496_v32 = vmax.f32 %v335_v25, 0.0  ;;  %v339_v33 = vadd.f32 %v338_v28, %v972_v45 }
 0x104   :  { %v379_v34 = vadd.f32 %v378_v29, %v972_v45  ;;  %v681_v35 = vpack.c.bf16 %v792_v30, %v792_v30  ;;  %v504_v36 = vmax.f32 %v375_v27, 0.0  ;;  %v340_v37 = vpop.f32.mrf.mxu0 }
 0x105   :  { %v380_v38 = vpop.f32.mrf.mxu1  ;;  %477 = vst [vmem:[%s1107_s3] sm:$0xf] %v673_v31  ;;  %v692_v39 = vpack.c.bf16 %v496_v32, %v496_v32  ;;  %805 = vtanh.f32 %v339_v33  ;;  %v341_v40 = vadd.f32 %v340_v37, %v974_v46 }
 0x106   :  { %v381_v41 = vadd.f32 %v380_v38, %v974_v46  ;;  %v794_v42 = vpop.eup %793  ;;  %485 = vst [vmem:[%s1107_s3 + $0x40] sm:$0xf] %v681_v35  ;;  %v700_v43 = vpack.c.bf16 %v504_v36, %v504_v36  ;;  %807 = vtanh.f32 %v379_v34  ;;  %v342_v44 = vpop.f32.mrf.mxu0 }
 0x107   :  { %v382_v47 = vpop.f32.mrf.mxu1  ;;  %v796_v48 = vpop.eup %795  ;;  %v674_v49 = vpack.c.bf16 %v794_v42, %v794_v42  ;;  %576 = vst [vmem:[%s1107_s3 + $0x1c] sm:$0xf] %v692_v39  ;;  %v497_v50 = vmax.f32 %v341_v40, 0.0  ;;  %v343_v52 = vadd.f32 %v342_v44, %v972_v45 }
 0x108   :  { %v505_v51 = vmax.f32 %v381_v41, 0.0  ;;  %v682_v53 = vpack.c.bf16 %v796_v48, %v796_v48  ;;  %584 = vst [vmem:[%s1107_s3 + $0x5c] sm:$0xf] %v700_v43  ;;  %v383_v54 = vadd.f32 %v382_v47, %v972_v45  ;;  %v344_v55 = vpop.f32.mrf.mxu0 }
 0x109   :  { %v384_v56 = vpop.f32.mrf.mxu1  ;;  %478 = vst [vmem:[%s1107_s3 + $0x8] sm:$0xf] %v674_v49  ;;  %v693_v57 = vpack.c.bf16 %v497_v50, %v497_v50  ;;  %809 = vtanh.f32 %v343_v52  ;;  %v345_v59 = vadd.f32 %v344_v55, %v974_v46 }
 0x10a   :  { %v701_v58 = vpack.c.bf16 %v505_v51, %v505_v51  ;;  %v798_v60 = vpop.eup %797  ;;  %486 = vst [vmem:[%s1107_s3 + $0x48] sm:$0xf] %v682_v53  ;;  %811 = vtanh.f32 %v383_v54  ;;  %v385_v61 = vadd.f32 %v384_v56, %v974_v46  ;;  %v348_v62 = vpop.f32.mrf.mxu0 }
 0x10b   :  { %v388_v63 = vpop.f32.mrf.mxu1  ;;  %v800_v0 = vpop.eup %799  ;;  %v675_v1 = vpack.c.bf16 %v798_v60, %v798_v60  ;;  %577 = vst [vmem:[%s1107_s3 + $0x24] sm:$0xf] %v693_v57  ;;  %v498_v2 = vmax.f32 %v345_v59, 0.0  ;;  %v349_v3 = vadd.f32 %v348_v62, %v972_v45 }
 0x10c   :  { %585 = vst [vmem:[%s1107_s3 + $0x64] sm:$0xf] %v701_v58  ;;  %v389_v4 = vadd.f32 %v388_v63, %v972_v45  ;;  %v683_v5 = vpack.c.bf16 %v800_v0, %v800_v0  ;;  %v506_v6 = vmax.f32 %v385_v61, 0.0  ;;  %v350_v7 = vpop.f32.mrf.mxu0 }
 0x10d   :  { %v390_v8 = vpop.f32.mrf.mxu1  ;;  %479 = vst [vmem:[%s1107_s3 + $0x10] sm:$0xf] %v675_v1  ;;  %v694_v9 = vpack.c.bf16 %v498_v2, %v498_v2  ;;  %813 = vtanh.f32 %v349_v3  ;;  %v351_v10 = vadd.f32 %v350_v7, %v974_v46 }
 0x10e   :  { %v391_v11 = vadd.f32 %v390_v8, %v974_v46  ;;  %v802_v12 = vpop.eup %801  ;;  %487 = vst [vmem:[%s1107_s3 + $0x50] sm:$0xf] %v683_v5  ;;  %v702_v13 = vpack.c.bf16 %v506_v6, %v506_v6  ;;  %815 = vtanh.f32 %v389_v4  ;;  %v352_v14 = vpop.f32.mrf.mxu0 }
 0x10f   :  { %v392_v15 = vpop.f32.mrf.mxu1  ;;  %v804_v16 = vpop.eup %803  ;;  %v676_v17 = vpack.c.bf16 %v802_v12, %v802_v12  ;;  %578 = vst [vmem:[%s1107_s3 + $0x2c] sm:$0xf] %v694_v9  ;;  %v499_v18 = vmax.f32 %v351_v10, 0.0  ;;  %v353_v20 = vadd.f32 %v352_v14, %v972_v45 }
 0x110   :  { %v507_v19 = vmax.f32 %v391_v11, 0.0  ;;  %v684_v21 = vpack.c.bf16 %v804_v16, %v804_v16  ;;  %586 = vst [vmem:[%s1107_s3 + $0x6c] sm:$0xf] %v702_v13  ;;  %v393_v22 = vadd.f32 %v392_v15, %v972_v45  ;;  %v354_v23 = vpop.f32.mrf.mxu0 }
 0x111   :  { %v394_v24 = vpop.f32.mrf.mxu1  ;;  %480 = vst [vmem:[%s1107_s3 + $0x18] sm:$0xf] %v676_v17  ;;  %v695_v25 = vpack.c.bf16 %v499_v18, %v499_v18  ;;  %817 = vtanh.f32 %v353_v20  ;;  %v355_v27 = vadd.f32 %v354_v23, %v974_v46 }
 0x112   :  { %v703_v26 = vpack.c.bf16 %v507_v19, %v507_v19  ;;  %v806_v28 = vpop.eup %805  ;;  %488 = vst [vmem:[%s1107_s3 + $0x58] sm:$0xf] %v684_v21  ;;  %819 = vtanh.f32 %v393_v22  ;;  %v395_v29 = vadd.f32 %v394_v24, %v974_v46 }
 0x113   :  { %v808_v45 = vpop.eup %807  ;;  %v677_v30 = vpack.c.bf16 %v806_v28, %v806_v28  ;;  %579 = vst [vmem:[%s1107_s3 + $0x34] sm:$0xf] %v695_v25  ;;  %v500_v31 = vmax.f32 %v355_v27, 0.0 }
 0x114   :  { %587 = vst [vmem:[%s1107_s3 + $0x74] sm:$0xf] %v703_v26  ;;  %v685_v32 = vpack.c.bf16 %v808_v45, %v808_v45  ;;  %v508_v33 = vmax.f32 %v395_v29, 0.0 }
 0x115   :  { %481 = vst [vmem:[%s1107_s3 + $0x20] sm:$0xf] %v677_v30  ;;  %v696_v34 = vpack.c.bf16 %v500_v31, %v500_v31 }
 0x116   :  { %v810_v35 = vpop.eup %809  ;;  %489 = vst [vmem:[%s1107_s3 + $0x60] sm:$0xf] %v685_v32  ;;  %v704_v46 = vpack.c.bf16 %v508_v33, %v508_v33 }
 0x117   :  { %v812_v36 = vpop.eup %811  ;;  %v678_v37 = vpack.c.bf16 %v810_v35, %v810_v35  ;;  %580 = vst [vmem:[%s1107_s3 + $0x3c] sm:$0xf] %v696_v34 }
 0x118   :  { %v686_v38 = vpack.c.bf16 %v812_v36, %v812_v36  ;;  %588 = vst [vmem:[%s1107_s3 + $0x7c] sm:$0xf] %v704_v46 }
 0x119   :  { %482 = vst [vmem:[%s1107_s3 + $0x28] sm:$0xf] %v678_v37 }
 0x11a   :  { %v814_v39 = vpop.eup %813  ;;  %490 = vst [vmem:[%s1107_s3 + $0x68] sm:$0xf] %v686_v38 }
 0x11b   :  { %v816_v40 = vpop.eup %815  ;;  %v679_v41 = vpack.c.bf16 %v814_v39, %v814_v39 }
 0x11c   :  { %v687_v42 = vpack.c.bf16 %v816_v40, %v816_v40 }
 0x11d   :  { %483 = vst [vmem:[%s1107_s3 + $0x30] sm:$0xf] %v679_v41 }
 0x11e   :  { %v818_v43 = vpop.eup %817  ;;  %491 = vst [vmem:[%s1107_s3 + $0x70] sm:$0xf] %v687_v42 }
 0x11f   :  { %v820_v44 = vpop.eup %819  ;;  %v680_v47 = vpack.c.bf16 %v818_v43, %v818_v43 }
 0x120   :  { %v688_v48 = vpack.c.bf16 %v820_v44, %v820_v44 }
 0x121   :  { %484 = vst [vmem:[%s1107_s3 + $0x38] sm:$0xf] %v680_v47 }
 0x122   :  { %492 = vst [vmem:[%s1107_s3 + $0x78] sm:$0xf] %v688_v48 }

// kernel: gaflow_forward.22
= control target key start
LH: loop header
LB: loop body
LE: loop exit
PB: predicated region body
PF: predicated region fallthrough
CT: control target
= control target key end

     0   :  { %s2524_s3 = inlined_call_operand.vmem [shape: bf16[128,128], index: 3, kind: input, shape index: {}]   ;;  %s2525_s0 = inlined_call_operand.vmem [shape: bf16[128,128], index: 0, kind: input, shape index: {}]   ;;  %s2526_s5 = inlined_call_operand.vmem [shape: bf16[256,128], index: 5, kind: input, shape index: {}]   ;;  %s2527_s1 = inlined_call_operand.vmem [shape: bf16[128,128], index: 1, kind: input, shape index: {}]   ;;  %s2528_s7 = inlined_call_operand.vmem [shape: bf16[512,128], index: 7, kind: input, shape index: {}]   ;;  %s2529_s4 = inlined_call_operand.vmem [shape: f32[1,128], index: 4, kind: input, shape index: {}]   ;;  %s2530_s2 = inlined_call_operand.vmem [shape: bf16[128,128], index: 2, kind: input, shape index: {}]   ;;  %s2531_s9 = inlined_call_operand.vmem [shape: bf16[128,128], index: 9, kind: input, shape index: {}]   ;;  %s2532_s6 = inlined_call_operand.vmem [shape: f32[1,128], index: 6, kind: input, shape index: {}]   ;;  %s2533_s8 = inlined_call_operand.vmem [shape: f32[1,128], index: 8, kind: input, shape index: {}]   ;;  %s2534_s11 = inlined_call_operand.vmem [shape: bf16[128,128], index: 11, kind: output, shape index: {0}]   ;;  %s2535_s10 = inlined_call_operand.vmem [shape: f32[1,128], index: 10, kind: input, shape index: {}]   ;;  %s2536_s12 = inlined_call_operand.vmem [shape: f32[128,128], index: 12, kind: output, shape index: {1}]  }
   0x1   :  { %v1885_v0 = vld [vmem:[%s2524_s3 + $0x38] sm:$0xff]   ;;  %v1886_v1 = vld [vmem:[%s2524_s3 + $0x30] sm:$0xff]   ;;  %v1887_v2 = vld [vmem:[%s2524_s3 + $0x28] sm:$0xff]  }
   0x2   :  { %1821 = vmatprep.subr.bf16.mxu0 %v1885_v0  ;;  %v1888_v3 = vld [vmem:[%s2524_s3 + $0x20] sm:$0xff]   ;;  %v1889_v5 = vld [vmem:[%s2524_s3 + $0x18] sm:$0xff]   ;;  %v1890_v6 = vld [vmem:[%s2524_s3 + $0x10] sm:$0xff]  }
   0x3   :  { %1822 = vmatpush3.bf16.msra.mxu0 %v1885_v0  ;;  %v1893_v4 = vld [vmem:[%s2525_s0] sm:$0xff]   ;;  %v1901_v7 = vld [vmem:[%s2526_s5 + $0x78] sm:$0xff]   ;;  %v1891_v9 = vld [vmem:[%s2524_s3 + $0x8] sm:$0xff]  }
   0x4   :  { %1823 = vmatprep.subr.bf16.mxu0 %v1886_v1  ;;  %1837 = vmatprep.mubr.bf16.mxu0 %v1893_v4  ;;  %v1902_v8 = vld [vmem:[%s2526_s5 + $0x38] sm:$0xff]   ;;  %v1903_v10 = vld [vmem:[%s2526_s5 + $0x70] sm:$0xff]   ;;  %v1905_v12 = vld [vmem:[%s2526_s5 + $0x68] sm:$0xff]  }
   0x5   :  { %1613 = vmatprep.subr.bf16.mxu1 %v1901_v7  ;;  %v1904_v11 = vld [vmem:[%s2526_s5 + $0x30] sm:$0xff]   ;;  %v1892_v13 = vld [vmem:[%s2524_s3] sm:$0xff]   ;;  %v1906_v14 = vld [vmem:[%s2526_s5 + $0x28] sm:$0xff]  }
   0x6   :  { %1614 = vmatpush3.bf16.msra.mxu1 %v1902_v8  ;;  %v1907_v15 = vld [vmem:[%s2526_s5 + $0x60] sm:$0xff]   ;;  %v1909_v17 = vld [vmem:[%s2526_s5 + $0x58] sm:$0xff]   ;;  %v1894_v18 = vld [vmem:[%s2525_s0 + $0x8] sm:$0xff]  }
   0x7   :  { %1824 = vmatpush3.bf16.msra.mxu0 %v1886_v1  ;;  %1615 = vmatprep.subr.bf16.mxu1 %v1903_v10  ;;  %v1908_v16 = vld [vmem:[%s2526_s5 + $0x20] sm:$0xff]   ;;  %v1895_v19 = vld [vmem:[%s2525_s0 + $0x10] sm:$0xff]   ;;  %v1910_v20 = vld [vmem:[%s2526_s5 + $0x18] sm:$0xff]  }
   0x8   :  { %1825 = vmatprep.subr.bf16.mxu0 %v1887_v2  ;;  %v1896_v21 = vld [vmem:[%s2525_s0 + $0x18] sm:$0xff]   ;;  %v1897_v22 = vld [vmem:[%s2525_s0 + $0x20] sm:$0xff]   ;;  %v1898_v23 = vld [vmem:[%s2525_s0 + $0x28] sm:$0xff]  }
   0x9   :  { %v1899_v24 = vld [vmem:[%s2525_s0 + $0x30] sm:$0xff]   ;;  %v1900_v25 = vld [vmem:[%s2525_s0 + $0x38] sm:$0xff]   ;;  %v1913_v28 = vld [vmem:[%s2526_s5 + $0x48] sm:$0xff]  }
   0xa   :  { %1616 = vmatpush3.bf16.msra.mxu1 %v1904_v11  ;;  %v1911_v26 = vld [vmem:[%s2526_s5 + $0x50] sm:$0xff]   ;;  %v1914_v29 = vld [vmem:[%s2526_s5 + $0x8] sm:$0xff]   ;;  %v1915_v30 = vld [vmem:[%s2526_s5 + $0x40] sm:$0xff]  }
   0xb   :  { %1826 = vmatpush3.bf16.msra.mxu0 %v1887_v2  ;;  %1617 = vmatprep.subr.bf16.mxu1 %v1905_v12  ;;  %v1912_v27 = vld [vmem:[%s2526_s5 + $0x10] sm:$0xff]   ;;  %v1916_v31 = vld [vmem:[%s2526_s5] sm:$0xff]   ;;  %v1925_v33 = vld [vmem:[%s2528_s7 + $0xf8] sm:$0xff]  }
   0xc   :  { %1827 = vmatprep.subr.bf16.mxu0 %v1888_v3  ;;  %v1917_v32 = vld [vmem:[%s2527_s1] sm:$0xff]   ;;  %v1932_v34 = vld [vmem:[%s2528_s7 + $0x78] sm:$0xff]   ;;  %v1935_v36 = vld [vmem:[%s2528_s7 + $0x70] sm:$0xff]  }
   0xd   :  { %v1934_v35 = vld [vmem:[%s2528_s7 + $0x38] sm:$0xff]   ;;  %v1936_v37 = vld [vmem:[%s2528_s7 + $0x30] sm:$0xff]   ;;  %v1938_v38 = vld [vmem:[%s2528_s7 + $0x68] sm:$0xff]  }
   0xe   :  { %1618 = vmatpush3.bf16.msra.mxu1 %v1906_v14  ;;  %v1940_v39 = vld [vmem:[%s2528_s7 + $0x28] sm:$0xff]   ;;  %v1941_v40 = vld [vmem:[%s2528_s7 + $0x60] sm:$0xff]   ;;  %v1944_v42 = vld [vmem:[%s2528_s7 + $0x58] sm:$0xff]  }
   0xf   :  { %1828 = vmatpush3.bf16.msra.mxu0 %v1888_v3  ;;  %1619 = vmatprep.subr.bf16.mxu1 %v1907_v15  ;;  %v1942_v41 = vld [vmem:[%s2528_s7 + $0x20] sm:$0xff]   ;;  %v1946_v43 = vld [vmem:[%s2528_s7 + $0x18] sm:$0xff]   ;;  %v1947_v44 = vld [vmem:[%s2528_s7 + $0x50] sm:$0xff]  }
  0x10   :  { %1829 = vmatprep.subr.bf16.mxu0 %v1889_v5  ;;  %v1948_v45 = vld [vmem:[%s2528_s7 + $0x10] sm:$0xff]   ;;  %v2211_v48 = vld [vmem:[%s2529_s4] ss:$0 sm:$0xff]  ;;  %v1926_v63 = vld [vmem:[%s2528_s7 + $0xb8] sm:$0xff]  }
  0x11   :  { %v1927_v1 = vld [vmem:[%s2528_s7 + $0xf0] sm:$0xff]   ;;  %v1929_v8 = vld [vmem:[%s2528_s7 + $0xe8] sm:$0xff]   ;;  %v1931_v15 = vld [vmem:[%s2528_s7 + $0xe0] sm:$0xff]  }
  0x12   :  { %1620 = vmatpush3.bf16.msra.mxu1 %v1908_v16  ;;  %v2240_v10 = vld [vmem:[%s2527_s1 + $0x8] sm:$0xff]  }
  0x13   :  { %1830 = vmatpush3.bf16.msra.mxu0 %v1889_v5  ;;  %1621 = vmatprep.subr.bf16.mxu1 %v1909_v17 }
  0x14   :  { %1831 = vmatprep.subr.bf16.mxu0 %v1890_v6 }
  0x16   :  { %1622 = vmatpush3.bf16.msra.mxu1 %v1910_v20  ;;  %v1937_v20 = vld [vmem:[%s2528_s7 + $0xd8] sm:$0xff]  }
  0x17   :  { %1832 = vmatpush3.bf16.msra.mxu0 %v1890_v6  ;;  %1623 = vmatprep.subr.bf16.mxu1 %v1911_v26  ;;  %v1928_v6 = vld [vmem:[%s2528_s7 + $0xb0] sm:$0xff]   ;;  %v1939_v26 = vld [vmem:[%s2528_s7 + $0x98] sm:$0xff]  }
  0x18   :  { %1833 = vmatprep.subr.bf16.mxu0 %v1891_v9 }
  0x1a   :  { %1624 = vmatpush3.bf16.msra.mxu1 %v1912_v27 }
  0x1b   :  { %1834 = vmatpush3.bf16.msra.mxu0 %v1891_v9  ;;  %1625 = vmatprep.subr.bf16.mxu1 %v1913_v28  ;;  %v1943_v28 = vld [vmem:[%s2528_s7 + $0xd0] sm:$0xff]  }
  0x1c   :  { %1835 = vmatprep.subr.bf16.mxu0 %v1892_v13 }
  0x1e   :  { %1626 = vmatpush3.bf16.msra.mxu1 %v1914_v29 }
  0x1f   :  { %1836 = vmatpush3.bf16.msra.mxu0 %v1892_v13  ;;  %1627 = vmatprep.subr.bf16.mxu1 %v1915_v30  ;;  %v1930_v13 = vld [vmem:[%s2528_s7 + $0xa8] sm:$0xff]  }
  0x20   :  { %1677 = vmatprep.subr.bf16.mxu0 %v1932_v34  ;;  %v1949_v34 = vld [vmem:[%s2528_s7 + $0xc8] sm:$0xff]  }
  0x22   :  { %1838 = vmatmul.mubr.bf16.vlgmr.msra.gmra.mxu0 %v1894_v18  ;;  %1628 = vmatpush3.bf16.msra.mxu1 %v1916_v31  ;;  %v1933_v18 = vld [vmem:[%s2528_s7 + $0xa0] sm:$0xff]  }
  0x23   :  { %1841 = vmatprep.mubr.bf16.mxu0 %v1895_v19  ;;  %1741 = vmatprep.subr.bf16.mxu1 %v1925_v33 }
  0x24   :  { %1678 = vmatpush3.bf16.msra.mxu0 %v1934_v35  ;;  %v1920_v35 = vld [vmem:[%s2527_s1 + $0x18] sm:$0xff]  }
  0x25   :  { %1679 = vmatprep.subr.bf16.mxu0 %v1935_v36 }
  0x28   :  { %1680 = vmatpush3.bf16.msra.mxu0 %v1936_v37 }
  0x29   :  { %1681 = vmatprep.subr.bf16.mxu0 %v1938_v38 }
  0x2a   :  { %1842 = vmatmul.mubr.bf16.gmra.mxu0 %v1896_v21 }
  0x2b   :  { %1845 = vmatprep.mubr.bf16.mxu0 %v1897_v22 }
  0x2c   :  { %1682 = vmatpush3.bf16.msra.mxu0 %v1940_v39 }
  0x2d   :  { %1683 = vmatprep.subr.bf16.mxu0 %v1941_v40 }
  0x30   :  { %1684 = vmatpush3.bf16.msra.mxu0 %v1942_v41 }
  0x31   :  { %1685 = vmatprep.subr.bf16.mxu0 %v1944_v42 }
  0x32   :  { %1846 = vmatmul.mubr.bf16.gmra.mxu0 %v1898_v23  ;;  %v2263_v23 = vld [vmem:[%s2527_s1 + $0x10] sm:$0xff]  }
  0x33   :  { %1849 = vmatprep.mubr.bf16.mxu0 %v1899_v24 }
  0x34   :  { %1686 = vmatpush3.bf16.msra.mxu0 %v1946_v43  ;;  %v1921_v43 = vld [vmem:[%s2527_s1 + $0x20] sm:$0xff]  }
  0x35   :  { %1687 = vmatprep.subr.bf16.mxu0 %v1947_v44 }
  0x38   :  { %1688 = vmatpush3.bf16.msra.mxu0 %v1948_v45 }
  0x3a   :  { %1850 = vmatmul.mubr.bf16.gmra.mxu0 %v1900_v25 }
  0x3b   :  { %976 = vmatprep.mubr.bf16.mxu0 %v1917_v32 }
  0xe2   :  { %v1839_v46 = vpop.f32.mrf.mxu0 }
  0xe3   :  { %v251_v53 = vadd.f32 %v1839_v46, %v2211_v48 }
  0xe4   :  { %v242_v47 = vpop.f32.mrf.mxu0 }
  0xe5   :  { %v243_v50 = vadd.f32 %v2211_v48, %v242_v47  ;;  %v307_v60 = vmax.f32 %v251_v53, 0.0 }
  0xe6   :  { %v1840_v49 = vpop.f32.mrf.mxu0 }
  0xe7   :  { %v254_v51 = vadd.f32 %v1840_v49, %v2211_v48  ;;  %v305_v56 = vmax.f32 %v243_v50, 0.0  ;;  %v1922_v50 = vld [vmem:[%s2527_s1 + $0x28] sm:$0xff]  }
  0xe8   :  { %v245_v52 = vpop.f32.mrf.mxu0 }
  0xe9   :  { %v246_v54 = vadd.f32 %v2211_v48, %v245_v52  ;;  %v308_v57 = vmax.f32 %v254_v51, 0.0 }
  0xea   :  { %v1843_v55 = vpop.f32.mrf.mxu0 }
  0xeb   :  { %v306_v58 = vmax.f32 %v246_v54, 0.0  ;;  %v2226_v2 = vpack.c.bf16 %v308_v57, %v307_v60  ;;  %v267_v16 = vadd.f32 %v1843_v55, %v2211_v48  ;;  %v1951_v60 = vld [vmem:[%s2528_s7 + $0x88] sm:$0xff]  }
  0xec   :  { %v258_v59 = vpop.f32.mrf.mxu0 }
  0xed   :  { %v259_v61 = vadd.f32 %v2211_v48, %v258_v59  ;;  %v2218_v62 = vpack.c.bf16 %v306_v58, %v305_v56  ;;  %v311_v21 = vmax.f32 %v267_v16, 0.0  ;;  %v1923_v56 = vld [vmem:[%s2527_s1 + $0x30] sm:$0xff]   ;;  %v1924_v58 = vld [vmem:[%s2527_s1 + $0x38] sm:$0xff]   ;;  %v1952_v59 = vld [vmem:[%s2528_s7 + $0x8] sm:$0xff]  }
  0xee   :  { %v1844_v0 = vpop.f32.mrf.mxu0  ;;  %v2369_v16 = vld [vmem:[%s2532_s6] ss:$0 sm:$0xff] }
  0xef   :  { %544 = vmatprep.mubr.bf16.mxu1 %v2218_v62  ;;  %v309_v4 = vmax.f32 %v259_v61, 0.0  ;;  %v270_v17 = vadd.f32 %v1844_v0, %v2211_v48  ;;  %v1953_v61 = vld [vmem:[%s2528_s7 + $0x40] sm:$0xff]  }
  0xf0   :  { %545 = vmatmul.mubr.bf16.vlgmr.msra.gmra.mxu1 %v1917_v32  ;;  %v261_v3 = vpop.f32.mrf.mxu0  ;;  %v1945_v32 = vld [vmem:[%s2528_s7 + $0x90] sm:$0xff]   ;;  %v1956_v0 = vld [vmem:[%s2530_s2] sm:$0xff]  }
  0xf1   :  { %552 = vmatprep.mubr.bf16.mxu1 %v2226_v2  ;;  %v262_v5 = vadd.f32 %v2211_v48, %v261_v3  ;;  %1742 = vmatpush3.bf16.msra.mxu1 %v1926_v63  ;;  %v312_v22 = vmax.f32 %v270_v17, 0.0  ;;  %v1954_v63 = vld [vmem:[%s2528_s7] sm:$0xff]  }
  0xf2   :  { %v1847_v7 = vpop.f32.mrf.mxu0  ;;  %1743 = vmatprep.subr.bf16.mxu1 %v1927_v1  ;;  %v1955_v1 = vld [vmem:[%s2528_s7 + $0xc0] sm:$0xff]  }
  0xf3   :  { %v310_v9 = vmax.f32 %v262_v5, 0.0  ;;  %v2273_v29 = vpack.c.bf16 %v312_v22, %v311_v21  ;;  %v283_v38 = vadd.f32 %v1847_v7, %v2211_v48  ;;  %v1957_v3 = vld [vmem:[%s2528_s7 + $0x80] sm:$0xff]   ;;  %v1959_v5 = vld [vmem:[%s2530_s2 + $0x10] sm:$0xff]  }
  0xf4   :  { %v274_v11 = vpop.f32.mrf.mxu0  ;;  %v1961_v7 = vld [vmem:[%s2530_s2 + $0x20] sm:$0xff]  }
  0xf5   :  { %v2242_v12 = vpack.c.bf16 %v310_v9, %v309_v4  ;;  %1744 = vmatpush3.bf16.msra.mxu1 %v1928_v6  ;;  %v275_v24 = vadd.f32 %v2211_v48, %v274_v11  ;;  %v315_v41 = vmax.f32 %v283_v38, 0.0  ;;  %v1958_v4 = vld [vmem:[%s2530_s2 + $0x8] sm:$0xff]   ;;  %v1960_v6 = vld [vmem:[%s2530_s2 + $0x18] sm:$0xff]   ;;  %v1963_v9 = vld [vmem:[%s2530_s2 + $0x30] sm:$0xff]  }
  0xf6   :  { %v1848_v14 = vpop.f32.mrf.mxu0  ;;  %1745 = vmatprep.subr.bf16.mxu1 %v1929_v8  ;;  %v1962_v8 = vld [vmem:[%s2530_s2 + $0x28] sm:$0xff]   ;;  %v1965_v11 = vld [vmem:[%s2531_s9 + $0x38] sm:$0xff]  }
  0xf7   :  { %v313_v30 = vmax.f32 %v275_v24, 0.0  ;;  %v286_v39 = vadd.f32 %v1848_v14, %v2211_v48 }
  0xf8   :  { %553 = vmatmul.mubr.bf16.gmra.mxu1 %v2240_v10  ;;  %v277_v19 = vpop.f32.mrf.mxu0 }
  0xf9   :  { %560 = vmatprep.mubr.bf16.mxu1 %v2242_v12  ;;  %1746 = vmatpush3.bf16.msra.mxu1 %v1930_v13  ;;  %v278_v25 = vadd.f32 %v2211_v48, %v277_v19  ;;  %v316_v42 = vmax.f32 %v286_v39, 0.0 }
  0xfa   :  { %1747 = vmatprep.subr.bf16.mxu1 %v1931_v15  ;;  %v1851_v27 = vpop.f32.mrf.mxu0 }
  0xfb   :  { %v314_v31 = vmax.f32 %v278_v25, 0.0  ;;  %v2296_v46 = vpack.c.bf16 %v316_v42, %v315_v41  ;;  %v299_v52 = vadd.f32 %v1851_v27, %v2211_v48 }
  0xfc   :  { %v290_v33 = vpop.f32.mrf.mxu0 }
  0xfd   :  { %1748 = vmatpush3.bf16.msra.mxu1 %v1933_v18  ;;  %v2286_v36 = vpack.c.bf16 %v314_v31, %v313_v30  ;;  %v291_v44 = vadd.f32 %v2211_v48, %v290_v33  ;;  %v319_v54 = vmax.f32 %v299_v52, 0.0 }
  0xfe   :  { %1749 = vmatprep.subr.bf16.mxu1 %v1937_v20  ;;  %v1852_v37 = vpop.f32.mrf.mxu0 }
  0xff   :  { %v317_v47 = vmax.f32 %v291_v44, 0.0  ;;  %v302_v53 = vadd.f32 %v1852_v37, %v2211_v48 }
 0x100   :  { %561 = vmatmul.mubr.bf16.gmra.mxu1 %v2263_v23  ;;  %v293_v40 = vpop.f32.mrf.mxu0 }
 0x101   :  { %568 = vmatprep.mubr.bf16.mxu1 %v2273_v29  ;;  %1750 = vmatpush3.bf16.msra.mxu1 %v1939_v26  ;;  %v294_v45 = vadd.f32 %v2211_v48, %v293_v40  ;;  %v320_v55 = vmax.f32 %v302_v53, 0.0  ;;  %v1950_v48 = vld [vmem:[%s2528_s7 + $0x48] sm:$0xff]  }
 0x102   :  { %1751 = vmatprep.subr.bf16.mxu1 %v1943_v28  ;;  %1689 = vmatprep.subr.bf16.mxu0 %v1950_v48 }
 0x103   :  { %v318_v49 = vmax.f32 %v294_v45, 0.0  ;;  %v2310_v57 = vpack.c.bf16 %v320_v55, %v319_v54  ;;  %1690 = vmatpush3.bf16.msra.mxu0 %v1952_v59 }
 0x104   :  { %1691 = vmatprep.subr.bf16.mxu0 %v1953_v61 }
 0x105   :  { %1752 = vmatpush3.bf16.msra.mxu1 %v1945_v32  ;;  %v2302_v51 = vpack.c.bf16 %v318_v49, %v317_v47 }
 0x106   :  { %1753 = vmatprep.subr.bf16.mxu1 %v1949_v34 }
 0x107   :  { %1692 = vmatpush3.bf16.msra.mxu0 %v1954_v63 }
 0x108   :  { %569 = vmatmul.mubr.bf16.gmra.mxu1 %v1920_v35  ;;  %1853 = vmatprep.subr.bf16.mxu0 %v1965_v11 }
 0x109   :  { %576 = vmatprep.mubr.bf16.mxu1 %v2286_v36  ;;  %1754 = vmatpush3.bf16.msra.mxu1 %v1951_v60 }
 0x10a   :  { %977 = vmatmul.mubr.bf16.vlgmr.msra.gmra.mxu0 %v1956_v0  ;;  %1755 = vmatprep.subr.bf16.mxu1 %v1955_v1 }
 0x10b   :  { %984 = vmatprep.mubr.bf16.mxu0 %v2240_v10  ;;  %v1964_v10 = vld [vmem:[%s2530_s2 + $0x38] sm:$0xff]   ;;  %1854 = vmatpush3.bf16.msra.mxu0 %v1965_v11 }
 0x10d   :  { %1756 = vmatpush3.bf16.msra.mxu1 %v1957_v3 }
 0x110   :  { %577 = vmatmul.mubr.bf16.gmra.mxu1 %v1921_v43 }
 0x111   :  { %584 = vmatprep.mubr.bf16.mxu1 %v2296_v46 }
 0x112   :  { %985 = vmatmul.mubr.bf16.gmra.mxu0 %v1958_v4 }
 0x113   :  { %992 = vmatprep.mubr.bf16.mxu0 %v2263_v23 }
 0x118   :  { %585 = vmatmul.mubr.bf16.gmra.mxu1 %v1922_v50 }
 0x119   :  { %592 = vmatprep.mubr.bf16.mxu1 %v2302_v51 }
 0x11a   :  { %993 = vmatmul.mubr.bf16.gmra.mxu0 %v1959_v5 }
 0x11b   :  { %1000 = vmatprep.mubr.bf16.mxu0 %v1920_v35 }
 0x120   :  { %593 = vmatmul.mubr.bf16.gmra.mxu1 %v1923_v56 }
 0x121   :  { %600 = vmatprep.mubr.bf16.mxu1 %v2310_v57 }
 0x122   :  { %1001 = vmatmul.mubr.bf16.gmra.mxu0 %v1960_v6 }
 0x123   :  { %1008 = vmatprep.mubr.bf16.mxu0 %v1921_v43 }
 0x128   :  { %601 = vmatmul.mubr.bf16.gmra.mxu1 %v1924_v58 }
 0x12a   :  { %1009 = vmatmul.mubr.bf16.gmra.mxu0 %v1961_v7 }
 0x12b   :  { %1016 = vmatprep.mubr.bf16.mxu0 %v1922_v50 }
 0x132   :  { %1017 = vmatmul.mubr.bf16.gmra.mxu0 %v1962_v8 }
 0x133   :  { %1024 = vmatprep.mubr.bf16.mxu0 %v1923_v56 }
 0x13a   :  { %1025 = vmatmul.mubr.bf16.gmra.mxu0 %v1963_v9 }
 0x13b   :  { %1032 = vmatprep.mubr.bf16.mxu0 %v1924_v58 }
 0x142   :  { %1033 = vmatmul.mubr.bf16.gmra.mxu0 %v1964_v10 }
 0x1b0   :  { %v1629_v13 = vpop.f32.mrf.mxu1 }
 0x1b2   :  { %v1630_v14 = vpop.f32.mrf.mxu1 }
 0x1b3   :  { %v1631_v15 = vadd.f32 %v1630_v14, %v1629_v13 }
 0x1b4   :  { %v1632_v17 = vpop.f32.mrf.mxu1 }
 0x1b5   :  { %v547_v19 = vadd.f32 %v1631_v15, %v2369_v16 }
 0x1b6   :  { %v1633_v18 = vpop.f32.mrf.mxu1 }
 0x1b7   :  { %v1634_v20 = vadd.f32 %v1633_v18, %v1632_v17  ;;  %v609_v24 = vmax.f32 %v547_v19, 0.0 }
 0x1b8   :  { %v1635_v21 = vpop.f32.mrf.mxu1 }
 0x1b9   :  { %v550_v22 = vadd.f32 %v1634_v20, %v2369_v16 }
 0x1ba   :  { %v1636_v23 = vpop.f32.mrf.mxu1 }
 0x1bb   :  { %v610_v25 = vmax.f32 %v550_v22, 0.0  ;;  %v1637_v26 = vadd.f32 %v1636_v23, %v1635_v21 }
 0x1bc   :  { %v1638_v27 = vpop.f32.mrf.mxu1 }
 0x1bd   :  { %v625_v28 = vpack.c.bf16 %v610_v25, %v609_v24  ;;  %v555_v31 = vadd.f32 %v1637_v26, %v2369_v16 }
 0x1be   :  { %v1639_v30 = vpop.f32.mrf.mxu1 }
 0x1bf   :  { %v1640_v32 = vadd.f32 %v1639_v30, %v1638_v27  ;;  %1073 = vmatprep.mubr.bf16.mxu1 %v625_v28  ;;  %v611_v37 = vmax.f32 %v555_v31, 0.0 }
 0x1c0   :  { %v1641_v33 = vpop.f32.mrf.mxu1  ;;  %1074 = vmatmul.mubr.bf16.vlgmr.msra.gmra.mxu1 %v2218_v62 }
 0x1c1   :  { %v558_v34 = vadd.f32 %v1640_v32, %v2369_v16 }
 0x1c2   :  { %v1642_v35 = vpop.f32.mrf.mxu1 }
 0x1c3   :  { %v612_v38 = vmax.f32 %v558_v34, 0.0  ;;  %v1643_v39 = vadd.f32 %v1642_v35, %v1641_v33 }
 0x1c4   :  { %v1644_v40 = vpop.f32.mrf.mxu1 }
 0x1c5   :  { %v626_v41 = vpack.c.bf16 %v612_v38, %v611_v37  ;;  %v563_v43 = vadd.f32 %v1643_v39, %v2369_v16 }
 0x1c6   :  { %v1645_v42 = vpop.f32.mrf.mxu1 }
 0x1c7   :  { %v1646_v44 = vadd.f32 %v1645_v42, %v1644_v40  ;;  %1081 = vmatprep.mubr.bf16.mxu1 %v626_v41  ;;  %v613_v62 = vmax.f32 %v563_v43, 0.0  ;;  %v1966_v43 = vld [vmem:[%s2531_s9 + $0x30] sm:$0xff]  }
 0x1c8   :  { %v1647_v45 = vpop.f32.mrf.mxu1  ;;  %1082 = vmatmul.mubr.bf16.gmra.mxu1 %v2226_v2  ;;  %1855 = vmatprep.subr.bf16.mxu0 %v1966_v43 }
 0x1c9   :  { %v566_v47 = vadd.f32 %v1646_v44, %v2369_v16  ;;  %1856 = vmatpush3.bf16.msra.mxu0 %v1966_v43  ;;  %v1967_v44 = vld [vmem:[%s2531_s9 + $0x28] sm:$0xff]  }
 0x1ca   :  { %v1648_v49 = vpop.f32.mrf.mxu1  ;;  %1857 = vmatprep.subr.bf16.mxu0 %v1967_v44 }
 0x1cb   :  { %v614_v50 = vmax.f32 %v566_v47, 0.0  ;;  %v1649_v52 = vadd.f32 %v1648_v49, %v1647_v45  ;;  %v1971_v45 = vld [vmem:[%s2531_s9 + $0x8] sm:$0xff]   ;;  %v1972_v47 = vld [vmem:[%s2531_s9] sm:$0xff]   ;;  %v1693_v49 = vpop.f32.mrf.mxu0 }
 0x1cc   :  { %v1650_v53 = vpop.f32.mrf.mxu1 }
 0x1cd   :  { %v627_v54 = vpack.c.bf16 %v614_v50, %v613_v62  ;;  %v571_v56 = vadd.f32 %v1649_v52, %v2369_v16  ;;  %1858 = vmatpush3.bf16.msra.mxu0 %v1967_v44  ;;  %v1694_v62 = vpop.f32.mrf.mxu0 }
 0x1ce   :  { %v1651_v55 = vpop.f32.mrf.mxu1 }
 0x1cf   :  { %v1652_v58 = vadd.f32 %v1651_v55, %v1650_v53  ;;  %1089 = vmatprep.mubr.bf16.mxu1 %v627_v54  ;;  %v615_v2 = vmax.f32 %v571_v56, 0.0  ;;  %v1696_v50 = vpop.f32.mrf.mxu0 }
 0x1d0   :  { %v1653_v48 = vpop.f32.mrf.mxu1  ;;  %1090 = vmatmul.mubr.bf16.gmra.mxu1 %v2242_v12 }
 0x1d1   :  { %v574_v59 = vadd.f32 %v1652_v58, %v2369_v16  ;;  %v1697_v52 = vpop.f32.mrf.mxu0 }
 0x1d2   :  { %v1654_v60 = vpop.f32.mrf.mxu1 }
 0x1d3   :  { %v616_v61 = vmax.f32 %v574_v59, 0.0  ;;  %v1655_v63 = vadd.f32 %v1654_v60, %v1653_v48  ;;  %v1699_v53 = vpop.f32.mrf.mxu0 }
 0x1d4   :  { %v1656_v0 = vpop.f32.mrf.mxu1 }
 0x1d5   :  { %v628_v1 = vpack.c.bf16 %v616_v61, %v615_v2  ;;  %v579_v4 = vadd.f32 %v1655_v63, %v2369_v16  ;;  %v1700_v54 = vpop.f32.mrf.mxu0 }
 0x1d6   :  { %v1657_v3 = vpop.f32.mrf.mxu1 }
 0x1d7   :  { %v1658_v5 = vadd.f32 %v1657_v3, %v1656_v0  ;;  %1097 = vmatprep.mubr.bf16.mxu1 %v628_v1  ;;  %v617_v12 = vmax.f32 %v579_v4, 0.0  ;;  %v1702_v55 = vpop.f32.mrf.mxu0  ;;  %v1695_v3 = vadd.f32 %v1694_v62, %v1693_v49 }
 0x1d8   :  { %v1659_v6 = vpop.f32.mrf.mxu1  ;;  %1098 = vmatmul.mubr.bf16.gmra.mxu1 %v2273_v29 }
 0x1d9   :  { %v582_v7 = vadd.f32 %v1658_v5, %v2369_v16  ;;  %v1703_v56 = vpop.f32.mrf.mxu0 }
 0x1da   :  { %v1660_v8 = vpop.f32.mrf.mxu1 }
 0x1db   :  { %v618_v9 = vmax.f32 %v582_v7, 0.0  ;;  %v1661_v10 = vadd.f32 %v1660_v8, %v1659_v6  ;;  %v1705_v58 = vpop.f32.mrf.mxu0  ;;  %v2423_v6 = vld [vmem:[%s2533_s8] ss:$0 sm:$0xff]  ;;  %v1698_v8 = vadd.f32 %v1697_v52, %v1696_v50 }
 0x1dc   :  { %v1662_v11 = vpop.f32.mrf.mxu1 }
 0x1dd   :  { %v629_v13 = vpack.c.bf16 %v618_v9, %v617_v12  ;;  %v587_v15 = vadd.f32 %v1661_v10, %v2369_v16  ;;  %v1706_v48 = vpop.f32.mrf.mxu0  ;;  %v979_v9 = vadd.f32 %v1695_v3, %v2423_v6 }
 0x1de   :  { %v1663_v14 = vpop.f32.mrf.mxu1 }
 0x1df   :  { %v1664_v17 = vadd.f32 %v1663_v14, %v1662_v11  ;;  %1105 = vmatprep.mubr.bf16.mxu1 %v629_v13  ;;  %v619_v29 = vmax.f32 %v587_v15, 0.0  ;;  %v1708_v59 = vpop.f32.mrf.mxu0  ;;  %v982_v15 = vadd.f32 %v1698_v8, %v2423_v6 }
 0x1e0   :  { %v1665_v18 = vpop.f32.mrf.mxu1  ;;  %1106 = vmatmul.mubr.bf16.gmra.mxu1 %v2286_v36 }
 0x1e1   :  { %v590_v19 = vadd.f32 %v1664_v17, %v2369_v16  ;;  %v1709_v60 = vpop.f32.mrf.mxu0 }
 0x1e2   :  { %v1666_v20 = vpop.f32.mrf.mxu1 }
 0x1e3   :  { %v620_v21 = vmax.f32 %v590_v19, 0.0  ;;  %v1667_v22 = vadd.f32 %v1666_v20, %v1665_v18  ;;  %v1711_v2 = vpop.f32.mrf.mxu0  ;;  %v1701_v18 = vadd.f32 %v1700_v54, %v1699_v53 }
 0x1e4   :  { %v1668_v23 = vpop.f32.mrf.mxu1 }
 0x1e5   :  { %v630_v24 = vpack.c.bf16 %v620_v21, %v619_v29  ;;  %v595_v26 = vadd.f32 %v1667_v22, %v2369_v16  ;;  %v1712_v61 = vpop.f32.mrf.mxu0  ;;  %v1704_v22 = vadd.f32 %v1703_v56, %v1702_v55 }
 0x1e6   :  { %v1669_v25 = vpop.f32.mrf.mxu1 }
 0x1e7   :  { %v1670_v27 = vadd.f32 %v1669_v25, %v1668_v23  ;;  %1113 = vmatprep.mubr.bf16.mxu1 %v630_v24  ;;  %v621_v36 = vmax.f32 %v595_v26, 0.0  ;;  %v1714_v63 = vpop.f32.mrf.mxu0  ;;  %v987_v24 = vadd.f32 %v1701_v18, %v2423_v6 }
 0x1e8   :  { %v1671_v28 = vpop.f32.mrf.mxu1  ;;  %1114 = vmatmul.mubr.bf16.gmra.mxu1 %v2296_v46 }
 0x1e9   :  { %v598_v30 = vadd.f32 %v1670_v27, %v2369_v16  ;;  %v1715_v0 = vpop.f32.mrf.mxu0 }
 0x1ea   :  { %v1672_v31 = vpop.f32.mrf.mxu1  ;;  %v1716_v52 = vadd.f32 %v1715_v0, %v1714_v63 }
 0x1eb   :  { %v622_v32 = vmax.f32 %v598_v30, 0.0  ;;  %v1673_v33 = vadd.f32 %v1672_v31, %v1671_v28  ;;  %v2416_v1 = vpop.f32.mrf.mxu0  ;;  %v990_v30 = vadd.f32 %v1704_v22, %v2423_v6 }
 0x1ec   :  { %v1674_v34 = vpop.f32.mrf.mxu1 }
 0x1ed   :  { %v631_v35 = vpack.c.bf16 %v622_v32, %v621_v36  ;;  %v603_v38 = vadd.f32 %v1673_v33, %v2369_v16  ;;  %v2418_v5 = vpop.f32.mrf.mxu0  ;;  %v1707_v36 = vadd.f32 %v1706_v48, %v1705_v58 }
 0x1ee   :  { %v1675_v37 = vpop.f32.mrf.mxu1  ;;  %v1719_v63 = vadd.f32 %v2418_v5, %v2416_v1 }
 0x1ef   :  { %v1676_v39 = vadd.f32 %v1675_v37, %v1674_v34  ;;  %1121 = vmatprep.mubr.bf16.mxu1 %v631_v35  ;;  %v623_v41 = vmax.f32 %v603_v38, 0.0  ;;  %v2426_v11 = vpop.f32.mrf.mxu0  ;;  %v1710_v37 = vadd.f32 %v1709_v60, %v1708_v59  ;;  %v1006_v60 = vadd.f32 %v1716_v52, %v2423_v6 }
 0x1f0   :  { %1122 = vmatmul.mubr.bf16.gmra.mxu1 %v2302_v51  ;;  %v1968_v51 = vld [vmem:[%s2531_s9 + $0x20] sm:$0xff]  }
 0x1f1   :  { %v606_v40 = vadd.f32 %v1676_v39, %v2369_v16  ;;  %1859 = vmatprep.subr.bf16.mxu0 %v1968_v51  ;;  %v1970_v16 = vld [vmem:[%s2531_s9 + $0x10] sm:$0xff]   ;;  %v1721_v20 = vpop.f32.mrf.mxu0  ;;  %v995_v39 = vadd.f32 %v1707_v36, %v2423_v6  ;;  %v998_v44 = vadd.f32 %v1710_v37, %v2423_v6 }
 0x1f2   :  { %1860 = vmatpush3.bf16.msra.mxu0 %v1968_v51 }
 0x1f3   :  { %v624_v42 = vmax.f32 %v606_v40, 0.0  ;;  %v2430_v26 = vpop.f32.mrf.mxu0 }
 0x1f5   :  { %v632_v46 = vpack.c.bf16 %v624_v42, %v623_v41  ;;  %v1724_v33 = vpop.f32.mrf.mxu0 }
 0x1f7   :  { %1129 = vmatprep.mubr.bf16.mxu1 %v632_v46  ;;  %v1726_v41 = vpop.f32.mrf.mxu0 }
 0x1f8   :  { %1130 = vmatmul.mubr.bf16.gmra.mxu1 %v2310_v57  ;;  %v1969_v57 = vld [vmem:[%s2531_s9 + $0x18] sm:$0xff]  }
 0x1f9   :  { %1861 = vmatprep.subr.bf16.mxu0 %v1969_v57 }
 0x1fa   :  { %1862 = vmatpush3.bf16.msra.mxu0 %v1969_v57 }
 0x1fb   :  { %1863 = vmatprep.subr.bf16.mxu0 %v1970_v16 }
 0x1fe   :  { %1864 = vmatpush3.bf16.msra.mxu0 %v1970_v16  ;;  %v1713_v16 = vadd.f32 %v1712_v61, %v1711_v2 }
 0x1ff   :  { %1865 = vmatprep.subr.bf16.mxu0 %v1971_v45 }
 0x200   :  { %v1003_v54 = vadd.f32 %v1713_v16, %v2423_v6 }
 0x202   :  { %1866 = vmatpush3.bf16.msra.mxu0 %v1971_v45 }
 0x203   :  { %1867 = vmatprep.subr.bf16.mxu0 %v1972_v47 }
 0x206   :  { %1868 = vmatpush3.bf16.msra.mxu0 %v1972_v47  ;;  %v1727_v47 = vpop.f32.mrf.mxu0 }
 0x208   :  { %v1729_v56 = vpop.f32.mrf.mxu0 }
 0x20a   :  { %v1730_v3 = vpop.f32.mrf.mxu0 }
 0x280   :  { %v1757_v4 = vpop.f32.mrf.mxu1 }
 0x282   :  { %v1758_v7 = vpop.f32.mrf.mxu1 }
 0x283   :  { %v1759_v12 = vadd.f32 %v1758_v7, %v1757_v4 }
 0x284   :  { %v1760_v10 = vpop.f32.mrf.mxu1 }
 0x285   :  { %v1076_v13 = vadd.f32 %v1759_v12, %v979_v9  ;;  %v1722_v12 = vadd.f32 %v1721_v20, %v2426_v11  ;;  %v1725_v11 = vadd.f32 %v1724_v33, %v2430_v26 }
 0x286   :  { %v1761_v14 = vpop.f32.mrf.mxu1 }
 0x287   :  { %v1762_v17 = vadd.f32 %v1761_v14, %v1760_v10  ;;  %1973 = vtanh.f32 %v1076_v13  ;;  %v1011_v10 = vadd.f32 %v1719_v63, %v2423_v6  ;;  %v1732_v14 = vpop.f32.mrf.mxu0 }
 0x288   :  { %v1763_v19 = vpop.f32.mrf.mxu1 }
 0x289   :  { %v1079_v29 = vadd.f32 %v1762_v17, %v982_v15  ;;  %v1014_v17 = vadd.f32 %v1722_v12, %v2423_v6 }
 0x28a   :  { %v1764_v21 = vpop.f32.mrf.mxu1 }
 0x28b   :  { %1975 = vtanh.f32 %v1079_v29  ;;  %v1765_v23 = vadd.f32 %v1764_v21, %v1763_v19  ;;  %v1733_v29 = vpop.f32.mrf.mxu0 }
 0x28c   :  { %v1766_v25 = vpop.f32.mrf.mxu1 }
 0x28d   :  { %v1084_v27 = vadd.f32 %v1765_v23, %v987_v24  ;;  %v1728_v24 = vadd.f32 %v1727_v47, %v1726_v41 }
 0x28e   :  { %v1767_v28 = vpop.f32.mrf.mxu1 }
 0x28f   :  { %v1768_v31 = vadd.f32 %v1767_v28, %v1766_v25  ;;  %1977 = vtanh.f32 %v1084_v27  ;;  %v1019_v27 = vadd.f32 %v1725_v11, %v2423_v6 }
 0x290   :  { %v1769_v32 = vpop.f32.mrf.mxu1 }
 0x291   :  { %v1087_v34 = vadd.f32 %v1768_v31, %v990_v30  ;;  %v1735_v30 = vpop.f32.mrf.mxu0 }
 0x292   :  { %v1770_v35 = vpop.f32.mrf.mxu1 }
 0x293   :  { %1979 = vtanh.f32 %v1087_v34  ;;  %v1771_v38 = vadd.f32 %v1770_v35, %v1769_v32  ;;  %v1022_v32 = vadd.f32 %v1728_v24, %v2423_v6  ;;  %v1731_v35 = vadd.f32 %v1730_v3, %v1729_v56 }
 0x294   :  { %v1772_v40 = vpop.f32.mrf.mxu1  ;;  %v1974_v43 = vpop.eup %1973 }
 0x295   :  { %v1092_v42 = vadd.f32 %v1771_v38, %v995_v39  ;;  %v1736_v38 = vpop.f32.mrf.mxu0 }
 0x296   :  { %v1773_v46 = vpop.f32.mrf.mxu1 }
 0x297   :  { %v1774_v51 = vadd.f32 %v1773_v46, %v1772_v40  ;;  %1981 = vtanh.f32 %v1092_v42  ;;  %v1734_v42 = vadd.f32 %v1733_v29, %v1732_v14 }
 0x298   :  { %v1976_v57 = vpop.eup %1975  ;;  %v1775_v45 = vpop.f32.mrf.mxu1 }
 0x299   :  { %v1095_v49 = vadd.f32 %v1774_v51, %v998_v44  ;;  %v1154_v62 = vpack.c.bf16 %v1976_v57, %v1974_v43  ;;  %v1027_v43 = vadd.f32 %v1731_v35, %v2423_v6  ;;  %v1738_v44 = vpop.f32.mrf.mxu0  ;;  %v1030_v47 = vadd.f32 %v1734_v42, %v2423_v6 }
 0x29a   :  { %v1776_v50 = vpop.f32.mrf.mxu1 }
 0x29b   :  { %1983 = vtanh.f32 %v1095_v49  ;;  %v1777_v53 = vadd.f32 %v1776_v50, %v1775_v45  ;;  %1554 = vst [vmem:[%s2534_s11] sm:$0xff] %v1154_v62   ;;  %1869 = vmatprep.mubr.bf16.mxu0 %v1154_v62  ;;  %v1737_v50 = vadd.f32 %v1736_v38, %v1735_v30  ;;  %v1739_v52 = vpop.f32.mrf.mxu0 }
 0x29c   :  { %v1778_v55 = vpop.f32.mrf.mxu1  ;;  %v1978_v59 = vpop.eup %1977 }
 0x29d   :  { %v1100_v58 = vadd.f32 %v1777_v53, %v1003_v54 }
 0x29e   :  { %v1779_v48 = vpop.f32.mrf.mxu1 }
 0x29f   :  { %v1780_v2 = vadd.f32 %v1779_v48, %v1778_v55  ;;  %1985 = vtanh.f32 %v1100_v58  ;;  %v1740_v58 = vadd.f32 %v1739_v52, %v1738_v44 }
 0x2a0   :  { %v1980_v61 = vpop.eup %1979  ;;  %v1781_v0 = vpop.f32.mrf.mxu1 }
 0x2a1   :  { %v1103_v4 = vadd.f32 %v1780_v2, %v1006_v60  ;;  %v1155_v7 = vpack.c.bf16 %v1980_v61, %v1978_v59  ;;  %v1035_v59 = vadd.f32 %v1737_v50, %v2423_v6 }
 0x2a2   :  { %v1782_v8 = vpop.f32.mrf.mxu1 }
 0x2a3   :  { %1987 = vtanh.f32 %v1103_v4  ;;  %v1783_v9 = vadd.f32 %v1782_v8, %v1781_v0  ;;  %1590 = vst [vmem:[%s2534_s11 + $0x8] sm:$0xff] %v1155_v7   ;;  %1870 = vmatmul.mubr.bf16.vlgmr.msra.gmra.mxu0 %v1155_v7  ;;  %v1038_v0 = vadd.f32 %v1740_v58, %v2423_v6 }
 0x2a4   :  { %v1784_v13 = vpop.f32.mrf.mxu1  ;;  %v1982_v15 = vpop.eup %1981 }
 0x2a5   :  { %v1108_v1 = vadd.f32 %v1783_v9, %v1011_v10 }
 0x2a6   :  { %v1785_v5 = vpop.f32.mrf.mxu1 }
 0x2a7   :  { %v1786_v18 = vadd.f32 %v1785_v5, %v1784_v13  ;;  %1989 = vtanh.f32 %v1108_v1  ;;  %v1525_v1 = vld [vmem:[%s2535_s10] ss:$0 sm:$0xff] }
 0x2a8   :  { %v1984_v19 = vpop.eup %1983  ;;  %v1787_v20 = vpop.f32.mrf.mxu1 }
 0x2a9   :  { %v1111_v21 = vadd.f32 %v1786_v18, %v1014_v17  ;;  %v1156_v22 = vpack.c.bf16 %v1984_v19, %v1982_v15 }
 0x2aa   :  { %v1788_v23 = vpop.f32.mrf.mxu1 }
 0x2ab   :  { %1991 = vtanh.f32 %v1111_v21  ;;  %v1789_v25 = vadd.f32 %v1788_v23, %v1787_v20  ;;  %1591 = vst [vmem:[%s2534_s11 + $0x10] sm:$0xff] %v1156_v22   ;;  %1873 = vmatprep.mubr.bf16.mxu0 %v1156_v22 }
 0x2ac   :  { %v1790_v28 = vpop.f32.mrf.mxu1  ;;  %v1986_v36 = vpop.eup %1985 }
 0x2ad   :  { %v1116_v31 = vadd.f32 %v1789_v25, %v1019_v27 }
 0x2ae   :  { %v1791_v26 = vpop.f32.mrf.mxu1 }
 0x2af   :  { %v1792_v33 = vadd.f32 %v1791_v26, %v1790_v28  ;;  %1993 = vtanh.f32 %v1116_v31 }
 0x2b0   :  { %v1988_v34 = vpop.eup %1987  ;;  %v1793_v37 = vpop.f32.mrf.mxu1 }
 0x2b1   :  { %v1119_v39 = vadd.f32 %v1792_v33, %v1022_v32  ;;  %v1157_v40 = vpack.c.bf16 %v1988_v34, %v1986_v36 }
 0x2b2   :  { %v1794_v41 = vpop.f32.mrf.mxu1 }
 0x2b3   :  { %1995 = vtanh.f32 %v1119_v39  ;;  %v1795_v46 = vadd.f32 %v1794_v41, %v1793_v37  ;;  %1592 = vst [vmem:[%s2534_s11 + $0x18] sm:$0xff] %v1157_v40   ;;  %1874 = vmatmul.mubr.bf16.gmra.mxu0 %v1157_v40 }
 0x2b4   :  { %v1796_v51 = vpop.f32.mrf.mxu1  ;;  %v1990_v45 = vpop.eup %1989 }
 0x2b5   :  { %v1124_v57 = vadd.f32 %v1795_v46, %v1027_v43 }
 0x2b6   :  { %v1797_v16 = vpop.f32.mrf.mxu1 }
 0x2b7   :  { %v1798_v49 = vadd.f32 %v1797_v16, %v1796_v51  ;;  %1997 = vtanh.f32 %v1124_v57 }
 0x2b8   :  { %v1992_v62 = vpop.eup %1991  ;;  %v1799_v53 = vpop.f32.mrf.mxu1 }
 0x2b9   :  { %v1127_v54 = vadd.f32 %v1798_v49, %v1030_v47  ;;  %v1158_v55 = vpack.c.bf16 %v1992_v62, %v1990_v45 }
 0x2ba   :  { %v1800_v56 = vpop.f32.mrf.mxu1 }
 0x2bb   :  { %1999 = vtanh.f32 %v1127_v54  ;;  %v1801_v48 = vadd.f32 %v1800_v56, %v1799_v53  ;;  %1593 = vst [vmem:[%s2534_s11 + $0x20] sm:$0xff] %v1158_v55   ;;  %1877 = vmatprep.mubr.bf16.mxu0 %v1158_v55 }
 0x2bc   :  { %v1802_v60 = vpop.f32.mrf.mxu1  ;;  %v1994_v63 = vpop.eup %1993 }
 0x2bd   :  { %v1132_v2 = vadd.f32 %v1801_v48, %v1035_v59 }
 0x2be   :  { %v1803_v61 = vpop.f32.mrf.mxu1 }
 0x2bf   :  { %v1804_v3 = vadd.f32 %v1803_v61, %v1802_v60  ;;  %2001 = vtanh.f32 %v1132_v2 }
 0x2c0   :  { %v1996_v4 = vpop.eup %1995 }
 0x2c1   :  { %v1135_v7 = vadd.f32 %v1804_v3, %v1038_v0  ;;  %v1159_v8 = vpack.c.bf16 %v1996_v4, %v1994_v63 }
 0x2c3   :  { %2003 = vtanh.f32 %v1135_v7  ;;  %1594 = vst [vmem:[%s2534_s11 + $0x28] sm:$0xff] %v1159_v8   ;;  %1878 = vmatmul.mubr.bf16.gmra.mxu0 %v1159_v8 }
 0x2c4   :  { %v1998_v12 = vpop.eup %1997 }
 0x2c8   :  { %v2000_v9 = vpop.eup %1999 }
 0x2c9   :  { %v1160_v10 = vpack.c.bf16 %v2000_v9, %v1998_v12 }
 0x2cb   :  { %1595 = vst [vmem:[%s2534_s11 + $0x30] sm:$0xff] %v1160_v10   ;;  %1881 = vmatprep.mubr.bf16.mxu0 %v1160_v10 }
 0x2cc   :  { %v2002_v6 = vpop.eup %2001 }
 0x2d0   :  { %v2004_v13 = vpop.eup %2003 }
 0x2d1   :  { %v1161_v14 = vpack.c.bf16 %v2004_v13, %v2002_v6 }
 0x2d3   :  { %1596 = vst [vmem:[%s2534_s11 + $0x38] sm:$0xff] %v1161_v14   ;;  %1882 = vmatmul.mubr.bf16.gmra.mxu0 %v1161_v14 }
 0x363   :  { %v1871_v5 = vpop.f32.mrf.mxu0 }
 0x364   :  { %v1348_v15 = vadd.f32 %v1871_v5, %v1525_v1 }
 0x365   :  { %v1339_v17 = vpop.f32.mrf.mxu0 }
 0x366   :  { %1404 = vst [vmem:[%s2536_s12 + $0x10] sm:$0xff] %v1348_v15  ;;  %v1340_v18 = vadd.f32 %v1525_v1, %v1339_v17 }
 0x367   :  { %v1872_v19 = vpop.f32.mrf.mxu0 }
 0x368   :  { %1402 = vst [vmem:[%s2536_s12] sm:$0xff] %v1340_v18  ;;  %v1351_v11 = vadd.f32 %v1872_v19, %v1525_v1 }
 0x369   :  { %v1342_v20 = vpop.f32.mrf.mxu0 }
 0x36a   :  { %1405 = vst [vmem:[%s2536_s12 + $0x18] sm:$0xff] %v1351_v11  ;;  %v1343_v29 = vadd.f32 %v1525_v1, %v1342_v20 }
 0x36c   :  { %1403 = vst [vmem:[%s2536_s12 + $0x8] sm:$0xff] %v1343_v29 }
 0x373   :  { %v1875_v21 = vpop.f32.mrf.mxu0 }
 0x374   :  { %v1364_v22 = vadd.f32 %v1875_v21, %v1525_v1 }
 0x375   :  { %v1355_v23 = vpop.f32.mrf.mxu0 }
 0x376   :  { %1408 = vst [vmem:[%s2536_s12 + $0x30] sm:$0xff] %v1364_v22  ;;  %v1356_v24 = vadd.f32 %v1525_v1, %v1355_v23 }
 0x377   :  { %v1876_v25 = vpop.f32.mrf.mxu0 }
 0x378   :  { %1406 = vst [vmem:[%s2536_s12 + $0x20] sm:$0xff] %v1356_v24  ;;  %v1367_v27 = vadd.f32 %v1876_v25, %v1525_v1 }
 0x379   :  { %v1358_v28 = vpop.f32.mrf.mxu0 }
 0x37a   :  { %1409 = vst [vmem:[%s2536_s12 + $0x38] sm:$0xff] %v1367_v27  ;;  %v1359_v30 = vadd.f32 %v1525_v1, %v1358_v28 }
 0x37c   :  { %1407 = vst [vmem:[%s2536_s12 + $0x28] sm:$0xff] %v1359_v30 }
 0x383   :  { %v1879_v31 = vpop.f32.mrf.mxu0 }
 0x384   :  { %v1380_v26 = vadd.f32 %v1879_v31, %v1525_v1 }
 0x385   :  { %v1371_v36 = vpop.f32.mrf.mxu0 }
 0x386   :  { %1412 = vst [vmem:[%s2536_s12 + $0x50] sm:$0xff] %v1380_v26  ;;  %v1372_v32 = vadd.f32 %v1525_v1, %v1371_v36 }
 0x387   :  { %v1880_v33 = vpop.f32.mrf.mxu0 }
 0x388   :  { %1410 = vst [vmem:[%s2536_s12 + $0x40] sm:$0xff] %v1372_v32  ;;  %v1383_v34 = vadd.f32 %v1880_v33, %v1525_v1 }
 0x389   :  { %v1374_v35 = vpop.f32.mrf.mxu0 }
 0x38a   :  { %1413 = vst [vmem:[%s2536_s12 + $0x58] sm:$0xff] %v1383_v34  ;;  %v1375_v37 = vadd.f32 %v1525_v1, %v1374_v35 }
 0x38c   :  { %1411 = vst [vmem:[%s2536_s12 + $0x48] sm:$0xff] %v1375_v37 }
 0x393   :  { %v1883_v38 = vpop.f32.mrf.mxu0 }
 0x394   :  { %v1396_v39 = vadd.f32 %v1883_v38, %v1525_v1 }
 0x395   :  { %v1387_v40 = vpop.f32.mrf.mxu0 }
 0x396   :  { %1416 = vst [vmem:[%s2536_s12 + $0x70] sm:$0xff] %v1396_v39  ;;  %v1388_v41 = vadd.f32 %v1525_v1, %v1387_v40 }
 0x397   :  { %v1884_v42 = vpop.f32.mrf.mxu0 }
 0x398   :  { %1414 = vst [vmem:[%s2536_s12 + $0x60] sm:$0xff] %v1388_v41  ;;  %v1399_v46 = vadd.f32 %v1884_v42, %v1525_v1 }
 0x399   :  { %v1390_v43 = vpop.f32.mrf.mxu0 }
 0x39a   :  { %1417 = vst [vmem:[%s2536_s12 + $0x78] sm:$0xff] %v1399_v46  ;;  %v1391_v44 = vadd.f32 %v1525_v1, %v1390_v43 }
 0x39c   :  { %1415 = vst [vmem:[%s2536_s12 + $0x68] sm:$0xff] %v1391_v44 }

// kernel: gaflow_forward.20
= control target key start
LH: loop header
LB: loop body
LE: loop exit
PB: predicated region body
PF: predicated region fallthrough
CT: control target
= control target key end

     0   :  { %s1253_s18 = smov 0   ;;  %s1255_s19 = smov 0   ;;  %s1441_s0 = inlined_call_operand.vmem [shape: bf16[2,64,256], index: 0, kind: input, shape index: {}]   ;;  %s1442_s1 = inlined_call_operand.vmem [shape: bf16[2,256,64], index: 1, kind: input, shape index: {}]   ;;  %s1443_s2 = inlined_call_operand.vmem [shape: f32[2,64,1], index: 2, kind: output, shape index: {0}]   ;;  %s1444_s3 = inlined_call_operand.vmem [shape: f32[2,64,1], index: 3, kind: output, shape index: {1}]   ;;  %s1445_s4 = inlined_call_operand.vmem [shape: f32[2,1,64], index: 4, kind: output, shape index: {2}]   ;;  %s1446_s5 = inlined_call_operand.vmem [shape: f32[2,1,64], index: 5, kind: output, shape index: {3}]  }
   0x1   :  { %s1257_s20 = smov 0  }
   0x2 LB: > { %s28_s21 = sadd.s32 1, %s1215_s19  ;;  %p1012_p0 = scmp.ge.s32.totalorder %s1219_s20, 1  ;;  %s1219_s20 = sphi %s1257_s20, %s16_s20   ;;  %s1215_s19 = sphi %s1255_s19, %s1448_s19   ;;  %s1211_s18 = sphi %s1253_s18, %s1447_s18  }
   0x3   : > { %p30_p1 = scmp.ge.s32.totalorder %s28_s21, 2  ;;  %p228_p2 = scmp.lt.s32.totalorder %s1219_s20, 3 }
   0x5   : > { %s1450_s21 = smov (%p30_p1, %s28_s21), 0  ;;  %p229_p3 = pnand %p1012_p0, %p228_p2 }
   0x6   : > { %p286_p4 = scmp.lt.s32.totalorder (!%p229_p3), %s1211_s18, 1 }
   0x7   : > { %232 = sbr.rel (%p229_p3) target bundleno = 565 (0x235), region = 28 }
   0xc   : > { %s1452_s18 = smov (!%p286_p4, %s1211_s18), 1  ;;  %vm788_vm0 = vcmask 516096   ;;  %v1221_v24 = vmov -inf   ;;  %v1222_v25 = vmov 0.0   ;;  %vm577_vm1 = vcmask 523264  }
   0xd   : > { %s1048_s22 = sshll.u32 %s1452_s18, 7  ;;  %s1288_s26 = sshll.u32 %s1452_s18, 6  ;;  %vm602_vm2 = vcmask 7168  }
   0xe   : > { %s1277_s25 = scalar_lea.vmem %s1442_s1, %s1048_s22  ;;  %s1295_s29 = scalar_lea.vmem %s1441_s0, %s1288_s26 }
   0xf   : > { %v1133_v0 = vld [vmem:[%s1277_s25 + $0x78] sm:$0xff]   ;;  %v1135_v2 = vld [vmem:[%s1277_s25 + $0x70] sm:$0xff]   ;;  %v1137_v4 = vld [vmem:[%s1277_s25 + $0x68] sm:$0xff]   ;;  %s1316_s7 = scalar_lea.vmem %s1445_s4, %s1452_s18  ;;  %s1322_s10 = scalar_lea.vmem %s1446_s5, %s1452_s18 }
  0x10   : > { %v1134_v1 = vld [vmem:[%s1277_s25 + $0x38] sm:$0xff]   ;;  %1051 = vmatprep.subr.bf16.mxu0 %v1133_v0  ;;  %1091 = vmatprep.subr.bf16.mxu1 %v1133_v0  ;;  %v1136_v3 = vld [vmem:[%s1277_s25 + $0x30] sm:$0xff]   ;;  %v1138_v5 = vld [vmem:[%s1277_s25 + $0x28] sm:$0xff]   ;;  %789 = vst.msk [vmem:[%s1316_s7] sm:$0x1] %vm788_vm0, %v1221_v24  ;;  %s1386_s13 = scalar_lea.vmem %s1443_s2, %s1288_s26  ;;  %s319_s16 = scalar_lea.vmem %s1444_s3, %s1288_s26 }
  0x11   : > { %1052 = vmatpush3.bf16.msra.mxu0 %v1134_v1  ;;  %1099 = vmatpush3.bf16.msra.mxu1 %v1134_v1  ;;  %v1139_v6 = vld [vmem:[%s1277_s25 + $0x60] sm:$0xff]   ;;  %v1141_v8 = vld [vmem:[%s1277_s25 + $0x58] sm:$0xff]   ;;  %v1143_v10 = vld [vmem:[%s1277_s25 + $0x50] sm:$0xff]   ;;  %790 = vst.msk [vmem:[%s1322_s10] sm:$0x1] %vm788_vm0, %v1222_v25 }
  0x12   : > { %1053 = vmatprep.subr.bf16.mxu0 %v1135_v2  ;;  %1092 = vmatprep.subr.bf16.mxu1 %v1135_v2  ;;  %v1140_v7 = vld [vmem:[%s1277_s25 + $0x20] sm:$0xff]   ;;  %v1142_v9 = vld [vmem:[%s1277_s25 + $0x18] sm:$0xff]   ;;  %v1144_v13 = vld [vmem:[%s1277_s25 + $0x10] sm:$0xff]  }
  0x13   : > { %v1151_v11 = vld [vmem:[%s1295_s29 + $0x4] ss:$8 sps:$4 sm:$0xff]   ;;  %v1149_v18 = vld [vmem:[%s1295_s29] ss:$8 sps:$4 sm:$0xff]   ;;  %v1155_v20 = vld [vmem:[%s1295_s29 + $0x14] ss:$8 sps:$4 sm:$0xff]  }
  0x14   : > { %v1154_v12 = vld [vmem:[%s1295_s29 + $0x24] ss:$8 sps:$4 sm:$0xff]   ;;  %536 = vmatprep.mubr.bf16.mxu0 %v1151_v11  ;;  %v1152_v19 = vld [vmem:[%s1295_s29 + $0x20] ss:$8 sps:$4 sm:$0xff]   ;;  %v1157_v21 = vld [vmem:[%s1295_s29 + $0x34] ss:$8 sps:$4 sm:$0xff]  }
  0x15   : > { %1054 = vmatpush3.bf16.msra.mxu0 %v1136_v3  ;;  %1100 = vmatpush3.bf16.msra.mxu1 %v1136_v3  ;;  %v1145_v14 = vld [vmem:[%s1277_s25 + $0x48] sm:$0xff]   ;;  %v1147_v16 = vld [vmem:[%s1277_s25 + $0x40] sm:$0xff]   ;;  %v1159_v22 = vld [vmem:[%s1295_s29 + $0x10] ss:$8 sps:$4 sm:$0xff]  }
  0x16   : > { %1055 = vmatprep.subr.bf16.mxu0 %v1137_v4  ;;  %1093 = vmatprep.subr.bf16.mxu1 %v1137_v4  ;;  %v1146_v15 = vld [vmem:[%s1277_s25 + $0x8] sm:$0xff]   ;;  %v1148_v17 = vld [vmem:[%s1277_s25] sm:$0xff]   ;;  %v1160_v23 = vld [vmem:[%s1295_s29 + $0x30] ss:$8 sps:$4 sm:$0xff]  }
  0x17   : > { %552 = vmatprep.mubr.bf16.mxu1 %v1154_v12 }
  0x19   : > { %1056 = vmatpush3.bf16.msra.mxu0 %v1138_v5  ;;  %1101 = vmatpush3.bf16.msra.mxu1 %v1138_v5 }
  0x1a   : > { %1057 = vmatprep.subr.bf16.mxu0 %v1139_v6  ;;  %1094 = vmatprep.subr.bf16.mxu1 %v1139_v6 }
  0x1d   : > { %1058 = vmatpush3.bf16.msra.mxu0 %v1140_v7  ;;  %1102 = vmatpush3.bf16.msra.mxu1 %v1140_v7 }
  0x1e   : > { %1059 = vmatprep.subr.bf16.mxu0 %v1141_v8  ;;  %1095 = vmatprep.subr.bf16.mxu1 %v1141_v8 }
  0x21   : > { %1060 = vmatpush3.bf16.msra.mxu0 %v1142_v9  ;;  %1103 = vmatpush3.bf16.msra.mxu1 %v1142_v9 }
  0x22   : > { %1061 = vmatprep.subr.bf16.mxu0 %v1143_v10  ;;  %1096 = vmatprep.subr.bf16.mxu1 %v1143_v10 }
  0x25   : > { %1062 = vmatpush3.bf16.msra.mxu0 %v1144_v13  ;;  %1104 = vmatpush3.bf16.msra.mxu1 %v1144_v13 }
  0x26   : > { %1063 = vmatprep.subr.bf16.mxu0 %v1145_v14  ;;  %1097 = vmatprep.subr.bf16.mxu1 %v1145_v14 }
  0x29   : > { %1064 = vmatpush3.bf16.msra.mxu0 %v1146_v15  ;;  %1105 = vmatpush3.bf16.msra.mxu1 %v1146_v15  ;;  %v791_v15 = vld [vmem:[%s1316_s7] sm:$0x1] }
  0x2a   : > { %1065 = vmatprep.subr.bf16.mxu0 %v1147_v16  ;;  %1098 = vmatprep.subr.bf16.mxu1 %v1147_v16 }
  0x2d   : > { %1066 = vmatpush3.bf16.msra.mxu0 %v1148_v17  ;;  %1106 = vmatpush3.bf16.msra.mxu1 %v1148_v17 }
  0x30   : > { %537 = vmatmul.mubr.bf16.vlgmr.msra.gmra.mxu0 %v1149_v18  ;;  %553 = vmatmul.mubr.bf16.vlgmr.msra.gmra.mxu1 %v1152_v19 }
  0x31   : > { %544 = vmatprep.mubr.bf16.mxu0 %v1155_v20  ;;  %560 = vmatprep.mubr.bf16.mxu1 %v1157_v21 }
  0x38   : > { %545 = vmatmul.mubr.bf16.gmra.mxu0 %v1159_v22  ;;  %561 = vmatmul.mubr.bf16.gmra.mxu1 %v1160_v23 }
  0xf0   : > { %v1067_v26 = vpop.f32.mrf.mxu0  ;;  %v1079_v27 = vpop.f32.mrf.mxu1 }
  0xf2   : > { %v1068_v28 = vpop.f32.mrf.mxu0  ;;  %v1080_v29 = vpop.f32.mrf.mxu1 }
  0xf3   : > { %v1069_v30 = vadd.f32 %v1068_v28, %v1067_v26  ;;  %v1081_v31 = vadd.f32 %v1080_v29, %v1079_v27 }
  0xf4   : > { %v1070_v32 = vpop.f32.mrf.mxu0  ;;  %v1082_v33 = vpop.f32.mrf.mxu1 }
  0xf5   : > { %v1328_v34 = vmul.f32 0.0625, %v1069_v30  ;;  %v1330_v35 = vmul.f32 0.0625, %v1081_v31 }
  0xf6   : > { %v1071_v36 = vpop.f32.mrf.mxu0  ;;  %v1083_v37 = vpop.f32.mrf.mxu1 }
  0xf7   : > { %v1072_v38 = vadd.f32 %v1071_v36, %v1070_v32  ;;  %v1084_v39 = vadd.f32 %v1083_v37, %v1082_v33  ;;  %v578_v40 = vsel %vm577_vm1, %v1328_v34, -inf  ;;  %v590_v46 = vsel %vm577_vm1, %v1330_v35, -inf }
  0xf8   : > { %v1073_v41 = vpop.f32.mrf.mxu0  ;;  %v1085_v42 = vpop.f32.mrf.mxu1  ;;  %579 = vmax.xlane.f32.xlu0 %v578_v40  ;;  %v723_v3 = vmax.f32 %v578_v40, %v590_v46 }
  0xf9   : > { %v1334_v43 = vmul.f32 0.0625, %v1084_v39  ;;  %v1338_v47 = vmul.f32 0.0625, %v1072_v38 }
  0xfa   : > { %v1074_v44 = vpop.f32.mrf.mxu0  ;;  %v1086_v45 = vpop.f32.mrf.mxu1 }
  0xfb   : > { %v1075_v48 = vadd.f32 %v1074_v44, %v1073_v41  ;;  %v1087_v49 = vadd.f32 %v1086_v45, %v1085_v42  ;;  %v593_v50 = vsel %vm577_vm1, %v1334_v43, -inf  ;;  %v581_v60 = vsel %vm577_vm1, %v1338_v47, -inf }
  0xfc   : > { %v1088_v51 = vpop.f32.mrf.mxu1  ;;  %594 = vmax.xlane.f32.xlu1 %v593_v50  ;;  %v1076_v52 = vpop.f32.mrf.mxu0  ;;  %591 = vmax.xlane.f32.xlu0 %v590_v46  ;;  %v725_v0 = vmax.f32 %v581_v60, %v593_v50 }
  0xfd   : > { %v1342_v53 = vmul.f32 0.0625, %v1075_v48  ;;  %v1344_v54 = vmul.f32 0.0625, %v1087_v49 }
  0xfe   : > { %v1077_v55 = vpop.f32.mrf.mxu0  ;;  %v1089_v56 = vpop.f32.mrf.mxu1  ;;  %v730_v6 = vmax.f32 %v723_v3, %v725_v0 }
  0xff   : > { %v1078_v57 = vadd.f32 %v1077_v55, %v1076_v52  ;;  %v1090_v58 = vadd.f32 %v1089_v56, %v1088_v51  ;;  %v584_v59 = vsel %vm577_vm1, %v1342_v53, -inf  ;;  %v596_v63 = vsel %vm577_vm1, %v1344_v54, -inf }
 0x100   : > { %585 = vmax.xlane.f32.xlu1 %v584_v59  ;;  %582 = vmax.xlane.f32.xlu0 %v581_v60  ;;  %v727_v4 = vmax.f32 %v584_v59, %v596_v63 }
 0x101   : > { %v1350_v61 = vmul.f32 0.0625, %v1078_v57  ;;  %v1352_v62 = vmul.f32 0.0625, %v1090_v58 }
 0x103   : > { %v587_v1 = vsel %vm577_vm1, %v1350_v61, -inf  ;;  %v599_v2 = vsel %vm577_vm1, %v1352_v62, -inf }
 0x104   : > { %588 = vmax.xlane.f32.xlu1 %v587_v1  ;;  %597 = vmax.xlane.f32.xlu0 %v596_v63  ;;  %v729_v5 = vmax.f32 %v587_v1, %v599_v2 }
 0x106   : > { %v731_v7 = vmax.f32 %v727_v4, %v729_v5 }
 0x108   : > { %600 = vmax.xlane.f32.xlu1 %v599_v2  ;;  %v732_v8 = vmax.f32 %v730_v6, %v731_v7 }
 0x10a   : > { %v733_v9 = vrot.slane %v732_v8, 4 }
 0x10c   : > { %v734_v10 = vmax.f32 %v732_v8, %v733_v9 }
 0x10e   : > { %v735_v11 = vrot.slane %v734_v10, 2 }
 0x110   : > { %v736_v12 = vmax.f32 %v734_v10, %v735_v11  ;;  %v792_v10 = vld [vmem:[%s1322_s10] sm:$0x1] }
 0x112   : > { %v737_v13 = vrot.slane %v736_v12, 1 }
 0x114   : > { %v738_v14 = vmax.f32 %v736_v12, %v737_v13 }
 0x116   : > { %v739_v16 = vsub.f32 %v1328_v34, %v738_v14  ;;  %v740_v17 = vsub.f32 %v1338_v47, %v738_v14  ;;  %v741_v18 = vsub.f32 %v1342_v53, %v738_v14  ;;  %v742_v19 = vsub.f32 %v1350_v61, %v738_v14 }
 0x117   : > { %v743_v20 = vsub.f32 %v1330_v35, %v738_v14  ;;  %v793_v24 = vmax.f32 %v791_v15, %v738_v14  ;;  %v744_v25 = vsub.f32 %v1334_v43, %v738_v14  ;;  %v745_v27 = vsub.f32 %v1344_v54, %v738_v14 }
 0x118   : > { %v747_v21 = vmul.f32 1.442695, %v739_v16  ;;  %v749_v22 = vmul.f32 1.442695, %v740_v17  ;;  %v751_v23 = vmul.f32 1.442695, %v741_v18  ;;  %v746_v29 = vsub.f32 %v1352_v62, %v738_v14 }
 0x119   : > { %v753_v26 = vmul.f32 1.442695, %v742_v19  ;;  %805 = vst.msk [vmem:[%s1316_s7] sm:$0x1] %vm788_vm0, %v793_v24  ;;  %v755_v28 = vmul.f32 1.442695, %v743_v20  ;;  %v794_v46 = vsub.f32 %v791_v15, %v793_v24  ;;  %v798_v51 = vsub.f32 %v738_v14, %v793_v24 }
 0x11a   : > { %1161 = vpow2.f32 %v747_v21  ;;  %v757_v30 = vmul.f32 1.442695, %v744_v25  ;;  %v759_v31 = vmul.f32 1.442695, %v745_v27  ;;  %v761_v32 = vmul.f32 1.442695, %v746_v29 }
 0x11b   : > { %1163 = vpow2.f32 %v749_v22  ;;  %v795_v57 = vmul.f32 1.442695, %v794_v46  ;;  %v799_v63 = vmul.f32 1.442695, %v798_v51 }
 0x11c   : > { %1165 = vpow2.f32 %v751_v23 }
 0x11d   : > { %1167 = vpow2.f32 %v753_v26 }
 0x11e   : > { %1169 = vpow2.f32 %v755_v28 }
 0x11f   : > { %1171 = vpow2.f32 %v757_v30 }
 0x120   : > { %1173 = vpow2.f32 %v759_v31 }
 0x121   : > { %1175 = vpow2.f32 %v761_v32 }
 0x122   : > { %1177 = vpow2.f32 %v795_v57 }
 0x123   : > { %1179 = vpow2.f32 %v799_v63 }
 0x127   : > { %v1162_v33 = vpop.eup %1161 }
 0x128   : > { %v1164_v36 = vpop.eup %1163  ;;  %v763_v37 = vsel %vm577_vm1, %v1162_v33, 0.0 }
 0x129   : > { %v1166_v38 = vpop.eup %1165  ;;  %v764_v39 = vsel %vm577_vm1, %v1164_v36, 0.0 }
 0x12a   : > { %v1168_v40 = vpop.eup %1167  ;;  %v765_v41 = vadd.f32 %v764_v39, %v763_v37  ;;  %v766_v42 = vsel %vm577_vm1, %v1166_v38, 0.0 }
 0x12b   : > { %v1170_v44 = vpop.eup %1169  ;;  %v768_v48 = vsel %vm577_vm1, %v1168_v40, 0.0 }
 0x12c   : > { %v767_v45 = vadd.f32 %v766_v42, %v765_v41  ;;  %v1172_v49 = vpop.eup %1171  ;;  %v770_v52 = vsel %vm577_vm1, %v1170_v44, 0.0 }
 0x12d   : > { %v1174_v55 = vpop.eup %1173  ;;  %v772_v58 = vsel %vm577_vm1, %v1172_v49, 0.0 }
 0x12e   : > { %v769_v50 = vadd.f32 %v768_v48, %v767_v45  ;;  %v1176_v59 = vpop.eup %1175  ;;  %v774_v0 = vsel %vm577_vm1, %v1174_v55, 0.0 }
 0x12f   : > { %v776_v2 = vsel %vm577_vm1, %v1176_v59, 0.0  ;;  %v1178_v9 = vpop.eup %1177 }
 0x130   : > { %v771_v56 = vadd.f32 %v770_v52, %v769_v50  ;;  %v1180_v12 = vpop.eup %1179  ;;  %v797_v13 = vmul.f32 %v1178_v9, %v792_v10 }
 0x132   : > { %v773_v60 = vadd.f32 %v772_v58, %v771_v56 }
 0x134   : > { %v775_v1 = vadd.f32 %v774_v0, %v773_v60 }
 0x136   : > { %v777_v3 = vadd.f32 %v776_v2, %v775_v1 }
 0x138   : > { %v778_v4 = vrot.slane %v777_v3, 4 }
 0x13a   : > { %v779_v5 = vadd.f32 %v778_v4, %v777_v3 }
 0x13c   : > { %v780_v6 = vrot.slane %v779_v5, 2 }
 0x13e   : > { %v781_v7 = vadd.f32 %v780_v6, %v779_v5 }
 0x140   : > { %v782_v8 = vrot.slane %v781_v7, 1 }
 0x142   : > { %v783_v11 = vadd.f32 %v782_v8, %v781_v7 }
 0x144   : > { %v801_v14 = vmul.f32 %v1180_v12, %v783_v11 }
 0x146   : > { %v802_v15 = vadd.f32 %v801_v14, %v797_v13 }
 0x148   : > { %804 = vst.msk [vmem:[%s1322_s10] sm:$0x1] %vm788_vm0, %v802_v15 }
 0x181   : > { %v580_v16 = vpop.xlane.xlu0 %579 }
 0x182   : > { %603 = vst.msk [vmem:[%s1386_s13] sm:$0xff] %vm602_vm2, %v580_v16  ;;  %v611_v17 = vsub.f32 %v1328_v34, %v580_v16 }
 0x184   : > { %v619_v18 = vmul.f32 1.442695, %v611_v17 }
 0x185   : > { %v595_v19 = vpop.xlane.xlu1 %594  ;;  %v592_v20 = vpop.xlane.xlu0 %591 }
 0x186   : > { %1181 = vpow2.f32 %v619_v18  ;;  %608 = vst.msk [vmem:[%s1386_s13 + $0x28] sm:$0xff] %vm602_vm2, %v595_v19  ;;  %607 = vst.msk [vmem:[%s1386_s13 + $0x20] sm:$0xff] %vm602_vm2, %v592_v20  ;;  %v615_v21 = vsub.f32 %v1330_v35, %v592_v20  ;;  %v616_v23 = vsub.f32 %v1334_v43, %v595_v19 }
 0x188   : > { %v627_v22 = vmul.f32 1.442695, %v615_v21  ;;  %v629_v35 = vmul.f32 1.442695, %v616_v23 }
 0x189   : > { %v586_v24 = vpop.xlane.xlu1 %585  ;;  %v583_v25 = vpop.xlane.xlu0 %582 }
 0x18a   : > { %605 = vst.msk [vmem:[%s1386_s13 + $0x10] sm:$0xff] %vm602_vm2, %v586_v24  ;;  %v613_v34 = vsub.f32 %v1342_v53, %v586_v24  ;;  %604 = vst.msk [vmem:[%s1386_s13 + $0x8] sm:$0xff] %vm602_vm2, %v583_v25  ;;  %v612_v26 = vsub.f32 %v1338_v47, %v583_v25  ;;  %1183 = vpow2.f32 %v627_v22 }
 0x18c   : > { %v623_v27 = vmul.f32 1.442695, %v613_v34  ;;  %v621_v28 = vmul.f32 1.442695, %v612_v26 }
 0x18d   : > { %v589_v29 = vpop.xlane.xlu1 %588  ;;  %v598_v30 = vpop.xlane.xlu0 %597 }
 0x18e   : > { %1185 = vpow2.f32 %v623_v27  ;;  %606 = vst.msk [vmem:[%s1386_s13 + $0x18] sm:$0xff] %vm602_vm2, %v589_v29  ;;  %v614_v43 = vsub.f32 %v1350_v61, %v589_v29  ;;  %609 = vst.msk [vmem:[%s1386_s13 + $0x30] sm:$0xff] %vm602_vm2, %v598_v30  ;;  %v617_v53 = vsub.f32 %v1344_v54, %v598_v30 }
 0x18f   : > { %1187 = vpow2.f32 %v621_v28 }
 0x190   : > { %v631_v31 = vmul.f32 1.442695, %v617_v53  ;;  %1189 = vpow2.f32 %v629_v35  ;;  %v625_v47 = vmul.f32 1.442695, %v614_v43 }
 0x191   : > { %v601_v32 = vpop.xlane.xlu1 %600 }
 0x192   : > { %610 = vst.msk [vmem:[%s1386_s13 + $0x38] sm:$0xff] %vm602_vm2, %v601_v32  ;;  %v618_v33 = vsub.f32 %v1352_v62, %v601_v32  ;;  %1191 = vpow2.f32 %v631_v31 }
 0x193   : > { %v1182_v36 = vpop.eup %1181  ;;  %1193 = vpow2.f32 %v625_v47 }
 0x194   : > { %v635_v37 = vsel %vm577_vm1, %v1182_v36, 0.0  ;;  %v633_v38 = vmul.f32 1.442695, %v618_v33 }
 0x195   : > { %636 = vadd.xlane.f32.xlu0 %v635_v37 }
 0x196   : > { %1195 = vpow2.f32 %v633_v38 }
 0x197   : > { %v1184_v61 = vpop.eup %1183 }
 0x198   : > { %v647_v54 = vsel %vm577_vm1, %v1184_v61, 0.0 }
 0x199   : > { %648 = vadd.xlane.f32.xlu0 %v647_v54 }
 0x19b   : > { %v1186_v39 = vpop.eup %1185 }
 0x19c   : > { %v1188_v40 = vpop.eup %1187  ;;  %v641_v41 = vsel %vm577_vm1, %v1186_v39, 0.0 }
 0x19d   : > { %v638_v42 = vsel %vm577_vm1, %v1188_v40, 0.0  ;;  %v1190_v62 = vpop.eup %1189  ;;  %642 = vadd.xlane.f32.xlu0 %v641_v41 }
 0x19e   : > { %639 = vadd.xlane.f32.xlu1 %v638_v42  ;;  %v650_v45 = vsel %vm577_vm1, %v1190_v62, 0.0 }
 0x19f   : > { %v1192_v44 = vpop.eup %1191 }
 0x1a0   : > { %v653_v46 = vsel %vm577_vm1, %v1192_v44, 0.0  ;;  %v1194_v48 = vpop.eup %1193 }
 0x1a1   : > { %654 = vadd.xlane.f32.xlu0 %v653_v46  ;;  %v644_v49 = vsel %vm577_vm1, %v1194_v48, 0.0 }
 0x1a2   : > { %651 = vadd.xlane.f32.xlu1 %v650_v45 }
 0x1a3   : > { %v1196_v50 = vpop.eup %1195 }
 0x1a4   : > { %v656_v51 = vsel %vm577_vm1, %v1196_v50, 0.0 }
 0x1a6   : > { %645 = vadd.xlane.f32.xlu1 %v644_v49 }
 0x1aa   : > { %657 = vadd.xlane.f32.xlu1 %v656_v51 }
 0x21e   : > { %v637_v52 = vpop.xlane.xlu0 %636 }
 0x21f   : > { %659 = vst.msk [vmem:[%s319_s16] sm:$0xff] %vm602_vm2, %v637_v52 }
 0x222   : > { %v649_v55 = vpop.xlane.xlu0 %648 }
 0x223   : > { %663 = vst.msk [vmem:[%s319_s16 + $0x20] sm:$0xff] %vm602_vm2, %v649_v55 }
 0x226   : > { %v643_v57 = vpop.xlane.xlu0 %642 }
 0x227   : > { %v640_v56 = vpop.xlane.xlu1 %639  ;;  %661 = vst.msk [vmem:[%s319_s16 + $0x10] sm:$0xff] %vm602_vm2, %v643_v57 }
 0x228   : > { %660 = vst.msk [vmem:[%s319_s16 + $0x8] sm:$0xff] %vm602_vm2, %v640_v56 }
 0x22a   : > { %v655_v59 = vpop.xlane.xlu0 %654 }
 0x22b   : > { %v652_v58 = vpop.xlane.xlu1 %651  ;;  %665 = vst.msk [vmem:[%s319_s16 + $0x30] sm:$0xff] %vm602_vm2, %v655_v59 }
 0x22c   : > { %664 = vst.msk [vmem:[%s319_s16 + $0x28] sm:$0xff] %vm602_vm2, %v652_v58 }
 0x22f   : > { %v646_v60 = vpop.xlane.xlu1 %645 }
 0x230   : > { %662 = vst.msk [vmem:[%s319_s16 + $0x18] sm:$0xff] %vm602_vm2, %v646_v60 }
 0x233   : > { %v658_v63 = vpop.xlane.xlu1 %657 }
 0x234   : > { %666 = vst.msk [vmem:[%s319_s16 + $0x38] sm:$0xff] %vm602_vm2, %v658_v63 }
 0x235 PF: > { %s16_s20 = sadd.s32 1, %s1219_s20   ;;  %s1447_s18 = smov %s1215_s19 }
 0x236   : > { %p13_p5 = scmp.ge.s32.totalorder %s16_s20, 4   ;;  %s1448_s19 = smov %s1450_s21 }
 0x238   :  { %15 = sbr.rel (!%p13_p5) target bundleno = 2 (0x2), region = 101 }

// kernel: gaflow_forward.21
= control target key start
LH: loop header
LB: loop body
LE: loop exit
PB: predicated region body
PF: predicated region fallthrough
CT: control target
= control target key end

     0   :  { %11 = vsyncpa [#allocation3], 0  ;;  %s1606_s0 = inlined_call_operand.vmem [shape: bf16[2,64,256], index: 0, kind: input, shape index: {}]   ;;  %s1607_s1 = inlined_call_operand.vmem [shape: bf16[2,256,64], index: 1, kind: input, shape index: {}]   ;;  %s1608_s2 = inlined_call_operand.vmem [shape: f32[2,64,1], index: 2, kind: input, shape index: {}]   ;;  %s1609_s3 = inlined_call_operand.vmem [shape: f32[2,64,1], index: 3, kind: input, shape index: {}]   ;;  %s1610_s4 = inlined_call_operand.vmem [shape: f32[2,1,64], index: 4, kind: input, shape index: {}]   ;;  %s1611_s5 = inlined_call_operand.vmem [shape: f32[2,1,64], index: 5, kind: input, shape index: {}]   ;;  %s1612_s6 = inlined_call_operand.hbm [shape: bf16[2,64,64], index: 6, kind: output, shape index: {}]  }
   0x1   :  { %13 = vsyncpa [#allocation3 + $0x1], 0  ;;  %s1394_s21 = smov 0   ;;  %s1396_s22 = smov 0  }
   0x2   :  { %s1398_s23 = smov 0   ;;  %s1400_s24 = smov 0  }
   0x3   :  { %s1402_s25 = smov 0   ;;  %s1404_s26 = smov 0  }
   0x4 LB: > { %s1034_s27 = sadd.s32 4294967295, %s1353_s26   ;;  %s1035_s28 = sadd.s32 4294967294, %s1353_s26   ;;  %s1353_s26 = sphi %s1404_s26, %s19_s26   ;;  %s1349_s25 = sphi %s1402_s25, %s1619_s25   ;;  %s1345_s24 = sphi %s1400_s24, %s1618_s24   ;;  %s1341_s23 = sphi %s1398_s23, %s1617_s23   ;;  %s1337_s22 = sphi %s1396_s22, %s1616_s22   ;;  %s1333_s21 = sphi %s1394_s21, %s1615_s21  }
   0x5   : > { %s31_s29 = sadd.s32 1, %s1349_s25  ;;  %s202_s30 = sadd.s32 1, %s1341_s23 }
   0x6   : > { %p33_p0 = scmp.ge.s32.totalorder %s31_s29, 2  ;;  %p212_p1 = scmp.ne.s32.totalorder %s1341_s23, %s1337_s22 }
   0x7   : > { %p213_p2 = scmp.eq.s32.totalorder %s1034_s27, 1  ;;  %p218_p3 = scmp.ne.s32.totalorder %s1337_s22, %s1333_s21 }
   0x8   : > { %s1621_s29 = smov (%p33_p0, %s31_s29), 0  ;;  %p219_p5 = scmp.eq.s32.totalorder %s1035_s28, 1 }
   0x9   : > { %p1434_p4 = por %p213_p2, %p212_p1  ;;  %s197_s8 = ssub.s32 %s1349_s25, %s1621_s29 }
   0xa   : > { %p1038_p6 = scmp.ge.s32.totalorder %s1353_s26, 1  ;;  %p200_p7 = scmp.eq.s32.totalorder %s197_s8, 0 }
   0xb   : > { %p1441_p8 = por %p219_p5, %p218_p3  ;;  %p297_p9 = scmp.lt.s32.totalorder %s1353_s26, 3 }
   0xc   : > { %s1447_s10 = scalar_select %p200_p7, %s1341_s23, %s202_s30  }
   0xd   : > { %p298_p10 = pnand %p1038_p6, %p297_p9 }
   0xe   : > { %p362_p11 = scmp.lt.s32.totalorder (!%p298_p10), %s1345_s24, 1  ;;  %s1098_s27 = sshll.u32 (!%p298_p10), %s1345_s24, 9 }
   0xf   : > { %301 = sbr.rel (%p298_p10) target bundleno = 311 (0x137), region = 44  ;;  %s1356_s14 = smov (!%p298_p10), [#allocation2]  }
  0x14   : > { %v1355_v0 = vmov 0   ;;  %s1451_s11 = scalar_select %p362_p11, %s1345_s24, 1  ;;  %vm861_vm0 = vcmask 519168  }
  0x15   : > { %1214 = vset.pattern.permute.xlu1 %v1355_v0  ;;  %1213 = vset.pattern.permute.xlu0 %v1355_v0 }
  0x16   : > { %s1087_s12 = sshll.u32 %s1451_s11, 7  ;;  %s1086_s16 = sshll.u32 %s1451_s11, 6 }
  0x17   : > { %s1457_s15 = scalar_lea.vmem %s1607_s1, %s1087_s12  ;;  %s1472_s19 = scalar_lea.vmem %s1606_s0, %s1086_s16 }
  0x18   : > { %v1215_v1 = vld [vmem:[%s1457_s15 + $0x78] sm:$0xff]   ;;  %v1217_v3 = vld [vmem:[%s1457_s15 + $0x70] sm:$0xff]   ;;  %v1219_v5 = vld [vmem:[%s1457_s15 + $0x68] sm:$0xff]   ;;  %s1481_s28 = scalar_lea.vmem %s1608_s2, %s1086_s16  ;;  %s1488_s12 = scalar_lea.vmem %s1609_s3, %s1086_s16 }
  0x19   : > { %v1216_v2 = vld [vmem:[%s1457_s15 + $0x38] sm:$0xff]   ;;  %1099 = vmatprep.subr.bf16.mxu0 %v1215_v1  ;;  %1139 = vmatprep.subr.bf16.mxu1 %v1215_v1  ;;  %v1218_v4 = vld [vmem:[%s1457_s15 + $0x30] sm:$0xff]   ;;  %v1220_v6 = vld [vmem:[%s1457_s15 + $0x28] sm:$0xff]   ;;  %s399_s18 = scalar_lea.vmem %s1610_s4, %s1451_s11 }
  0x1a   : > { %1100 = vmatpush3.bf16.msra.mxu0 %v1216_v2  ;;  %1147 = vmatpush3.bf16.msra.mxu1 %v1216_v2  ;;  %v1221_v7 = vld [vmem:[%s1457_s15 + $0x60] sm:$0xff]   ;;  %v1223_v9 = vld [vmem:[%s1457_s15 + $0x58] sm:$0xff]   ;;  %v1225_v11 = vld [vmem:[%s1457_s15 + $0x50] sm:$0xff]  }
  0x1b   : > { %1101 = vmatprep.subr.bf16.mxu0 %v1217_v3  ;;  %1140 = vmatprep.subr.bf16.mxu1 %v1217_v3  ;;  %v1222_v8 = vld [vmem:[%s1457_s15 + $0x20] sm:$0xff]   ;;  %v1224_v10 = vld [vmem:[%s1457_s15 + $0x18] sm:$0xff]   ;;  %v1226_v14 = vld [vmem:[%s1457_s15 + $0x10] sm:$0xff]  }
  0x1c   : > { %v1233_v12 = vld [vmem:[%s1472_s19 + $0x4] ss:$8 sps:$4 sm:$0xff]   ;;  %v664_v16 = vld [vmem:[%s1481_s28 + $0x10] sm:$0xff]  ;;  %v665_v20 = vld [vmem:[%s1481_s28 + $0x18] sm:$0xff] }
  0x1d   : > { %v1236_v13 = vld [vmem:[%s1472_s19 + $0x24] ss:$8 sps:$4 sm:$0xff]   ;;  %613 = vmatprep.mubr.bf16.mxu0 %v1233_v12  ;;  %682 = vperm.xlu1 %1214, %v664_v16   ;;  %v752_v24 = vld [vmem:[%s1488_s12 + $0x18] sm:$0xff]  ;;  %v751_v25 = vld [vmem:[%s1488_s12 + $0x10] sm:$0xff] }
  0x1e   : > { %1102 = vmatpush3.bf16.msra.mxu0 %v1218_v4  ;;  %1148 = vmatpush3.bf16.msra.mxu1 %v1218_v4  ;;  %v1227_v15 = vld [vmem:[%s1457_s15 + $0x48] sm:$0xff]   ;;  %v662_v17 = vld [vmem:[%s1481_s28] sm:$0xff]  ;;  %v1237_v33 = vld [vmem:[%s1472_s19 + $0x14] ss:$8 sps:$4 sm:$0xff]  }
  0x1f   : > { %1103 = vmatprep.subr.bf16.mxu0 %v1219_v5  ;;  %1141 = vmatprep.subr.bf16.mxu1 %v1219_v5  ;;  %v1228_v18 = vld [vmem:[%s1457_s15 + $0x8] sm:$0xff]   ;;  %v1229_v19 = vld [vmem:[%s1457_s15 + $0x40] sm:$0xff]   ;;  %v1239_v34 = vld [vmem:[%s1472_s19 + $0x34] ss:$8 sps:$4 sm:$0xff]  }
  0x20   : > { %629 = vmatprep.mubr.bf16.mxu1 %v1236_v13  ;;  %672 = vperm.xlu0 %1213, %v662_v17   ;;  %v663_v21 = vld [vmem:[%s1481_s28 + $0x8] sm:$0xff]  ;;  %v749_v23 = vld [vmem:[%s1488_s12] sm:$0xff]  ;;  %v756_v35 = vld [vmem:[%s1488_s12 + $0x38] sm:$0xff] }
  0x21   : > { %v750_v22 = vld [vmem:[%s1488_s12 + $0x8] sm:$0xff]  ;;  %687 = vperm.xlu1 %1214, %v665_v20   ;;  %v1230_v26 = vld [vmem:[%s1457_s15] sm:$0xff]   ;;  %v669_v36 = vld [vmem:[%s1481_s28 + $0x38] sm:$0xff]  ;;  %s402_s15 = scalar_lea.vmem %s1611_s5, %s1451_s11  ;;  %s358_s11 = sand.u32 1, %s1337_s22  }
  0x22   : > { %1104 = vmatpush3.bf16.msra.mxu0 %v1220_v6  ;;  %1149 = vmatpush3.bf16.msra.mxu1 %v1220_v6  ;;  %1243 = vrcp.f32 %v750_v22  ;;  %v667_v27 = vld [vmem:[%s1481_s28 + $0x28] sm:$0xff]  ;;  %v666_v28 = vld [vmem:[%s1481_s28 + $0x20] sm:$0xff]  ;;  %v668_v37 = vld [vmem:[%s1481_s28 + $0x30] sm:$0xff]  ;;  %s1561_s24 = scalar_lea.sflag [#allocation3], %s358_s11 }
  0x23   : > { %1105 = vmatprep.subr.bf16.mxu0 %v1221_v7  ;;  %1142 = vmatprep.subr.bf16.mxu1 %v1221_v7  ;;  %1245 = vrcp.f32 %v749_v23  ;;  %v754_v29 = vld [vmem:[%s1488_s12 + $0x28] sm:$0xff]  ;;  %v753_v30 = vld [vmem:[%s1488_s12 + $0x20] sm:$0xff]  ;;  %v755_v38 = vld [vmem:[%s1488_s12 + $0x30] sm:$0xff]  ;;  %s1551_s12 = scalar_lea.hbm %s1612_s6, %s1098_s27 }
  0x24   : > { %677 = vperm.xlu0 %1213, %v663_v21   ;;  %1247 = vrcp.f32 %v752_v24  ;;  %v1231_v31 = vld [vmem:[%s1472_s19] ss:$8 sps:$4 sm:$0xff]   ;;  %v1241_v40 = vld [vmem:[%s1472_s19 + $0x10] ss:$8 sps:$4 sm:$0xff]  }
  0x25   : > { %1249 = vrcp.f32 %v751_v25  ;;  %v1234_v32 = vld [vmem:[%s1472_s19 + $0x20] ss:$8 sps:$4 sm:$0xff]   ;;  %697 = vperm.xlu1 %1214, %v667_v27   ;;  %v1242_v41 = vld [vmem:[%s1472_s19 + $0x30] ss:$8 sps:$4 sm:$0xff]   ;;  %s1039_s19 = sshll.u32 %s358_s11, 5 }
  0x26   : > { %1106 = vmatpush3.bf16.msra.mxu0 %v1222_v8  ;;  %1150 = vmatpush3.bf16.msra.mxu1 %v1222_v8  ;;  %1251 = vrcp.f32 %v754_v29  ;;  %v765_v3 = vld [vmem:[%s402_s15] sm:$0x1]  ;;  %s1532_s20 = scalar_lea.vmem [#allocation2], %s1039_s19  ;;  %s1281_s15 = sshll.u32 %s1356_s14, 4  ;;  %s1282_s15 = int_to_ptr.vmem [resolvable:$false] %s1281_s15 }
  0x27   : > { %1107 = vmatprep.subr.bf16.mxu0 %v1223_v9  ;;  %1143 = vmatprep.subr.bf16.mxu1 %v1223_v9  ;;  %1253 = vrcp.f32 %v753_v30  ;;  %v1072_v7 = vld [vmem:[%s399_s18] ss:$0 sm:$0xff]  ;;  %v816_v30 = vlaneseq  ;;  %s886_s28 = sshll.u32 %s1532_s20, 4  ;;  %s1283_s16 = scalar_lea.vmem %s1282_s15, 1024  ;;  %s1553_s28 = int_to_ptr.vmem [resolvable:$true] %s886_s28 }
  0x28   : > { %692 = vperm.xlu0 %1213, %v666_v28   ;;  %1255 = vrcp.f32 %v756_v35  ;;  %s1277_s13 = scalar_lea.vmem %s1553_s28, 512  ;;  %p1284_p1 = scmp.lt.s32.totalorder %s1553_s28, %s1282_s15 }
  0x29   : > { %707 = vperm.xlu1 %1214, %v669_v36   ;;  %1257 = vrcp.f32 %v755_v38  ;;  %p1278_p12 = scmp.ne.s32.totalorder %s1553_s28, %s1277_s13  ;;  %p1285_p2 = scmp.lt.s32.totalorder %s1283_s16, %s1277_s13 }
  0x2a   : > { %1108 = vmatpush3.bf16.msra.mxu0 %v1224_v10  ;;  %1151 = vmatpush3.bf16.msra.mxu1 %v1224_v10  ;;  %1259 = vrcp.f32 %v765_v3 }
  0x2b   : > { %1109 = vmatprep.subr.bf16.mxu0 %v1225_v11  ;;  %1144 = vmatprep.subr.bf16.mxu1 %v1225_v11  ;;  %p1279_p13 = pnand %p1278_p12, %p1434_p4  ;;  %p1286_p3 = por %p1285_p2, %p1284_p1 }
  0x2c   : > { %702 = vperm.xlu0 %1213, %v668_v37  }
  0x2d   : > { %p1280_p0 = pneg %p1279_p13 }
  0x2e   : > { %1110 = vmatpush3.bf16.msra.mxu0 %v1226_v14  ;;  %1152 = vmatpush3.bf16.msra.mxu1 %v1226_v14 }
  0x2f   : > { %1111 = vmatprep.subr.bf16.mxu0 %v1227_v15  ;;  %1145 = vmatprep.subr.bf16.mxu1 %v1227_v15  ;;  %v1244_v39 = vpop.eup %1243  ;;  %p1287_p5 = pnand %p1286_p3, %p1280_p0 }
  0x30   : > { %v1246_v42 = vpop.eup %1245  ;;  %774 = vperm.xlu1 %1214, %v1244_v39  }
  0x31   : > { %v1248_v43 = vpop.eup %1247  ;;  %769 = vperm.xlu0 %1213, %v1246_v42  }
  0x32   : > { %1112 = vmatpush3.bf16.msra.mxu0 %v1228_v18  ;;  %1153 = vmatpush3.bf16.msra.mxu1 %v1228_v18  ;;  %v1250_v44 = vpop.eup %1249 }
  0x33   : > { %1113 = vmatprep.subr.bf16.mxu0 %v1229_v19  ;;  %1146 = vmatprep.subr.bf16.mxu1 %v1229_v19  ;;  %v1252_v45 = vpop.eup %1251 }
  0x34   : > { %784 = vperm.xlu1 %1214, %v1248_v43   ;;  %v1254_v46 = vpop.eup %1253 }
  0x35   : > { %779 = vperm.xlu0 %1213, %v1250_v44   ;;  %v1256_v47 = vpop.eup %1255 }
  0x36   : > { %1114 = vmatpush3.bf16.msra.mxu0 %v1230_v26  ;;  %1154 = vmatpush3.bf16.msra.mxu1 %v1230_v26  ;;  %v1258_v48 = vpop.eup %1257 }
  0x38   : > { %794 = vperm.xlu1 %1214, %v1252_v45  }
  0x39   : > { %614 = vmatmul.mubr.bf16.vlgmr.msra.gmra.mxu0 %v1231_v31  ;;  %630 = vmatmul.mubr.bf16.vlgmr.msra.gmra.mxu1 %v1234_v32 }
  0x3a   : > { %621 = vmatprep.mubr.bf16.mxu0 %v1237_v33  ;;  %637 = vmatprep.mubr.bf16.mxu1 %v1239_v34 }
  0x3b   : > { %789 = vperm.xlu0 %1213, %v1254_v46  }
  0x3c   : > { %804 = vperm.xlu1 %1214, %v1256_v47  }
  0x3f   : > { %799 = vperm.xlu0 %1213, %v1258_v48  }
  0x41   : > { %622 = vmatmul.mubr.bf16.gmra.mxu0 %v1241_v40  ;;  %638 = vmatmul.mubr.bf16.gmra.mxu1 %v1242_v41 }
  0x98   : > { %v1515_v50 = vpop.permute.xlu1 %682 }
  0x9b   : > { %v673_v49 = vpop.permute.xlu0 %672 }
  0x9c   : > { %v1517_v56 = vpop.permute.xlu1 %687 }
  0x9f   : > { %v678_v51 = vpop.permute.xlu0 %677 }
  0xa0   : > { %v698_v10 = vpop.permute.xlu1 %697 }
  0xa3   : > { %v693_v61 = vpop.permute.xlu0 %692 }
  0xa4   : > { %v708_v35 = vpop.permute.xlu1 %707 }
  0xa7   : > { %v703_v17 = vpop.permute.xlu0 %702 }
  0xac   : > { %v770_v42 = vpop.permute.xlu0 %769 }
  0xf9   : > { %v1115_v52 = vpop.f32.mrf.mxu0  ;;  %v1127_v53 = vpop.f32.mrf.mxu1 }
  0xfb   : > { %v1116_v54 = vpop.f32.mrf.mxu0  ;;  %v1128_v55 = vpop.f32.mrf.mxu1 }
  0xfc   : > { %v1117_v57 = vadd.f32 %v1116_v54, %v1115_v52  ;;  %v1129_v58 = vadd.f32 %v1128_v55, %v1127_v53  ;;  %v775_v55 = vpop.permute.xlu1 %774 }
  0xfd   : > { %v1118_v59 = vpop.f32.mrf.mxu0  ;;  %v1130_v60 = vpop.f32.mrf.mxu1 }
  0xfe   : > { %v646_v62 = vmul.f32 0.0625, %v1117_v57  ;;  %v650_v63 = vmul.f32 0.0625, %v1129_v58 }
  0xff   : > { %v1119_v0 = vpop.f32.mrf.mxu0  ;;  %v1131_v1 = vpop.f32.mrf.mxu1 }
 0x100   : > { %v654_v2 = vmul.f32 2.0, %v646_v62  ;;  %v658_v4 = vmul.f32 2.0, %v650_v63  ;;  %v1120_v5 = vadd.f32 %v1119_v0, %v1118_v59  ;;  %v1132_v6 = vadd.f32 %v1131_v1, %v1130_v60  ;;  %v780_v62 = vpop.permute.xlu0 %779  ;;  %v785_v3 = vpop.permute.xlu1 %784 }
 0x101   : > { %v1121_v8 = vpop.f32.mrf.mxu0  ;;  %v1133_v9 = vpop.f32.mrf.mxu1 }
 0x102   : > { %v710_v11 = vsub.f32 %v654_v2, %v673_v49  ;;  %v714_v12 = vsub.f32 %v658_v4, %v693_v61  ;;  %v647_v13 = vmul.f32 0.0625, %v1120_v5  ;;  %v651_v14 = vmul.f32 0.0625, %v1132_v6  ;;  %v1260_v61 = vpop.eup %1259 }
 0x103   : > { %v1122_v15 = vpop.f32.mrf.mxu0  ;;  %v1134_v16 = vpop.f32.mrf.mxu1  ;;  %v817_v49 = vshrl.u32 %v816_v30, 7 }
 0x104   : > { %v725_v18 = vsub.f32 %v710_v11, %v1072_v7  ;;  %v729_v19 = vsub.f32 %v714_v12, %v1072_v7  ;;  %v655_v20 = vmul.f32 2.0, %v647_v13  ;;  %v659_v21 = vmul.f32 2.0, %v651_v14  ;;  %v795_v14 = vpop.permute.xlu1 %794 }
 0x105   : > { %v1123_v22 = vadd.f32 %v1122_v15, %v1121_v8  ;;  %v1135_v23 = vadd.f32 %v1134_v16, %v1133_v9  ;;  %v1124_v24 = vpop.f32.mrf.mxu0  ;;  %v1136_v25 = vpop.f32.mrf.mxu1  ;;  %v818_v63 = vsub.s32 0, %v817_v49 }
 0x106   : > { %v733_v26 = vmul.f32 1.442695, %v725_v18  ;;  %v741_v27 = vmul.f32 1.442695, %v729_v19  ;;  %v711_v28 = vsub.f32 %v655_v20, %v678_v51  ;;  %v715_v29 = vsub.f32 %v659_v21, %v698_v10  ;;  %v790_v8 = vpop.permute.xlu0 %789 }
 0x107   : > { %v648_v31 = vmul.f32 0.0625, %v1123_v22  ;;  %v652_v32 = vmul.f32 0.0625, %v1135_v23  ;;  %v1125_v33 = vpop.f32.mrf.mxu0  ;;  %v1137_v34 = vpop.f32.mrf.mxu1  ;;  %v819_v4 = vrot.slane %v1260_v61, %v818_v63 }
 0x108   : > { %1261 = vpow2.f32 %v733_v26  ;;  %v726_v36 = vsub.f32 %v711_v28, %v1072_v7  ;;  %v730_v37 = vsub.f32 %v715_v29, %v1072_v7  ;;  %v1126_v38 = vadd.f32 %v1125_v33, %v1124_v24  ;;  %v805_v30 = vpop.permute.xlu1 %804 }
 0x109   : > { %1263 = vpow2.f32 %v741_v27  ;;  %v656_v39 = vmul.f32 2.0, %v648_v31  ;;  %v660_v40 = vmul.f32 2.0, %v652_v32  ;;  %v1138_v41 = vadd.f32 %v1137_v34, %v1136_v25 }
 0x10a   : > { %v735_v43 = vmul.f32 1.442695, %v726_v36  ;;  %v743_v44 = vmul.f32 1.442695, %v730_v37  ;;  %v649_v45 = vmul.f32 0.0625, %v1126_v38  ;;  %v800_v24 = vpop.permute.xlu0 %799 }
 0x10b   : > { %v712_v46 = vsub.f32 %v656_v39, %v1515_v50  ;;  %v716_v47 = vsub.f32 %v660_v40, %v703_v17  ;;  %v653_v48 = vmul.f32 0.0625, %v1138_v41 }
 0x10c   : > { %1265 = vpow2.f32 %v735_v43  ;;  %v657_v51 = vmul.f32 2.0, %v649_v45 }
 0x10d   : > { %1267 = vpow2.f32 %v743_v44  ;;  %v727_v52 = vsub.f32 %v712_v46, %v1072_v7  ;;  %v731_v53 = vsub.f32 %v716_v47, %v1072_v7  ;;  %v661_v54 = vmul.f32 2.0, %v653_v48 }
 0x10e   : > { %v713_v57 = vsub.f32 %v657_v51, %v1517_v56 }
 0x10f   : > { %v737_v58 = vmul.f32 1.442695, %v727_v52  ;;  %v745_v59 = vmul.f32 1.442695, %v731_v53  ;;  %v717_v60 = vsub.f32 %v661_v54, %v708_v35 }
 0x110   : > { %v728_v50 = vsub.f32 %v713_v57, %v1072_v7 }
 0x111   : > { %1269 = vpow2.f32 %v737_v58  ;;  %v732_v0 = vsub.f32 %v717_v60, %v1072_v7 }
 0x112   : > { %1271 = vpow2.f32 %v745_v59  ;;  %v739_v1 = vmul.f32 1.442695, %v728_v50 }
 0x113   : > { %v747_v2 = vmul.f32 1.442695, %v732_v0 }
 0x114   : > { %1273 = vpow2.f32 %v739_v1 }
 0x115   : > { %v1262_v5 = vpop.eup %1261  ;;  %1275 = vpow2.f32 %v747_v2 }
 0x116   : > { %v1264_v56 = vpop.eup %1263  ;;  %v807_v6 = vmul.f32 %v1262_v5, %v770_v42 }
 0x117   : > { %v811_v9 = vmul.f32 %v1264_v56, %v790_v8 }
 0x118   : > { %v821_v10 = vmul.f32 %v819_v4, %v807_v6 }
 0x119   : > { %v1266_v11 = vpop.eup %1265  ;;  %v825_v12 = vmul.f32 %v819_v4, %v811_v9 }
 0x11a   : > { %v1268_v7 = vpop.eup %1267  ;;  %v1090_v13 = vpack.c.bf16 %v821_v10, %v821_v10  ;;  %v808_v15 = vmul.f32 %v1266_v11, %v775_v55 }
 0x11b   : > { %v1094_v16 = vpack.c.bf16 %v825_v12, %v825_v12  ;;  %v812_v17 = vmul.f32 %v1268_v7, %v795_v14 }
 0x11c   : > { %862 = vst.msk [vmem:[%s1532_s20] sm:$0xf] %vm861_vm0, %v1090_v13  ;;  %v822_v18 = vmul.f32 %v819_v4, %v808_v15 }
 0x11d   : > { %866 = vst.msk [vmem:[%s1532_s20 + $0x10] sm:$0xf] %vm861_vm0, %v1094_v16  ;;  %v826_v19 = vmul.f32 %v819_v4, %v812_v17 }
 0x11e   : > { %v1270_v20 = vpop.eup %1269  ;;  %v1091_v21 = vpack.c.bf16 %v822_v18, %v822_v18 }
 0x11f   : > { %v1272_v22 = vpop.eup %1271  ;;  %v1095_v23 = vpack.c.bf16 %v826_v19, %v826_v19  ;;  %v809_v25 = vmul.f32 %v1270_v20, %v780_v62 }
 0x120   : > { %863 = vst.msk [vmem:[%s1532_s20 + $0x4] sm:$0xf] %vm861_vm0, %v1091_v21  ;;  %v813_v26 = vmul.f32 %v1272_v22, %v800_v24 }
 0x121   : > { %v1274_v27 = vpop.eup %1273  ;;  %867 = vst.msk [vmem:[%s1532_s20 + $0x14] sm:$0xf] %vm861_vm0, %v1095_v23  ;;  %v823_v28 = vmul.f32 %v819_v4, %v809_v25 }
 0x122   : > { %v1276_v29 = vpop.eup %1275  ;;  %v827_v31 = vmul.f32 %v819_v4, %v813_v26  ;;  %v810_v32 = vmul.f32 %v1274_v27, %v785_v3 }
 0x123   : > { %v1092_v33 = vpack.c.bf16 %v823_v28, %v823_v28  ;;  %v814_v34 = vmul.f32 %v1276_v29, %v805_v30 }
 0x124   : > { %v1096_v35 = vpack.c.bf16 %v827_v31, %v827_v31  ;;  %v824_v36 = vmul.f32 %v819_v4, %v810_v32 }
 0x125   : > { %864 = vst.msk [vmem:[%s1532_s20 + $0x8] sm:$0xf] %vm861_vm0, %v1092_v33  ;;  %v828_v37 = vmul.f32 %v819_v4, %v814_v34 }
 0x126   : > { %868 = vst.msk [vmem:[%s1532_s20 + $0x18] sm:$0xf] %vm861_vm0, %v1096_v35  ;;  %v1093_v38 = vpack.c.bf16 %v824_v36, %v824_v36 }
 0x127   : > { %v1097_v39 = vpack.c.bf16 %v828_v37, %v828_v37 }
 0x128   : > { %865 = vst.msk [vmem:[%s1532_s20 + $0xc] sm:$0xf] %vm861_vm0, %v1093_v38 }
 0x129   : > { %869 = vst.msk [vmem:[%s1532_s20 + $0x1c] sm:$0xf] %vm861_vm0, %v1097_v39 }
 0x12a   : > { %1290 = shalt.err (!%p1287_p5)
}
 0x12b   : > { %s1291_s17 = scalar_lea.hbm %s1551_s12, 512  ;;  %s1295_s19 = scalar_lea.hbm %s1612_s6, 1024 }
 0x12c   : > { %p1292_p6 = scmp.ne.s32.totalorder %s1551_s12, %s1291_s17  ;;  %p1296_p10 = scmp.lt.s32.totalorder %s1551_s12, %s1612_s6 }
 0x12d   : > { %p1297_p11 = scmp.lt.s32.totalorder %s1295_s19, %s1291_s17 }
 0x12e   : > { %p1293_p7 = pnand %p1292_p6, %p1434_p4 }
 0x12f   : > { %p1298_p12 = por %p1297_p11, %p1296_p10 }
 0x130   : > { %p1294_p9 = pneg %p1293_p7 }
 0x132   : > { %p1299_p13 = pnand %p1298_p12, %p1294_p9 }
 0x134   : > { %1302 = shalt.err (!%p1299_p13)
}
 0x135   : > { %s1357_s30 = smov 64   ;;  %s1358_s8 = smov 4  }
 0x136   : > { %1155 = dma.vmem_to_hbm [thread:$0]  (%p1434_p4), %s1553_s28, 512, %s1551_s12, %s1561_s24, %s1357_s30, %s1357_s30, %s1358_s8  }
 0x137 PF: > { %p1161_p0 = scmp.ge.s32.totalorder %s1353_s26, 2  ;;  %s901_s13 = sand.u32 1, %s1333_s21  }
 0x138   : > { %s902_s14 = scalar_lea.sflag [#allocation3], %s901_s13 }
 0x139   : > { %p1158_p1 = pnand %p1161_p0, %p1441_p8 }
 0x13b   : > { %p1159_p2 = pneg %p1158_p1 }
 0x13d   : > { %1328 = dma.done.wait (%p1159_p2), %s902_s14, 512  }
 0x13e   : > { %1330 = vsyncadd (%p1159_p2), %s902_s14, 4294966784  ;;  %s19_s26 = sadd.s32 1, %s1353_s26   ;;  %s1615_s21 = smov %s1337_s22 }
 0x13f   : > { %p16_p3 = scmp.ge.s32.totalorder %s19_s26, 4   ;;  %s1616_s22 = smov %s1341_s23 }
 0x140   : > { %s1617_s23 = smov %s1447_s10  ;;  %s1618_s24 = smov %s1349_s25 }
 0x141   : > { %s1619_s25 = smov %s1621_s29  ;;  %18 = sbr.rel (!%p16_p3) target bundleno = 4 (0x4), region = 94 }
 0x146   :  { %907 = vsyncpa [#allocation3], 1 }
 0x147   :  { %909 = vsyncpa [#allocation3 + $0x1], 1 }

// kernel: gaflow_forward.27
= control target key start
LH: loop header
LB: loop body
LE: loop exit
PB: predicated region body
PF: predicated region fallthrough
CT: control target
= control target key end

     0   :  { %v7474_v1 = vmov 0   ;;  %s12254_s2 = inlined_call_operand.vmem [shape: bf16[1152,256], index: 2, kind: input, shape index: {}]   ;;  %s12255_s1 = inlined_call_operand.vmem [shape: f32[128,18], index: 1, kind: input, shape index: {}]   ;;  %s12256_s0 = inlined_call_operand.vmem [shape: bf16[128,1152], index: 0, kind: input, shape index: {}]   ;;  %s12257_s4 = inlined_call_operand.vmem [shape: bf16[256,1152], index: 4, kind: input, shape index: {}]   ;;  %s12258_s3 = inlined_call_operand.vmem [shape: f32[1,256], index: 3, kind: input, shape index: {}]   ;;  %s12259_s5 = inlined_call_operand.vmem [shape: f32[1,1152], index: 5, kind: input, shape index: {}]   ;;  %s12260_s6 = inlined_call_operand.vmem [shape: f32[128,256], index: 6, kind: output, shape index: {}]  }
   0x1   :  { %v6578_v0 = vld [vmem:[%s12254_s2 + $0x74] ss:$8 sps:$4 sm:$0xff]   ;;  %6543 = vset.pattern.permute.xlu1 %v7474_v1  ;;  %6542 = vset.pattern.permute.xlu0 %v7474_v1  ;;  %v6580_v2 = vld [vmem:[%s12254_s2 + $0x70] ss:$8 sps:$4 sm:$0xff]   ;;  %v6584_v5 = vld [vmem:[%s12254_s2 + $0x64] ss:$8 sps:$4 sm:$0xff]  }
   0x2   :  { %1348 = vmatprep.subr.bf16.mxu0 %v6578_v0  ;;  %v6581_v3 = vld [vmem:[%s12254_s2 + $0x174] ss:$8 sps:$4 sm:$0xff]   ;;  %v6583_v4 = vld [vmem:[%s12254_s2 + $0x170] ss:$8 sps:$4 sm:$0xff]   ;;  %v6586_v6 = vld [vmem:[%s12254_s2 + $0x60] ss:$8 sps:$4 sm:$0xff]  }
   0x3   :  { %1349 = vmatpush1.bf16.msra.mxu0 %v6580_v2  ;;  %1461 = vmatprep.subr.bf16.mxu1 %v6581_v3  ;;  %v6587_v7 = vld [vmem:[%s12254_s2 + $0x164] ss:$8 sps:$4 sm:$0xff]   ;;  %v6589_v8 = vld [vmem:[%s12254_s2 + $0x160] ss:$8 sps:$4 sm:$0xff]   ;;  %v6590_v9 = vld [vmem:[%s12254_s2 + $0x54] ss:$8 sps:$4 sm:$0xff]  }
   0x4   :  { %1462 = vmatpush1.bf16.msra.mxu1 %v6583_v4  ;;  %1350 = vmatprep.subr.bf16.mxu0 %v6584_v5  ;;  %v6592_v10 = vld [vmem:[%s12254_s2 + $0x50] ss:$8 sps:$4 sm:$0xff]   ;;  %v6593_v11 = vld [vmem:[%s12254_s2 + $0x154] ss:$8 sps:$4 sm:$0xff]   ;;  %v6596_v12 = vld [vmem:[%s12254_s2 + $0x44] ss:$8 sps:$4 sm:$0xff]  }
   0x5   :  { %1463 = vmatprep.subr.bf16.mxu1 %v6587_v7  ;;  %v6595_v13 = vld [vmem:[%s12254_s2 + $0x150] ss:$8 sps:$4 sm:$0xff]   ;;  %v6599_v14 = vld [vmem:[%s12254_s2 + $0x144] ss:$8 sps:$4 sm:$0xff]   ;;  %v6598_v15 = vld [vmem:[%s12254_s2 + $0x40] ss:$8 sps:$4 sm:$0xff]  }
   0x6   :  { %v6602_v16 = vld [vmem:[%s12254_s2 + $0x34] ss:$8 sps:$4 sm:$0xff]   ;;  %v6601_v17 = vld [vmem:[%s12254_s2 + $0x140] ss:$8 sps:$4 sm:$0xff]   ;;  %v6604_v19 = vld [vmem:[%s12254_s2 + $0x30] ss:$8 sps:$4 sm:$0xff]  }
   0x7   :  { %1351 = vmatpush1.bf16.msra.mxu0 %v6586_v6  ;;  %v6605_v18 = vld [vmem:[%s12254_s2 + $0x134] ss:$8 sps:$4 sm:$0xff]   ;;  %v6608_v20 = vld [vmem:[%s12254_s2 + $0x24] ss:$8 sps:$4 sm:$0xff]   ;;  %v6607_v21 = vld [vmem:[%s12254_s2 + $0x130] ss:$8 sps:$4 sm:$0xff]  }
   0x8   :  { %1352 = vmatprep.subr.bf16.mxu0 %v6590_v9  ;;  %1464 = vmatpush1.bf16.msra.mxu1 %v6589_v8  ;;  %v6611_v22 = vld [vmem:[%s12254_s2 + $0x124] ss:$8 sps:$4 sm:$0xff]   ;;  %v6610_v23 = vld [vmem:[%s12254_s2 + $0x20] ss:$8 sps:$4 sm:$0xff]   ;;  %v6614_v24 = vld [vmem:[%s12254_s2 + $0x14] ss:$8 sps:$4 sm:$0xff]  }
   0x9   :  { %1465 = vmatprep.subr.bf16.mxu1 %v6593_v11  ;;  %v6613_v25 = vld [vmem:[%s12254_s2 + $0x120] ss:$8 sps:$4 sm:$0xff]   ;;  %v6617_v26 = vld [vmem:[%s12254_s2 + $0x114] ss:$8 sps:$4 sm:$0xff]   ;;  %v6616_v27 = vld [vmem:[%s12254_s2 + $0x10] ss:$8 sps:$4 sm:$0xff]  }
   0xa   :  { %v7613_v28 = vld [vmem:[%s12255_s1 + $0x10] sm:$0xff]  ;;  %v6620_v29 = vld [vmem:[%s12254_s2 + $0x4] ss:$8 sps:$4 sm:$0xff]   ;;  %v7628_v32 = vld [vmem:[%s12255_s1 + $0x18] sm:$0xff]  ;;  %v7475_v9 = vmov 2  }
   0xb   :  { %1353 = vmatpush1.bf16.msra.mxu0 %v6592_v10  ;;  %4331 = vperm.xlu1 %6543, %v7613_v28   ;;  %v6619_v30 = vld [vmem:[%s12254_s2 + $0x110] ss:$8 sps:$4 sm:$0xff]   ;;  %v6623_v31 = vld [vmem:[%s12254_s2 + $0x104] ss:$8 sps:$4 sm:$0xff]   ;;  %v6622_v33 = vld [vmem:[%s12254_s2] ss:$8 sps:$4 sm:$0xff]  }
   0xc   :  { %1354 = vmatprep.subr.bf16.mxu0 %v6596_v12  ;;  %1466 = vmatpush1.bf16.msra.mxu1 %v6595_v13  ;;  %v6626_v34 = vld [vmem:[%s12254_s2 + $0xf4] ss:$8 sps:$4 sm:$0xff]   ;;  %v6625_v35 = vld [vmem:[%s12254_s2 + $0x100] ss:$8 sps:$4 sm:$0xff]   ;;  %v6628_v38 = vld [vmem:[%s12254_s2 + $0xf0] ss:$8 sps:$4 sm:$0xff]  }
   0xd   :  { %1467 = vmatprep.subr.bf16.mxu1 %v6599_v14  ;;  %v7643_v36 = vld [vmem:[%s12255_s1 + $0x28] sm:$0xff]  ;;  %v6629_v37 = vld [vmem:[%s12254_s2 + $0x1f4] ss:$8 sps:$4 sm:$0xff]   ;;  %v6631_v39 = vld [vmem:[%s12254_s2 + $0x1f0] ss:$8 sps:$4 sm:$0xff]  }
   0xe   :  { %v6632_v40 = vld [vmem:[%s12254_s2 + $0xe4] ss:$8 sps:$4 sm:$0xff]   ;;  %v7661_v41 = vld [vmem:[%s12255_s1 + $0x38] sm:$0xff]  ;;  %v6634_v43 = vld [vmem:[%s12254_s2 + $0xe0] ss:$8 sps:$4 sm:$0xff]  }
   0xf   :  { %1355 = vmatpush1.bf16.msra.mxu0 %v6598_v15  ;;  %4336 = vperm.xlu1 %6543, %v7628_v32   ;;  %v6635_v42 = vld [vmem:[%s12254_s2 + $0x1e4] ss:$8 sps:$4 sm:$0xff]   ;;  %v6638_v44 = vld [vmem:[%s12254_s2 + $0xd4] ss:$8 sps:$4 sm:$0xff]   ;;  %v6637_v45 = vld [vmem:[%s12254_s2 + $0x1e0] ss:$8 sps:$4 sm:$0xff]  }
  0x10   :  { %1356 = vmatprep.subr.bf16.mxu0 %v6602_v16  ;;  %1468 = vmatpush1.bf16.msra.mxu1 %v6601_v17  ;;  %v7679_v46 = vld [vmem:[%s12255_s1 + $0x48] sm:$0xff]  ;;  %v6641_v47 = vld [vmem:[%s12254_s2 + $0x1d4] ss:$8 sps:$4 sm:$0xff]   ;;  %v6640_v48 = vld [vmem:[%s12254_s2 + $0xd0] ss:$8 sps:$4 sm:$0xff]  }
  0x11   :  { %1469 = vmatprep.subr.bf16.mxu1 %v6605_v18  ;;  %v6644_v49 = vld [vmem:[%s12254_s2 + $0xc4] ss:$8 sps:$4 sm:$0xff]   ;;  %v6643_v50 = vld [vmem:[%s12254_s2 + $0x1d0] ss:$8 sps:$4 sm:$0xff]   ;;  %v6646_v53 = vld [vmem:[%s12254_s2 + $0xc0] ss:$8 sps:$4 sm:$0xff]  }
  0x12   :  { %v7697_v51 = vld [vmem:[%s12255_s1 + $0x58] sm:$0xff]  ;;  %v6647_v52 = vld [vmem:[%s12254_s2 + $0x1c4] ss:$8 sps:$4 sm:$0xff]   ;;  %v6649_v54 = vld [vmem:[%s12254_s2 + $0x1c0] ss:$8 sps:$4 sm:$0xff]  }
  0x13   :  { %1357 = vmatpush1.bf16.msra.mxu0 %v6604_v19  ;;  %4346 = vperm.xlu1 %6543, %v7643_v36   ;;  %v6650_v55 = vld [vmem:[%s12254_s2 + $0xb4] ss:$8 sps:$4 sm:$0xff]   ;;  %v6652_v56 = vld [vmem:[%s12254_s2 + $0xb0] ss:$8 sps:$4 sm:$0xff]   ;;  %v7718_v57 = vld [vmem:[%s12255_s1 + $0x68] sm:$0xff] }
  0x14   :  { %1358 = vmatprep.subr.bf16.mxu0 %v6608_v20  ;;  %1470 = vmatpush1.bf16.msra.mxu1 %v6607_v21  ;;  %v6653_v58 = vld [vmem:[%s12254_s2 + $0x1b4] ss:$8 sps:$4 sm:$0xff]   ;;  %v6675_v59 = vld [vmem:[%s12256_s0 + $0x4] ss:$36 sps:$4 sm:$0xff]   ;;  %v6655_v60 = vld [vmem:[%s12254_s2 + $0x1b0] ss:$8 sps:$4 sm:$0xff]  }
  0x15   :  { %1471 = vmatprep.subr.bf16.mxu1 %v6611_v22  ;;  %v6656_v61 = vld [vmem:[%s12254_s2 + $0xa4] ss:$8 sps:$4 sm:$0xff]   ;;  %v7736_v62 = vld [vmem:[%s12255_s1 + $0x78] sm:$0xff]  ;;  %1380 = vmatprep.mubr.bf16.mxu0 %v6675_v59  ;;  %v6658_v2 = vld [vmem:[%s12254_s2 + $0xa0] ss:$8 sps:$4 sm:$0xff]  }
  0x16   :  { %v6682_v63 = vld [vmem:[%s12256_s0 + $0xc] ss:$36 sps:$4 sm:$0xff]   ;;  %v6662_v3 = vld [vmem:[%s12254_s2 + $0x94] ss:$8 sps:$4 sm:$0xff]   ;;  %v6661_v4 = vld [vmem:[%s12254_s2 + $0x1a0] ss:$8 sps:$4 sm:$0xff]  }
  0x17   :  { %1359 = vmatpush1.bf16.msra.mxu0 %v6610_v23  ;;  %4356 = vperm.xlu1 %6543, %v7661_v41   ;;  %v6659_v0 = vld [vmem:[%s12254_s2 + $0x1a4] ss:$8 sps:$4 sm:$0xff]   ;;  %v6665_v5 = vld [vmem:[%s12254_s2 + $0x194] ss:$8 sps:$4 sm:$0xff]   ;;  %v6664_v7 = vld [vmem:[%s12254_s2 + $0x90] ss:$8 sps:$4 sm:$0xff]  }
  0x18   :  { %1360 = vmatprep.subr.bf16.mxu0 %v6614_v24  ;;  %1472 = vmatpush1.bf16.msra.mxu1 %v6613_v25  ;;  %v7760_v6 = vld [vmem:[%s12255_s1 + $0x8] sm:$0xff]  ;;  %v6667_v10 = vld [vmem:[%s12254_s2 + $0x190] ss:$8 sps:$4 sm:$0xff]   ;;  %v6673_v13 = vld [vmem:[%s12256_s0] ss:$36 sps:$4 sm:$0xff]  }
  0x19   :  { %1473 = vmatprep.subr.bf16.mxu1 %v6617_v26  ;;  %1493 = vmatprep.mubr.bf16.mxu1 %v6682_v63  ;;  %v6668_v8 = vld [vmem:[%s12254_s2 + $0x84] ss:$8 sps:$4 sm:$0xff]   ;;  %v6670_v12 = vld [vmem:[%s12254_s2 + $0x80] ss:$8 sps:$4 sm:$0xff]   ;;  %v6679_v15 = vld [vmem:[%s12254_s2 + $0x274] ss:$8 sps:$4 sm:$0xff]  }
  0x1a   :  { %v6671_v11 = vld [vmem:[%s12254_s2 + $0x184] ss:$8 sps:$4 sm:$0xff]   ;;  %v6676_v14 = vld [vmem:[%s12254_s2 + $0x180] ss:$8 sps:$4 sm:$0xff]   ;;  %v6677_v16 = vld [vmem:[%s12254_s2 + $0x270] ss:$8 sps:$4 sm:$0xff]  }
  0x1b   :  { %1361 = vmatpush1.bf16.msra.mxu0 %v6616_v27  ;;  %4366 = vperm.xlu1 %6543, %v7679_v46   ;;  %v6685_v17 = vld [vmem:[%s12254_s2 + $0x374] ss:$8 sps:$4 sm:$0xff]   ;;  %v7798_v18 = vld [vmem:[%s12255_s1 + $0x20] sm:$0xff]  ;;  %v6680_v19 = vld [vmem:[%s12256_s0 + $0x8] ss:$36 sps:$4 sm:$0xff]  }
  0x1c   :  { %1362 = vmatprep.subr.bf16.mxu0 %v6620_v29  ;;  %1474 = vmatpush1.bf16.msra.mxu1 %v6619_v30  ;;  %v6692_v20 = vld [vmem:[%s12256_s0 + $0x4c] ss:$36 sps:$4 sm:$0xff]   ;;  %v6698_v23 = vld [vmem:[%s12256_s0 + $0x54] ss:$36 sps:$4 sm:$0xff]   ;;  %v6686_v25 = vld [vmem:[%s12254_s2 + $0x260] ss:$8 sps:$4 sm:$0xff]  }
  0x1d   :  { %1475 = vmatprep.subr.bf16.mxu1 %v6623_v31  ;;  %v6683_v21 = vld [vmem:[%s12254_s2 + $0x370] ss:$8 sps:$4 sm:$0xff]   ;;  %v6688_v22 = vld [vmem:[%s12254_s2 + $0x264] ss:$8 sps:$4 sm:$0xff]   ;;  %v6689_v26 = vld [vmem:[%s12254_s2 + $0x360] ss:$8 sps:$4 sm:$0xff]  }
  0x1e   :  { %v6691_v24 = vld [vmem:[%s12254_s2 + $0x364] ss:$8 sps:$4 sm:$0xff]   ;;  %v7828_v27 = vld [vmem:[%s12255_s1 + $0x30] sm:$0xff] }
  0x1f   :  { %1363 = vmatpush1.bf16.msra.mxu0 %v6622_v33  ;;  %4376 = vperm.xlu1 %6543, %v7697_v51   ;;  %v6697_v29 = vld [vmem:[%s12254_s2 + $0x254] ss:$8 sps:$4 sm:$0xff]   ;;  %v6694_v30 = vld [vmem:[%s12256_s0 + $0x48] ss:$36 sps:$4 sm:$0xff]   ;;  %v6695_v31 = vld [vmem:[%s12254_s2 + $0x250] ss:$8 sps:$4 sm:$0xff]  }
  0x20   :  { %1364 = vmatprep.subr.bf16.mxu0 %v6626_v34  ;;  %1476 = vmatpush1.bf16.msra.mxu1 %v6625_v35  ;;  %v6700_v33 = vld [vmem:[%s12256_s0 + $0x50] ss:$36 sps:$4 sm:$0xff]   ;;  %v6727_v59 = vld [vmem:[%s12254_s2 + $0x324] ss:$8 sps:$4 sm:$0xff]  }
  0x21   :  { %1477 = vmatprep.subr.bf16.mxu1 %v6629_v37  ;;  %v6703_v34 = vld [vmem:[%s12254_s2 + $0x354] ss:$8 sps:$4 sm:$0xff]   ;;  %v6706_v37 = vld [vmem:[%s12254_s2 + $0x244] ss:$8 sps:$4 sm:$0xff]  }
  0x22   :  { %v6710_v35 = vld [vmem:[%s12256_s0 + $0x94] ss:$36 sps:$4 sm:$0xff]  }
  0x23   :  { %1365 = vmatpush2.bf16.msra.mxu0 %v6628_v38  ;;  %4386 = vperm.xlu1 %6543, %v7718_v57   ;;  %v6701_v38 = vld [vmem:[%s12254_s2 + $0x350] ss:$8 sps:$4 sm:$0xff]   ;;  %v6733_v63 = vld [vmem:[%s12254_s2 + $0x214] ss:$8 sps:$4 sm:$0xff]  }
  0x24   :  { %1366 = vmatprep.subr.bf16.mxu0 %v6632_v40  ;;  %1478 = vmatpush2.bf16.msra.mxu1 %v6631_v39  ;;  %v6716_v39 = vld [vmem:[%s12256_s0 + $0x9c] ss:$36 sps:$4 sm:$0xff]  }
  0x25   :  { %1479 = vmatprep.subr.bf16.mxu1 %v6635_v42  ;;  %v6704_v40 = vld [vmem:[%s12254_s2 + $0x240] ss:$8 sps:$4 sm:$0xff]   ;;  %v6709_v42 = vld [vmem:[%s12254_s2 + $0x344] ss:$8 sps:$4 sm:$0xff]  }
  0x27   :  { %1367 = vmatpush2.bf16.msra.mxu0 %v6634_v43  ;;  %4396 = vperm.xlu1 %6543, %v7736_v62   ;;  %v6707_v43 = vld [vmem:[%s12254_s2 + $0x340] ss:$8 sps:$4 sm:$0xff]  }
  0x28   :  { %1368 = vmatprep.subr.bf16.mxu0 %v6638_v44  ;;  %1480 = vmatpush2.bf16.msra.mxu1 %v6637_v45  ;;  %v7870_v44 = vld [vmem:[%s12255_s1 + $0x40] sm:$0xff]  ;;  %v6712_v45 = vld [vmem:[%s12256_s0 + $0x90] ss:$36 sps:$4 sm:$0xff]  }
  0x29   :  { %1481 = vmatprep.subr.bf16.mxu1 %v6641_v47  ;;  %v6715_v47 = vld [vmem:[%s12254_s2 + $0x234] ss:$8 sps:$4 sm:$0xff]  }
  0x2b   :  { %1369 = vmatpush2.bf16.msra.mxu0 %v6640_v48  ;;  %6545 = vset.pattern.permute.xlu1 %v7475_v9  ;;  %v6713_v48 = vld [vmem:[%s12254_s2 + $0x230] ss:$8 sps:$4 sm:$0xff]  }
  0x2c   :  { %1370 = vmatprep.subr.bf16.mxu0 %v6644_v49  ;;  %1482 = vmatpush2.bf16.msra.mxu1 %v6643_v50  ;;  %v6721_v49 = vld [vmem:[%s12254_s2 + $0x334] ss:$8 sps:$4 sm:$0xff]   ;;  %v7888_v50 = vld [vmem:[%s12255_s1] sm:$0xff] }
  0x2d   :  { %1483 = vmatprep.subr.bf16.mxu1 %v6647_v52  ;;  %4420 = vperm.xlu1 %6545, %v7760_v6   ;;  %v6718_v52 = vld [vmem:[%s12256_s0 + $0x98] ss:$36 sps:$4 sm:$0xff]  }
  0x2e   :  { %4321 = vperm.xlu0 %6542, %v7888_v50  }
  0x2f   :  { %1371 = vmatpush2.bf16.msra.mxu0 %v6646_v53  ;;  %v6719_v53 = vld [vmem:[%s12254_s2 + $0x330] ss:$8 sps:$4 sm:$0xff]  }
  0x30   :  { %1372 = vmatprep.subr.bf16.mxu0 %v6650_v55  ;;  %1484 = vmatpush2.bf16.msra.mxu1 %v6649_v54  ;;  %v6724_v54 = vld [vmem:[%s12254_s2 + $0x224] ss:$8 sps:$4 sm:$0xff]   ;;  %v7903_v55 = vld [vmem:[%s12255_s1 + $0x50] sm:$0xff] }
  0x31   :  { %1485 = vmatprep.subr.bf16.mxu1 %v6653_v58  ;;  %4424 = vperm.xlu1 %6545, %v7613_v28   ;;  %v6728_v58 = vld [vmem:[%s12256_s0 + $0xdc] ss:$36 sps:$4 sm:$0xff]  }
  0x32   :  { %4326 = vperm.xlu0 %6542, %v7760_v6  }
  0x33   :  { %1373 = vmatpush2.bf16.msra.mxu0 %v6652_v56  ;;  %v6722_v56 = vld [vmem:[%s12254_s2 + $0x220] ss:$8 sps:$4 sm:$0xff]  }
  0x34   :  { %1374 = vmatprep.subr.bf16.mxu0 %v6656_v61  ;;  %1486 = vmatpush2.bf16.msra.mxu1 %v6655_v60  ;;  %v6734_v60 = vld [vmem:[%s12256_s0 + $0xe4] ss:$36 sps:$4 sm:$0xff]  }
  0x35   :  { %1487 = vmatprep.subr.bf16.mxu1 %v6659_v0  ;;  %4432 = vperm.xlu1 %6545, %v7798_v18   ;;  %v6725_v61 = vld [vmem:[%s12254_s2 + $0x320] ss:$8 sps:$4 sm:$0xff]   ;;  %v6730_v0 = vld [vmem:[%s12256_s0 + $0xd8] ss:$36 sps:$4 sm:$0xff]  }
  0x36   :  { %4341 = vperm.xlu0 %6542, %v7798_v18  }
  0x37   :  { %1375 = vmatpush2.bf16.msra.mxu0 %v6658_v2  ;;  %v7930_v2 = vld [vmem:[%s12255_s1 + $0x60] sm:$0xff] }
  0x38   :  { %1376 = vmatprep.subr.bf16.mxu0 %v6662_v3  ;;  %1488 = vmatpush2.bf16.msra.mxu1 %v6661_v4  ;;  %v6731_v3 = vld [vmem:[%s12254_s2 + $0x210] ss:$8 sps:$4 sm:$0xff]   ;;  %v6736_v4 = vld [vmem:[%s12256_s0 + $0xe0] ss:$36 sps:$4 sm:$0xff]  }
  0x39   :  { %1489 = vmatprep.subr.bf16.mxu1 %v6665_v5  ;;  %4440 = vperm.xlu1 %6545, %v7828_v27   ;;  %v6739_v5 = vld [vmem:[%s12254_s2 + $0x314] ss:$8 sps:$4 sm:$0xff]  }
  0x3a   :  { %4351 = vperm.xlu0 %6542, %v7828_v27  }
  0x3b   :  { %1377 = vmatpush2.bf16.msra.mxu0 %v6664_v7  ;;  %v6737_v7 = vld [vmem:[%s12254_s2 + $0x310] ss:$8 sps:$4 sm:$0xff]  }
  0x3c   :  { %1378 = vmatprep.subr.bf16.mxu0 %v6668_v8  ;;  %1490 = vmatpush2.bf16.msra.mxu1 %v6667_v10  ;;  %v6742_v8 = vld [vmem:[%s12254_s2 + $0x204] ss:$8 sps:$4 sm:$0xff]   ;;  %v7951_v10 = vld [vmem:[%s12255_s1 + $0x70] sm:$0xff] }
  0x3d   :  { %1491 = vmatprep.subr.bf16.mxu1 %v6671_v11  ;;  %4448 = vperm.xlu1 %6545, %v7870_v44   ;;  %v6746_v11 = vld [vmem:[%s12256_s0 + $0x124] ss:$36 sps:$4 sm:$0xff]  }
  0x3e   :  { %4361 = vperm.xlu0 %6542, %v7870_v44  }
  0x3f   :  { %1379 = vmatpush2.bf16.msra.mxu0 %v6670_v12  ;;  %v6745_v12 = vld [vmem:[%s12254_s2 + $0x304] ss:$8 sps:$4 sm:$0xff]  }
  0x40   :  { %1574 = vmatprep.subr.bf16.mxu0 %v6679_v15  ;;  %1492 = vmatpush2.bf16.msra.mxu1 %v6676_v14  ;;  %v6740_v14 = vld [vmem:[%s12254_s2 + $0x200] ss:$8 sps:$4 sm:$0xff]  }
  0x41   :  { %1687 = vmatprep.subr.bf16.mxu1 %v6685_v17  ;;  %4456 = vperm.xlu1 %6545, %v7903_v55   ;;  %v6743_v15 = vld [vmem:[%s12254_s2 + $0x300] ss:$8 sps:$4 sm:$0xff]  }
  0x42   :  { %1381 = vmatmul.mubr.bf16.vlgmr.msra.gmra.mxu0 %v6673_v13  ;;  %v6752_v13 = vld [vmem:[%s12256_s0 + $0x12c] ss:$36 sps:$4 sm:$0xff]   ;;  %v6748_v17 = vld [vmem:[%s12256_s0 + $0x120] ss:$36 sps:$4 sm:$0xff]   ;;  %4371 = vperm.xlu0 %6542, %v7903_v55  }
  0x43   :  { %1575 = vmatpush1.bf16.msra.mxu0 %v6677_v16  ;;  %1390 = vmatprep.mubr.bf16.mxu0 %v6692_v20  ;;  %v6751_v16 = vld [vmem:[%s12254_s2 + $0x2f4] ss:$8 sps:$4 sm:$0xff]  }
  0x44   :  { %1494 = vmatmul.mubr.bf16.vlgmr.msra.gmra.mxu1 %v6680_v19  ;;  %1576 = vmatprep.subr.bf16.mxu0 %v6688_v22  ;;  %v6749_v19 = vld [vmem:[%s12254_s2 + $0x2f0] ss:$8 sps:$4 sm:$0xff]   ;;  %v6757_v20 = vld [vmem:[%s12254_s2 + $0x3f4] ss:$8 sps:$4 sm:$0xff]   ;;  %v7476_v22 = vmov 4  }
  0x45   :  { %1688 = vmatpush1.bf16.msra.mxu1 %v6683_v21  ;;  %1503 = vmatprep.mubr.bf16.mxu1 %v6698_v23  ;;  %v6754_v21 = vld [vmem:[%s12256_s0 + $0x128] ss:$36 sps:$4 sm:$0xff]  }
  0x46   :  { %1689 = vmatprep.subr.bf16.mxu1 %v6691_v24  ;;  %4464 = vperm.xlu1 %6545, %v7930_v2   ;;  %v6764_v23 = vld [vmem:[%s12256_s0 + $0x16c] ss:$36 sps:$4 sm:$0xff]  }
  0x47   :  { %1577 = vmatpush1.bf16.msra.mxu0 %v6686_v25  ;;  %v6760_v24 = vld [vmem:[%s12254_s2 + $0x2e4] ss:$8 sps:$4 sm:$0xff]   ;;  %v6755_v25 = vld [vmem:[%s12254_s2 + $0x3f0] ss:$8 sps:$4 sm:$0xff]   ;;  %4381 = vperm.xlu0 %6542, %v7930_v2  }
  0x48   :  { %1578 = vmatprep.subr.bf16.mxu0 %v6697_v29  ;;  %v6770_v29 = vld [vmem:[%s12256_s0 + $0x174] ss:$36 sps:$4 sm:$0xff]  }
  0x49   :  { %1690 = vmatpush1.bf16.msra.mxu1 %v6689_v26  ;;  %v6763_v26 = vld [vmem:[%s12254_s2 + $0x3e4] ss:$8 sps:$4 sm:$0xff]  }
  0x4a   :  { %1391 = vmatmul.mubr.bf16.gmra.mxu0 %v6694_v30  ;;  %1691 = vmatprep.subr.bf16.mxu1 %v6703_v34  ;;  %v6758_v30 = vld [vmem:[%s12254_s2 + $0x2e0] ss:$8 sps:$4 sm:$0xff]  }
  0x4b   :  { %1579 = vmatpush1.bf16.msra.mxu0 %v6695_v31  ;;  %1400 = vmatprep.mubr.bf16.mxu0 %v6710_v35  ;;  %v6761_v31 = vld [vmem:[%s12254_s2 + $0x3e0] ss:$8 sps:$4 sm:$0xff]   ;;  %v6767_v35 = vld [vmem:[%s12254_s2 + $0x2d0] ss:$8 sps:$4 sm:$0xff]  }
  0x4c   :  { %1504 = vmatmul.mubr.bf16.gmra.mxu1 %v6700_v33  ;;  %1580 = vmatprep.subr.bf16.mxu0 %v6706_v37  ;;  %v6769_v33 = vld [vmem:[%s12254_s2 + $0x2d4] ss:$8 sps:$4 sm:$0xff]   ;;  %v6766_v34 = vld [vmem:[%s12256_s0 + $0x168] ss:$36 sps:$4 sm:$0xff]  }
  0x4d   :  { %1692 = vmatpush1.bf16.msra.mxu1 %v6701_v38  ;;  %1513 = vmatprep.mubr.bf16.mxu1 %v6716_v39  ;;  %v6775_v37 = vld [vmem:[%s12254_s2 + $0x3d4] ss:$8 sps:$4 sm:$0xff]   ;;  %v6773_v38 = vld [vmem:[%s12254_s2 + $0x3d0] ss:$8 sps:$4 sm:$0xff]   ;;  %v6778_v39 = vld [vmem:[%s12254_s2 + $0x2c4] ss:$8 sps:$4 sm:$0xff]  }
  0x4e   :  { %1693 = vmatprep.subr.bf16.mxu1 %v6709_v42  ;;  %4472 = vperm.xlu1 %6545, %v7951_v10   ;;  %v6781_v42 = vld [vmem:[%s12254_s2 + $0x3c4] ss:$8 sps:$4 sm:$0xff]  }
  0x4f   :  { %1581 = vmatpush1.bf16.msra.mxu0 %v6704_v40  ;;  %v6782_v40 = vld [vmem:[%s12256_s0 + $0x1b4] ss:$36 sps:$4 sm:$0xff]   ;;  %4391 = vperm.xlu0 %6542, %v7951_v10  }
  0x50   :  { %1582 = vmatprep.subr.bf16.mxu0 %v6715_v47  ;;  %v6787_v47 = vld [vmem:[%s12254_s2 + $0x2b4] ss:$8 sps:$4 sm:$0xff]  }
  0x51   :  { %1694 = vmatpush1.bf16.msra.mxu1 %v6707_v43  ;;  %v6776_v43 = vld [vmem:[%s12254_s2 + $0x2c0] ss:$8 sps:$4 sm:$0xff]  }
  0x52   :  { %1401 = vmatmul.mubr.bf16.gmra.mxu0 %v6712_v45  ;;  %1695 = vmatprep.subr.bf16.mxu1 %v6721_v49  ;;  %v6788_v45 = vld [vmem:[%s12256_s0 + $0x1bc] ss:$36 sps:$4 sm:$0xff]   ;;  %v6784_v49 = vld [vmem:[%s12256_s0 + $0x1b0] ss:$36 sps:$4 sm:$0xff]  }
  0x53   :  { %1583 = vmatpush1.bf16.msra.mxu0 %v6713_v48  ;;  %1410 = vmatprep.mubr.bf16.mxu0 %v6728_v58  ;;  %v6779_v48 = vld [vmem:[%s12254_s2 + $0x3c0] ss:$8 sps:$4 sm:$0xff]   ;;  %v6791_v58 = vld [vmem:[%s12254_s2 + $0x3b0] ss:$8 sps:$4 sm:$0xff]  }
  0x54   :  { %1514 = vmatmul.mubr.bf16.gmra.mxu1 %v6718_v52  ;;  %1584 = vmatprep.subr.bf16.mxu0 %v6724_v54  ;;  %v6793_v52 = vld [vmem:[%s12254_s2 + $0x3b4] ss:$8 sps:$4 sm:$0xff]  }
  0x55   :  { %1696 = vmatpush1.bf16.msra.mxu1 %v6719_v53  ;;  %1523 = vmatprep.mubr.bf16.mxu1 %v6734_v60  ;;  %v6785_v53 = vld [vmem:[%s12254_s2 + $0x2b0] ss:$8 sps:$4 sm:$0xff]   ;;  %v6800_v60 = vld [vmem:[%s12256_s0 + $0x1fc] ss:$36 sps:$4 sm:$0xff]  }
  0x56   :  { %1697 = vmatprep.subr.bf16.mxu1 %v6727_v59  ;;  %6546 = vset.pattern.permute.xlu1 %v7476_v22  ;;  %v6790_v54 = vld [vmem:[%s12256_s0 + $0x1b8] ss:$36 sps:$4 sm:$0xff]   ;;  %v6799_v59 = vld [vmem:[%s12254_s2 + $0x3a4] ss:$8 sps:$4 sm:$0xff]  }
  0x57   :  { %1585 = vmatpush1.bf16.msra.mxu0 %v6722_v56  ;;  %4512 = vperm.xlu1 %6546, %v7888_v50   ;;  %v6796_v56 = vld [vmem:[%s12254_s2 + $0x2a4] ss:$8 sps:$4 sm:$0xff]  }
  0x58   :  { %1586 = vmatprep.subr.bf16.mxu0 %v6733_v63  ;;  %v6805_v63 = vld [vmem:[%s12254_s2 + $0x294] ss:$8 sps:$4 sm:$0xff]   ;;  %6544 = vset.pattern.permute.xlu0 %v7475_v9 }
  0x59   :  { %1698 = vmatpush1.bf16.msra.mxu1 %v6725_v61  ;;  %v6794_v61 = vld [vmem:[%s12254_s2 + $0x2a0] ss:$8 sps:$4 sm:$0xff]   ;;  %4416 = vperm.xlu0 %6544, %v7888_v50   ;;  %v6824_v9 = vld [vmem:[%s12256_s0 + $0x18] ss:$36 sps:$4 sm:$0xff]  }
  0x5a   :  { %1411 = vmatmul.mubr.bf16.gmra.mxu0 %v6730_v0  ;;  %1699 = vmatprep.subr.bf16.mxu1 %v6739_v5  ;;  %v6806_v0 = vld [vmem:[%s12256_s0 + $0x204] ss:$36 sps:$4 sm:$0xff]   ;;  %v6811_v5 = vld [vmem:[%s12254_s2 + $0x394] ss:$8 sps:$4 sm:$0xff]  }
  0x5b   :  { %1587 = vmatpush1.bf16.msra.mxu0 %v6731_v3  ;;  %1420 = vmatprep.mubr.bf16.mxu0 %v6746_v11  ;;  %v6797_v3 = vld [vmem:[%s12254_s2 + $0x3a0] ss:$8 sps:$4 sm:$0xff]   ;;  %v6814_v11 = vld [vmem:[%s12254_s2 + $0x284] ss:$8 sps:$4 sm:$0xff]  }
  0x5c   :  { %1524 = vmatmul.mubr.bf16.gmra.mxu1 %v6736_v4  ;;  %1588 = vmatprep.subr.bf16.mxu0 %v6742_v8  ;;  %v6802_v4 = vld [vmem:[%s12256_s0 + $0x1f8] ss:$36 sps:$4 sm:$0xff]   ;;  %v6808_v8 = vld [vmem:[%s12256_s0 + $0x200] ss:$36 sps:$4 sm:$0xff]  }
  0x5d   :  { %1700 = vmatpush1.bf16.msra.mxu1 %v6737_v7  ;;  %1533 = vmatprep.mubr.bf16.mxu1 %v6752_v13  ;;  %v6803_v7 = vld [vmem:[%s12254_s2 + $0x290] ss:$8 sps:$4 sm:$0xff]   ;;  %v6812_v13 = vld [vmem:[%s12254_s2 + $0x280] ss:$8 sps:$4 sm:$0xff]  }
  0x5e   :  { %1701 = vmatprep.subr.bf16.mxu1 %v6745_v12  ;;  %4520 = vperm.xlu1 %6546, %v7613_v28   ;;  %v6772_v28 = vld [vmem:[%s12256_s0 + $0x170] ss:$36 sps:$4 sm:$0xff]  }
  0x5f   :  { %1589 = vmatpush1.bf16.msra.mxu0 %v6740_v14  ;;  %v6809_v12 = vld [vmem:[%s12254_s2 + $0x390] ss:$8 sps:$4 sm:$0xff]   ;;  %v6817_v14 = vld [vmem:[%s12254_s2 + $0x384] ss:$8 sps:$4 sm:$0xff]   ;;  %4428 = vperm.xlu0 %6544, %v7628_v32  }
  0x60   :  { %1590 = vmatprep.subr.bf16.mxu0 %v6751_v16  ;;  %v6820_v16 = vld [vmem:[%s12256_s0 + $0x14] ss:$36 sps:$4 sm:$0xff]  }
  0x61   :  { %1702 = vmatpush1.bf16.msra.mxu1 %v6743_v15  ;;  %v6815_v15 = vld [vmem:[%s12254_s2 + $0x380] ss:$8 sps:$4 sm:$0xff]  }
  0x62   :  { %1421 = vmatmul.mubr.bf16.gmra.mxu0 %v6748_v17  ;;  %1703 = vmatprep.subr.bf16.mxu1 %v6757_v20  ;;  %v6823_v17 = vld [vmem:[%s12254_s2 + $0x474] ss:$8 sps:$4 sm:$0xff]  }
  0x63   :  { %1591 = vmatpush2.bf16.msra.mxu0 %v6749_v19  ;;  %1430 = vmatprep.mubr.bf16.mxu0 %v6764_v23  ;;  %v6826_v19 = vld [vmem:[%s12256_s0 + $0x1c] ss:$36 sps:$4 sm:$0xff]   ;;  %v6818_v20 = vld [vmem:[%s12256_s0 + $0x10] ss:$36 sps:$4 sm:$0xff]  }
  0x64   :  { %1534 = vmatmul.mubr.bf16.gmra.mxu1 %v6754_v21  ;;  %1592 = vmatprep.subr.bf16.mxu0 %v6760_v24  ;;  %v6821_v21 = vld [vmem:[%s12254_s2 + $0x470] ss:$8 sps:$4 sm:$0xff]   ;;  %v6827_v23 = vld [vmem:[%s12256_s0 + $0x5c] ss:$36 sps:$4 sm:$0xff]   ;;  %v6832_v24 = vld [vmem:[%s12254_s2 + $0x464] ss:$8 sps:$4 sm:$0xff]  }
  0x65   :  { %1704 = vmatpush2.bf16.msra.mxu1 %v6755_v25  ;;  %1543 = vmatprep.mubr.bf16.mxu1 %v6770_v29  ;;  %v6833_v25 = vld [vmem:[%s12256_s0 + $0x64] ss:$36 sps:$4 sm:$0xff]   ;;  %v6841_v29 = vld [vmem:[%s12254_s2 + $0x454] ss:$8 sps:$4 sm:$0xff]  }
  0x66   :  { %1705 = vmatprep.subr.bf16.mxu1 %v6763_v26  ;;  %4524 = vperm.xlu1 %6546, %v7628_v32   ;;  %v6830_v26 = vld [vmem:[%s12254_s2 + $0x460] ss:$8 sps:$4 sm:$0xff]   ;;  %v6829_v32 = vld [vmem:[%s12256_s0 + $0x58] ss:$36 sps:$4 sm:$0xff]  }
  0x67   :  { %1593 = vmatpush2.bf16.msra.mxu0 %v6758_v30  ;;  %4436 = vperm.xlu0 %6544, %v7643_v36   ;;  %v6835_v30 = vld [vmem:[%s12256_s0 + $0x60] ss:$36 sps:$4 sm:$0xff]  }
  0x68   :  { %1594 = vmatprep.subr.bf16.mxu0 %v6769_v33  ;;  %v6839_v33 = vld [vmem:[%s12254_s2 + $0x450] ss:$8 sps:$4 sm:$0xff]  }
  0x69   :  { %1706 = vmatpush2.bf16.msra.mxu1 %v6761_v31  ;;  %v6836_v31 = vld [vmem:[%s12256_s0 + $0xa4] ss:$36 sps:$4 sm:$0xff]  }
  0x6a   :  { %1431 = vmatmul.mubr.bf16.gmra.mxu0 %v6766_v34  ;;  %1707 = vmatprep.subr.bf16.mxu1 %v6775_v37  ;;  %v7477_v34 = vmov 6   ;;  %v6848_v37 = vld [vmem:[%s12254_s2 + $0x440] ss:$8 sps:$4 sm:$0xff]  }
  0x6b   :  { %1595 = vmatpush2.bf16.msra.mxu0 %v6767_v35  ;;  %1440 = vmatprep.mubr.bf16.mxu0 %v6782_v40  ;;  %v6842_v35 = vld [vmem:[%s12256_s0 + $0xac] ss:$36 sps:$4 sm:$0xff]  }
  0x6c   :  { %1544 = vmatmul.mubr.bf16.gmra.mxu1 %v6772_v28  ;;  %1596 = vmatprep.subr.bf16.mxu0 %v6778_v39  ;;  %v6859_v28 = vld [vmem:[%s12254_s2 + $0x434] ss:$8 sps:$4 sm:$0xff]   ;;  %v6844_v39 = vld [vmem:[%s12256_s0 + $0xa8] ss:$36 sps:$4 sm:$0xff]  }
  0x6d   :  { %1708 = vmatpush2.bf16.msra.mxu1 %v6773_v38  ;;  %4532 = vperm.xlu1 %6546, %v7643_v36   ;;  %v6850_v36 = vld [vmem:[%s12254_s2 + $0x444] ss:$8 sps:$4 sm:$0xff]   ;;  %v8191_v38 = vld [vmem:[%s12255_s1 + $0x10] sm:$0xff] }
  0x6e   :  { %1709 = vmatprep.subr.bf16.mxu1 %v6781_v42  ;;  %1553 = vmatprep.mubr.bf16.mxu1 %v6788_v45  ;;  %v6845_v40 = vld [vmem:[%s12256_s0 + $0xec] ss:$36 sps:$4 sm:$0xff]   ;;  %v6866_v45 = vld [vmem:[%s12254_s2 + $0x420] ss:$8 sps:$4 sm:$0xff]  }
  0x6f   :  { %1597 = vmatpush2.bf16.msra.mxu0 %v6776_v43  ;;  %4444 = vperm.xlu0 %6544, %v7661_v41   ;;  %v6857_v42 = vld [vmem:[%s12254_s2 + $0x430] ss:$8 sps:$4 sm:$0xff]  }
  0x70   :  { %1598 = vmatprep.subr.bf16.mxu0 %v6787_v47  ;;  %v6851_v43 = vld [vmem:[%s12256_s0 + $0xf4] ss:$36 sps:$4 sm:$0xff]  }
  0x71   :  { %1710 = vmatpush2.bf16.msra.mxu1 %v6779_v48  ;;  %4540 = vperm.xlu1 %6546, %v7661_v41   ;;  %v6838_v41 = vld [vmem:[%s12256_s0 + $0xa0] ss:$36 sps:$4 sm:$0xff]   ;;  %v6877_v48 = vld [vmem:[%s12254_s2 + $0x414] ss:$8 sps:$4 sm:$0xff]  }
  0x72   :  { %1441 = vmatmul.mubr.bf16.gmra.mxu0 %v6784_v49  ;;  %1711 = vmatprep.subr.bf16.mxu1 %v6793_v52  ;;  %v6854_v49 = vld [vmem:[%s12256_s0 + $0x134] ss:$36 sps:$4 sm:$0xff]  }
  0x73   :  { %1599 = vmatpush2.bf16.msra.mxu0 %v6785_v53  ;;  %1450 = vmatprep.mubr.bf16.mxu0 %v6800_v60  ;;  %v6875_v52 = vld [vmem:[%s12254_s2 + $0x410] ss:$8 sps:$4 sm:$0xff]  }
  0x74   :  { %1554 = vmatmul.mubr.bf16.gmra.mxu1 %v6790_v54  ;;  %1600 = vmatprep.subr.bf16.mxu0 %v6796_v56  ;;  %v6853_v54 = vld [vmem:[%s12256_s0 + $0xf0] ss:$36 sps:$4 sm:$0xff]   ;;  %v6860_v56 = vld [vmem:[%s12256_s0 + $0x13c] ss:$36 sps:$4 sm:$0xff]  }
  0x75   :  { %1712 = vmatpush2.bf16.msra.mxu1 %v6791_v58  ;;  %4548 = vperm.xlu1 %6546, %v7679_v46   ;;  %v6856_v60 = vld [vmem:[%s12256_s0 + $0x130] ss:$36 sps:$4 sm:$0xff]  }
  0x76   :  { %1713 = vmatprep.subr.bf16.mxu1 %v6799_v59  ;;  %1563 = vmatprep.mubr.bf16.mxu1 %v6806_v0  ;;  %v6884_v59 = vld [vmem:[%s12254_s2 + $0x400] ss:$8 sps:$4 sm:$0xff]   ;;  %v6865_v0 = vld [vmem:[%s12256_s0 + $0x178] ss:$36 sps:$4 sm:$0xff]  }
  0x77   :  { %1601 = vmatpush2.bf16.msra.mxu0 %v6794_v61  ;;  %4452 = vperm.xlu0 %6544, %v7679_v46   ;;  %v6868_v46 = vld [vmem:[%s12254_s2 + $0x424] ss:$8 sps:$4 sm:$0xff]  }
  0x78   :  { %1602 = vmatprep.subr.bf16.mxu0 %v6805_v63  ;;  %v6862_v63 = vld [vmem:[%s12256_s0 + $0x138] ss:$36 sps:$4 sm:$0xff]  }
  0x79   :  { %1714 = vmatpush2.bf16.msra.mxu1 %v6797_v3  ;;  %4556 = vperm.xlu1 %6546, %v7697_v51   ;;  %v6872_v3 = vld [vmem:[%s12256_s0 + $0x1c4] ss:$36 sps:$4 sm:$0xff]  }
  0x7a   :  { %1451 = vmatmul.mubr.bf16.gmra.mxu0 %v6802_v4  ;;  %1715 = vmatprep.subr.bf16.mxu1 %v6811_v5  ;;  %v7478_v5 = vmov 8  }
  0x7b   :  { %1603 = vmatpush2.bf16.msra.mxu0 %v6803_v7  ;;  %1606 = vmatprep.mubr.bf16.mxu0 %v6820_v16  ;;  %v6878_v7 = vld [vmem:[%s12256_s0 + $0x1cc] ss:$36 sps:$4 sm:$0xff]  }
  0x7c   :  { %1564 = vmatmul.mubr.bf16.gmra.mxu1 %v6808_v8  ;;  %1604 = vmatprep.subr.bf16.mxu0 %v6814_v11  ;;  %v6874_v8 = vld [vmem:[%s12256_s0 + $0x1c0] ss:$36 sps:$4 sm:$0xff]   ;;  %v6881_v11 = vld [vmem:[%s12256_s0 + $0x20c] ss:$36 sps:$4 sm:$0xff]  }
  0x7d   :  { %1716 = vmatpush2.bf16.msra.mxu1 %v6809_v12  ;;  %4564 = vperm.xlu1 %6546, %v7718_v57   ;;  %v6883_v16 = vld [vmem:[%s12256_s0 + $0x208] ss:$36 sps:$4 sm:$0xff]  }
  0x7e   :  { %1717 = vmatprep.subr.bf16.mxu1 %v6817_v14  ;;  %1719 = vmatprep.mubr.bf16.mxu1 %v6826_v19  ;;  %v8313_v14 = vld [vmem:[%s12255_s1 + $0x18] sm:$0xff] }
  0x7f   :  { %1605 = vmatpush2.bf16.msra.mxu0 %v6812_v13  ;;  %4460 = vperm.xlu0 %6544, %v7697_v51   ;;  %v6847_v51 = vld [vmem:[%s12256_s0 + $0xe8] ss:$36 sps:$4 sm:$0xff]   ;;  %v6887_v13 = vld [vmem:[%s12256_s0 + $0x214] ss:$36 sps:$4 sm:$0xff]  }
  0x80   :  { %1800 = vmatprep.subr.bf16.mxu0 %v6823_v17  ;;  %v8337_v19 = vld [vmem:[%s12255_s1 + $0x38] sm:$0xff] }
  0x81   :  { %1718 = vmatpush2.bf16.msra.mxu1 %v6815_v15  ;;  %4572 = vperm.xlu1 %6546, %v7736_v62   ;;  %v8322_v15 = vld [vmem:[%s12255_s1 + $0x28] sm:$0xff] }
  0x82   :  { %1607 = vmatmul.mubr.bf16.vlgmr.msra.gmra.mxu0 %v6818_v20  ;;  %v8348_v20 = vld [vmem:[%s12255_s1 + $0x48] sm:$0xff] }
  0x83   :  { %1801 = vmatpush1.bf16.msra.mxu0 %v6821_v21  ;;  %1616 = vmatprep.mubr.bf16.mxu0 %v6827_v23  ;;  %v6890_v21 = vld [vmem:[%s12256_s0 + $0x20] ss:$36 sps:$4 sm:$0xff]   ;;  %v8368_v23 = vld [vmem:[%s12255_s1 + $0x68] sm:$0xff] }
  0x84   :  { %1720 = vmatmul.mubr.bf16.vlgmr.msra.gmra.mxu1 %v6824_v9  ;;  %1802 = vmatprep.subr.bf16.mxu0 %v6832_v24  ;;  %v6891_v24 = vld [vmem:[%s12256_s0 + $0x68] ss:$36 sps:$4 sm:$0xff]  }
  0x85   :  { %1729 = vmatprep.mubr.bf16.mxu1 %v6833_v25  ;;  %6549 = vset.pattern.permute.xlu1 %v7477_v34 }
  0x86   :  { %4612 = vperm.xlu1 %6549, %v7760_v6   ;;  %v8218_v47 = vpop.permute.xlu1 %4331  ;;  %4468 = vperm.xlu0 %6544, %v7718_v57   ;;  %v6886_v57 = vld [vmem:[%s12254_s2 + $0x404] ss:$8 sps:$4 sm:$0xff]  }
  0x87   :  { %1803 = vmatpush1.bf16.msra.mxu0 %v6830_v26  ;;  %12439 = vst [vmem:[#allocation2_spill] sm:$0xff] %v8218_v47  ;;  %v8380_v26 = vld [vmem:[%s12255_s1 + $0x78] sm:$0xff] }
  0x88   :  { %1804 = vmatprep.subr.bf16.mxu0 %v6841_v29  ;;  %v6892_v29 = vld [vmem:[%s12256_s0 + $0xb0] ss:$36 sps:$4 sm:$0xff]  }
  0x8a   :  { %1617 = vmatmul.mubr.bf16.gmra.mxu0 %v6829_v32  ;;  %4616 = vperm.xlu1 %6549, %v8191_v38   ;;  %v8234_v53 = vpop.permute.xlu1 %4336  ;;  %v7479_v32 = vmov 10  }
  0x8b   :  { %1626 = vmatprep.mubr.bf16.mxu0 %v6836_v31  ;;  %1805 = vmatpush1.bf16.msra.mxu0 %v6839_v33  ;;  %12440 = vst [vmem:[#allocation3_spill] sm:$0xff] %v8234_v53  ;;  %v6900_v31 = vld [vmem:[%s12257_s4 + $0x1fc] ss:$36 sps:$4 sm:$0xff]   ;;  %v8397_v33 = vld [vmem:[%s12255_s1 + $0x8] sm:$0xff] }
  0x8c   :  { %1730 = vmatmul.mubr.bf16.gmra.mxu1 %v6835_v30  ;;  %1806 = vmatprep.subr.bf16.mxu0 %v6850_v36 }
  0x8d   :  { %1739 = vmatprep.mubr.bf16.mxu1 %v6842_v35  ;;  %4476 = vperm.xlu0 %6544, %v7736_v62   ;;  %v6863_v62 = vld [vmem:[%s12256_s0 + $0x17c] ss:$36 sps:$4 sm:$0xff]  }
  0x8e   :  { %4624 = vperm.xlu1 %6549, %v7798_v18   ;;  %v8247_v58 = vpop.permute.xlu1 %4346  ;;  %2906 = vmatprep.subr.bf16.mxu1 %v6900_v31  ;;  %v6901_v35 = vld [vmem:[%s12257_s4 + $0x200] ss:$36 sps:$4 sm:$0xff]  }
  0x8f   :  { %1807 = vmatpush1.bf16.msra.mxu0 %v6848_v37  ;;  %12441 = vst [vmem:[#allocation4_spill] sm:$0xff] %v8247_v58  ;;  %v6903_v37 = vld [vmem:[%s12257_s4 + $0x204] ss:$36 sps:$4 sm:$0xff]  }
  0x90   :  { %1808 = vmatprep.subr.bf16.mxu0 %v6859_v28 }
  0x91   :  { %6547 = vset.pattern.permute.xlu0 %v7476_v22  ;;  %v6869_v22 = vld [vmem:[%s12256_s0 + $0x184] ss:$36 sps:$4 sm:$0xff]  }
  0x92   :  { %1627 = vmatmul.mubr.bf16.gmra.mxu0 %v6838_v41  ;;  %4632 = vperm.xlu1 %6549, %v7828_v27   ;;  %v8261_v61 = vpop.permute.xlu1 %4356  ;;  %v6906_v41 = vld [vmem:[%s12257_s4 + $0x1b4] ss:$36 sps:$4 sm:$0xff]  }
  0x93   :  { %1636 = vmatprep.mubr.bf16.mxu0 %v6845_v40  ;;  %1809 = vmatpush1.bf16.msra.mxu0 %v6857_v42  ;;  %12442 = vst [vmem:[#allocation5_spill] sm:$0xff] %v8261_v61  ;;  %v6904_v40 = vld [vmem:[%s12257_s4 + $0x1b0] ss:$36 sps:$4 sm:$0xff]   ;;  %v6907_v42 = vld [vmem:[%s12257_s4 + $0x1b8] ss:$36 sps:$4 sm:$0xff]  }
  0x94   :  { %1740 = vmatmul.mubr.bf16.gmra.mxu1 %v6844_v39  ;;  %1810 = vmatprep.subr.bf16.mxu0 %v6868_v46  ;;  %v6909_v39 = vld [vmem:[%s12257_s4 + $0x1bc] ss:$36 sps:$4 sm:$0xff]  }
  0x95   :  { %1749 = vmatprep.mubr.bf16.mxu1 %v6851_v43  ;;  %4516 = vperm.xlu0 %6547, %v7760_v6   ;;  %v6893_v46 = vld [vmem:[%s12256_s0 + $0xf8] ss:$36 sps:$4 sm:$0xff]  }
  0x96   :  { %4640 = vperm.xlu1 %6549, %v7870_v44   ;;  %v8271_v6 = vpop.permute.xlu1 %4366 }
  0x97   :  { %1811 = vmatpush1.bf16.msra.mxu0 %v6866_v45  ;;  %12443 = vst [vmem:[#allocation6_spill] sm:$0xff] %v8271_v6 }
  0x98   :  { %1812 = vmatprep.subr.bf16.mxu0 %v6877_v48  ;;  %v6912_v48 = vld [vmem:[%s12257_s4 + $0x16c] ss:$36 sps:$4 sm:$0xff]  }
  0x99   :  { %4528 = vperm.xlu0 %6547, %v7798_v18   ;;  %v6871_v18 = vld [vmem:[%s12256_s0 + $0x180] ss:$36 sps:$4 sm:$0xff]  }
  0x9a   :  { %1637 = vmatmul.mubr.bf16.gmra.mxu0 %v6847_v51  ;;  %4648 = vperm.xlu1 %6549, %v7903_v55   ;;  %v8281_v4 = vpop.permute.xlu1 %4376  ;;  %v6915_v51 = vld [vmem:[%s12257_s4 + $0x174] ss:$36 sps:$4 sm:$0xff]  }
  0x9b   :  { %1646 = vmatprep.mubr.bf16.mxu0 %v6854_v49  ;;  %1813 = vmatpush1.bf16.msra.mxu0 %v6875_v52  ;;  %12444 = vst [vmem:[#allocation7_spill] sm:$0xff] %v8281_v4  ;;  %v8445_v49 = vld [vmem:[%s12255_s1 + $0x20] sm:$0xff]  ;;  %v6910_v52 = vld [vmem:[%s12257_s4 + $0x168] ss:$36 sps:$4 sm:$0xff]  }
  0x9c   :  { %1750 = vmatmul.mubr.bf16.gmra.mxu1 %v6853_v54  ;;  %1814 = vmatprep.subr.bf16.mxu0 %v6886_v57  ;;  %v6913_v54 = vld [vmem:[%s12257_s4 + $0x170] ss:$36 sps:$4 sm:$0xff]   ;;  %v6918_v57 = vld [vmem:[%s12257_s4 + $0x124] ss:$36 sps:$4 sm:$0xff]  }
  0x9d   :  { %1759 = vmatprep.mubr.bf16.mxu1 %v6860_v56  ;;  %4536 = vperm.xlu0 %6547, %v7828_v27   ;;  %v6921_v56 = vld [vmem:[%s12257_s4 + $0x12c] ss:$36 sps:$4 sm:$0xff]  }
  0x9e   :  { %4656 = vperm.xlu1 %6549, %v7930_v2   ;;  %v8292_v27 = vpop.permute.xlu1 %4386 }
  0x9f   :  { %1815 = vmatpush1.bf16.msra.mxu0 %v6884_v59  ;;  %12445 = vst [vmem:[#allocation8_spill] sm:$0xff] %v8292_v27  ;;  %v8464_v59 = vld [vmem:[%s12255_s1 + $0x30] sm:$0xff] }
  0xa0   :  { %3019 = vmatprep.subr.bf16.mxu0 %v6903_v37  ;;  %v6939_v37 = vld [vmem:[%s12257_s4 + $0x54] ss:$36 sps:$4 sm:$0xff]  }
  0xa1   :  { %4544 = vperm.xlu0 %6547, %v7870_v44   ;;  %v6880_v44 = vld [vmem:[%s12256_s0 + $0x1c8] ss:$36 sps:$4 sm:$0xff]  }
  0xa2   :  { %1647 = vmatmul.mubr.bf16.gmra.mxu0 %v6856_v60  ;;  %4664 = vperm.xlu1 %6549, %v7951_v10   ;;  %v8302_v12 = vpop.permute.xlu1 %4396 }
  0xa3   :  { %1656 = vmatprep.mubr.bf16.mxu0 %v6863_v62  ;;  %12446 = vst [vmem:[#allocation9_spill] sm:$0xff] %v8302_v12  ;;  %v6916_v62 = vld [vmem:[%s12257_s4 + $0x120] ss:$36 sps:$4 sm:$0xff]  }
  0xa4   :  { %1760 = vmatmul.mubr.bf16.gmra.mxu1 %v6862_v63  ;;  %v6919_v63 = vld [vmem:[%s12257_s4 + $0x128] ss:$36 sps:$4 sm:$0xff]  }
  0xa5   :  { %1769 = vmatprep.mubr.bf16.mxu1 %v6869_v22  ;;  %4552 = vperm.xlu0 %6547, %v7903_v55   ;;  %v6894_v22 = vld [vmem:[%s12256_s0 + $0x140] ss:$36 sps:$4 sm:$0xff]  }
  0xa6   :  { %6550 = vset.pattern.permute.xlu1 %v7478_v5 }
  0xa7   :  { %4704 = vperm.xlu1 %6550, %v7888_v50  }
  0xa8   :  { %v8317_v55 = vpop.permute.xlu1 %4420 }
  0xa9   :  { %4560 = vperm.xlu0 %6547, %v7930_v2   ;;  %12447 = vst [vmem:[#allocation10_spill] sm:$0xff] %v8317_v55  ;;  %v6889_v2 = vld [vmem:[%s12256_s0 + $0x210] ss:$36 sps:$4 sm:$0xff]   ;;  %v8404_v36 = vpop.permute.xlu0 %4321 }
  0xaa   :  { %1657 = vmatmul.mubr.bf16.gmra.mxu0 %v6865_v0  ;;  %12453 = vst [vmem:[#allocation16_spill] sm:$0xff] %v8404_v36 }
  0xab   :  { %1666 = vmatprep.mubr.bf16.mxu0 %v6872_v3  ;;  %4712 = vperm.xlu1 %6550, %v8191_v38   ;;  %v6924_v3 = vld [vmem:[%s12257_s4 + $0xdc] ss:$36 sps:$4 sm:$0xff]  }
  0xac   :  { %1770 = vmatmul.mubr.bf16.gmra.mxu1 %v6871_v18  ;;  %v8332_v17 = vpop.permute.xlu1 %4424  ;;  %v6927_v18 = vld [vmem:[%s12257_s4 + $0xe4] ss:$36 sps:$4 sm:$0xff]  }
  0xad   :  { %1779 = vmatprep.mubr.bf16.mxu1 %v6878_v7  ;;  %4568 = vperm.xlu0 %6547, %v7951_v10   ;;  %12448 = vst [vmem:[#allocation11_spill] sm:$0xff] %v8332_v17  ;;  %v8434_v45 = vpop.permute.xlu0 %4326  ;;  %v6922_v7 = vld [vmem:[%s12257_s4 + $0xd8] ss:$36 sps:$4 sm:$0xff]  }
  0xae   :  { %12456 = vst [vmem:[#allocation19_spill] sm:$0xff] %v8434_v45 }
  0xaf   :  { %4716 = vperm.xlu1 %6550, %v8313_v14  }
  0xb0   :  { %v8343_v10 = vpop.permute.xlu1 %4432 }
  0xb1   :  { %6548 = vset.pattern.permute.xlu0 %v7477_v34  ;;  %12449 = vst [vmem:[#allocation12_spill] sm:$0xff] %v8343_v10  ;;  %v6898_v34 = vld [vmem:[%s12257_s4 + $0x1f8] ss:$36 sps:$4 sm:$0xff]   ;;  %v8480_v0 = vpop.permute.xlu0 %4341 }
  0xb2   :  { %1667 = vmatmul.mubr.bf16.gmra.mxu0 %v6874_v8  ;;  %4608 = vperm.xlu0 %6548, %v7888_v50   ;;  %v8358_v50 = vld [vmem:[%s12255_s1 + $0x58] sm:$0xff]  ;;  %12458 = vst [vmem:[#allocation21_spill] sm:$0xff] %v8480_v0  ;;  %v6925_v8 = vld [vmem:[%s12257_s4 + $0xe0] ss:$36 sps:$4 sm:$0xff]  }
  0xb3   :  { %1676 = vmatprep.mubr.bf16.mxu0 %v6881_v11  ;;  %4724 = vperm.xlu1 %6550, %v8322_v15  }
  0xb4   :  { %1780 = vmatmul.mubr.bf16.gmra.mxu1 %v6880_v44  ;;  %v8362_v9 = vpop.permute.xlu1 %4440 }
  0xb5   :  { %1789 = vmatprep.mubr.bf16.mxu1 %v6887_v13  ;;  %12450 = vst [vmem:[#allocation13_spill] sm:$0xff] %v8362_v9  ;;  %2907 = vmatpush1.bf16.msra.mxu1 %v6898_v34  ;;  %v8504_v44 = vpop.permute.xlu0 %4351  ;;  %v6930_v13 = vld [vmem:[%s12257_s4 + $0x94] ss:$36 sps:$4 sm:$0xff]  }
  0xb6   :  { %4620 = vperm.xlu0 %6548, %v8313_v14   ;;  %2908 = vmatprep.subr.bf16.mxu1 %v6906_v41  ;;  %12460 = vst [vmem:[#allocation23_spill] sm:$0xff] %v8504_v44  ;;  %v8542_v41 = vld [vmem:[%s12255_s1 + $0x60] sm:$0xff] }
  0xb7   :  { %4732 = vperm.xlu1 %6550, %v8337_v19  }
  0xb8   :  { %v8375_v25 = vpop.permute.xlu1 %4448 }
  0xb9   :  { %12451 = vst [vmem:[#allocation14_spill] sm:$0xff] %v8375_v25  ;;  %2909 = vmatpush1.bf16.msra.mxu1 %v6904_v40  ;;  %v8531_v34 = vpop.permute.xlu0 %4361  ;;  %v6937_v40 = vld [vmem:[%s12257_s4 + $0x50] ss:$36 sps:$4 sm:$0xff]  }
  0xba   :  { %1677 = vmatmul.mubr.bf16.gmra.mxu0 %v6883_v16  ;;  %4628 = vperm.xlu0 %6548, %v8322_v15   ;;  %v6933_v16 = vld [vmem:[%s12257_s4 + $0x9c] ss:$36 sps:$4 sm:$0xff]   ;;  %12462 = vst [vmem:[#allocation25_spill] sm:$0xff] %v8531_v34 }
  0xbb   :  { %1832 = vmatprep.mubr.bf16.mxu0 %v7474_v1  ;;  %4740 = vperm.xlu1 %6550, %v8348_v20  }
  0xbc   :  { %1790 = vmatmul.mubr.bf16.gmra.mxu1 %v6889_v2  ;;  %v8389_v30 = vpop.permute.xlu1 %4456  ;;  %2910 = vmatprep.subr.bf16.mxu1 %v6912_v48  ;;  %v8515_v2 = vld [vmem:[%s12255_s1 + $0x50] sm:$0xff] }
  0xbd   :  { %12452 = vst [vmem:[#allocation15_spill] sm:$0xff] %v8389_v30  ;;  %2911 = vmatpush1.bf16.msra.mxu1 %v6910_v52  ;;  %v6945_v48 = vld [vmem:[%s12257_s4 + $0xc] ss:$36 sps:$4 sm:$0xff]   ;;  %v8567_v52 = vpop.permute.xlu0 %4371 }
  0xbe   :  { %4636 = vperm.xlu0 %6548, %v8337_v19   ;;  %2912 = vmatprep.subr.bf16.mxu1 %v6918_v57  ;;  %12464 = vst [vmem:[#allocation27_spill] sm:$0xff] %v8567_v52  ;;  %v6943_v57 = vld [vmem:[%s12257_s4 + $0x8] ss:$36 sps:$4 sm:$0xff]   ;;  %v12264_v52 = vmov 14  }
  0xbf   :  { %4748 = vperm.xlu1 %6550, %v8358_v50   ;;  %v6996_v30 = vld [vmem:[%s12257_s4 + $0x20c] ss:$36 sps:$4 sm:$0xff]  }
  0xc1   :  { %v8412_v28 = vpop.permute.xlu1 %4464  ;;  %2913 = vmatpush1.bf16.msra.mxu1 %v6916_v62 }
  0xc2   :  { %1833 = vmatmul.mubr.bf16.vlgmr.msra.gmra.mxu0 %v6890_v21  ;;  %4644 = vperm.xlu0 %6548, %v8348_v20   ;;  %12454 = vst [vmem:[#allocation17_spill] sm:$0xff] %v8412_v28  ;;  %v6928_v21 = vld [vmem:[%s12257_s4 + $0x90] ss:$36 sps:$4 sm:$0xff]  }
  0xc3   :  { %1842 = vmatprep.mubr.bf16.mxu0 %v7474_v1  ;;  %4756 = vperm.xlu1 %6550, %v8368_v23  }
  0xc4   :  { %3020 = vmatpush1.bf16.msra.mxu0 %v6901_v35  ;;  %2914 = vmatprep.subr.bf16.mxu1 %v6924_v3  ;;  %v6936_v35 = vld [vmem:[%s12257_s4 + $0x4c] ss:$36 sps:$4 sm:$0xff]   ;;  %v12263_v3 = vmov 12  }
  0xc5   :  { %3021 = vmatprep.subr.bf16.mxu0 %v6909_v39  ;;  %2915 = vmatpush1.bf16.msra.mxu1 %v6922_v7  ;;  %v6934_v39 = vld [vmem:[%s12257_s4 + $0x48] ss:$36 sps:$4 sm:$0xff]   ;;  %v6949_v7 = vld [vmem:[%s12257_s4 + $0x440] ss:$36 sps:$4 sm:$0xff]  }
  0xc6   :  { %4652 = vperm.xlu0 %6548, %v8358_v50   ;;  %2916 = vmatprep.subr.bf16.mxu1 %v6930_v13  ;;  %v8600_v13 = vpop.permute.xlu0 %4381 }
  0xc7   :  { %4764 = vperm.xlu1 %6550, %v8380_v26   ;;  %12466 = vst [vmem:[#allocation29_spill] sm:$0xff] %v8600_v13 }
  0xc8   :  { %3022 = vmatpush1.bf16.msra.mxu0 %v6907_v42 }
  0xc9   :  { %v8432_v43 = vpop.permute.xlu1 %4472  ;;  %3023 = vmatprep.subr.bf16.mxu0 %v6915_v51  ;;  %2917 = vmatpush1.bf16.msra.mxu1 %v6928_v21  ;;  %v8563_v51 = vld [vmem:[%s12255_s1 + $0x70] sm:$0xff] }
  0xca   :  { %1843 = vmatmul.mubr.bf16.gmra.mxu0 %v6891_v24  ;;  %4660 = vperm.xlu0 %6548, %v8368_v23   ;;  %12455 = vst [vmem:[#allocation18_spill] sm:$0xff] %v8432_v43  ;;  %v6931_v24 = vld [vmem:[%s12257_s4 + $0x98] ss:$36 sps:$4 sm:$0xff]   ;;  %v6984_v43 = vld [vmem:[%s12257_s4 + $0x28c] ss:$36 sps:$4 sm:$0xff]  }
  0xcb   :  { %1852 = vmatprep.mubr.bf16.mxu0 %v7474_v1  ;;  %6553 = vset.pattern.permute.xlu1 %v7479_v32  ;;  %v6954_v21 = vld [vmem:[%s12257_s4 + $0x3f4] ss:$36 sps:$4 sm:$0xff]  }
  0xcc   :  { %4804 = vperm.xlu1 %6553, %v8397_v33   ;;  %3024 = vmatpush1.bf16.msra.mxu0 %v6913_v54  ;;  %v6940_v54 = vld [vmem:[%s12257_s4] ss:$36 sps:$4 sm:$0xff]  }
  0xcd   :  { %3025 = vmatprep.subr.bf16.mxu0 %v6921_v56  ;;  %2918 = vmatprep.subr.bf16.mxu1 %v6936_v35  ;;  %v6896_v56 = vld [vmem:[%s12256_s0 + $0x1d0] ss:$36 sps:$4 sm:$0xff]  }
  0xce   :  { %4668 = vperm.xlu0 %6548, %v8380_v26   ;;  %2919 = vmatpush1.bf16.msra.mxu1 %v6934_v39  ;;  %v6952_v35 = vld [vmem:[%s12257_s4 + $0x3f0] ss:$36 sps:$4 sm:$0xff]   ;;  %v6897_v39 = vld [vmem:[%s12256_s0 + $0x218] ss:$36 sps:$4 sm:$0xff]  }
  0xd0   :  { %4808 = vperm.xlu1 %6553, %v8191_v38   ;;  %3026 = vmatpush1.bf16.msra.mxu0 %v6919_v63  ;;  %v6948_v63 = vld [vmem:[%s12257_s4 + $0x43c] ss:$36 sps:$4 sm:$0xff]  }
  0xd1   :  { %3027 = vmatprep.subr.bf16.mxu0 %v6927_v18  ;;  %v6946_v18 = vld [vmem:[%s12257_s4 + $0x438] ss:$36 sps:$4 sm:$0xff]  }
  0xd2   :  { %1853 = vmatmul.mubr.bf16.gmra.mxu0 %v6892_v29  ;;  %v8468_v60 = vpop.permute.xlu1 %4512  ;;  %6551 = vset.pattern.permute.xlu0 %v7478_v5  ;;  %v8492_v5 = vld [vmem:[%s12255_s1 + $0x40] sm:$0xff]  ;;  %v6895_v29 = vld [vmem:[%s12256_s0 + $0x188] ss:$36 sps:$4 sm:$0xff]  }
  0xd3   :  { %1862 = vmatprep.mubr.bf16.mxu0 %v7474_v1  ;;  %12457 = vst [vmem:[#allocation20_spill] sm:$0xff] %v8468_v60  ;;  %4708 = vperm.xlu0 %6551, %v8397_v33   ;;  %v8987_v60 = vld [vmem:[%s12255_s1 + $0x48] sm:$0xff] }
  0xd4   :  { %4816 = vperm.xlu1 %6553, %v8445_v49   ;;  %3028 = vmatpush1.bf16.msra.mxu0 %v6925_v8  ;;  %v8597_v8 = vld [vmem:[%s12255_s1] sm:$0xff] }
  0xd5   :  { %3029 = vmatprep.subr.bf16.mxu0 %v6933_v16 }
  0xd7   :  { %4720 = vperm.xlu0 %6551, %v8445_v49  }
  0xd8   :  { %4824 = vperm.xlu1 %6553, %v8464_v59   ;;  %3030 = vmatpush1.bf16.msra.mxu0 %v6931_v24  ;;  %v6957_v24 = vld [vmem:[%s12257_s4 + $0x3fc] ss:$36 sps:$4 sm:$0xff]  }
  0xd9   :  { %v8501_v11 = vpop.permute.xlu1 %4520  ;;  %3031 = vmatprep.subr.bf16.mxu0 %v6939_v37  ;;  %v6955_v37 = vld [vmem:[%s12257_s4 + $0x3f8] ss:$36 sps:$4 sm:$0xff]  }
  0xda   :  { %1863 = vmatmul.mubr.bf16.gmra.mxu0 %v6893_v46  ;;  %12459 = vst [vmem:[#allocation22_spill] sm:$0xff] %v8501_v11  ;;  %v6942_v46 = vld [vmem:[%s12257_s4 + $0x4] ss:$36 sps:$4 sm:$0xff]   ;;  %v8926_v11 = vld [vmem:[%s12255_s1 + $0x18] sm:$0xff] }
  0xdb   :  { %1872 = vmatprep.mubr.bf16.mxu0 %v7474_v1  ;;  %4728 = vperm.xlu0 %6551, %v8464_v59  }
  0xdc   :  { %4832 = vperm.xlu1 %6553, %v8492_v5   ;;  %3032 = vmatpush1.bf16.msra.mxu0 %v6937_v40  ;;  %v8622_v40 = vpop.permute.xlu0 %4391 }
  0xdd   :  { %2920 = vmatprep.subr.bf16.mxu1 %v6942_v46  ;;  %3033 = vmatprep.subr.bf16.mxu0 %v6945_v48  ;;  %12468 = vst [vmem:[#allocation31_spill] sm:$0xff] %v8622_v40  ;;  %v6960_v46 = vld [vmem:[%s12257_s4 + $0x3ac] ss:$36 sps:$4 sm:$0xff]   ;;  %v6990_v40 = vld [vmem:[%s12257_s4 + $0x244] ss:$36 sps:$4 sm:$0xff]  }
  0xde   :  { %2921 = vmatpush1.bf16.msra.mxu1 %v6940_v54  ;;  %v6958_v54 = vld [vmem:[%s12257_s4 + $0x3a8] ss:$36 sps:$4 sm:$0xff]  }
  0xdf   :  { %4736 = vperm.xlu0 %6551, %v8492_v5   ;;  %2922 = vmatprep.subr.bf16.mxu1 %v6948_v63  ;;  %v248_v63 = vld [vmem:[%s12258_s3] sm:$0x3] }
  0xe0   :  { %4840 = vperm.xlu1 %6553, %v8515_v2   ;;  %3034 = vmatpush1.bf16.msra.mxu0 %v6943_v57  ;;  %v6961_v57 = vld [vmem:[%s12257_s4 + $0x3b0] ss:$36 sps:$4 sm:$0xff]  }
  0xe1   :  { %v8528_v31 = vpop.permute.xlu1 %4524 }
  0xe2   :  { %1873 = vmatmul.mubr.bf16.gmra.mxu0 %v6894_v22  ;;  %12461 = vst [vmem:[#allocation24_spill] sm:$0xff] %v8528_v31  ;;  %v6951_v22 = vld [vmem:[%s12257_s4 + $0x444] ss:$36 sps:$4 sm:$0xff]   ;;  %2923 = vmatpush2.bf16.msra.mxu1 %v6946_v18  ;;  %v6969_v18 = vld [vmem:[%s12257_s4 + $0x36c] ss:$36 sps:$4 sm:$0xff]  }
  0xe3   :  { %1882 = vmatprep.mubr.bf16.mxu0 %v7474_v1  ;;  %4744 = vperm.xlu0 %6551, %v8515_v2  }
  0xe4   :  { %4848 = vperm.xlu1 %6553, %v8542_v41   ;;  %3035 = vmatprep.subr.bf16.mxu0 %v6951_v22  ;;  %v6966_v22 = vld [vmem:[%s12257_s4 + $0x364] ss:$36 sps:$4 sm:$0xff]  }
  0xe5   :  { %3036 = vmatpush2.bf16.msra.mxu0 %v6949_v7  ;;  %2924 = vmatprep.subr.bf16.mxu1 %v6954_v21  ;;  %v6964_v21 = vld [vmem:[%s12257_s4 + $0x360] ss:$36 sps:$4 sm:$0xff]  }
  0xe6   :  { %3037 = vmatprep.subr.bf16.mxu0 %v6957_v24  ;;  %2925 = vmatpush2.bf16.msra.mxu1 %v6952_v35  ;;  %v6967_v24 = vld [vmem:[%s12257_s4 + $0x368] ss:$36 sps:$4 sm:$0xff]  }
  0xe7   :  { %4752 = vperm.xlu0 %6551, %v8542_v41   ;;  %2926 = vmatprep.subr.bf16.mxu1 %v6960_v46 }
  0xe8   :  { %v8552_v42 = vpop.permute.xlu1 %4532  ;;  %4856 = vperm.xlu1 %6553, %v8563_v51  }
  0xe9   :  { %12463 = vst [vmem:[#allocation26_spill] sm:$0xff] %v8552_v42  ;;  %3038 = vmatpush2.bf16.msra.mxu0 %v6955_v37  ;;  %v6972_v37 = vld [vmem:[%s12257_s4 + $0x31c] ss:$36 sps:$4 sm:$0xff]  }
  0xea   :  { %1883 = vmatmul.mubr.bf16.gmra.mxu0 %v6895_v29  ;;  %v250_v29 = vlaneseq  ;;  %2927 = vmatpush2.bf16.msra.mxu1 %v6958_v54  ;;  %v6970_v54 = vld [vmem:[%s12257_s4 + $0x318] ss:$36 sps:$4 sm:$0xff]  }
  0xeb   :  { %1892 = vmatprep.mubr.bf16.mxu0 %v7474_v1  ;;  %4760 = vperm.xlu0 %6551, %v8563_v51  }
  0xec   :  { %v8579_v62 = vpop.permute.xlu1 %4540  ;;  %6554 = vset.pattern.permute.xlu1 %v12263_v3  ;;  %v8633_v48 = vshrl.u32 %v250_v29, 7  ;;  %2928 = vmatprep.subr.bf16.mxu1 %v6966_v22 }
  0xed   :  { %12465 = vst [vmem:[#allocation28_spill] sm:$0xff] %v8579_v62  ;;  %4896 = vperm.xlu1 %6554, %v8597_v8  }
  0xee   :  { %12470 = vst [vmem:[#allocation33_spill] sm:$0xff] %v8633_v48  ;;  %v12262_v29 = vsub.s32 1, %v8633_v48  ;;  %2929 = vmatpush2.bf16.msra.mxu1 %v6964_v21  ;;  %v6978_v21 = vld [vmem:[%s12257_s4 + $0x2d4] ss:$36 sps:$4 sm:$0xff]  }
  0xef   :  { %6552 = vset.pattern.permute.xlu0 %v7479_v32  ;;  %v12261_v32 = vsub.s32 0, %v8633_v48  ;;  %2930 = vmatprep.subr.bf16.mxu1 %v6972_v37  ;;  %v6979_v37 = vld [vmem:[%s12257_s4 + $0x2d8] ss:$36 sps:$4 sm:$0xff]  }
  0xf0   :  { %v8603_v16 = vpop.permute.xlu1 %4548  ;;  %4800 = vperm.xlu0 %6552, %v8597_v8   ;;  %v9003_v48 = vld [vmem:[%s12255_s1 + $0x58] sm:$0xff] }
  0xf1   :  { %12467 = vst [vmem:[#allocation30_spill] sm:$0xff] %v8603_v16  ;;  %4904 = vperm.xlu1 %6554, %v8191_v38   ;;  %v6963_v38 = vld [vmem:[%s12257_s4 + $0x3b4] ss:$36 sps:$4 sm:$0xff]   ;;  %v8677_v46 = vrot.slane %v248_v63, %v12261_v32  ;;  %v6981_v32 = vld [vmem:[%s12257_s4 + $0x2dc] ss:$36 sps:$4 sm:$0xff]  }
  0xf2   :  { %1893 = vmatmul.mubr.bf16.gmra.mxu0 %v6896_v56  ;;  %v8643_v56 = vpop.permute.xlu0 %4416  ;;  %3039 = vmatprep.subr.bf16.mxu0 %v6963_v38 }
  0xf3   :  { %1902 = vmatprep.mubr.bf16.mxu0 %v7474_v1  ;;  %12471 = vst [vmem:[#allocation34_spill] sm:$0xff] %v8643_v56  ;;  %3040 = vmatpush2.bf16.msra.mxu0 %v6961_v57  ;;  %v8690_v57 = vrot.slane %v248_v63, %v12262_v29  ;;  %v6976_v63 = vld [vmem:[%s12257_s4 + $0x2d0] ss:$36 sps:$4 sm:$0xff]  }
  0xf4   :  { %v8625_v1 = vpop.permute.xlu1 %4556  ;;  %3041 = vmatprep.subr.bf16.mxu0 %v6969_v18  ;;  %4812 = vperm.xlu0 %6552, %v8313_v14  }
  0xf5   :  { %12469 = vst [vmem:[#allocation32_spill] sm:$0xff] %v8625_v1  ;;  %4908 = vperm.xlu1 %6554, %v8313_v14   ;;  %v6973_v14 = vld [vmem:[%s12257_s4 + $0x320] ss:$36 sps:$4 sm:$0xff]   ;;  %2931 = vmatpush2.bf16.msra.mxu1 %v6970_v54 }
  0xf6   :  { %v8666_v35 = vpop.permute.xlu0 %4428  ;;  %2932 = vmatprep.subr.bf16.mxu1 %v6978_v21  ;;  %v6985_v21 = vld [vmem:[%s12257_s4 + $0x290] ss:$36 sps:$4 sm:$0xff]  }
  0xf7   :  { %12473 = vst [vmem:[#allocation36_spill] sm:$0xff] %v8666_v35  ;;  %3042 = vmatpush2.bf16.msra.mxu0 %v6967_v24 }
  0xf8   :  { %v8656_v7 = vpop.permute.xlu1 %4564  ;;  %4820 = vperm.xlu0 %6552, %v8322_v15  }
  0xf9   :  { %12472 = vst [vmem:[#allocation35_spill] sm:$0xff] %v8656_v7  ;;  %4916 = vperm.xlu1 %6554, %v8322_v15   ;;  %2933 = vmatpush2.bf16.msra.mxu1 %v6976_v63  ;;  %v6993_v7 = vld [vmem:[%s12257_s4 + $0x24c] ss:$36 sps:$4 sm:$0xff]  }
  0xfa   :  { %1903 = vmatmul.mubr.bf16.gmra.mxu0 %v6897_v39  ;;  %v6975_v39 = vld [vmem:[%s12257_s4 + $0x324] ss:$36 sps:$4 sm:$0xff]   ;;  %v8692_v22 = vpop.permute.xlu0 %4436  ;;  %2934 = vmatprep.subr.bf16.mxu1 %v6984_v43 }
  0xfb   :  { %12475 = vst [vmem:[#allocation38_spill] sm:$0xff] %v8692_v22  ;;  %3043 = vmatprep.subr.bf16.mxu0 %v6975_v39  ;;  %v6988_v43 = vld [vmem:[%s12257_s4 + $0x240] ss:$36 sps:$4 sm:$0xff]  }
  0xfc   :  { %v8679_v38 = vpop.permute.xlu1 %4572  ;;  %3044 = vmatpush2.bf16.msra.mxu0 %v6973_v14  ;;  %4828 = vperm.xlu0 %6552, %v8337_v19   ;;  %v6987_v14 = vld [vmem:[%s12257_s4 + $0x294] ss:$36 sps:$4 sm:$0xff]  }
  0xfd   :  { %12474 = vst [vmem:[#allocation37_spill] sm:$0xff] %v8679_v38  ;;  %4924 = vperm.xlu1 %6554, %v8337_v19   ;;  %3045 = vmatprep.subr.bf16.mxu0 %v6981_v32  ;;  %v6982_v32 = vld [vmem:[%s12257_s4 + $0x288] ss:$36 sps:$4 sm:$0xff]  }
  0xfe   :  { %v8714_v54 = vpop.permute.xlu0 %4444  ;;  %2935 = vmatpush2.bf16.msra.mxu1 %v6982_v32 }
  0xff   :  { %12477 = vst [vmem:[#allocation40_spill] sm:$0xff] %v8714_v54  ;;  %2936 = vmatprep.subr.bf16.mxu1 %v6990_v40 }
 0x100   :  { %3046 = vmatpush2.bf16.msra.mxu0 %v6979_v37  ;;  %4836 = vperm.xlu0 %6552, %v8348_v20  }
 0x101   :  { %4932 = vperm.xlu1 %6554, %v8348_v20   ;;  %v8712_v38 = vpop.permute.xlu1 %4612  ;;  %3047 = vmatprep.subr.bf16.mxu0 %v6987_v14  ;;  %v6991_v14 = vld [vmem:[%s12257_s4 + $0x248] ss:$36 sps:$4 sm:$0xff]  }
 0x102   :  { %v1382_v18 = vpop.f32.mrf.mxu0  ;;  %12476 = vst [vmem:[#allocation39_spill] sm:$0xff] %v8712_v38  ;;  %2937 = vmatpush2.bf16.msra.mxu1 %v6988_v43 }
 0x103   :  { %v1383_v24 = vadd.f32 %v1382_v18, %v8677_v46  ;;  %3132 = vmatprep.subr.bf16.mxu1 %v6996_v30 }
 0x104   :  { %v1384_v15 = vpop.f32.mrf.mxu0  ;;  %v1495_v39 = vpop.f32.mrf.mxu1  ;;  %3048 = vmatpush2.bf16.msra.mxu0 %v6985_v21  ;;  %4844 = vperm.xlu0 %6552, %v8358_v50  }
 0x105   :  { %v1385_v29 = vadd.f32 %v1384_v15, %v8690_v57  ;;  %v8710_v3 = vadd.f32 %v1495_v39, %v1383_v24  ;;  %4940 = vperm.xlu1 %6554, %v8358_v50   ;;  %v8738_v39 = vpop.permute.xlu1 %4616  ;;  %3049 = vmatprep.subr.bf16.mxu0 %v6993_v7 }
 0x106   :  { %v8716_v18 = vpop.f32.mrf.mxu0  ;;  %v1497_v12 = vpop.f32.mrf.mxu1  ;;  %12478 = vst [vmem:[#allocation41_spill] sm:$0xff] %v8738_v39 }
 0x107   :  { %v8725_v24 = vadd.f32 %v1497_v12, %v1385_v29  ;;  %v8740_v12 = vpop.permute.xlu0 %4452 }
 0x108   :  { %v8733_v19 = vpop.f32.mrf.mxu0  ;;  %v8735_v15 = vpop.f32.mrf.mxu1  ;;  %12479 = vst [vmem:[#allocation42_spill] sm:$0xff] %v8740_v12  ;;  %3050 = vmatpush2.bf16.msra.mxu0 %v6991_v14  ;;  %4852 = vperm.xlu0 %6552, %v8368_v23  }
 0x109   :  { %4948 = vperm.xlu1 %6554, %v8368_v23   ;;  %v8762_v1 = vpop.permute.xlu1 %4624 }
 0x10a   :  { %v1392_v29 = vpop.f32.mrf.mxu0  ;;  %v8742_v63 = vpop.f32.mrf.mxu1  ;;  %12480 = vst [vmem:[#allocation43_spill] sm:$0xff] %v8762_v1 }
 0x10b   :  { %v1393_v37 = vadd.f32 %v1392_v29, %v8677_v46  ;;  %v8764_v32 = vpop.permute.xlu0 %4460 }
 0x10c   :  { %v1394_v20 = vpop.f32.mrf.mxu0  ;;  %v1505_v27 = vpop.f32.mrf.mxu1  ;;  %12481 = vst [vmem:[#allocation44_spill] sm:$0xff] %v8764_v32  ;;  %4860 = vperm.xlu0 %6552, %v8380_v26  }
 0x10d   :  { %v1395_v28 = vadd.f32 %v1394_v20, %v8690_v57  ;;  %v8760_v13 = vadd.f32 %v1505_v27, %v1393_v37  ;;  %v6999_v27 = vld [vmem:[%s12257_s4 + $0x214] ss:$36 sps:$4 sm:$0xff]   ;;  %4956 = vperm.xlu1 %6554, %v8380_v26   ;;  %v8782_v7 = vpop.permute.xlu1 %4632 }
 0x10e   :  { %v8766_v29 = vpop.f32.mrf.mxu0  ;;  %v1507_v4 = vpop.f32.mrf.mxu1  ;;  %12482 = vst [vmem:[#allocation45_spill] sm:$0xff] %v8782_v7  ;;  %3245 = vmatprep.subr.bf16.mxu0 %v6999_v27 }
 0x10f   :  { %v8775_v21 = vadd.f32 %v1507_v4, %v1395_v28  ;;  %v8784_v50 = vpop.permute.xlu0 %4468 }
 0x110   :  { %v8777_v37 = vpop.f32.mrf.mxu0  ;;  %v8779_v40 = vpop.f32.mrf.mxu1  ;;  %12483 = vst [vmem:[#allocation46_spill] sm:$0xff] %v8784_v50 }
 0x111   :  { %6557 = vset.pattern.permute.xlu1 %v12264_v52  ;;  %v8795_v30 = vpop.permute.xlu1 %4640 }
 0x112   :  { %v1402_v20 = vpop.f32.mrf.mxu0  ;;  %v8786_v32 = vpop.f32.mrf.mxu1  ;;  %4996 = vperm.xlu1 %6557, %v8397_v33   ;;  %12484 = vst [vmem:[#allocation47_spill] sm:$0xff] %v8795_v30 }
 0x113   :  { %v1403_v4 = vadd.f32 %v1402_v20, %v8677_v46  ;;  %v8797_v27 = vpop.permute.xlu0 %4476 }
 0x114   :  { %v1404_v28 = vpop.f32.mrf.mxu0  ;;  %v1515_v43 = vpop.f32.mrf.mxu1  ;;  %12485 = vst [vmem:[#allocation48_spill] sm:$0xff] %v8797_v27 }
 0x115   :  { %v1405_v14 = vadd.f32 %v1404_v28, %v8690_v57  ;;  %v8792_v16 = vadd.f32 %v1515_v43, %v1403_v4  ;;  %v8810_v4 = vld [vmem:[%s12255_s1 + $0x10] sm:$0xff]  ;;  %v8813_v43 = vpop.permute.xlu1 %4648 }
 0x116   :  { %v1406_v50 = vpop.f32.mrf.mxu0  ;;  %v1517_v12 = vpop.f32.mrf.mxu1  ;;  %5000 = vperm.xlu1 %6557, %v8810_v4   ;;  %12486 = vst [vmem:[#allocation49_spill] sm:$0xff] %v8813_v43 }
 0x117   :  { %v1407_v23 = vadd.f32 %v1406_v50, %v8677_v46  ;;  %v8801_v20 = vadd.f32 %v1517_v12, %v1405_v14  ;;  %v12487_v50 = vmov 12  }
 0x118   :  { %v8803_v6 = vpop.f32.mrf.mxu0  ;;  %v1519_v52 = vpop.f32.mrf.mxu1  ;;  %6555 = vset.pattern.permute.xlu0 %v12487_v50 }
 0x119   :  { %v8805_v28 = vadd.f32 %v1519_v52, %v1407_v23  ;;  %4900 = vperm.xlu0 %6555, %v8397_v33   ;;  %v8820_v52 = vpop.permute.xlu0 %4516  ;;  %v8826_v43 = vpop.permute.xlu1 %4656 }
 0x11a   :  { %v1412_v27 = vpop.f32.mrf.mxu0  ;;  %v8815_v26 = vpop.f32.mrf.mxu1  ;;  %12488 = vst [vmem:[#allocation50_spill] sm:$0xff] %v8820_v52  ;;  %5008 = vperm.xlu1 %6557, %v8445_v49   ;;  %12489 = vst [vmem:[#allocation51_spill] sm:$0xff] %v8826_v43 }
 0x11b   :  { %v1413_v12 = vadd.f32 %v1412_v27, %v8677_v46 }
 0x11c   :  { %v1414_v14 = vpop.f32.mrf.mxu0  ;;  %v1525_v23 = vpop.f32.mrf.mxu1 }
 0x11d   :  { %v1415_v30 = vadd.f32 %v1414_v14, %v8690_v57  ;;  %v8823_v25 = vadd.f32 %v1525_v23, %v1413_v12  ;;  %4912 = vperm.xlu0 %6555, %v8445_v49   ;;  %v8832_v33 = vpop.permute.xlu0 %4528  ;;  %v8839_v12 = vpop.permute.xlu1 %4664 }
 0x11e   :  { %v1416_v34 = vpop.f32.mrf.mxu0  ;;  %v1527_v62 = vpop.f32.mrf.mxu1  ;;  %12490 = vst [vmem:[#allocation52_spill] sm:$0xff] %v8832_v33  ;;  %5016 = vperm.xlu1 %6557, %v8464_v59   ;;  %12492 = vst [vmem:[#allocation54_spill] sm:$0xff] %v8839_v12 }
 0x11f   :  { %v1417_v50 = vadd.f32 %v1416_v34, %v8677_v46  ;;  %v8829_v54 = vadd.f32 %v1527_v62, %v1415_v30 }
 0x120   :  { %v8834_v27 = vpop.f32.mrf.mxu0  ;;  %v1529_v61 = vpop.f32.mrf.mxu1 }
 0x121   :  { %12491 = vst [vmem:[#allocation53_spill] sm:$0xff] %v8834_v27  ;;  %v8836_v14 = vadd.f32 %v1529_v61, %v1417_v50  ;;  %4920 = vperm.xlu0 %6555, %v8464_v59   ;;  %v8845_v62 = vpop.permute.xlu0 %4536  ;;  %v9059_v27 = vld [vmem:[%s12255_s1 + $0x8] sm:$0xff] }
 0x122   :  { %v1422_v23 = vpop.f32.mrf.mxu0  ;;  %v8841_v43 = vpop.f32.mrf.mxu1  ;;  %12494 = vst [vmem:[#allocation56_spill] sm:$0xff] %v8845_v62  ;;  %5024 = vperm.xlu1 %6557, %v8492_v5   ;;  %12533 = vst [vmem:[#allocation93_spill] sm:$0xff] %v9059_v27 }
 0x123   :  { %12493 = vst [vmem:[#allocation55_spill] sm:$0xff] %v8841_v43  ;;  %v1423_v34 = vadd.f32 %v1422_v23, %v8677_v46  ;;  %v8851_v61 = vpop.permute.xlu1 %4704  ;;  %v12532_v43 = vmov 16  }
 0x124   :  { %v1424_v49 = vpop.f32.mrf.mxu0  ;;  %v1535_v30 = vpop.f32.mrf.mxu1  ;;  %12495 = vst [vmem:[#allocation57_spill] sm:$0xff] %v8851_v61 }
 0x125   :  { %v1425_v7 = vadd.f32 %v1424_v49, %v8690_v57  ;;  %v8848_v9 = vadd.f32 %v1535_v30, %v1423_v34  ;;  %4928 = vperm.xlu0 %6555, %v8492_v5   ;;  %v8857_v59 = vpop.permute.xlu0 %4544 }
 0x126   :  { %v1426_v50 = vpop.f32.mrf.mxu0  ;;  %v1537_v12 = vpop.f32.mrf.mxu1  ;;  %12496 = vst [vmem:[#allocation58_spill] sm:$0xff] %v8857_v59  ;;  %5032 = vperm.xlu1 %6557, %v8515_v2  }
 0x127   :  { %v1427_v44 = vadd.f32 %v1426_v50, %v8677_v46  ;;  %v8854_v42 = vadd.f32 %v1537_v12, %v1425_v7  ;;  %v8864_v34 = vpop.permute.xlu1 %4712 }
 0x128   :  { %v8859_v23 = vpop.f32.mrf.mxu0  ;;  %v1539_v62 = vpop.f32.mrf.mxu1  ;;  %12498 = vst [vmem:[#allocation60_spill] sm:$0xff] %v8864_v34 }
 0x129   :  { %12497 = vst [vmem:[#allocation59_spill] sm:$0xff] %v8859_v23  ;;  %v8861_v49 = vadd.f32 %v1539_v62, %v1427_v44  ;;  %4936 = vperm.xlu0 %6555, %v8515_v2   ;;  %v8870_v7 = vpop.permute.xlu0 %4552 }
 0x12a   :  { %v1432_v30 = vpop.f32.mrf.mxu0  ;;  %v8866_v22 = vpop.f32.mrf.mxu1  ;;  %12500 = vst [vmem:[#allocation62_spill] sm:$0xff] %v8870_v7  ;;  %5040 = vperm.xlu1 %6557, %v8542_v41  }
 0x12b   :  { %12499 = vst [vmem:[#allocation61_spill] sm:$0xff] %v8866_v22  ;;  %v1433_v50 = vadd.f32 %v1432_v30, %v8677_v46  ;;  %v8876_v44 = vpop.permute.xlu1 %4716 }
 0x12c   :  { %v1434_v5 = vpop.f32.mrf.mxu0  ;;  %v1545_v12 = vpop.f32.mrf.mxu1  ;;  %12501 = vst [vmem:[#allocation63_spill] sm:$0xff] %v8876_v44 }
 0x12d   :  { %v1435_v59 = vadd.f32 %v1434_v5, %v8690_v57  ;;  %v8873_v58 = vadd.f32 %v1545_v12, %v1433_v50  ;;  %4944 = vperm.xlu0 %6555, %v8542_v41   ;;  %v8882_v2 = vpop.permute.xlu0 %4560 }
 0x12e   :  { %v1436_v62 = vpop.f32.mrf.mxu0  ;;  %v1547_v1 = vpop.f32.mrf.mxu1  ;;  %12502 = vst [vmem:[#allocation64_spill] sm:$0xff] %v8882_v2  ;;  %5048 = vperm.xlu1 %6557, %v8563_v51  }
 0x12f   :  { %v1437_v33 = vadd.f32 %v1436_v62, %v8677_v46  ;;  %v8879_v10 = vadd.f32 %v1547_v1, %v1435_v59  ;;  %v8889_v50 = vpop.permute.xlu1 %4724 }
 0x130   :  { %v8884_v30 = vpop.f32.mrf.mxu0  ;;  %v1549_v7 = vpop.f32.mrf.mxu1  ;;  %12504 = vst [vmem:[#allocation66_spill] sm:$0xff] %v8889_v50 }
 0x131   :  { %12503 = vst [vmem:[#allocation65_spill] sm:$0xff] %v8884_v30  ;;  %v8886_v5 = vadd.f32 %v1549_v7, %v1437_v33  ;;  %4952 = vperm.xlu0 %6555, %v8563_v51   ;;  %v8895_v1 = vpop.permute.xlu0 %4568  ;;  %v12265_v33 = vmov 16   ;;  %v9039_v30 = vld [vmem:[%s12255_s1 + $0x78] sm:$0xff] }
 0x132   :  { %v1442_v12 = vpop.f32.mrf.mxu0  ;;  %v8891_v0 = vpop.f32.mrf.mxu1  ;;  %12506 = vst [vmem:[#allocation68_spill] sm:$0xff] %v8895_v1  ;;  %6558 = vset.pattern.permute.xlu1 %v12265_v33  ;;  %v12508_v1 = vmov 14   ;;  %12528 = vst [vmem:[#allocation89_spill] sm:$0xff] %v9039_v30 }
 0x133   :  { %12505 = vst [vmem:[#allocation67_spill] sm:$0xff] %v8891_v0  ;;  %v1443_v62 = vadd.f32 %v1442_v12, %v8677_v46  ;;  %v8901_v7 = vpop.permute.xlu1 %4732  ;;  %5088 = vperm.xlu1 %6558, %v8597_v8  }
 0x134   :  { %v1444_v59 = vpop.f32.mrf.mxu0  ;;  %v1555_v2 = vpop.f32.mrf.mxu1  ;;  %12507 = vst [vmem:[#allocation69_spill] sm:$0xff] %v8901_v7 }
 0x135   :  { %v1445_v44 = vadd.f32 %v1444_v59, %v8690_v57  ;;  %v8898_v31 = vadd.f32 %v1555_v2, %v1443_v62  ;;  %6556 = vset.pattern.permute.xlu0 %v12508_v1  ;;  %v8908_v34 = vpop.permute.xlu0 %4608 }
 0x136   :  { %v1446_v50 = vpop.f32.mrf.mxu0  ;;  %v1557_v35 = vpop.f32.mrf.mxu1  ;;  %12509 = vst [vmem:[#allocation70_spill] sm:$0xff] %v8908_v34  ;;  %4992 = vperm.xlu0 %6556, %v8597_v8  }
 0x137   :  { %v1447_v12 = vadd.f32 %v1446_v50, %v8677_v46  ;;  %v8905_v53 = vadd.f32 %v1557_v35, %v1445_v44  ;;  %v8915_v33 = vpop.permute.xlu1 %4740  ;;  %5096 = vperm.xlu1 %6558, %v8810_v4  }
 0x138   :  { %v8910_v59 = vpop.f32.mrf.mxu0  ;;  %v1559_v2 = vpop.f32.mrf.mxu1  ;;  %12511 = vst [vmem:[#allocation72_spill] sm:$0xff] %v8915_v33 }
 0x139   :  { %12510 = vst [vmem:[#allocation71_spill] sm:$0xff] %v8910_v59  ;;  %v8913_v62 = vadd.f32 %v1559_v2, %v1447_v12  ;;  %v8921_v44 = vpop.permute.xlu0 %4620 }
 0x13a   :  { %v1452_v7 = vpop.f32.mrf.mxu0  ;;  %v8917_v39 = vpop.f32.mrf.mxu1  ;;  %12513 = vst [vmem:[#allocation74_spill] sm:$0xff] %v8921_v44  ;;  %5004 = vperm.xlu0 %6556, %v8926_v11  }
 0x13b   :  { %12512 = vst [vmem:[#allocation73_spill] sm:$0xff] %v8917_v39  ;;  %v1453_v35 = vadd.f32 %v1452_v7, %v8677_v46  ;;  %v8932_v33 = vpop.permute.xlu1 %4748  ;;  %5100 = vperm.xlu1 %6558, %v8926_v11  }
 0x13c   :  { %v1454_v50 = vpop.f32.mrf.mxu0  ;;  %v1565_v1 = vpop.f32.mrf.mxu1  ;;  %12514 = vst [vmem:[#allocation75_spill] sm:$0xff] %v8932_v33 }
 0x13d   :  { %v1455_v12 = vadd.f32 %v1454_v50, %v8690_v57  ;;  %v8930_v2 = vadd.f32 %v1565_v1, %v1453_v35  ;;  %v8938_v38 = vpop.permute.xlu0 %4628  ;;  %v8945_v35 = vld [vmem:[%s12255_s1 + $0x28] sm:$0xff] }
 0x13e   :  { %v1456_v17 = vpop.f32.mrf.mxu0  ;;  %v1567_v47 = vpop.f32.mrf.mxu1  ;;  %12515 = vst [vmem:[#allocation76_spill] sm:$0xff] %v8938_v38  ;;  %5012 = vperm.xlu0 %6556, %v8945_v35  }
 0x13f   :  { %v1457_v7 = vadd.f32 %v1456_v17, %v8677_v46  ;;  %v8936_v44 = vadd.f32 %v1567_v47, %v1455_v12  ;;  %v8950_v1 = vpop.permute.xlu1 %4756  ;;  %5108 = vperm.xlu1 %6558, %v8945_v35  }
 0x140   :  { %v8940_v61 = vpop.f32.mrf.mxu0  ;;  %v1569_v34 = vpop.f32.mrf.mxu1  ;;  %12517 = vst [vmem:[#allocation78_spill] sm:$0xff] %v8950_v1 }
 0x141   :  { %12516 = vst [vmem:[#allocation77_spill] sm:$0xff] %v8940_v61  ;;  %v8948_v50 = vadd.f32 %v1569_v34, %v1457_v7  ;;  %v8958_v12 = vpop.permute.xlu0 %4636  ;;  %v8965_v34 = vld [vmem:[%s12255_s1 + $0x38] sm:$0xff] }
 0x142   :  { %v8952_v33 = vpop.f32.mrf.mxu1  ;;  %v1608_v47 = vpop.f32.mrf.mxu0  ;;  %12519 = vst [vmem:[#allocation80_spill] sm:$0xff] %v8958_v12  ;;  %5020 = vperm.xlu0 %6556, %v8965_v34  }
 0x143   :  { %12518 = vst [vmem:[#allocation79_spill] sm:$0xff] %v8952_v33  ;;  %v8956_v17 = vadd.f32 %v1608_v47, %v8710_v3  ;;  %v8971_v1 = vpop.permute.xlu1 %4764  ;;  %5116 = vperm.xlu1 %6558, %v8965_v34  }
 0x144   :  { %v1610_v38 = vpop.f32.mrf.mxu0  ;;  %v8960_v52 = vpop.f32.mrf.mxu1  ;;  %12520 = vst [vmem:[#allocation81_spill] sm:$0xff] %v8971_v1 }
 0x145   :  { %v8969_v7 = vadd.f32 %v1610_v38, %v8725_v24  ;;  %v8978_v47 = vpop.permute.xlu0 %4644 }
 0x146   :  { %v8973_v55 = vpop.f32.mrf.mxu0  ;;  %v8975_v3 = vpop.f32.mrf.mxu1  ;;  %12521 = vst [vmem:[#allocation82_spill] sm:$0xff] %v8978_v47  ;;  %5028 = vperm.xlu0 %6556, %v8987_v60  }
 0x147   :  { %5124 = vperm.xlu1 %6558, %v8987_v60   ;;  %v8996_v47 = vpop.permute.xlu1 %4804 }
 0x148   :  { %v8980_v12 = vpop.f32.mrf.mxu0  ;;  %v8982_v45 = vpop.f32.mrf.mxu1  ;;  %12522 = vst [vmem:[#allocation83_spill] sm:$0xff] %v8996_v47  ;;  %v9023_v47 = vld [vmem:[%s12255_s1 + $0x68] sm:$0xff] }
 0x149   :  { %v8998_v56 = vpop.permute.xlu0 %4652 }
 0x14a   :  { %v1618_v38 = vpop.f32.mrf.mxu0  ;;  %v8990_v24 = vpop.f32.mrf.mxu1  ;;  %12523 = vst [vmem:[#allocation84_spill] sm:$0xff] %v8998_v56  ;;  %5036 = vperm.xlu0 %6556, %v9003_v48  }
 0x14b   :  { %v8994_v1 = vadd.f32 %v1618_v38, %v8760_v13  ;;  %5132 = vperm.xlu1 %6558, %v9003_v48   ;;  %v9014_v13 = vpop.permute.xlu1 %4808 }
 0x14c   :  { %v1620_v36 = vpop.f32.mrf.mxu0  ;;  %v9009_v61 = vpop.f32.mrf.mxu1  ;;  %12524 = vst [vmem:[#allocation85_spill] sm:$0xff] %v9014_v13 }
 0x14d   :  { %v9007_v33 = vadd.f32 %v1620_v36, %v8775_v21  ;;  %v9016_v38 = vpop.permute.xlu0 %4660 }
 0x14e   :  { %v9011_v39 = vpop.f32.mrf.mxu0  ;;  %12525 = vst [vmem:[#allocation86_spill] sm:$0xff] %v9016_v38  ;;  %5044 = vperm.xlu0 %6556, %v9023_v47   ;;  %v9026_v36 = vpop.f32.mrf.mxu1 }
 0x14f   :  { %5140 = vperm.xlu1 %6558, %v9023_v47   ;;  %v9032_v13 = vpop.permute.xlu1 %4816 }
 0x150   :  { %v9018_v56 = vpop.f32.mrf.mxu0  ;;  %12526 = vst [vmem:[#allocation87_spill] sm:$0xff] %v9032_v13 }
 0x151   :  { %v9034_v38 = vpop.permute.xlu0 %4668 }
 0x152   :  { %v1628_v21 = vpop.f32.mrf.mxu0  ;;  %12527 = vst [vmem:[#allocation88_spill] sm:$0xff] %v9034_v38  ;;  %5052 = vperm.xlu0 %6556, %v9039_v30  }
 0x153   :  { %v9030_v59 = vadd.f32 %v1628_v21, %v8792_v16  ;;  %5148 = vperm.xlu1 %6558, %v9039_v30   ;;  %v9046_v16 = vpop.f32.mrf.mxu1  ;;  %v9051_v38 = vpop.permute.xlu1 %4824 }
 0x154   :  { %v1630_v0 = vpop.f32.mrf.mxu0  ;;  %12531 = vst [vmem:[#allocation92_spill] sm:$0xff] %v9051_v38 }
 0x155   :  { %v9043_v22 = vadd.f32 %v1630_v0, %v8801_v20  ;;  %v9062_v0 = vpop.permute.xlu0 %4708 }
 0x156   :  { %v1632_v23 = vpop.f32.mrf.mxu0  ;;  %6559 = vset.pattern.permute.xlu0 %v12532_v43  ;;  %12534 = vst [vmem:[#allocation94_spill] sm:$0xff] %v9062_v0  ;;  %v9079_v0 = vld [vmem:[%s12255_s1 + $0x20] sm:$0xff] }
 0x157   :  { %12529 = vst [vmem:[#allocation90_spill] sm:$0xff] %v9043_v22  ;;  %v9049_v21 = vadd.f32 %v1632_v23, %v8805_v28  ;;  %5092 = vperm.xlu0 %6559, %v9059_v27   ;;  %v12268_v22 = vmov 1   ;;  %v9065_v28 = vpop.f32.mrf.mxu1  ;;  %v9071_v43 = vpop.permute.xlu1 %4832  ;;  %12538 = vst [vmem:[#allocation98_spill] sm:$0xff] %v9079_v0 }
 0x158   :  { %v9053_v13 = vpop.f32.mrf.mxu0  ;;  %6561 = vset.pattern.permute.xlu1 %v12268_v22  ;;  %12536 = vst [vmem:[#allocation96_spill] sm:$0xff] %v9071_v43 }
 0x159   :  { %12530 = vst [vmem:[#allocation91_spill] sm:$0xff] %v9049_v21  ;;  %5220 = vperm.xlu1 %6561, %v9059_v27   ;;  %v9082_v22 = vpop.permute.xlu0 %4720 }
 0x15a   :  { %v1638_v20 = vpop.f32.mrf.mxu0  ;;  %12539 = vst [vmem:[#allocation99_spill] sm:$0xff] %v9082_v22 }
 0x15b   :  { %v9068_v23 = vadd.f32 %v1638_v20, %v8823_v25  ;;  %5104 = vperm.xlu0 %6559, %v9079_v0   ;;  %v9084_v25 = vpop.f32.mrf.mxu1  ;;  %v9090_v43 = vpop.permute.xlu1 %4840 }
 0x15c   :  { %v1640_v38 = vpop.f32.mrf.mxu0  ;;  %12541 = vst [vmem:[#allocation101_spill] sm:$0xff] %v9090_v43 }
 0x15d   :  { %12535 = vst [vmem:[#allocation95_spill] sm:$0xff] %v9068_v23  ;;  %v9074_v21 = vadd.f32 %v1640_v38, %v8829_v54  ;;  %5224 = vperm.xlu1 %6561, %v8810_v4   ;;  %v9097_v38 = vld [vmem:[%s12255_s1 + $0x30] sm:$0xff]  ;;  %v9100_v22 = vpop.permute.xlu0 %4728  ;;  %v9102_v27 = vpop.f32.mrf.mxu1 }
 0x15e   :  { %v1642_v30 = vpop.f32.mrf.mxu0  ;;  %12543 = vst [vmem:[#allocation103_spill] sm:$0xff] %v9097_v38  ;;  %12544 = vst [vmem:[#allocation104_spill] sm:$0xff] %v9100_v22 }
 0x15f   :  { %12537 = vst [vmem:[#allocation97_spill] sm:$0xff] %v9074_v21  ;;  %v9087_v20 = vadd.f32 %v1642_v30, %v8836_v14  ;;  %5112 = vperm.xlu0 %6559, %v9097_v38   ;;  %v9108_v30 = vpop.permute.xlu1 %4848 }
 0x160   :  { %v9092_v54 = vpop.f32.mrf.mxu0  ;;  %12546 = vst [vmem:[#allocation106_spill] sm:$0xff] %v9108_v30 }
 0x161   :  { %12540 = vst [vmem:[#allocation100_spill] sm:$0xff] %v9087_v20  ;;  %12542 = vst [vmem:[#allocation102_spill] sm:$0xff] %v9092_v54  ;;  %5232 = vperm.xlu1 %6561, %v9079_v0   ;;  %v9116_v54 = vld [vmem:[%s12255_s1 + $0x40] sm:$0xff]  ;;  %v9119_v22 = vpop.permute.xlu0 %4736 }
 0x162   :  { %v1648_v21 = vpop.f32.mrf.mxu0  ;;  %12548 = vst [vmem:[#allocation108_spill] sm:$0xff] %v9119_v22 }
 0x163   :  { %v9105_v14 = vadd.f32 %v1648_v21, %v8848_v9  ;;  %5120 = vperm.xlu0 %6559, %v9116_v54   ;;  %v9121_v9 = vpop.f32.mrf.mxu1  ;;  %v9127_v30 = vpop.permute.xlu1 %4856 }
 0x164   :  { %v1650_v43 = vpop.f32.mrf.mxu0  ;;  %12550 = vst [vmem:[#allocation110_spill] sm:$0xff] %v9127_v30 }
 0x165   :  { %12545 = vst [vmem:[#allocation105_spill] sm:$0xff] %v9105_v14  ;;  %v9111_v20 = vadd.f32 %v1650_v43, %v8854_v42  ;;  %5240 = vperm.xlu1 %6561, %v9097_v38   ;;  %v9134_v43 = vld [vmem:[%s12255_s1 + $0x50] sm:$0xff]  ;;  %v9137_v22 = vpop.permute.xlu0 %4744  ;;  %v9139_v14 = vpop.f32.mrf.mxu1 }
 0x166   :  { %v1652_v23 = vpop.f32.mrf.mxu0  ;;  %12552 = vst [vmem:[#allocation112_spill] sm:$0xff] %v9134_v43  ;;  %12553 = vst [vmem:[#allocation113_spill] sm:$0xff] %v9137_v22 }
 0x167   :  { %12547 = vst [vmem:[#allocation107_spill] sm:$0xff] %v9111_v20  ;;  %v9124_v21 = vadd.f32 %v1652_v23, %v8861_v49  ;;  %5128 = vperm.xlu0 %6559, %v9134_v43   ;;  %v9153_v22 = vpop.f32.mrf.mxu1 }
 0x168   :  { %v9129_v42 = vpop.f32.mrf.mxu0  ;;  %v9145_v23 = vpop.permute.xlu1 %4896 }
 0x169   :  { %12549 = vst [vmem:[#allocation109_spill] sm:$0xff] %v9124_v21  ;;  %12551 = vst [vmem:[#allocation111_spill] sm:$0xff] %v9129_v42  ;;  %5248 = vperm.xlu1 %6561, %v9116_v54   ;;  %v9151_v38 = vpop.permute.xlu0 %4752 }
 0x16a   :  { %v1658_v20 = vpop.f32.mrf.mxu0  ;;  %12554 = vst [vmem:[#allocation114_spill] sm:$0xff] %v9145_v23  ;;  %12555 = vst [vmem:[#allocation115_spill] sm:$0xff] %v9151_v38 }
 0x16b   :  { %v9142_v49 = vadd.f32 %v1658_v20, %v8873_v58  ;;  %5136 = vperm.xlu0 %6559, %v8542_v41   ;;  %v9166_v41 = vpop.f32.mrf.mxu1 }
 0x16c   :  { %v1660_v30 = vpop.f32.mrf.mxu0  ;;  %v9159_v58 = vpop.permute.xlu1 %4904 }
 0x16d   :  { %v9148_v21 = vadd.f32 %v1660_v30, %v8879_v10  ;;  %5256 = vperm.xlu1 %6561, %v9134_v43   ;;  %12557 = vst [vmem:[#allocation117_spill] sm:$0xff] %v9159_v58  ;;  %v9164_v10 = vpop.permute.xlu0 %4760 }
 0x16e   :  { %v1662_v42 = vpop.f32.mrf.mxu0  ;;  %12558 = vst [vmem:[#allocation118_spill] sm:$0xff] %v9164_v10  ;;  %v12562_v10 = vmov 1  }
 0x16f   :  { %v9156_v0 = vadd.f32 %v1662_v42, %v8886_v5  ;;  %5144 = vperm.xlu0 %6559, %v8563_v51   ;;  %v9174_v5 = vld [vmem:[%s12255_s1 + $0x60] sm:$0xff] }
 0x170   :  { %v9161_v20 = vpop.f32.mrf.mxu0  ;;  %v9177_v42 = vpop.permute.xlu1 %4908 }
 0x171   :  { %12556 = vst [vmem:[#allocation116_spill] sm:$0xff] %v9156_v0  ;;  %5264 = vperm.xlu1 %6561, %v9174_v5   ;;  %12560 = vst [vmem:[#allocation120_spill] sm:$0xff] %v9177_v42  ;;  %v9183_v43 = vpop.permute.xlu0 %4800 }
 0x172   :  { %v1668_v30 = vpop.f32.mrf.mxu0  ;;  %12563 = vst [vmem:[#allocation122_spill] sm:$0xff] %v9183_v43 }
 0x173   :  { %v9169_v38 = vadd.f32 %v1668_v30, %v8898_v31  ;;  %6560 = vset.pattern.permute.xlu0 %v12562_v10  ;;  %v9186_v31 = vpop.f32.mrf.mxu1  ;;  %v1387_v10 = vadd.f32 %v8716_v18, %v8677_v46 }
 0x174   :  { %v1670_v58 = vpop.f32.mrf.mxu0  ;;  %5216 = vperm.xlu0 %6560, %v8597_v8  }
 0x175   :  { %12559 = vst [vmem:[#allocation119_spill] sm:$0xff] %v9169_v38  ;;  %v9180_v23 = vadd.f32 %v1670_v58, %v8905_v53  ;;  %5272 = vperm.xlu1 %6561, %v8563_v51   ;;  %v9192_v38 = vpop.permute.xlu1 %4916  ;;  %v9196_v53 = vpop.permute.xlu0 %4812 }
 0x176   :  { %v1672_v0 = vpop.f32.mrf.mxu0  ;;  %12565 = vst [vmem:[#allocation124_spill] sm:$0xff] %v9192_v38  ;;  %12566 = vst [vmem:[#allocation125_spill] sm:$0xff] %v9196_v53  ;;  %v9201_v43 = vpop.f32.mrf.mxu1  ;;  %v1389_v38 = vadd.f32 %v8733_v19, %v8690_v57 }
 0x177   :  { %12561 = vst [vmem:[#allocation121_spill] sm:$0xff] %v9180_v23  ;;  %v9189_v30 = vadd.f32 %v1672_v0, %v8913_v62  ;;  %v12279_v62 = vmov 3  }
 0x178   :  { %v9194_v42 = vpop.f32.mrf.mxu0  ;;  %5228 = vperm.xlu0 %6560, %v8926_v11   ;;  %v1502_v19 = vadd.f32 %v8742_v63, %v1389_v38  ;;  %v1724_v38 = vadd.f32 %v8975_v3, %v8969_v7 }
 0x179   :  { %12564 = vst [vmem:[#allocation123_spill] sm:$0xff] %v9189_v30  ;;  %6562 = vset.pattern.permute.xlu1 %v12279_v62  ;;  %v9207_v51 = vpop.permute.xlu1 %4924  ;;  %v9215_v18 = vpop.permute.xlu0 %4820 }
 0x17a   :  { %v1678_v58 = vpop.f32.mrf.mxu0  ;;  %12567 = vst [vmem:[#allocation126_spill] sm:$0xff] %v9207_v51  ;;  %5296 = vperm.xlu1 %6562, %v8597_v8   ;;  %12568 = vst [vmem:[#allocation127_spill] sm:$0xff] %v9215_v18 }
 0x17b   :  { %v9204_v23 = vadd.f32 %v1678_v58, %v8930_v2  ;;  %v1500_v2 = vadd.f32 %v8735_v15, %v1387_v10  ;;  %v9219_v58 = vpop.f32.mrf.mxu1  ;;  %v1397_v15 = vadd.f32 %v8766_v29, %v8677_v46 }
 0x17c   :  { %v1680_v0 = vpop.f32.mrf.mxu0  ;;  %5236 = vperm.xlu0 %6560, %v8945_v35  }
 0x17d   :  { %v9213_v53 = vadd.f32 %v1680_v0, %v8936_v44  ;;  %v9224_v51 = vpop.permute.xlu1 %4932  ;;  %v1613_v44 = vadd.f32 %v8973_v55, %v1500_v2  ;;  %v9231_v0 = vpop.permute.xlu0 %4828  ;;  %v1399_v55 = vadd.f32 %v8777_v37, %v8690_v57 }
 0x17e   :  { %v1682_v30 = vpop.f32.mrf.mxu0  ;;  %12569 = vst [vmem:[#allocation128_spill] sm:$0xff] %v9224_v51  ;;  %5304 = vperm.xlu1 %6562, %v8810_v4   ;;  %12570 = vst [vmem:[#allocation129_spill] sm:$0xff] %v9231_v0  ;;  %v9239_v10 = vpop.f32.mrf.mxu1 }
 0x17f   :  { %v9222_v62 = vadd.f32 %v1682_v30, %v8948_v50  ;;  %v1722_v50 = vadd.f32 %v8960_v52, %v8956_v17  ;;  %v1615_v30 = vadd.f32 %v8980_v12, %v1502_v19  ;;  %v1726_v46 = vadd.f32 %v8982_v45, %v1613_v44 }
 0x180   :  { %v9226_v8 = vpop.f32.mrf.mxu0  ;;  %5244 = vperm.xlu0 %6560, %v8965_v34   ;;  %v1510_v17 = vadd.f32 %v8779_v40, %v1397_v15  ;;  %v9254_v19 = vpop.f32.mrf.mxu1  ;;  %v1512_v7 = vadd.f32 %v8786_v32, %v1399_v55  ;;  %v1732_v40 = vadd.f32 %v9009_v61, %v8994_v1  ;;  %v1734_v61 = vadd.f32 %v9026_v36, %v9007_v33  ;;  %v7002_v33 = vld [vmem:[%s12257_s4 + $0x1c4] ss:$36 sps:$4 sm:$0xff]  }
 0x181   :  { %v9241_v51 = vpop.permute.xlu1 %4940  ;;  %v9249_v2 = vpop.permute.xlu0 %4836  ;;  %v1728_v12 = vadd.f32 %v8990_v24, %v1615_v30 }
 0x182   :  { %v1834_v18 = vpop.f32.mrf.mxu0  ;;  %12571 = vst [vmem:[#allocation130_spill] sm:$0xff] %v9241_v51  ;;  %5308 = vperm.xlu1 %6562, %v8926_v11   ;;  %12572 = vst [vmem:[#allocation131_spill] sm:$0xff] %v9249_v2  ;;  %v1623_v45 = vadd.f32 %v9011_v39, %v1510_v17  ;;  %v1625_v15 = vadd.f32 %v9018_v56, %v1512_v7  ;;  %v9267_v30 = vpop.f32.mrf.mxu1 }
 0x183   :  { %v1835_v29 = vadd.f32 %v1834_v18, %v1722_v50 }
 0x184   :  { %v1836_v63 = vpop.f32.mrf.mxu0  ;;  %5252 = vperm.xlu0 %6560, %v8987_v60   ;;  %v1736_v1 = vadd.f32 %v9046_v16, %v1623_v45  ;;  %v9294_v36 = vpop.f32.mrf.mxu1 }
 0x185   :  { %v1837_v37 = vadd.f32 %v1836_v63, %v1724_v38  ;;  %v9256_v0 = vpop.permute.xlu1 %4948  ;;  %v1913_v18 = vmax.f32 %v1835_v29, 0.0  ;;  %v9261_v2 = vpop.permute.xlu0 %4844  ;;  %v6997_v29 = vld [vmem:[%s12257_s4 + $0x210] ss:$36 sps:$4 sm:$0xff]  }
 0x186   :  { %v1838_v52 = vpop.f32.mrf.mxu0  ;;  %12573 = vst [vmem:[#allocation132_spill] sm:$0xff] %v9256_v0  ;;  %5316 = vperm.xlu1 %6562, %v8945_v35   ;;  %12574 = vst [vmem:[#allocation133_spill] sm:$0xff] %v9261_v2  ;;  %v9838_v2 = vld [vmem:[%s12255_s1 + $0x30] sm:$0xff] }
 0x187   :  { %v1839_v51 = vadd.f32 %v1838_v52, %v1726_v46  ;;  %v1914_v32 = vmax.f32 %v1837_v37, 0.0  ;;  %v6994_v46 = vld [vmem:[%s12257_s4 + $0x208] ss:$36 sps:$4 sm:$0xff]  }
 0x188   :  { %v1840_v3 = vpop.f32.mrf.mxu0  ;;  %5260 = vperm.xlu0 %6560, %v9003_v48  }
 0x189   :  { %v1915_v44 = vmax.f32 %v1839_v51, 0.0  ;;  %v1841_v50 = vadd.f32 %v1840_v3, %v1728_v12  ;;  %v9271_v39 = vpop.permute.xlu1 %4956  ;;  %v1409_v51 = vadd.f32 %v8803_v6, %v8690_v57  ;;  %v9287_v6 = vpop.permute.xlu0 %4852  ;;  %v7005_v12 = vld [vmem:[%s12257_s4 + $0x1cc] ss:$36 sps:$4 sm:$0xff]  }
 0x18a   :  { %v1844_v24 = vpop.f32.mrf.mxu0  ;;  %12575 = vst [vmem:[#allocation134_spill] sm:$0xff] %v9271_v39  ;;  %5324 = vperm.xlu1 %6562, %v8965_v34   ;;  %12576 = vst [vmem:[#allocation135_spill] sm:$0xff] %v9287_v6  ;;  %v1738_v34 = vadd.f32 %v9065_v28, %v1625_v15  ;;  %v7008_v15 = vld [vmem:[%s12257_s4 + $0x17c] ss:$36 sps:$4 sm:$0xff]  }
 0x18b   :  { %v9269_v55 = vpack.c.bf16 %v1915_v44, %v1913_v18  ;;  %v1916_v35 = vmax.f32 %v1841_v50, 0.0  ;;  %v1845_v38 = vadd.f32 %v1844_v24, %v1732_v40  ;;  %v1522_v28 = vadd.f32 %v8815_v26, %v1409_v51  ;;  %v7000_v44 = vld [vmem:[%s12257_s4 + $0x1c0] ss:$36 sps:$4 sm:$0xff]   ;;  %v7003_v50 = vld [vmem:[%s12257_s4 + $0x1c8] ss:$36 sps:$4 sm:$0xff]  }
 0x18c   :  { %v1846_v63 = vpop.f32.mrf.mxu0  ;;  %5268 = vperm.xlu0 %6560, %v9023_v47   ;;  %v1742_v24 = vadd.f32 %v9084_v25, %v9030_v59  ;;  %v12580_v59 = vld [vmem:[#allocation53_spill] sm:$0xff]  ;;  %v12581_v25 = vld [vmem:[#allocation90_spill] sm:$0xff] }
 0x18d   :  { %v9279_v56 = vpack.c.bf16 %v1916_v35, %v1914_v32  ;;  %v1847_v16 = vadd.f32 %v1846_v63, %v1734_v61  ;;  %v9303_v7 = vpop.permute.xlu1 %4996  ;;  %v1917_v3 = vmax.f32 %v1845_v38, 0.0  ;;  %v9312_v40 = vpop.permute.xlu0 %4860  ;;  %v1635_v32 = vadd.f32 %v9053_v13, %v1522_v28 }
 0x18e   :  { %v1848_v52 = vpop.f32.mrf.mxu0  ;;  %12577 = vst [vmem:[#allocation136_spill] sm:$0xff] %v9303_v7  ;;  %12578 = vst [vmem:[#allocation137_spill] sm:$0xff] %v9312_v40  ;;  %5332 = vperm.xlu1 %6562, %v8987_v60   ;;  %v9321_v35 = vpop.f32.mrf.mxu1  ;;  %v1419_v60 = vadd.f32 %v12580_v59, %v8690_v57  ;;  %v1744_v38 = vadd.f32 %v9102_v27, %v12581_v25  ;;  %v7006_v27 = vld [vmem:[%s12257_s4 + $0x178] ss:$36 sps:$4 sm:$0xff]  }
 0x18f   :  { %v1849_v17 = vadd.f32 %v1848_v52, %v1736_v1  ;;  %2938 = vmatprep.mubr.bf16.mxu1 %v9279_v56  ;;  %3051 = vmatprep.mubr.bf16.mxu0 %v9279_v56  ;;  %v1918_v51 = vmax.f32 %v1847_v16, 0.0  ;;  %v12579_v1 = vld [vmem:[#allocation89_spill] sm:$0xff]  ;;  %v12583_v52 = vld [vmem:[#allocation91_spill] sm:$0xff] }
 0x190   :  { %v1850_v37 = vpop.f32.mrf.mxu0  ;;  %2939 = vmatmul.mubr.bf16.vlgmr.msra.gmra.mxu1 %v9269_v55  ;;  %3052 = vmatmul.mubr.bf16.vlgmr.msra.gmra.mxu0 %v9269_v55  ;;  %v1746_v13 = vadd.f32 %v9121_v9, %v12583_v52  ;;  %v7011_v16 = vld [vmem:[%s12257_s4 + $0x184] ss:$36 sps:$4 sm:$0xff]   ;;  %v9349_v28 = vpop.f32.mrf.mxu1 }
 0x191   :  { %v1919_v45 = vmax.f32 %v1849_v17, 0.0  ;;  %v1851_v18 = vadd.f32 %v1850_v37, %v1738_v34  ;;  %3133 = vmatpush1.bf16.msra.mxu1 %v6994_v46  ;;  %3246 = vmatpush1.bf16.msra.mxu0 %v6997_v29  ;;  %v9330_v29 = vpop.permute.xlu1 %5000  ;;  %v7009_v9 = vld [vmem:[%s12257_s4 + $0x180] ss:$36 sps:$4 sm:$0xff]   ;;  %v1748_v37 = vadd.f32 %v9139_v14, %v1635_v32 }
 0x192   :  { %v1854_v26 = vpop.f32.mrf.mxu0  ;;  %3134 = vmatprep.subr.bf16.mxu1 %v7002_v33  ;;  %3247 = vmatprep.subr.bf16.mxu0 %v7005_v12  ;;  %12582 = vst [vmem:[#allocation89_spill] sm:$0xff] %v9330_v29  ;;  %v7017_v14 = vld [vmem:[%s12257_s4 + $0x13c] ss:$36 sps:$4 sm:$0xff]  }
 0x193   :  { %v9323_v63 = vpack.c.bf16 %v1919_v45, %v1917_v3  ;;  %v1920_v61 = vmax.f32 %v1851_v18, 0.0  ;;  %5276 = vperm.xlu0 %6560, %v12579_v1   ;;  %v1855_v34 = vadd.f32 %v1854_v26, %v1742_v24  ;;  %5340 = vperm.xlu1 %6562, %v9003_v48   ;;  %v7014_v18 = vld [vmem:[%s12257_s4 + $0x134] ss:$36 sps:$4 sm:$0xff]   ;;  %v12590_v52 = vld [vmem:[#allocation102_spill] sm:$0xff] }
 0x194   :  { %v1856_v46 = vpop.f32.mrf.mxu0  ;;  %v9346_v12 = vpop.permute.xlu0 %4900 }
 0x195   :  { %v9334_v33 = vpack.c.bf16 %v1920_v61, %v1918_v51  ;;  %3135 = vmatpush1.bf16.msra.mxu1 %v7000_v44  ;;  %3248 = vmatpush1.bf16.msra.mxu0 %v7003_v50  ;;  %12584 = vst [vmem:[#allocation53_spill] sm:$0xff] %v9346_v12  ;;  %v1857_v3 = vadd.f32 %v1856_v46, %v1744_v38  ;;  %v9361_v44 = vpop.permute.xlu1 %5008  ;;  %v12586_v50 = vld [vmem:[#allocation55_spill] sm:$0xff]  ;;  %v1921_v26 = vmax.f32 %v1855_v34, 0.0  ;;  %v12587_v51 = vmov 3   ;;  %v7012_v38 = vld [vmem:[%s12257_s4 + $0x130] ss:$36 sps:$4 sm:$0xff]   ;;  %v9376_v34 = vpop.f32.mrf.mxu1 }
 0x196   :  { %v1858_v17 = vpop.f32.mrf.mxu0  ;;  %3136 = vmatprep.subr.bf16.mxu1 %v7008_v15  ;;  %12585 = vst [vmem:[#allocation90_spill] sm:$0xff] %v9361_v44  ;;  %v1532_v24 = vadd.f32 %v12586_v50, %v1419_v60  ;;  %3249 = vmatprep.subr.bf16.mxu0 %v7011_v16  ;;  %v12588_v61 = vld [vmem:[#allocation95_spill] sm:$0xff]  ;;  %v7015_v60 = vld [vmem:[%s12257_s4 + $0x138] ss:$36 sps:$4 sm:$0xff]  }
 0x197   :  { %v1859_v45 = vadd.f32 %v1858_v17, %v1746_v13  ;;  %2948 = vmatprep.mubr.bf16.mxu1 %v9334_v33  ;;  %3061 = vmatprep.mubr.bf16.mxu0 %v9334_v33  ;;  %v1752_v59 = vadd.f32 %v9153_v22, %v12588_v61  ;;  %v1922_v16 = vmax.f32 %v1857_v3, 0.0  ;;  %v12594_v50 = vld [vmem:[#allocation97_spill] sm:$0xff]  ;;  %v9401_v61 = vpop.f32.mrf.mxu1 }
 0x198   :  { %v1860_v48 = vpop.f32.mrf.mxu0  ;;  %2949 = vmatmul.mubr.bf16.gmra.mxu1 %v9323_v63  ;;  %3062 = vmatmul.mubr.bf16.gmra.mxu0 %v9323_v63  ;;  %v9373_v46 = vpop.permute.xlu0 %4912  ;;  %v1645_v13 = vadd.f32 %v12590_v52, %v1532_v24  ;;  %v1754_v24 = vadd.f32 %v9166_v41, %v12594_v50  ;;  %v12600_v50 = vld [vmem:[#allocation105_spill] sm:$0xff] }
 0x199   :  { %v1923_v15 = vmax.f32 %v1859_v45, 0.0  ;;  %v1861_v32 = vadd.f32 %v1860_v48, %v1748_v37  ;;  %6563 = vset.pattern.permute.xlu0 %v12587_v51  ;;  %3137 = vmatpush1.bf16.msra.mxu1 %v7006_v27  ;;  %12589 = vst [vmem:[#allocation91_spill] sm:$0xff] %v9373_v46  ;;  %v12591_v27 = vld [vmem:[#allocation93_spill] sm:$0xff]  ;;  %v9384_v48 = vpop.permute.xlu1 %5016  ;;  %v12595_v51 = vld [vmem:[#allocation100_spill] sm:$0xff] }
 0x19a   :  { %3250 = vmatpush1.bf16.msra.mxu0 %v7009_v9  ;;  %v1864_v25 = vpop.f32.mrf.mxu0  ;;  %5348 = vperm.xlu1 %6562, %v9023_v47   ;;  %v12592_v9 = vld [vmem:[#allocation59_spill] sm:$0xff]  ;;  %12593 = vst [vmem:[#allocation55_spill] sm:$0xff] %v9384_v48  ;;  %v1756_v3 = vadd.f32 %v9186_v31, %v12595_v51  ;;  %v1758_v41 = vadd.f32 %v9201_v43, %v1645_v13  ;;  %v12599_v13 = vld [vmem:[#allocation61_spill] sm:$0xff] }
 0x19b   :  { %v9378_v17 = vpack.c.bf16 %v1923_v15, %v1921_v26  ;;  %v1924_v22 = vmax.f32 %v1861_v32, 0.0  ;;  %5300 = vperm.xlu0 %6563, %v12591_v27   ;;  %v1429_v37 = vadd.f32 %v12592_v9, %v8690_v57  ;;  %3138 = vmatprep.subr.bf16.mxu1 %v7014_v18  ;;  %v1865_v15 = vadd.f32 %v1864_v25, %v1752_v59  ;;  %v7020_v32 = vld [vmem:[%s12257_s4 + $0xec] ss:$36 sps:$4 sm:$0xff]   ;;  %v7023_v18 = vld [vmem:[%s12257_s4 + $0xf4] ss:$36 sps:$4 sm:$0xff]   ;;  %v12597_v59 = vld [vmem:[#allocation98_spill] sm:$0xff] }
 0x19c   :  { %v1866_v45 = vpop.f32.mrf.mxu0  ;;  %3251 = vmatprep.subr.bf16.mxu0 %v7017_v14  ;;  %v9398_v14 = vpop.permute.xlu0 %4920 }
 0x19d   :  { %v9390_v26 = vpack.c.bf16 %v1924_v22, %v1922_v16  ;;  %3139 = vmatpush1.bf16.msra.mxu1 %v7012_v38  ;;  %12596 = vst [vmem:[#allocation95_spill] sm:$0xff] %v9398_v14  ;;  %v1867_v31 = vadd.f32 %v1866_v45, %v1754_v24  ;;  %v7018_v38 = vld [vmem:[%s12257_s4 + $0xe8] ss:$36 sps:$4 sm:$0xff]   ;;  %v9413_v52 = vpop.permute.xlu1 %5024  ;;  %v1925_v16 = vmax.f32 %v1865_v15, 0.0  ;;  %v1762_v24 = vadd.f32 %v9219_v58, %v12600_v50  ;;  %v7024_v58 = vld [vmem:[%s12257_s4 + $0xa0] ss:$36 sps:$4 sm:$0xff]  }
 0x19e   :  { %3252 = vmatpush1.bf16.msra.mxu0 %v7015_v60  ;;  %v1868_v47 = vpop.f32.mrf.mxu0  ;;  %5356 = vperm.xlu1 %6562, %v12579_v1   ;;  %v7021_v60 = vld [vmem:[%s12257_s4 + $0xf0] ss:$36 sps:$4 sm:$0xff]   ;;  %12598 = vst [vmem:[#allocation102_spill] sm:$0xff] %v9413_v52  ;;  %v1542_v1 = vadd.f32 %v12599_v13, %v1429_v37  ;;  %v7026_v45 = vld [vmem:[%s12257_s4 + $0xa4] ss:$36 sps:$4 sm:$0xff]  }
 0x19f   :  { %5312 = vperm.xlu0 %6563, %v12597_v59   ;;  %v1869_v25 = vadd.f32 %v1868_v47, %v1756_v3  ;;  %2958 = vmatprep.mubr.bf16.mxu1 %v9390_v26  ;;  %v7029_v37 = vld [vmem:[%s12257_s4 + $0xac] ss:$36 sps:$4 sm:$0xff]  }
 0x1a0   :  { %3071 = vmatprep.mubr.bf16.mxu0 %v9390_v26  ;;  %v1870_v43 = vpop.f32.mrf.mxu0  ;;  %2959 = vmatmul.mubr.bf16.gmra.mxu1 %v9378_v17  ;;  %v9426_v3 = vpop.permute.xlu0 %4928  ;;  %v12602_v15 = vld [vmem:[#allocation111_spill] sm:$0xff] }
 0x1a1   :  { %v1927_v22 = vmax.f32 %v1869_v25, 0.0  ;;  %v1871_v9 = vadd.f32 %v1870_v43, %v1758_v41  ;;  %3072 = vmatmul.mubr.bf16.gmra.mxu0 %v9378_v17  ;;  %3140 = vmatprep.subr.bf16.mxu1 %v7020_v32  ;;  %12601 = vst [vmem:[#allocation93_spill] sm:$0xff] %v9426_v3  ;;  %v1655_v47 = vadd.f32 %v12602_v15, %v1542_v1  ;;  %v9429_v41 = vpop.f32.mrf.mxu1  ;;  %v1926_v25 = vmax.f32 %v1867_v31, 0.0  ;;  %v7027_v32 = vld [vmem:[%s12257_s4 + $0xa8] ss:$36 sps:$4 sm:$0xff]  }
 0x1a2   :  { %3253 = vmatprep.subr.bf16.mxu0 %v7023_v18  ;;  %v1874_v51 = vpop.f32.mrf.mxu0  ;;  %3141 = vmatpush1.bf16.msra.mxu1 %v7018_v38  ;;  %v12603_v18 = vld [vmem:[#allocation65_spill] sm:$0xff]  ;;  %v12604_v1 = vld [vmem:[#allocation107_spill] sm:$0xff]  ;;  %v12280_v31 = vmov 5  }
 0x1a3   :  { %v9431_v43 = vpack.c.bf16 %v1927_v22, %v1925_v16  ;;  %v1928_v13 = vmax.f32 %v1871_v9, 0.0  ;;  %3254 = vmatpush1.bf16.msra.mxu0 %v7021_v60  ;;  %v1439_v50 = vadd.f32 %v12603_v18, %v8690_v57  ;;  %v1764_v15 = vadd.f32 %v9239_v10, %v12604_v1  ;;  %6565 = vset.pattern.permute.xlu1 %v12280_v31  ;;  %v12605_v16 = vld [vmem:[#allocation103_spill] sm:$0xff]  ;;  %v9445_v60 = vpop.permute.xlu1 %5032  ;;  %v12607_v22 = vld [vmem:[#allocation109_spill] sm:$0xff]  ;;  %v9455_v31 = vpop.f32.mrf.mxu1 }
 0x1a4   :  { %5320 = vperm.xlu0 %6563, %v12605_v16   ;;  %v1876_v38 = vpop.f32.mrf.mxu0  ;;  %12606 = vst [vmem:[#allocation59_spill] sm:$0xff] %v9445_v60  ;;  %v1766_v9 = vadd.f32 %v9254_v19, %v12607_v22  ;;  %v1875_v40 = vadd.f32 %v1874_v51, %v1762_v24  ;;  %5396 = vperm.xlu1 %6565, %v12591_v27   ;;  %v9452_v10 = vpop.permute.xlu0 %4936  ;;  %v7032_v19 = vld [vmem:[%s12257_s4 + $0x5c] ss:$36 sps:$4 sm:$0xff]   ;;  %v7035_v27 = vld [vmem:[%s12257_s4 + $0x64] ss:$36 sps:$4 sm:$0xff]  }
 0x1a5   :  { %v9449_v39 = vpack.c.bf16 %v1928_v13, %v1926_v25  ;;  %3142 = vmatprep.subr.bf16.mxu1 %v7026_v45  ;;  %3255 = vmatprep.subr.bf16.mxu0 %v7029_v37  ;;  %12608 = vst [vmem:[#allocation97_spill] sm:$0xff] %v9452_v10  ;;  %v1768_v1 = vadd.f32 %v9267_v30, %v1655_v47  ;;  %v7030_v30 = vld [vmem:[%s12257_s4 + $0x58] ss:$36 sps:$4 sm:$0xff]   ;;  %v7033_v24 = vld [vmem:[%s12257_s4 + $0x60] ss:$36 sps:$4 sm:$0xff]   ;;  %v12610_v37 = vld [vmem:[#allocation67_spill] sm:$0xff] }
 0x1a6   :  { %v1878_v18 = vpop.f32.mrf.mxu0  ;;  %v1877_v0 = vadd.f32 %v1876_v38, %v1764_v15  ;;  %3143 = vmatpush1.bf16.msra.mxu1 %v7024_v58  ;;  %v1552_v47 = vadd.f32 %v12610_v37, %v1439_v50  ;;  %v1929_v25 = vmax.f32 %v1875_v40, 0.0  ;;  %v7038_v38 = vld [vmem:[%s12257_s4 + $0x14] ss:$36 sps:$4 sm:$0xff]   ;;  %v9489_v50 = vpop.f32.mrf.mxu1  ;;  %v9859_v10 = vld [vmem:[%s12255_s1 + $0x40] sm:$0xff] }
 0x1a7   :  { %3256 = vmatpush1.bf16.msra.mxu0 %v7027_v32  ;;  %v1879_v6 = vadd.f32 %v1878_v18, %v1766_v9  ;;  %2968 = vmatprep.mubr.bf16.mxu1 %v9449_v39  ;;  %v9471_v51 = vpop.permute.xlu1 %5040  ;;  %v1772_v32 = vadd.f32 %v9294_v36, %v9142_v49  ;;  %v12612_v9 = vld [vmem:[#allocation71_spill] sm:$0xff]  ;;  %v7101_v60 = vld [vmem:[%s12257_s4 + $0xb0] ss:$36 sps:$4 sm:$0xff]  }
 0x1a8   :  { %5328 = vperm.xlu0 %6563, %v9116_v54   ;;  %v1880_v45 = vpop.f32.mrf.mxu0  ;;  %12609 = vst [vmem:[#allocation100_spill] sm:$0xff] %v9471_v51  ;;  %5400 = vperm.xlu1 %6565, %v8810_v4   ;;  %v9486_v4 = vpop.permute.xlu0 %4944  ;;  %v1665_v40 = vadd.f32 %v9161_v20, %v1552_v47  ;;  %v1930_v49 = vmax.f32 %v1877_v0, 0.0  ;;  %v1449_v18 = vadd.f32 %v12612_v9, %v8690_v57  ;;  %v7036_v20 = vld [vmem:[%s12257_s4 + $0x10] ss:$36 sps:$4 sm:$0xff]   ;;  %v7039_v0 = vld [vmem:[%s12257_s4 + $0x18] ss:$36 sps:$4 sm:$0xff]  }
 0x1a9   :  { %v1931_v13 = vmax.f32 %v1879_v6, 0.0  ;;  %3081 = vmatprep.mubr.bf16.mxu0 %v9449_v39  ;;  %v1881_v58 = vadd.f32 %v1880_v45, %v1768_v1  ;;  %2969 = vmatmul.mubr.bf16.gmra.mxu1 %v9431_v43  ;;  %v7041_v6 = vld [vmem:[%s12257_s4 + $0x1c] ss:$36 sps:$4 sm:$0xff]   ;;  %12611 = vst [vmem:[#allocation98_spill] sm:$0xff] %v9486_v4  ;;  %v1774_v1 = vadd.f32 %v9321_v35, %v9148_v21 }
 0x1aa   :  { %3082 = vmatmul.mubr.bf16.gmra.mxu0 %v9431_v43  ;;  %v1884_v15 = vpop.f32.mrf.mxu0  ;;  %3144 = vmatprep.subr.bf16.mxu1 %v7032_v19  ;;  %v12614_v19 = vld [vmem:[#allocation116_spill] sm:$0xff]  ;;  %v7097_v51 = vld [vmem:[%s12257_s4 + $0x140] ss:$36 sps:$4 sm:$0xff]  }
 0x1ab   :  { %v9491_v36 = vpack.c.bf16 %v1931_v13, %v1929_v25  ;;  %v1932_v22 = vmax.f32 %v1881_v58, 0.0  ;;  %3257 = vmatprep.subr.bf16.mxu0 %v7035_v27  ;;  %3145 = vmatpush1.bf16.msra.mxu1 %v7030_v30  ;;  %v9503_v37 = vpop.permute.xlu1 %5048  ;;  %v1776_v27 = vadd.f32 %v9349_v28, %v12614_v19  ;;  %v12615_v25 = vld [vmem:[#allocation112_spill] sm:$0xff]  ;;  %v1885_v21 = vadd.f32 %v1884_v15, %v1772_v32  ;;  %v9522_v32 = vpop.f32.mrf.mxu1  ;;  %v9821_v4 = vld [vmem:[%s12255_s1 + $0x20] sm:$0xff] }
 0x1ac   :  { %3258 = vmatpush1.bf16.msra.mxu0 %v7033_v24  ;;  %v1886_v45 = vpop.f32.mrf.mxu0  ;;  %12613 = vst [vmem:[#allocation61_spill] sm:$0xff] %v9503_v37  ;;  %5336 = vperm.xlu0 %6563, %v12615_v25   ;;  %v9511_v30 = vpop.permute.xlu0 %4952  ;;  %v1778_v24 = vadd.f32 %v9376_v34, %v1665_v40  ;;  %v7044_v28 = vld [vmem:[%s12257_s4 + $0x44c] ss:$36 sps:$4 sm:$0xff]  }
 0x1ad   :  { %v9507_v47 = vpack.c.bf16 %v1932_v22, %v1930_v49  ;;  %5408 = vperm.xlu1 %6565, %v12597_v59   ;;  %3146 = vmatprep.subr.bf16.mxu1 %v7038_v38  ;;  %12616 = vst [vmem:[#allocation105_spill] sm:$0xff] %v9511_v30  ;;  %v1887_v13 = vadd.f32 %v1886_v45, %v1774_v1  ;;  %v7047_v59 = vld [vmem:[%s12257_s4 + $0x454] ss:$36 sps:$4 sm:$0xff]   ;;  %v7042_v34 = vld [vmem:[%s12257_s4 + $0x448] ss:$36 sps:$4 sm:$0xff]   ;;  %v1933_v49 = vmax.f32 %v1885_v21, 0.0 }
 0x1ae   :  { %3259 = vmatprep.subr.bf16.mxu0 %v7041_v6  ;;  %v1888_v35 = vpop.f32.mrf.mxu0  ;;  %v7045_v38 = vld [vmem:[%s12257_s4 + $0x450] ss:$36 sps:$4 sm:$0xff]   ;;  %v12617_v6 = vld [vmem:[#allocation73_spill] sm:$0xff]  ;;  %v12619_v45 = vld [vmem:[#allocation119_spill] sm:$0xff] }
 0x1af   :  { %v1889_v58 = vadd.f32 %v1888_v35, %v1776_v27  ;;  %2978 = vmatprep.mubr.bf16.mxu1 %v9507_v47  ;;  %3091 = vmatprep.mubr.bf16.mxu0 %v9507_v47  ;;  %v1562_v40 = vadd.f32 %v12617_v6, %v1449_v18  ;;  %v9533_v1 = vpop.permute.xlu1 %5088  ;;  %v7050_v18 = vld [vmem:[%s12257_s4 + $0x404] ss:$36 sps:$4 sm:$0xff]   ;;  %v7053_v19 = vld [vmem:[%s12257_s4 + $0x40c] ss:$36 sps:$4 sm:$0xff]   ;;  %v1934_v27 = vmax.f32 %v1887_v13, 0.0 }
 0x1b0   :  { %3147 = vmatpush1.bf16.msra.mxu1 %v7036_v20  ;;  %3260 = vmatpush1.bf16.msra.mxu0 %v7039_v0  ;;  %v1890_v15 = vpop.f32.mrf.mxu0  ;;  %12618 = vst [vmem:[#allocation111_spill] sm:$0xff] %v9533_v1  ;;  %v1782_v20 = vadd.f32 %v9401_v61, %v12619_v45  ;;  %v1793_v45 = vpop.f32.mrf.mxu1  ;;  %v7051_v13 = vld [vmem:[%s12257_s4 + $0x408] ss:$36 sps:$4 sm:$0xff]  }
 0x1b1   :  { %5344 = vperm.xlu0 %6563, %v9174_v5   ;;  %v1935_v22 = vmax.f32 %v1889_v58, 0.0  ;;  %5416 = vperm.xlu1 %6565, %v12605_v16   ;;  %v1891_v9 = vadd.f32 %v1890_v15, %v1778_v24  ;;  %v1675_v16 = vadd.f32 %v9194_v42, %v1562_v40  ;;  %v9548_v61 = vpop.permute.xlu0 %4992  ;;  %v12621_v24 = vld [vmem:[#allocation77_spill] sm:$0xff]  ;;  %v7048_v42 = vld [vmem:[%s12257_s4 + $0x400] ss:$36 sps:$4 sm:$0xff]   ;;  %v7095_v30 = vld [vmem:[%s12257_s4 + $0x188] ss:$36 sps:$4 sm:$0xff]  }
 0x1b2   :  { %2979 = vmatmul.mubr.bf16.gmra.mxu1 %v9491_v36  ;;  %3092 = vmatmul.mubr.bf16.gmra.mxu0 %v9491_v36  ;;  %v1894_v0 = vpop.f32.mrf.mxu0  ;;  %12620 = vst [vmem:[#allocation65_spill] sm:$0xff] %v9548_v61  ;;  %v1459_v58 = vadd.f32 %v12621_v24, %v8690_v57  ;;  %v12622_v15 = vld [vmem:[#allocation121_spill] sm:$0xff]  ;;  %v9567_v57 = vld [vmem:[%s12255_s1 + $0x70] sm:$0xff] }
 0x1b3   :  { %v9546_v21 = vpack.c.bf16 %v1935_v22, %v1933_v49  ;;  %v1936_v35 = vmax.f32 %v1891_v9, 0.0  ;;  %3148 = vmatprep.subr.bf16.mxu1 %v7044_v28  ;;  %3261 = vmatprep.subr.bf16.mxu0 %v7047_v59  ;;  %v1784_v6 = vadd.f32 %v9429_v41, %v12622_v15  ;;  %v12623_v28 = vld [vmem:[#allocation123_spill] sm:$0xff]  ;;  %v1895_v41 = vadd.f32 %v1894_v0, %v1782_v20  ;;  %v7056_v9 = vld [vmem:[%s12257_s4 + $0x3bc] ss:$36 sps:$4 sm:$0xff]  }
 0x1b4   :  { %3149 = vmatpush2.bf16.msra.mxu1 %v7042_v34  ;;  %3262 = vmatpush2.bf16.msra.mxu0 %v7045_v38  ;;  %v1896_v37 = vpop.f32.mrf.mxu0  ;;  %v1786_v59 = vadd.f32 %v9455_v31, %v12623_v28  ;;  %v9571_v34 = vpop.permute.xlu1 %5096  ;;  %v1788_v49 = vadd.f32 %v9489_v50, %v1675_v16  ;;  %v7054_v50 = vld [vmem:[%s12257_s4 + $0x3b8] ss:$36 sps:$4 sm:$0xff]   ;;  %v7057_v15 = vld [vmem:[%s12257_s4 + $0x3c0] ss:$36 sps:$4 sm:$0xff]  }
 0x1b5   :  { %v9562_v40 = vpack.c.bf16 %v1936_v35, %v1934_v27  ;;  %5352 = vperm.xlu0 %6563, %v9567_v57   ;;  %5424 = vperm.xlu1 %6565, %v9116_v54   ;;  %12624 = vst [vmem:[#allocation107_spill] sm:$0xff] %v9571_v34  ;;  %v1897_v31 = vadd.f32 %v1896_v37, %v1784_v6  ;;  %v9579_v20 = vpop.permute.xlu0 %5004  ;;  %v1795_v54 = vpop.f32.mrf.mxu1  ;;  %v7059_v37 = vld [vmem:[%s12257_s4 + $0x3c4] ss:$36 sps:$4 sm:$0xff]   ;;  %v1937_v16 = vmax.f32 %v1895_v41, 0.0  ;;  %v12627_v27 = vmov 5  }
 0x1b6   :  { %3150 = vmatprep.subr.bf16.mxu1 %v7050_v18  ;;  %3263 = vmatprep.subr.bf16.mxu0 %v7053_v19  ;;  %v1898_v38 = vpop.f32.mrf.mxu0  ;;  %12625 = vst [vmem:[#allocation103_spill] sm:$0xff] %v9579_v20  ;;  %v12626_v18 = vld [vmem:[#allocation79_spill] sm:$0xff] }
 0x1b7   :  { %v1899_v22 = vadd.f32 %v1898_v38, %v1786_v59  ;;  %2988 = vmatprep.mubr.bf16.mxu1 %v9562_v40  ;;  %3101 = vmatprep.mubr.bf16.mxu0 %v9562_v40  ;;  %v1572_v19 = vadd.f32 %v12626_v18, %v1459_v58  ;;  %v9600_v58 = vld [vmem:[%s12255_s1] sm:$0xff]  ;;  %v1938_v59 = vmax.f32 %v1897_v31, 0.0  ;;  %v1796_v31 = vadd.f32 %v1795_v54, %v9222_v62 }
 0x1b8   :  { %3151 = vmatpush2.bf16.msra.mxu1 %v7048_v42  ;;  %3264 = vmatpush2.bf16.msra.mxu0 %v7051_v13  ;;  %v1900_v0 = vpop.f32.mrf.mxu0  ;;  %v9593_v6 = vpop.permute.xlu1 %5100  ;;  %v1792_v42 = vadd.f32 %v9522_v32, %v9204_v23  ;;  %v7062_v13 = vld [vmem:[%s12257_s4 + $0x374] ss:$36 sps:$4 sm:$0xff]   ;;  %v7065_v32 = vld [vmem:[%s12257_s4 + $0x37c] ss:$36 sps:$4 sm:$0xff]  }
 0x1b9   :  { %6564 = vset.pattern.permute.xlu0 %v12627_v27  ;;  %v1939_v35 = vmax.f32 %v1899_v22, 0.0  ;;  %5432 = vperm.xlu1 %6565, %v12615_v25   ;;  %v1901_v24 = vadd.f32 %v1900_v0, %v1788_v49  ;;  %12628 = vst [vmem:[#allocation109_spill] sm:$0xff] %v9593_v6  ;;  %v1685_v28 = vadd.f32 %v9226_v8, %v1572_v19  ;;  %v9614_v38 = vpop.permute.xlu0 %5012  ;;  %v1797_v22 = vpop.f32.mrf.mxu1  ;;  %v7060_v8 = vld [vmem:[%s12257_s4 + $0x370] ss:$36 sps:$4 sm:$0xff]  }
 0x1ba   :  { %5392 = vperm.xlu0 %6564, %v9600_v58   ;;  %2989 = vmatmul.mubr.bf16.gmra.mxu1 %v9546_v21  ;;  %v1904_v25 = vpop.f32.mrf.mxu0  ;;  %12629 = vst [vmem:[#allocation67_spill] sm:$0xff] %v9614_v38  ;;  %v1794_v49 = vadd.f32 %v1793_v45, %v9213_v53  ;;  %v7063_v53 = vld [vmem:[%s12257_s4 + $0x378] ss:$36 sps:$4 sm:$0xff]  }
 0x1bb   :  { %v9608_v41 = vpack.c.bf16 %v1939_v35, %v1937_v16  ;;  %v1940_v23 = vmax.f32 %v1901_v24, 0.0  ;;  %3102 = vmatmul.mubr.bf16.gmra.mxu0 %v9546_v21  ;;  %3152 = vmatprep.subr.bf16.mxu1 %v7056_v9  ;;  %v1905_v9 = vadd.f32 %v1904_v25, %v1792_v42  ;;  %v7071_v27 = vld [vmem:[%s12257_s4 + $0x334] ss:$36 sps:$4 sm:$0xff]  }
 0x1bc   :  { %3265 = vmatprep.subr.bf16.mxu0 %v7059_v37  ;;  %3153 = vmatpush2.bf16.msra.mxu1 %v7054_v50  ;;  %v1906_v0 = vpop.f32.mrf.mxu0  ;;  %v9627_v45 = vpop.permute.xlu1 %5108  ;;  %v1798_v37 = vadd.f32 %v1797_v22, %v1685_v28  ;;  %v7069_v42 = vld [vmem:[%s12257_s4 + $0x330] ss:$36 sps:$4 sm:$0xff]  }
 0x1bd   :  { %v9621_v18 = vpack.c.bf16 %v1940_v23, %v1938_v59  ;;  %3266 = vmatpush2.bf16.msra.mxu0 %v7057_v15  ;;  %5440 = vperm.xlu1 %6565, %v9174_v5   ;;  %12630 = vst [vmem:[#allocation71_spill] sm:$0xff] %v9627_v45  ;;  %v1907_v19 = vadd.f32 %v1906_v0, %v1794_v49  ;;  %v7068_v5 = vld [vmem:[%s12257_s4 + $0x32c] ss:$36 sps:$4 sm:$0xff]   ;;  %v9634_v54 = vpop.permute.xlu0 %5020  ;;  %v1941_v35 = vmax.f32 %v1905_v9, 0.0  ;;  %v7072_v0 = vld [vmem:[%s12257_s4 + $0x2e0] ss:$36 sps:$4 sm:$0xff]  }
 0x1be   :  { %5404 = vperm.xlu0 %6564, %v8926_v11   ;;  %3154 = vmatprep.subr.bf16.mxu1 %v7062_v13  ;;  %v1908_v50 = vpop.f32.mrf.mxu0  ;;  %12631 = vst [vmem:[#allocation116_spill] sm:$0xff] %v9634_v54  ;;  %v7066_v11 = vld [vmem:[%s12257_s4 + $0x328] ss:$36 sps:$4 sm:$0xff]  }
 0x1bf   :  { %3267 = vmatprep.subr.bf16.mxu0 %v7065_v32  ;;  %v1909_v62 = vadd.f32 %v1908_v50, %v1796_v31  ;;  %2998 = vmatprep.mubr.bf16.mxu1 %v9621_v18  ;;  %v9652_v13 = vld [vmem:[%s12255_s1 + $0x28] sm:$0xff]  ;;  %v1942_v28 = vmax.f32 %v1907_v19, 0.0  ;;  %v12281_v31 = vmov 7   ;;  %v9681_v50 = vld [vmem:[%s12255_s1 + $0x38] sm:$0xff] }
 0x1c0   :  { %3155 = vmatpush2.bf16.msra.mxu1 %v7060_v8  ;;  %3111 = vmatprep.mubr.bf16.mxu0 %v9621_v18  ;;  %v1910_v16 = vpop.f32.mrf.mxu0  ;;  %v9647_v25 = vpop.permute.xlu1 %5116  ;;  %v7074_v32 = vld [vmem:[%s12257_s4 + $0x2e4] ss:$36 sps:$4 sm:$0xff]   ;;  %v7077_v49 = vld [vmem:[%s12257_s4 + $0x2ec] ss:$36 sps:$4 sm:$0xff]   ;;  %v7080_v19 = vld [vmem:[%s12257_s4 + $0x29c] ss:$36 sps:$4 sm:$0xff]  }
 0x1c1   :  { %3268 = vmatpush2.bf16.msra.mxu0 %v7063_v53  ;;  %v1943_v24 = vmax.f32 %v1909_v62, 0.0  ;;  %5448 = vperm.xlu1 %6565, %v9567_v57   ;;  %v1911_v15 = vadd.f32 %v1910_v16, %v1798_v37  ;;  %12632 = vst [vmem:[#allocation112_spill] sm:$0xff] %v9647_v25  ;;  %v9665_v22 = vpop.permute.xlu0 %5028  ;;  %v7075_v9 = vld [vmem:[%s12257_s4 + $0x2e8] ss:$36 sps:$4 sm:$0xff]  }
 0x1c2   :  { %5412 = vperm.xlu0 %6564, %v9652_v13   ;;  %2999 = vmatmul.mubr.bf16.gmra.mxu1 %v9608_v41  ;;  %12633 = vst [vmem:[#allocation73_spill] sm:$0xff] %v9665_v22  ;;  %v7083_v62 = vld [vmem:[%s12257_s4 + $0x2a4] ss:$36 sps:$4 sm:$0xff]  }
 0x1c3   :  { %v9656_v59 = vpack.c.bf16 %v1943_v24, %v1941_v35  ;;  %v1944_v23 = vmax.f32 %v1911_v15, 0.0  ;;  %3112 = vmatmul.mubr.bf16.gmra.mxu0 %v9608_v41  ;;  %3156 = vmatprep.subr.bf16.mxu1 %v7068_v5  ;;  %v7078_v5 = vld [vmem:[%s12257_s4 + $0x298] ss:$36 sps:$4 sm:$0xff]   ;;  %v7081_v35 = vld [vmem:[%s12257_s4 + $0x2a0] ss:$36 sps:$4 sm:$0xff]  }
 0x1c4   :  { %3269 = vmatprep.subr.bf16.mxu0 %v7071_v27  ;;  %3157 = vmatpush2.bf16.msra.mxu1 %v7066_v11  ;;  %v9676_v53 = vpop.permute.xlu1 %5124  ;;  %v9703_v11 = vld [vmem:[%s12255_s1 + $0x48] sm:$0xff]  ;;  %v9709_v27 = vld [vmem:[%s12255_s1 + $0x10] sm:$0xff] }
 0x1c5   :  { %v9670_v8 = vpack.c.bf16 %v1944_v23, %v1942_v28  ;;  %3270 = vmatpush2.bf16.msra.mxu0 %v7069_v42  ;;  %6566 = vset.pattern.permute.xlu1 %v12281_v31  ;;  %12634 = vst [vmem:[#allocation119_spill] sm:$0xff] %v9676_v53  ;;  %v9685_v37 = vpop.permute.xlu0 %5036  ;;  %v7086_v15 = vld [vmem:[%s12257_s4 + $0x254] ss:$36 sps:$4 sm:$0xff]   ;;  %v7089_v42 = vld [vmem:[%s12257_s4 + $0x25c] ss:$36 sps:$4 sm:$0xff]  }
 0x1c6   :  { %5420 = vperm.xlu0 %6564, %v9681_v50   ;;  %5488 = vperm.xlu1 %6566, %v9600_v58   ;;  %12635 = vst [vmem:[#allocation77_spill] sm:$0xff] %v9685_v37  ;;  %v7084_v28 = vld [vmem:[%s12257_s4 + $0x250] ss:$36 sps:$4 sm:$0xff]   ;;  %v7099_v37 = vld [vmem:[%s12257_s4 + $0xf8] ss:$36 sps:$4 sm:$0xff]  }
 0x1c7   :  { %3158 = vmatprep.subr.bf16.mxu1 %v7074_v32  ;;  %3271 = vmatprep.subr.bf16.mxu0 %v7077_v49  ;;  %v7087_v32 = vld [vmem:[%s12257_s4 + $0x258] ss:$36 sps:$4 sm:$0xff]   ;;  %v9872_v53 = vld [vmem:[%s12255_s1 + $0x50] sm:$0xff] }
 0x1c8   :  { %3159 = vmatpush2.bf16.msra.mxu1 %v7072_v0  ;;  %3008 = vmatprep.mubr.bf16.mxu1 %v9670_v8  ;;  %v9698_v16 = vpop.permute.xlu1 %5132  ;;  %v7090_v49 = vld [vmem:[%s12257_s4 + $0x458] ss:$36 sps:$4 sm:$0xff]  }
 0x1c9   :  { %3272 = vmatpush2.bf16.msra.mxu0 %v7075_v9  ;;  %3121 = vmatprep.mubr.bf16.mxu0 %v9670_v8  ;;  %12636 = vst [vmem:[#allocation121_spill] sm:$0xff] %v9698_v16  ;;  %v9717_v24 = vpop.permute.xlu0 %5044  ;;  %v9741_v0 = vld [vmem:[%s12255_s1 + $0x58] sm:$0xff]  ;;  %v7100_v16 = vld [vmem:[%s12257_s4 + $0x2f0] ss:$36 sps:$4 sm:$0xff]  }
 0x1ca   :  { %5428 = vperm.xlu0 %6564, %v9703_v11   ;;  %5496 = vperm.xlu1 %6566, %v9709_v27   ;;  %12637 = vst [vmem:[#allocation123_spill] sm:$0xff] %v9717_v24  ;;  %v9747_v9 = vld [vmem:[%s12255_s1 + $0x18] sm:$0xff] }
 0x1cb   :  { %3009 = vmatmul.mubr.bf16.gmra.mxu1 %v9656_v59  ;;  %3122 = vmatmul.mubr.bf16.gmra.mxu0 %v9656_v59 }
 0x1cc   :  { %3160 = vmatprep.subr.bf16.mxu1 %v7080_v19  ;;  %3273 = vmatprep.subr.bf16.mxu0 %v7083_v62  ;;  %v9729_v23 = vpop.permute.xlu1 %5140 }
 0x1cd   :  { %3161 = vmatpush2.bf16.msra.mxu1 %v7078_v5  ;;  %3164 = vmatprep.mubr.bf16.mxu1 %v9279_v56  ;;  %12638 = vst [vmem:[#allocation79_spill] sm:$0xff] %v9729_v23  ;;  %v9750_v19 = vpop.permute.xlu0 %5052  ;;  %v7091_v5 = vld [vmem:[%s12257_s4 + $0x218] ss:$36 sps:$4 sm:$0xff]  }
 0x1ce   :  { %3274 = vmatpush2.bf16.msra.mxu0 %v7081_v35  ;;  %3277 = vmatprep.mubr.bf16.mxu0 %v9279_v56  ;;  %12639 = vst [vmem:[#allocation138_spill] sm:$0xff] %v9750_v19  ;;  %v9760_v35 = vld [vmem:[%s12255_s1 + $0x68] sm:$0xff]  ;;  %v12645_v19 = vmov 7  }
 0x1cf   :  { %5436 = vperm.xlu0 %6564, %v9741_v0   ;;  %5500 = vperm.xlu1 %6566, %v9747_v9  }
 0x1d0   :  { %3162 = vmatprep.subr.bf16.mxu1 %v7086_v15  ;;  %3275 = vmatprep.subr.bf16.mxu0 %v7089_v42  ;;  %v9752_v62 = vpop.permute.xlu1 %5148  ;;  %v7092_v15 = vld [vmem:[%s12257_s4 + $0x410] ss:$36 sps:$4 sm:$0xff]  }
 0x1d1   :  { %3163 = vmatpush2.bf16.msra.mxu1 %v7084_v28  ;;  %12640 = vst [vmem:[#allocation139_spill] sm:$0xff] %v9752_v62  ;;  %v7093_v28 = vld [vmem:[%s12257_s4 + $0x1d0] ss:$36 sps:$4 sm:$0xff]  }
 0x1d2   :  { %3276 = vmatpush2.bf16.msra.mxu0 %v7087_v32  ;;  %6460 = vmatprep.subr.bf16.mxu1 %v7090_v49  ;;  %v9768_v42 = vpop.permute.xlu0 %5092  ;;  %v9781_v49 = vld [vmem:[%s12255_s1 + $0x78] sm:$0xff] }
 0x1d3   :  { %5444 = vperm.xlu0 %6564, %v9760_v35   ;;  %5508 = vperm.xlu1 %6566, %v9652_v13   ;;  %12641 = vst [vmem:[#allocation140_spill] sm:$0xff] %v9768_v42 }
 0x1d4   :  { %3165 = vmatmul.mubr.bf16.vlgmr.msra.gmra.mxu1 %v9269_v55  ;;  %v9776_v32 = vpop.permute.xlu1 %5220 }
 0x1d5   :  { %3278 = vmatmul.mubr.bf16.vlgmr.msra.gmra.mxu0 %v9269_v55  ;;  %3174 = vmatprep.mubr.bf16.mxu1 %v9334_v33  ;;  %12642 = vst [vmem:[#allocation141_spill] sm:$0xff] %v9776_v32 }
 0x1d6   :  { %3287 = vmatprep.mubr.bf16.mxu0 %v9334_v33  ;;  %6461 = vmatpush3.bf16.msra.mxu1 %v7091_v5  ;;  %v9785_v31 = vpop.permute.xlu0 %5104  ;;  %v7094_v5 = vld [vmem:[%s12257_s4 + $0x3c8] ss:$36 sps:$4 sm:$0xff]  }
 0x1d7   :  { %5452 = vperm.xlu0 %6564, %v9781_v49   ;;  %5516 = vperm.xlu1 %6566, %v9681_v50   ;;  %12643 = vst [vmem:[#allocation142_spill] sm:$0xff] %v9785_v31 }
 0x1d8   :  { %6462 = vmatprep.subr.bf16.mxu1 %v7092_v15  ;;  %v9790_v62 = vpop.permute.xlu1 %5224  ;;  %v9800_v15 = vld [vmem:[%s12255_s1 + $0x8] sm:$0xff] }
 0x1d9   :  { %12644 = vst [vmem:[#allocation143_spill] sm:$0xff] %v9790_v62 }
 0x1da   :  { %6463 = vmatpush3.bf16.msra.mxu1 %v7093_v28  ;;  %v9804_v28 = vpop.permute.xlu0 %5112 }
 0x1db   :  { %6567 = vset.pattern.permute.xlu0 %v12645_v19  ;;  %5524 = vperm.xlu1 %6566, %v9703_v11   ;;  %12646 = vst [vmem:[#allocation144_spill] sm:$0xff] %v9804_v28  ;;  %v7096_v19 = vld [vmem:[%s12257_s4 + $0x380] ss:$36 sps:$4 sm:$0xff]  }
 0x1dc   :  { %5492 = vperm.xlu0 %6567, %v9800_v15   ;;  %3175 = vmatmul.mubr.bf16.gmra.mxu1 %v9323_v63  ;;  %v9812_v24 = vpop.permute.xlu1 %5232 }
 0x1dd   :  { %3288 = vmatmul.mubr.bf16.gmra.mxu0 %v9323_v63  ;;  %3184 = vmatprep.mubr.bf16.mxu1 %v9390_v26  ;;  %12647 = vst [vmem:[#allocation145_spill] sm:$0xff] %v9812_v24 }
 0x1de   :  { %3297 = vmatprep.mubr.bf16.mxu0 %v9390_v26  ;;  %6464 = vmatprep.subr.bf16.mxu1 %v7094_v5  ;;  %v9824_v23 = vpop.permute.xlu0 %5120 }
 0x1df   :  { %5532 = vperm.xlu1 %6566, %v9741_v0   ;;  %6465 = vmatpush3.bf16.msra.mxu1 %v7095_v30  ;;  %12648 = vst [vmem:[#allocation146_spill] sm:$0xff] %v9824_v23  ;;  %v7098_v30 = vld [vmem:[%s12257_s4 + $0x338] ss:$36 sps:$4 sm:$0xff]  }
 0x1e0   :  { %5504 = vperm.xlu0 %6567, %v9821_v4   ;;  %6466 = vmatprep.subr.bf16.mxu1 %v7096_v19  ;;  %v9826_v5 = vpop.permute.xlu1 %5240 }
 0x1e1   :  { %12649 = vst [vmem:[#allocation147_spill] sm:$0xff] %v9826_v5 }
 0x1e2   :  { %v9842_v19 = vpop.permute.xlu0 %5128 }
 0x1e3   :  { %5540 = vperm.xlu1 %6566, %v9760_v35   ;;  %6467 = vmatpush3.bf16.msra.mxu1 %v7097_v51  ;;  %12650 = vst [vmem:[#allocation148_spill] sm:$0xff] %v9842_v19 }
 0x1e4   :  { %5512 = vperm.xlu0 %6567, %v9838_v2   ;;  %3185 = vmatmul.mubr.bf16.gmra.mxu1 %v9378_v17  ;;  %v9850_v51 = vpop.permute.xlu1 %5248 }
 0x1e5   :  { %3298 = vmatmul.mubr.bf16.gmra.mxu0 %v9378_v17  ;;  %3194 = vmatprep.mubr.bf16.mxu1 %v9449_v39  ;;  %12651 = vst [vmem:[#allocation149_spill] sm:$0xff] %v9850_v51 }
 0x1e6   :  { %3307 = vmatprep.mubr.bf16.mxu0 %v9449_v39  ;;  %6468 = vmatprep.subr.bf16.mxu1 %v7098_v30  ;;  %v9862_v22 = vpop.permute.xlu0 %5136  ;;  %v7487_v30 = vmov 9  }
 0x1e7   :  { %5548 = vperm.xlu1 %6566, %v9781_v49   ;;  %6469 = vmatpush3.bf16.msra.mxu1 %v7099_v37  ;;  %12652 = vst [vmem:[#allocation150_spill] sm:$0xff] %v9862_v22  ;;  %v7102_v37 = vld [vmem:[%s12257_s4 + $0x2a8] ss:$36 sps:$4 sm:$0xff]  }
 0x1e8   :  { %5520 = vperm.xlu0 %6567, %v9859_v10   ;;  %6470 = vmatprep.subr.bf16.mxu1 %v7100_v16  ;;  %v9864_v19 = vpop.permute.xlu1 %5256  ;;  %v7103_v16 = vld [vmem:[%s12257_s4 + $0x68] ss:$36 sps:$4 sm:$0xff]  }
 0x1e9   :  { %12653 = vst [vmem:[#allocation151_spill] sm:$0xff] %v9864_v19 }
 0x1ea   :  { %v9876_v22 = vpop.permute.xlu0 %5144 }
 0x1eb   :  { %6569 = vset.pattern.permute.xlu1 %v7487_v30  ;;  %6471 = vmatpush3.bf16.msra.mxu1 %v7101_v60  ;;  %12654 = vst [vmem:[#allocation152_spill] sm:$0xff] %v9876_v22  ;;  %v7104_v60 = vld [vmem:[%s12257_s4 + $0x260] ss:$36 sps:$4 sm:$0xff]  }
 0x1ec   :  { %5528 = vperm.xlu0 %6567, %v9872_v53   ;;  %3195 = vmatmul.mubr.bf16.gmra.mxu1 %v9431_v43  ;;  %v9888_v19 = vpop.permute.xlu1 %5264  ;;  %v9893_v22 = vld [vmem:[%s12255_s1 + $0x60] sm:$0xff] }
 0x1ed   :  { %3308 = vmatmul.mubr.bf16.gmra.mxu0 %v9431_v43  ;;  %5588 = vperm.xlu1 %6569, %v9800_v15   ;;  %12655 = vst [vmem:[#allocation153_spill] sm:$0xff] %v9888_v19  ;;  %v7105_v19 = vld [vmem:[%s12257_s4 + $0x20] ss:$36 sps:$4 sm:$0xff]  }
 0x1ee   :  { %3204 = vmatprep.mubr.bf16.mxu1 %v9507_v47  ;;  %3317 = vmatprep.mubr.bf16.mxu0 %v9507_v47 }
 0x1ef   :  { %6472 = vmatprep.subr.bf16.mxu1 %v7102_v37  ;;  %v9897_v52 = vpop.permute.xlu0 %5216 }
 0x1f0   :  { %5536 = vperm.xlu0 %6567, %v9893_v22   ;;  %6473 = vmatpush3.bf16.msra.mxu1 %v7103_v16  ;;  %12656 = vst [vmem:[#allocation154_spill] sm:$0xff] %v9897_v52  ;;  %v9899_v23 = vpop.permute.xlu1 %5272 }
 0x1f1   :  { %5592 = vperm.xlu1 %6569, %v9709_v27   ;;  %6474 = vmatprep.subr.bf16.mxu1 %v7104_v60  ;;  %12657 = vst [vmem:[#allocation155_spill] sm:$0xff] %v9899_v23 }
 0x1f3   :  { %v9908_v37 = vpop.permute.xlu0 %5228 }
 0x1f4   :  { %5544 = vperm.xlu0 %6567, %v9567_v57   ;;  %3205 = vmatmul.mubr.bf16.gmra.mxu1 %v9491_v36  ;;  %12658 = vst [vmem:[#allocation156_spill] sm:$0xff] %v9908_v37 }
 0x1f5   :  { %3318 = vmatmul.mubr.bf16.gmra.mxu0 %v9491_v36  ;;  %5600 = vperm.xlu1 %6569, %v9821_v4   ;;  %v9912_v16 = vpop.permute.xlu1 %5296 }
 0x1f6   :  { %3214 = vmatprep.mubr.bf16.mxu1 %v9562_v40  ;;  %3327 = vmatprep.mubr.bf16.mxu0 %v9562_v40  ;;  %12659 = vst [vmem:[#allocation157_spill] sm:$0xff] %v9912_v16 }
 0x1f7   :  { %6475 = vmatpush3.bf16.msra.mxu1 %v7105_v19  ;;  %v9916_v60 = vpop.permute.xlu0 %5236 }
 0x1f8   :  { %6568 = vset.pattern.permute.xlu0 %v7487_v30  ;;  %12660 = vst [vmem:[#allocation158_spill] sm:$0xff] %v9916_v60 }
 0x1f9   :  { %5608 = vperm.xlu1 %6569, %v9838_v2   ;;  %5584 = vperm.xlu0 %6568, %v9600_v58   ;;  %v9918_v23 = vpop.permute.xlu1 %5304 }
 0x1fa   :  { %12661 = vst [vmem:[#allocation159_spill] sm:$0xff] %v9918_v23 }
 0x1fb   :  { %v9923_v3 = vpop.permute.xlu0 %5244 }
 0x1fc   :  { %3215 = vmatmul.mubr.bf16.gmra.mxu1 %v9546_v21  ;;  %12662 = vst [vmem:[#allocation160_spill] sm:$0xff] %v9923_v3  ;;  %v7488_v3 = vmov 11  }
 0x1fd   :  { %3328 = vmatmul.mubr.bf16.gmra.mxu0 %v9546_v21  ;;  %5616 = vperm.xlu1 %6569, %v9859_v10   ;;  %v9928_v19 = vpop.permute.xlu1 %5308 }
 0x1fe   :  { %5596 = vperm.xlu0 %6568, %v9747_v9   ;;  %3224 = vmatprep.mubr.bf16.mxu1 %v9621_v18  ;;  %12663 = vst [vmem:[#allocation161_spill] sm:$0xff] %v9928_v19 }
 0x1ff   :  { %3337 = vmatprep.mubr.bf16.mxu0 %v9621_v18  ;;  %v9931_v30 = vpop.permute.xlu0 %5252 }
 0x200   :  { %12664 = vst [vmem:[#allocation162_spill] sm:$0xff] %v9931_v30 }
 0x201   :  { %5624 = vperm.xlu1 %6569, %v9872_v53   ;;  %v9934_v51 = vpop.permute.xlu1 %5316 }
 0x202   :  { %5604 = vperm.xlu0 %6568, %v9652_v13   ;;  %12665 = vst [vmem:[#allocation163_spill] sm:$0xff] %v9934_v51 }
 0x203   :  { %v9939_v54 = vpop.permute.xlu0 %5260 }
 0x204   :  { %3225 = vmatmul.mubr.bf16.gmra.mxu1 %v9608_v41  ;;  %12666 = vst [vmem:[#allocation164_spill] sm:$0xff] %v9939_v54 }
 0x205   :  { %3338 = vmatmul.mubr.bf16.gmra.mxu0 %v9608_v41  ;;  %5632 = vperm.xlu1 %6569, %v9893_v22   ;;  %v9944_v25 = vpop.permute.xlu1 %5324 }
 0x206   :  { %5612 = vperm.xlu0 %6568, %v9681_v50   ;;  %3234 = vmatprep.mubr.bf16.mxu1 %v9670_v8  ;;  %12667 = vst [vmem:[#allocation165_spill] sm:$0xff] %v9944_v25 }
 0x207   :  { %3347 = vmatprep.mubr.bf16.mxu0 %v9670_v8  ;;  %v9948_v30 = vpop.permute.xlu0 %5268 }
 0x208   :  { %12668 = vst [vmem:[#allocation166_spill] sm:$0xff] %v9948_v30 }
 0x209   :  { %5640 = vperm.xlu1 %6569, %v9567_v57   ;;  %v9952_v54 = vpop.permute.xlu1 %5332 }
 0x20a   :  { %5620 = vperm.xlu0 %6568, %v9703_v11   ;;  %12669 = vst [vmem:[#allocation167_spill] sm:$0xff] %v9952_v54 }
 0x20c   :  { %3235 = vmatmul.mubr.bf16.gmra.mxu1 %v9656_v59 }
 0x20d   :  { %3348 = vmatmul.mubr.bf16.gmra.mxu0 %v9656_v59  ;;  %6570 = vset.pattern.permute.xlu1 %v7488_v3 }
 0x20e   :  { %5628 = vperm.xlu0 %6568, %v9741_v0   ;;  %3390 = vmatprep.mubr.bf16.mxu1 %v9279_v56  ;;  %v9957_v25 = vpop.permute.xlu0 %5276  ;;  %v9959_v48 = vpop.permute.xlu1 %5340 }
 0x20f   :  { %5680 = vperm.xlu1 %6570, %v9600_v58   ;;  %12670 = vst [vmem:[#allocation168_spill] sm:$0xff] %v9957_v25  ;;  %12671 = vst [vmem:[#allocation169_spill] sm:$0xff] %v9959_v48 }
 0x212   :  { %5636 = vperm.xlu0 %6568, %v9760_v35  }
 0x213   :  { %5688 = vperm.xlu1 %6570, %v9709_v27  }
 0x214   :  { %3391 = vmatmul.mubr.bf16.vlgmr.msra.gmra.mxu1 %v9269_v55 }
 0x215   :  { %3398 = vmatprep.mubr.bf16.mxu1 %v9334_v33  ;;  %v9966_v30 = vpop.permute.xlu1 %5348 }
 0x216   :  { %5644 = vperm.xlu0 %6568, %v9781_v49   ;;  %12672 = vst [vmem:[#allocation170_spill] sm:$0xff] %v9966_v30  ;;  %v9968_v54 = vpop.permute.xlu0 %5300 }
 0x217   :  { %12673 = vst [vmem:[#allocation171_spill] sm:$0xff] %v9968_v54  ;;  %5692 = vperm.xlu1 %6570, %v9747_v9  }
 0x219   :  { %v9971_v56 = vpop.permute.xlu1 %5356 }
 0x21a   :  { %6571 = vset.pattern.permute.xlu0 %v7488_v3  ;;  %12674 = vst [vmem:[#allocation172_spill] sm:$0xff] %v9971_v56  ;;  %v9973_v25 = vpop.permute.xlu0 %5312 }
 0x21b   :  { %12675 = vst [vmem:[#allocation173_spill] sm:$0xff] %v9973_v25  ;;  %5700 = vperm.xlu1 %6570, %v9652_v13   ;;  %5684 = vperm.xlu0 %6571, %v9800_v15  }
 0x21c   :  { %3399 = vmatmul.mubr.bf16.gmra.mxu1 %v9323_v63 }
 0x21d   :  { %3406 = vmatprep.mubr.bf16.mxu1 %v9390_v26 }
 0x21f   :  { %5708 = vperm.xlu1 %6570, %v9681_v50   ;;  %5696 = vperm.xlu0 %6571, %v9821_v4   ;;  %v9981_v55 = vpop.permute.xlu0 %5320  ;;  %v9983_v33 = vpop.permute.xlu1 %5396 }
 0x220   :  { %12676 = vst [vmem:[#allocation174_spill] sm:$0xff] %v9981_v55  ;;  %12677 = vst [vmem:[#allocation175_spill] sm:$0xff] %v9983_v33 }
 0x223   :  { %5716 = vperm.xlu1 %6570, %v9703_v11   ;;  %5704 = vperm.xlu0 %6571, %v9838_v2   ;;  %v9987_v3 = vpop.permute.xlu0 %5328  ;;  %v9990_v56 = vpop.permute.xlu1 %5400 }
 0x224   :  { %12678 = vst [vmem:[#allocation176_spill] sm:$0xff] %v9987_v3  ;;  %3407 = vmatmul.mubr.bf16.gmra.mxu1 %v9378_v17  ;;  %12679 = vst [vmem:[#allocation177_spill] sm:$0xff] %v9990_v56 }
 0x225   :  { %3414 = vmatprep.mubr.bf16.mxu1 %v9449_v39 }
 0x227   :  { %5724 = vperm.xlu1 %6570, %v9741_v0   ;;  %5712 = vperm.xlu0 %6571, %v9859_v10   ;;  %v9997_v26 = vpop.permute.xlu0 %5336 }
 0x228   :  { %v9995_v63 = vpop.permute.xlu1 %5408  ;;  %12681 = vst [vmem:[#allocation179_spill] sm:$0xff] %v9997_v26  ;;  %v7489_v26 = vmov 13  }
 0x229   :  { %12680 = vst [vmem:[#allocation178_spill] sm:$0xff] %v9995_v63 }
 0x22b   :  { %5732 = vperm.xlu1 %6570, %v9760_v35   ;;  %5720 = vperm.xlu0 %6571, %v9872_v53  }
 0x22c   :  { %3415 = vmatmul.mubr.bf16.gmra.mxu1 %v9431_v43  ;;  %v10002_v30 = vpop.permute.xlu1 %5416  ;;  %v10004_v17 = vpop.permute.xlu0 %5344 }
 0x22d   :  { %12682 = vst [vmem:[#allocation180_spill] sm:$0xff] %v10002_v30  ;;  %12683 = vst [vmem:[#allocation181_spill] sm:$0xff] %v10004_v17  ;;  %3422 = vmatprep.mubr.bf16.mxu1 %v9507_v47 }
 0x22f   :  { %5740 = vperm.xlu1 %6570, %v9781_v49   ;;  %5728 = vperm.xlu0 %6571, %v9893_v22  }
 0x230   :  { %v10009_v39 = vpop.permute.xlu1 %5424  ;;  %v10011_v48 = vpop.permute.xlu0 %5352 }
 0x231   :  { %12684 = vst [vmem:[#allocation182_spill] sm:$0xff] %v10009_v39  ;;  %12685 = vst [vmem:[#allocation183_spill] sm:$0xff] %v10011_v48  ;;  %v10058_v39 = vld [vmem:[%s12259_s5] sm:$0xff] }
 0x233   :  { %6573 = vset.pattern.permute.xlu1 %v7489_v26  ;;  %5736 = vperm.xlu0 %6571, %v9567_v57  }
 0x234   :  { %5780 = vperm.xlu1 %6573, %v9800_v15   ;;  %3423 = vmatmul.mubr.bf16.gmra.mxu1 %v9491_v36  ;;  %v10016_v43 = vpop.permute.xlu1 %5432 }
 0x235   :  { %12686 = vst [vmem:[#allocation184_spill] sm:$0xff] %v10016_v43  ;;  %3430 = vmatprep.mubr.bf16.mxu1 %v9562_v40  ;;  %v10019_v47 = vpop.permute.xlu0 %5392 }
 0x236   :  { %12687 = vst [vmem:[#allocation185_spill] sm:$0xff] %v10019_v47 }
 0x237   :  { %6572 = vset.pattern.permute.xlu0 %v7489_v26 }
 0x238   :  { %5784 = vperm.xlu1 %6573, %v9709_v27   ;;  %5776 = vperm.xlu0 %6572, %v9600_v58   ;;  %v10023_v48 = vpop.permute.xlu1 %5440 }
 0x239   :  { %12688 = vst [vmem:[#allocation186_spill] sm:$0xff] %v10023_v48  ;;  %v10025_v17 = vpop.permute.xlu0 %5404 }
 0x23a   :  { %12689 = vst [vmem:[#allocation187_spill] sm:$0xff] %v10025_v17 }
 0x23c   :  { %5792 = vperm.xlu1 %6573, %v9821_v4   ;;  %5788 = vperm.xlu0 %6572, %v9747_v9   ;;  %v10029_v36 = vpop.permute.xlu1 %5448 }
 0x23d   :  { %12690 = vst [vmem:[#allocation188_spill] sm:$0xff] %v10029_v36  ;;  %3431 = vmatmul.mubr.bf16.gmra.mxu1 %v9546_v21  ;;  %v10032_v40 = vpop.permute.xlu0 %5412 }
 0x23e   :  { %12691 = vst [vmem:[#allocation189_spill] sm:$0xff] %v10032_v40  ;;  %3438 = vmatprep.mubr.bf16.mxu1 %v9621_v18 }
 0x240   :  { %5800 = vperm.xlu1 %6573, %v9838_v2   ;;  %5796 = vperm.xlu0 %6572, %v9652_v13  }
 0x241   :  { %v10037_v26 = vpop.permute.xlu1 %5488  ;;  %v10039_v48 = vpop.permute.xlu0 %5420 }
 0x242   :  { %12692 = vst [vmem:[#allocation190_spill] sm:$0xff] %v10037_v26  ;;  %12693 = vst [vmem:[#allocation191_spill] sm:$0xff] %v10039_v48 }
 0x244   :  { %5808 = vperm.xlu1 %6573, %v9859_v10   ;;  %5804 = vperm.xlu0 %6572, %v9681_v50  }
 0x245   :  { %3439 = vmatmul.mubr.bf16.gmra.mxu1 %v9608_v41  ;;  %v10044_v36 = vpop.permute.xlu1 %5496  ;;  %v10046_v21 = vpop.permute.xlu0 %5428  ;;  %v12698_v41 = vld [vmem:[#allocation33_spill] sm:$0xff] }
 0x246   :  { %12694 = vst [vmem:[#allocation192_spill] sm:$0xff] %v10044_v36  ;;  %12695 = vst [vmem:[#allocation193_spill] sm:$0xff] %v10046_v21  ;;  %3446 = vmatprep.mubr.bf16.mxu1 %v9670_v8  ;;  %v12699_v8 = vsub.s32 0, %v12698_v41 }
 0x248   :  { %5816 = vperm.xlu1 %6573, %v9872_v53   ;;  %5812 = vperm.xlu0 %6572, %v9703_v11   ;;  %v10066_v21 = vrot.slane %v10058_v39, %v12699_v8 }
 0x24a   :  { %v10051_v18 = vpop.permute.xlu1 %5500  ;;  %v10053_v43 = vpop.permute.xlu0 %5436 }
 0x24b   :  { %12696 = vst [vmem:[#allocation194_spill] sm:$0xff] %v10051_v18  ;;  %12697 = vst [vmem:[#allocation195_spill] sm:$0xff] %v10053_v43  ;;  %v12702_v43 = vsub.s32 1, %v12698_v41 }
 0x24c   :  { %5824 = vperm.xlu1 %6573, %v9893_v22   ;;  %5820 = vperm.xlu0 %6572, %v9741_v0  }
 0x24d   :  { %3447 = vmatmul.mubr.bf16.gmra.mxu1 %v9656_v59  ;;  %v10075_v14 = vrot.slane %v10058_v39, %v12702_v43  ;;  %v7490_v43 = vmov 15  }
 0x24e   :  { %v10068_v3 = vpop.permute.xlu1 %5508  ;;  %v10070_v48 = vpop.permute.xlu0 %5444 }
 0x24f   :  { %12700 = vst [vmem:[#allocation33_spill] sm:$0xff] %v10068_v3  ;;  %12701 = vst [vmem:[#allocation196_spill] sm:$0xff] %v10070_v48 }
 0x250   :  { %5832 = vperm.xlu1 %6573, %v9567_v57   ;;  %5828 = vperm.xlu0 %6572, %v9760_v35   ;;  %v2940_v28 = vpop.f32.mrf.mxu1  ;;  %v10079_v59 = vpop.f32.mrf.mxu0 }
 0x251   :  { %v2941_v30 = vadd.f32 %v2940_v28, %v10066_v21 }
 0x252   :  { %v2942_v8 = vpop.f32.mrf.mxu1  ;;  %v10082_v55 = vpop.f32.mrf.mxu0 }
 0x253   :  { %v2943_v5 = vadd.f32 %v2942_v8, %v10075_v14  ;;  %v10085_v48 = vpop.permute.xlu1 %5516  ;;  %v10087_v38 = vpop.permute.xlu0 %5452  ;;  %v10093_v40 = vmul.f32 0.25, %v2941_v30  ;;  %v2135_v8 = vsub.s32 2, %v12698_v41  ;;  %v2139_v30 = vsub.s32 3, %v12698_v41 }
 0x254   :  { %12703 = vst [vmem:[#allocation197_spill] sm:$0xff] %v10085_v48  ;;  %12704 = vst [vmem:[#allocation198_spill] sm:$0xff] %v10087_v38  ;;  %6574 = vset.pattern.permute.xlu1 %v7490_v43  ;;  %5836 = vperm.xlu0 %6572, %v9781_v49   ;;  %v2944_v45 = vpop.f32.mrf.mxu1  ;;  %v10090_v3 = vpop.f32.mrf.mxu0 }
 0x255   :  { %5872 = vperm.xlu1 %6574, %v9600_v58   ;;  %v10095_v28 = vmul.f32 0.25, %v2943_v5  ;;  %v2945_v51 = vadd.f32 %v2944_v45, %v10066_v21  ;;  %v10116_v38 = vrot.slane %v10058_v39, %v2135_v8  ;;  %v10126_v17 = vrot.slane %v10058_v39, %v2139_v30 }
 0x256   :  { %v2946_v48 = vpop.f32.mrf.mxu1  ;;  %v10099_v60 = vpop.f32.mrf.mxu0 }
 0x257   :  { %v2947_v44 = vadd.f32 %v2946_v48, %v10075_v14  ;;  %v10104_v46 = vpop.permute.xlu1 %5524  ;;  %v10106_v63 = vpop.permute.xlu0 %5492  ;;  %v10111_v45 = vmul.f32 0.25, %v2945_v51 }
 0x258   :  { %12705 = vst [vmem:[#allocation199_spill] sm:$0xff] %v10104_v46  ;;  %12706 = vst [vmem:[#allocation200_spill] sm:$0xff] %v10106_v63  ;;  %6575 = vset.pattern.permute.xlu0 %v7490_v43  ;;  %v2950_v5 = vpop.f32.mrf.mxu1  ;;  %v3063_v25 = vpop.f32.mrf.mxu0 }
 0x259   :  { %5880 = vperm.xlu1 %6574, %v9709_v27   ;;  %5876 = vperm.xlu0 %6575, %v9800_v15   ;;  %12707 = vst [vmem:[#allocation201_spill] sm:$0xff] %v10111_v45  ;;  %v10113_v24 = vmul.f32 0.25, %v2947_v44  ;;  %v2951_v48 = vadd.f32 %v2950_v5, %v10066_v21  ;;  %v3064_v44 = vadd.f32 %v3063_v25, %v10116_v38 }
 0x25a   :  { %v2952_v46 = vpop.f32.mrf.mxu1  ;;  %v3065_v20 = vpop.f32.mrf.mxu0 }
 0x25b   :  { %12708 = vst [vmem:[#allocation202_spill] sm:$0xff] %v10113_v24  ;;  %v10121_v31 = vpop.permute.xlu1 %5532  ;;  %v10123_v18 = vpop.permute.xlu0 %5504  ;;  %v2953_v51 = vadd.f32 %v2952_v46, %v10075_v14  ;;  %v10133_v43 = vmul.f32 0.25, %v2951_v48  ;;  %v10144_v36 = vmul.f32 0.25, %v3064_v44 }
 0x25c   :  { %12709 = vst [vmem:[#allocation203_spill] sm:$0xff] %v10121_v31  ;;  %12710 = vst [vmem:[#allocation204_spill] sm:$0xff] %v10123_v18  ;;  %v2954_v8 = vpop.f32.mrf.mxu1  ;;  %v3067_v6 = vpop.f32.mrf.mxu0  ;;  %v3066_v18 = vadd.f32 %v3065_v20, %v10126_v17 }
 0x25d   :  { %5884 = vperm.xlu1 %6574, %v9747_v9   ;;  %5888 = vperm.xlu0 %6575, %v9821_v4   ;;  %v2955_v5 = vadd.f32 %v2954_v8, %v10066_v21  ;;  %12711 = vst [vmem:[#allocation205_spill] sm:$0xff] %v10133_v43  ;;  %v10135_v31 = vmul.f32 0.25, %v2953_v51  ;;  %v3068_v25 = vadd.f32 %v3067_v6, %v10116_v38  ;;  %12715 = vst [vmem:[#allocation209_spill] sm:$0xff] %v10144_v36 }
 0x25e   :  { %v2956_v30 = vpop.f32.mrf.mxu1  ;;  %v3069_v19 = vpop.f32.mrf.mxu0 }
 0x25f   :  { %12712 = vst [vmem:[#allocation206_spill] sm:$0xff] %v10135_v31  ;;  %v2957_v46 = vadd.f32 %v2956_v30, %v10075_v14  ;;  %v10140_v37 = vpop.permute.xlu1 %5540  ;;  %v10142_v29 = vpop.permute.xlu0 %5512  ;;  %v3617_v48 = vmax.f32 %v10133_v43, %v10135_v31  ;;  %v10150_v20 = vmul.f32 0.25, %v2955_v5  ;;  %v3070_v6 = vadd.f32 %v3069_v19, %v10126_v17 }
 0x260   :  { %12713 = vst [vmem:[#allocation207_spill] sm:$0xff] %v10140_v37  ;;  %12714 = vst [vmem:[#allocation208_spill] sm:$0xff] %v10142_v29  ;;  %v2960_v8 = vpop.f32.mrf.mxu1  ;;  %v10155_v37 = vmul.f32 0.25, %v3066_v18  ;;  %v10161_v56 = vmul.f32 0.25, %v3068_v25 }
 0x261   :  { %5892 = vperm.xlu1 %6574, %v9652_v13   ;;  %5896 = vperm.xlu0 %6575, %v9838_v2   ;;  %12716 = vst [vmem:[#allocation210_spill] sm:$0xff] %v10150_v20  ;;  %v10152_v51 = vmul.f32 0.25, %v2957_v46  ;;  %v3073_v30 = vpop.f32.mrf.mxu0  ;;  %v10158_v44 = vmax.f32 %v3617_v48, %v10144_v36  ;;  %v2961_v29 = vadd.f32 %v2960_v8, %v10066_v21  ;;  %v10173_v7 = vmul.f32 0.25, %v3070_v6 }
 0x262   :  { %12718 = vst [vmem:[#allocation212_spill] sm:$0xff] %v10155_v37  ;;  %12719 = vst [vmem:[#allocation213_spill] sm:$0xff] %v10161_v56  ;;  %v2962_v5 = vpop.f32.mrf.mxu1  ;;  %v3074_v19 = vadd.f32 %v3073_v30, %v10116_v38 }
 0x263   :  { %12717 = vst [vmem:[#allocation211_spill] sm:$0xff] %v10152_v51  ;;  %v3618_v23 = vmax.f32 %v10150_v20, %v10152_v51  ;;  %v3075_v34 = vpop.f32.mrf.mxu0  ;;  %v2963_v18 = vadd.f32 %v2962_v5, %v10075_v14  ;;  %v10169_v62 = vpop.permute.xlu1 %5548  ;;  %12722 = vst [vmem:[#allocation216_spill] sm:$0xff] %v10173_v7  ;;  %v10180_v8 = vmul.f32 0.25, %v2961_v29 }
 0x264   :  { %12720 = vst [vmem:[#allocation214_spill] sm:$0xff] %v10169_v62  ;;  %v10171_v48 = vpop.permute.xlu0 %5520  ;;  %v2964_v46 = vpop.f32.mrf.mxu1  ;;  %v3076_v5 = vadd.f32 %v3075_v34, %v10126_v17  ;;  %v10189_v61 = vmul.f32 0.25, %v3074_v19 }
 0x265   :  { %12721 = vst [vmem:[#allocation215_spill] sm:$0xff] %v10171_v48  ;;  %v10176_v25 = vmax.f32 %v3618_v23, %v10161_v56  ;;  %5900 = vperm.xlu1 %6574, %v9681_v50   ;;  %5904 = vperm.xlu0 %6575, %v9859_v10   ;;  %12723 = vst [vmem:[#allocation217_spill] sm:$0xff] %v10180_v8  ;;  %v3077_v12 = vpop.f32.mrf.mxu0  ;;  %v10182_v30 = vmul.f32 0.25, %v2963_v18  ;;  %v2965_v62 = vadd.f32 %v2964_v46, %v10066_v21 }
 0x266   :  { %v3078_v6 = vadd.f32 %v3077_v12, %v10116_v38  ;;  %v2966_v48 = vpop.f32.mrf.mxu1  ;;  %12725 = vst [vmem:[#allocation219_spill] sm:$0xff] %v10189_v61  ;;  %v10201_v34 = vmul.f32 0.25, %v3076_v5 }
 0x267   :  { %12724 = vst [vmem:[#allocation218_spill] sm:$0xff] %v10182_v30  ;;  %v3079_v63 = vpop.f32.mrf.mxu0  ;;  %v3619_v29 = vmax.f32 %v10180_v8, %v10182_v30  ;;  %v2967_v33 = vadd.f32 %v2966_v48, %v10075_v14  ;;  %v10206_v19 = vmul.f32 0.25, %v2965_v62 }
 0x268   :  { %v10194_v18 = vpop.permute.xlu1 %5588  ;;  %v10196_v42 = vpop.permute.xlu0 %5528  ;;  %v3080_v12 = vadd.f32 %v3079_v63, %v10126_v17  ;;  %12728 = vst [vmem:[#allocation222_spill] sm:$0xff] %v10201_v34  ;;  %v10214_v32 = vmul.f32 0.25, %v3078_v6 }
 0x269   :  { %12726 = vst [vmem:[#allocation220_spill] sm:$0xff] %v10194_v18  ;;  %12727 = vst [vmem:[#allocation221_spill] sm:$0xff] %v10196_v42  ;;  %5908 = vperm.xlu1 %6574, %v9703_v11   ;;  %5912 = vperm.xlu0 %6575, %v9872_v53   ;;  %v10204_v46 = vmax.f32 %v3619_v29, %v10189_v61  ;;  %v10208_v23 = vmul.f32 0.25, %v2967_v33  ;;  %v2970_v48 = vpop.f32.mrf.mxu1 }
 0x26a   :  { %12729 = vst [vmem:[#allocation223_spill] sm:$0xff] %v10206_v19  ;;  %v3083_v54 = vpop.f32.mrf.mxu0  ;;  %v2971_v18 = vadd.f32 %v2970_v48, %v10066_v21  ;;  %12731 = vst [vmem:[#allocation225_spill] sm:$0xff] %v10214_v32  ;;  %v10226_v26 = vmul.f32 0.25, %v3080_v12 }
 0x26b   :  { %12730 = vst [vmem:[#allocation224_spill] sm:$0xff] %v10208_v23  ;;  %v3084_v42 = vadd.f32 %v3083_v54, %v10116_v38  ;;  %v3620_v63 = vmax.f32 %v10206_v19, %v10208_v23  ;;  %v2972_v5 = vpop.f32.mrf.mxu1 }
 0x26c   :  { %v3085_v29 = vpop.f32.mrf.mxu0  ;;  %v2973_v62 = vadd.f32 %v2972_v5, %v10075_v14  ;;  %v10222_v48 = vpop.permute.xlu1 %5592  ;;  %v10231_v16 = vmul.f32 0.25, %v2971_v18 }
 0x26d   :  { %5916 = vperm.xlu1 %6574, %v9741_v0   ;;  %5920 = vperm.xlu0 %6575, %v9893_v22   ;;  %v3086_v33 = vadd.f32 %v3085_v29, %v10126_v17  ;;  %12732 = vst [vmem:[#allocation226_spill] sm:$0xff] %v10222_v48  ;;  %v10224_v54 = vpop.permute.xlu0 %5536  ;;  %v10229_v6 = vmax.f32 %v3620_v63, %v10214_v32  ;;  %v2974_v1 = vpop.f32.mrf.mxu1  ;;  %v10239_v12 = vmul.f32 0.25, %v3084_v42 }
 0x26e   :  { %12733 = vst [vmem:[#allocation227_spill] sm:$0xff] %v10224_v54  ;;  %v3087_v47 = vpop.f32.mrf.mxu0  ;;  %12734 = vst [vmem:[#allocation228_spill] sm:$0xff] %v10231_v16  ;;  %v10233_v52 = vmul.f32 0.25, %v2973_v62  ;;  %v2975_v23 = vadd.f32 %v2974_v1, %v10066_v21 }
 0x26f   :  { %v3088_v5 = vadd.f32 %v3087_v47, %v10116_v38  ;;  %v2976_v48 = vpop.f32.mrf.mxu1  ;;  %12736 = vst [vmem:[#allocation230_spill] sm:$0xff] %v10239_v12  ;;  %v10250_v47 = vmul.f32 0.25, %v3086_v33 }
 0x270   :  { %12735 = vst [vmem:[#allocation229_spill] sm:$0xff] %v10233_v52  ;;  %v3089_v54 = vpop.f32.mrf.mxu0  ;;  %v3621_v63 = vmax.f32 %v10231_v16, %v10233_v52  ;;  %v2977_v18 = vadd.f32 %v2976_v48, %v10075_v14  ;;  %v10246_v62 = vpop.permute.xlu1 %5600  ;;  %v10252_v29 = vmul.f32 0.25, %v2975_v23 }
 0x271   :  { %5924 = vperm.xlu1 %6574, %v9760_v35   ;;  %5928 = vperm.xlu0 %6575, %v9567_v57   ;;  %12737 = vst [vmem:[#allocation231_spill] sm:$0xff] %v10246_v62  ;;  %v10248_v1 = vpop.permute.xlu0 %5544  ;;  %12739 = vst [vmem:[#allocation233_spill] sm:$0xff] %v10250_v47  ;;  %v3090_v42 = vadd.f32 %v3089_v54, %v10126_v17  ;;  %v10264_v23 = vmul.f32 0.25, %v3088_v5 }
 0x272   :  { %12738 = vst [vmem:[#allocation232_spill] sm:$0xff] %v10248_v1  ;;  %12740 = vst [vmem:[#allocation234_spill] sm:$0xff] %v10252_v29  ;;  %v2980_v32 = vpop.f32.mrf.mxu1  ;;  %v3093_v19 = vpop.f32.mrf.mxu0  ;;  %v10256_v52 = vmax.f32 %v3621_v63, %v10239_v12  ;;  %v10258_v16 = vmul.f32 0.25, %v2977_v18  ;;  %v7491_v63 = vmov 17  }
 0x273   :  { %v2981_v57 = vadd.f32 %v2980_v32, %v10066_v21  ;;  %v3094_v48 = vadd.f32 %v3093_v19, %v10116_v38  ;;  %12742 = vst [vmem:[#allocation236_spill] sm:$0xff] %v10264_v23  ;;  %v10276_v12 = vmul.f32 0.25, %v3090_v42 }
 0x274   :  { %12741 = vst [vmem:[#allocation235_spill] sm:$0xff] %v10258_v16  ;;  %v2982_v62 = vpop.f32.mrf.mxu1  ;;  %v3095_v61 = vpop.f32.mrf.mxu0  ;;  %v3622_v54 = vmax.f32 %v10252_v29, %v10258_v16 }
 0x275   :  { %5932 = vperm.xlu1 %6574, %v9781_v49   ;;  %6576 = vset.pattern.permute.xlu0 %v7491_v63  ;;  %v10269_v18 = vpop.permute.xlu1 %5608  ;;  %v10271_v1 = vpop.permute.xlu0 %5584  ;;  %v2983_v32 = vadd.f32 %v2982_v62, %v10075_v14  ;;  %v3096_v19 = vadd.f32 %v3095_v61, %v10126_v17 }
 0x276   :  { %12743 = vst [vmem:[#allocation237_spill] sm:$0xff] %v10269_v18  ;;  %12744 = vst [vmem:[#allocation238_spill] sm:$0xff] %v10271_v1  ;;  %5968 = vperm.xlu0 %6576, %v9600_v58   ;;  %v2984_v33 = vpop.f32.mrf.mxu1  ;;  %v3097_v5 = vpop.f32.mrf.mxu0  ;;  %v10279_v16 = vmax.f32 %v3622_v54, %v10264_v23  ;;  %v10283_v18 = vmul.f32 0.25, %v2981_v57  ;;  %v10294_v23 = vmul.f32 0.25, %v3094_v48 }
 0x277   :  { %v2985_v29 = vadd.f32 %v2984_v33, %v10066_v21  ;;  %v3098_v30 = vadd.f32 %v3097_v5, %v10116_v38  ;;  %v10285_v1 = vmul.f32 0.25, %v2983_v32 }
 0x278   :  { %12745 = vst [vmem:[#allocation239_spill] sm:$0xff] %v10283_v18  ;;  %v2986_v58 = vpop.f32.mrf.mxu1  ;;  %v3099_v8 = vpop.f32.mrf.mxu0  ;;  %12749 = vst [vmem:[#allocation243_spill] sm:$0xff] %v10294_v23 }
 0x279   :  { %12746 = vst [vmem:[#allocation240_spill] sm:$0xff] %v10285_v1  ;;  %6577 = vset.pattern.permute.xlu1 %v7491_v63  ;;  %v2987_v62 = vadd.f32 %v2986_v58, %v10075_v14  ;;  %v10290_v42 = vpop.permute.xlu1 %5616  ;;  %v10292_v54 = vpop.permute.xlu0 %5596  ;;  %v3623_v57 = vmax.f32 %v10283_v18, %v10285_v1  ;;  %v3100_v33 = vadd.f32 %v3099_v8, %v10126_v17  ;;  %v10301_v5 = vmul.f32 0.25, %v2985_v29 }
 0x27a   :  { %12747 = vst [vmem:[#allocation241_spill] sm:$0xff] %v10290_v42  ;;  %12748 = vst [vmem:[#allocation242_spill] sm:$0xff] %v10292_v54  ;;  %5972 = vperm.xlu1 %6577, %v9800_v15   ;;  %v2990_v32 = vpop.f32.mrf.mxu1  ;;  %5980 = vperm.xlu0 %6576, %v9747_v9   ;;  %v10306_v42 = vmul.f32 0.25, %v3096_v19  ;;  %v10312_v1 = vmul.f32 0.25, %v3098_v30 }
 0x27b   :  { %12750 = vst [vmem:[#allocation244_spill] sm:$0xff] %v10301_v5  ;;  %v10303_v63 = vmul.f32 0.25, %v2987_v62  ;;  %v2991_v58 = vadd.f32 %v2990_v32, %v10066_v21  ;;  %v3103_v61 = vpop.f32.mrf.mxu0  ;;  %v10309_v48 = vmax.f32 %v3623_v57, %v10294_v23  ;;  %v10321_v32 = vmul.f32 0.25, %v3100_v33 }
 0x27c   :  { %12752 = vst [vmem:[#allocation246_spill] sm:$0xff] %v10306_v42  ;;  %v3104_v54 = vadd.f32 %v3103_v61, %v10116_v38  ;;  %v2992_v15 = vpop.f32.mrf.mxu1  ;;  %12753 = vst [vmem:[#allocation247_spill] sm:$0xff] %v10312_v1 }
 0x27d   :  { %12751 = vst [vmem:[#allocation245_spill] sm:$0xff] %v10303_v63  ;;  %v3624_v9 = vmax.f32 %v10301_v5, %v10303_v63  ;;  %v2993_v8 = vadd.f32 %v2992_v15, %v10075_v14  ;;  %v3105_v29 = vpop.f32.mrf.mxu0  ;;  %v10317_v62 = vpop.permute.xlu1 %5624  ;;  %12755 = vst [vmem:[#allocation249_spill] sm:$0xff] %v10321_v32  ;;  %v10331_v15 = vmul.f32 0.25, %v2991_v58 }
 0x27e   :  { %12754 = vst [vmem:[#allocation248_spill] sm:$0xff] %v10317_v62  ;;  %5976 = vperm.xlu1 %6577, %v9709_v27   ;;  %v3106_v61 = vadd.f32 %v3105_v29, %v10126_v17  ;;  %v10325_v57 = vpop.permute.xlu0 %5604  ;;  %v2994_v30 = vpop.f32.mrf.mxu1  ;;  %5988 = vperm.xlu0 %6576, %v9652_v13  }
 0x27f   :  { %12756 = vst [vmem:[#allocation250_spill] sm:$0xff] %v10325_v57  ;;  %v10329_v63 = vmax.f32 %v3624_v9, %v10312_v1  ;;  %12757 = vst [vmem:[#allocation251_spill] sm:$0xff] %v10331_v15  ;;  %v10333_v62 = vmul.f32 0.25, %v2993_v8  ;;  %v2995_v19 = vadd.f32 %v2994_v30, %v10066_v21  ;;  %v3107_v33 = vpop.f32.mrf.mxu0  ;;  %v10339_v57 = vmul.f32 0.25, %v3104_v54 }
 0x280   :  { %v3108_v5 = vadd.f32 %v3107_v33, %v10116_v38  ;;  %v2996_v27 = vpop.f32.mrf.mxu1  ;;  %v10346_v8 = vmul.f32 0.25, %v3106_v61 }
 0x281   :  { %12758 = vst [vmem:[#allocation252_spill] sm:$0xff] %v10333_v62  ;;  %12759 = vst [vmem:[#allocation253_spill] sm:$0xff] %v10339_v57  ;;  %v3625_v13 = vmax.f32 %v10331_v15, %v10333_v62  ;;  %v2997_v9 = vadd.f32 %v2996_v27, %v10075_v14  ;;  %v3109_v58 = vpop.f32.mrf.mxu0  ;;  %v10344_v1 = vpop.permute.xlu1 %5632  ;;  %v10356_v29 = vmul.f32 0.25, %v2995_v19 }
 0x282   :  { %12760 = vst [vmem:[#allocation254_spill] sm:$0xff] %v10344_v1  ;;  %12761 = vst [vmem:[#allocation255_spill] sm:$0xff] %v10346_v8  ;;  %v3110_v30 = vadd.f32 %v3109_v58, %v10126_v17  ;;  %v10349_v23 = vpop.permute.xlu0 %5612  ;;  %v3000_v33 = vpop.f32.mrf.mxu1  ;;  %5984 = vperm.xlu1 %6577, %v9821_v4   ;;  %5996 = vperm.xlu0 %6576, %v9681_v50   ;;  %v10364_v15 = vmul.f32 0.25, %v3108_v5 }
 0x283   :  { %12762 = vst [vmem:[#allocation256_spill] sm:$0xff] %v10349_v23  ;;  %v10354_v54 = vmax.f32 %v3625_v13, %v10339_v57  ;;  %12763 = vst [vmem:[#allocation257_spill] sm:$0xff] %v10356_v29  ;;  %v10358_v27 = vmul.f32 0.25, %v2997_v9  ;;  %v3001_v1 = vadd.f32 %v3000_v33, %v10066_v21  ;;  %v3113_v61 = vpop.f32.mrf.mxu0 }
 0x284   :  { %v3114_v62 = vadd.f32 %v3113_v61, %v10116_v38  ;;  %v3002_v58 = vpop.f32.mrf.mxu1  ;;  %12765 = vst [vmem:[#allocation259_spill] sm:$0xff] %v10364_v15  ;;  %v10371_v9 = vmul.f32 0.25, %v3110_v30 }
 0x285   :  { %12764 = vst [vmem:[#allocation258_spill] sm:$0xff] %v10358_v27  ;;  %v3626_v4 = vmax.f32 %v10356_v29, %v10358_v27  ;;  %v3003_v50 = vadd.f32 %v3002_v58, %v10075_v14  ;;  %v3115_v19 = vpop.f32.mrf.mxu0  ;;  %v10369_v13 = vpop.permute.xlu1 %5640  ;;  %v10381_v23 = vmul.f32 0.25, %v3001_v1 }
 0x286   :  { %12766 = vst [vmem:[#allocation260_spill] sm:$0xff] %v10369_v13  ;;  %12767 = vst [vmem:[#allocation261_spill] sm:$0xff] %v10371_v9  ;;  %v3116_v33 = vadd.f32 %v3115_v19, %v10126_v17  ;;  %v10374_v57 = vpop.permute.xlu0 %5620  ;;  %v3004_v61 = vpop.f32.mrf.mxu1  ;;  %5992 = vperm.xlu1 %6577, %v9838_v2   ;;  %6004 = vperm.xlu0 %6576, %v9703_v11   ;;  %v10389_v29 = vmul.f32 0.25, %v3114_v62 }
 0x287   :  { %12768 = vst [vmem:[#allocation262_spill] sm:$0xff] %v10374_v57  ;;  %v10379_v5 = vmax.f32 %v3626_v4, %v10364_v15  ;;  %12769 = vst [vmem:[#allocation263_spill] sm:$0xff] %v10381_v23  ;;  %v10383_v58 = vmul.f32 0.25, %v3003_v50  ;;  %v3005_v13 = vadd.f32 %v3004_v61, %v10066_v21  ;;  %v3117_v30 = vpop.f32.mrf.mxu0 }
 0x288   :  { %v3118_v27 = vadd.f32 %v3117_v30, %v10116_v38  ;;  %v3006_v19 = vpop.f32.mrf.mxu1  ;;  %12771 = vst [vmem:[#allocation265_spill] sm:$0xff] %v10389_v29  ;;  %v10401_v30 = vmul.f32 0.25, %v3116_v33 }
 0x289   :  { %12770 = vst [vmem:[#allocation264_spill] sm:$0xff] %v10383_v58  ;;  %v3627_v2 = vmax.f32 %v10381_v23, %v10383_v58  ;;  %v3007_v11 = vadd.f32 %v3006_v19, %v10075_v14  ;;  %v3119_v1 = vpop.f32.mrf.mxu0  ;;  %v10406_v57 = vmul.f32 0.25, %v3005_v13 }
 0x28a   :  { %v3120_v4 = vadd.f32 %v3119_v1, %v10126_v17  ;;  %v10395_v50 = vpop.permute.xlu1 %5680  ;;  %v10397_v61 = vpop.permute.xlu0 %5628  ;;  %6000 = vperm.xlu1 %6577, %v9859_v10   ;;  %6012 = vperm.xlu0 %6576, %v9741_v0   ;;  %12774 = vst [vmem:[#allocation268_spill] sm:$0xff] %v10401_v30 }
 0x28b   :  { %12772 = vst [vmem:[#allocation266_spill] sm:$0xff] %v10395_v50  ;;  %12773 = vst [vmem:[#allocation267_spill] sm:$0xff] %v10397_v61  ;;  %v10404_v62 = vmax.f32 %v3627_v2, %v10389_v29  ;;  %v10408_v58 = vmul.f32 0.25, %v3007_v11  ;;  %v3010_v19 = vpop.f32.mrf.mxu1  ;;  %v3123_v23 = vpop.f32.mrf.mxu0  ;;  %v10414_v61 = vmul.f32 0.25, %v3118_v27 }
 0x28c   :  { %12775 = vst [vmem:[#allocation269_spill] sm:$0xff] %v10406_v57  ;;  %v3011_v1 = vadd.f32 %v3010_v19, %v10066_v21  ;;  %v3124_v15 = vadd.f32 %v3123_v23, %v10116_v38  ;;  %v10426_v23 = vmul.f32 0.25, %v3120_v4 }
 0x28d   :  { %12776 = vst [vmem:[#allocation270_spill] sm:$0xff] %v10408_v58  ;;  %12777 = vst [vmem:[#allocation271_spill] sm:$0xff] %v10414_v61  ;;  %v3628_v0 = vmax.f32 %v10406_v57, %v10408_v58  ;;  %v3012_v33 = vpop.f32.mrf.mxu1  ;;  %v3125_v2 = vpop.f32.mrf.mxu0 }
 0x28e   :  { %v3013_v13 = vadd.f32 %v3012_v33, %v10075_v14  ;;  %v3126_v11 = vadd.f32 %v3125_v2, %v10126_v17  ;;  %v10420_v29 = vpop.permute.xlu1 %5688  ;;  %v10422_v18 = vpop.permute.xlu0 %5636  ;;  %6008 = vperm.xlu1 %6577, %v9872_v53   ;;  %6020 = vperm.xlu0 %6576, %v9760_v35   ;;  %12780 = vst [vmem:[#allocation274_spill] sm:$0xff] %v10426_v23  ;;  %v10431_v58 = vmul.f32 0.25, %v3011_v1 }
 0x28f   :  { %12778 = vst [vmem:[#allocation272_spill] sm:$0xff] %v10420_v29  ;;  %12779 = vst [vmem:[#allocation273_spill] sm:$0xff] %v10422_v18  ;;  %v10429_v27 = vmax.f32 %v3628_v0, %v10414_v61  ;;  %v3014_v19 = vpop.f32.mrf.mxu1  ;;  %v3127_v10 = vpop.f32.mrf.mxu0  ;;  %v3058_v53 = vadd.f32 %v10090_v3, %v10116_v38  ;;  %v10441_v0 = vmul.f32 0.25, %v3124_v15 }
 0x290   :  { %12781 = vst [vmem:[#allocation275_spill] sm:$0xff] %v10431_v58  ;;  %v10433_v33 = vmul.f32 0.25, %v3013_v13  ;;  %v3015_v2 = vadd.f32 %v3014_v19, %v10066_v21  ;;  %v3128_v57 = vadd.f32 %v3127_v10, %v10116_v38  ;;  %v2143_v10 = vsub.s32 4, %v12698_v41 }
 0x291   :  { %v3016_v4 = vpop.f32.mrf.mxu1  ;;  %v3129_v18 = vpop.f32.mrf.mxu0  ;;  %12783 = vst [vmem:[#allocation277_spill] sm:$0xff] %v10441_v0  ;;  %v10454_v19 = vmul.f32 0.25, %v3126_v11 }
 0x292   :  { %12782 = vst [vmem:[#allocation276_spill] sm:$0xff] %v10433_v33  ;;  %v3629_v1 = vmax.f32 %v10431_v58, %v10433_v33  ;;  %v3017_v13 = vadd.f32 %v3016_v4, %v10075_v14  ;;  %v10446_v61 = vpop.permute.xlu1 %5692  ;;  %v10448_v21 = vpop.permute.xlu0 %5644  ;;  %6016 = vperm.xlu1 %6577, %v9893_v22   ;;  %6028 = vperm.xlu0 %6576, %v9781_v49   ;;  %v10459_v35 = vmul.f32 0.25, %v3015_v2 }
 0x293   :  { %12784 = vst [vmem:[#allocation278_spill] sm:$0xff] %v10446_v61  ;;  %12785 = vst [vmem:[#allocation279_spill] sm:$0xff] %v10448_v21  ;;  %v3130_v3 = vadd.f32 %v3129_v18, %v10126_v17  ;;  %v10465_v21 = vmul.f32 0.25, %v3058_v53  ;;  %v3060_v22 = vadd.f32 %v10099_v60, %v10126_v17  ;;  %v2147_v18 = vsub.s32 5, %v12698_v41  ;;  %v7472_v60 = vld [vmem:[%s12255_s1 + $0x70] sm:$0xff] }
 0x294   :  { %12786 = vst [vmem:[#allocation280_spill] sm:$0xff] %v10454_v19  ;;  %v10457_v15 = vmax.f32 %v3629_v1, %v10441_v0  ;;  %12787 = vst [vmem:[#allocation281_spill] sm:$0xff] %v10459_v35  ;;  %v10461_v14 = vmul.f32 0.25, %v3017_v13  ;;  %v10463_v4 = vpop.f32.mrf.mxu1  ;;  %v10474_v1 = vmul.f32 0.25, %v3128_v57  ;;  %v12792_v53 = vmax.f32 %v10111_v45, %v10113_v24 }
 0x295   :  { %12789 = vst [vmem:[#allocation283_spill] sm:$0xff] %v10465_v21  ;;  %v10469_v49 = vpop.f32.mrf.mxu0  ;;  %v10490_v57 = vrot.slane %v10058_v39, %v2143_v10  ;;  %v10501_v61 = vmul.f32 0.25, %v3060_v22 }
 0x296   :  { %12788 = vst [vmem:[#allocation282_spill] sm:$0xff] %v10461_v14  ;;  %12790 = vst [vmem:[#allocation284_spill] sm:$0xff] %v10474_v1  ;;  %v3630_v2 = vmax.f32 %v10459_v35, %v10461_v14  ;;  %v10478_v13 = vpop.f32.mrf.mxu1  ;;  %v10480_v0 = vpop.permute.xlu1 %5700  ;;  %6024 = vperm.xlu1 %6577, %v7472_v60   ;;  %v3632_v33 = vmax.f32 %v12792_v53, %v10465_v21  ;;  %v10496_v35 = vmul.f32 0.25, %v3130_v3 }
 0x297   :  { %12791 = vst [vmem:[#allocation285_spill] sm:$0xff] %v10480_v0  ;;  %v10492_v11 = vpop.f32.mrf.mxu0  ;;  %v10494_v14 = vpop.permute.xlu0 %5684  ;;  %12795 = vst [vmem:[#allocation288_spill] sm:$0xff] %v10501_v61  ;;  %v10504_v60 = vrot.slane %v10058_v39, %v2147_v18 }
 0x298   :  { %12793 = vst [vmem:[#allocation286_spill] sm:$0xff] %v10494_v14  ;;  %12794 = vst [vmem:[#allocation287_spill] sm:$0xff] %v10496_v35  ;;  %v10499_v58 = vmax.f32 %v3630_v2, %v10474_v1  ;;  %v3170_v0 = vpop.f32.mrf.mxu1  ;;  %v3648_v3 = vmax.f32 %v3632_v33, %v10501_v61 }
 0x299   :  { %v3171_v53 = vadd.f32 %v3170_v0, %v10490_v57  ;;  %v10507_v29 = vpop.f32.mrf.mxu0 }
 0x29a   :  { %v3172_v50 = vpop.f32.mrf.mxu1  ;;  %v10511_v14 = vpop.permute.xlu1 %5708 }
 0x29b   :  { %12796 = vst [vmem:[#allocation289_spill] sm:$0xff] %v10511_v14  ;;  %v10514_v2 = vmul.f32 0.25, %v3171_v53  ;;  %v3173_v22 = vadd.f32 %v3172_v50, %v10504_v60  ;;  %v10517_v1 = vpop.f32.mrf.mxu0  ;;  %v10519_v18 = vpop.permute.xlu0 %5696 }
 0x29c   :  { %12798 = vst [vmem:[#allocation291_spill] sm:$0xff] %v10519_v18  ;;  %v3176_v56 = vpop.f32.mrf.mxu1 }
 0x29d   :  { %12797 = vst [vmem:[#allocation290_spill] sm:$0xff] %v10514_v2  ;;  %v10522_v0 = vmax.f32 %v3648_v3, %v10514_v2  ;;  %v10524_v51 = vmul.f32 0.25, %v3173_v22  ;;  %v3177_v10 = vadd.f32 %v3176_v56, %v10490_v57  ;;  %v10527_v20 = vpop.f32.mrf.mxu0  ;;  %v12802_v56 = vmax.f32 %v10158_v44, %v10155_v37 }
 0x29e   :  { %v3178_v14 = vpop.f32.mrf.mxu1  ;;  %v10529_v33 = vpop.permute.xlu1 %5716  ;;  %v2155_v37 = vsub.s32 7, %v12698_v41 }
 0x29f   :  { %12799 = vst [vmem:[#allocation292_spill] sm:$0xff] %v10529_v33  ;;  %v10533_v53 = vmul.f32 0.25, %v3177_v10  ;;  %v3179_v18 = vadd.f32 %v3178_v14, %v10504_v60  ;;  %v10536_v36 = vpop.f32.mrf.mxu0  ;;  %v10538_v3 = vpop.permute.xlu0 %5704 }
 0x2a0   :  { %12801 = vst [vmem:[#allocation294_spill] sm:$0xff] %v10538_v3  ;;  %v3180_v22 = vpop.f32.mrf.mxu1 }
 0x2a1   :  { %12800 = vst [vmem:[#allocation293_spill] sm:$0xff] %v10533_v53  ;;  %v10544_v2 = vmax.f32 %v12802_v56, %v10533_v53  ;;  %v10546_v31 = vmul.f32 0.25, %v3179_v18  ;;  %v3181_v33 = vadd.f32 %v3180_v22, %v10490_v57  ;;  %v10549_v50 = vpop.f32.mrf.mxu0  ;;  %v2151_v56 = vsub.s32 6, %v12698_v41 }
 0x2a2   :  { %v3182_v10 = vpop.f32.mrf.mxu1  ;;  %v10560_v44 = vpop.permute.xlu1 %5724  ;;  %v12807_v22 = vmax.f32 %v10176_v25, %v10173_v7  ;;  %v12813_v41 = vmax.f32 %v10204_v46, %v10201_v34 }
 0x2a3   :  { %v10553_v43 = vmul.f32 0.25, %v3181_v33  ;;  %v3183_v3 = vadd.f32 %v3182_v10, %v10504_v60  ;;  %v10556_v61 = vpop.f32.mrf.mxu0  ;;  %v10558_v21 = vpop.permute.xlu0 %5712  ;;  %12806 = vst [vmem:[#allocation298_spill] sm:$0xff] %v10560_v44 }
 0x2a4   :  { %12804 = vst [vmem:[#allocation296_spill] sm:$0xff] %v10556_v61  ;;  %12805 = vst [vmem:[#allocation297_spill] sm:$0xff] %v10558_v21  ;;  %v3186_v18 = vpop.f32.mrf.mxu1 }
 0x2a5   :  { %12803 = vst [vmem:[#allocation295_spill] sm:$0xff] %v10553_v43  ;;  %v10567_v53 = vmax.f32 %v12807_v22, %v10553_v43  ;;  %v10569_v14 = vmul.f32 0.25, %v3183_v3  ;;  %v3187_v33 = vadd.f32 %v3186_v18, %v10490_v57  ;;  %v10572_v10 = vpop.f32.mrf.mxu0  ;;  %v10585_v22 = vrot.slane %v10058_v39, %v2151_v56 }
 0x2a6   :  { %v3188_v21 = vpop.f32.mrf.mxu1  ;;  %v10599_v7 = vpop.permute.xlu1 %5732 }
 0x2a7   :  { %12808 = vst [vmem:[#allocation299_spill] sm:$0xff] %v10567_v53  ;;  %12809 = vst [vmem:[#allocation300_spill] sm:$0xff] %v10569_v14  ;;  %v10577_v24 = vmul.f32 0.25, %v3187_v33  ;;  %v3189_v45 = vadd.f32 %v3188_v21, %v10504_v60  ;;  %v10580_v61 = vpop.f32.mrf.mxu0  ;;  %v10582_v25 = vpop.permute.xlu0 %5720  ;;  %v10597_v21 = vrot.slane %v10058_v39, %v2155_v37  ;;  %v12819_v37 = vmax.f32 %v10229_v6, %v10226_v26 }
 0x2a8   :  { %12811 = vst [vmem:[#allocation302_spill] sm:$0xff] %v10580_v61  ;;  %12812 = vst [vmem:[#allocation303_spill] sm:$0xff] %v10582_v25  ;;  %v3190_v3 = vpop.f32.mrf.mxu1 }
 0x2a9   :  { %12810 = vst [vmem:[#allocation301_spill] sm:$0xff] %v10577_v24  ;;  %v10591_v18 = vmax.f32 %v12813_v41, %v10577_v24  ;;  %v10593_v43 = vmul.f32 0.25, %v3189_v45  ;;  %v3191_v33 = vadd.f32 %v3190_v3, %v10490_v57  ;;  %v3303_v44 = vpop.f32.mrf.mxu0  ;;  %12816 = vst [vmem:[#allocation306_spill] sm:$0xff] %v10599_v7 }
 0x2aa   :  { %v3192_v25 = vpop.f32.mrf.mxu1  ;;  %v3304_v46 = vadd.f32 %v3303_v44, %v10585_v22 }
 0x2ab   :  { %12814 = vst [vmem:[#allocation304_spill] sm:$0xff] %v10591_v18  ;;  %12815 = vst [vmem:[#allocation305_spill] sm:$0xff] %v10593_v43  ;;  %v10603_v14 = vmul.f32 0.25, %v3191_v33  ;;  %v3193_v41 = vadd.f32 %v3192_v25, %v10504_v60  ;;  %v3305_v45 = vpop.f32.mrf.mxu0  ;;  %v10607_v24 = vpop.permute.xlu0 %5728 }
 0x2ac   :  { %12818 = vst [vmem:[#allocation308_spill] sm:$0xff] %v10607_v24  ;;  %v3306_v3 = vadd.f32 %v3305_v45, %v10597_v21  ;;  %v3196_v34 = vpop.f32.mrf.mxu1  ;;  %v10618_v25 = vmul.f32 0.25, %v3304_v46  ;;  %v12826_v46 = vmax.f32 %v10256_v52, %v10250_v47 }
 0x2ad   :  { %12817 = vst [vmem:[#allocation307_spill] sm:$0xff] %v10603_v14  ;;  %v3668_v39 = vmax.f32 %v12819_v37, %v10603_v14  ;;  %v10614_v7 = vmul.f32 0.25, %v3193_v41  ;;  %v3197_v33 = vadd.f32 %v3196_v34, %v10490_v57  ;;  %v3309_v56 = vpop.f32.mrf.mxu0 }
 0x2ae   :  { %v3310_v44 = vadd.f32 %v3309_v56, %v10585_v22  ;;  %v3198_v43 = vpop.f32.mrf.mxu1  ;;  %12821 = vst [vmem:[#allocation310_spill] sm:$0xff] %v10618_v25  ;;  %v10624_v61 = vmul.f32 0.25, %v3306_v3  ;;  %v10632_v56 = vpop.permute.xlu1 %5740 }
 0x2af   :  { %12820 = vst [vmem:[#allocation309_spill] sm:$0xff] %v10614_v7  ;;  %v3684_v24 = vmax.f32 %v3668_v39, %v10614_v7  ;;  %v10621_v18 = vmul.f32 0.25, %v3197_v33  ;;  %v3199_v45 = vadd.f32 %v3198_v43, %v10504_v60  ;;  %v3311_v53 = vpop.f32.mrf.mxu0  ;;  %v10627_v41 = vpop.permute.xlu0 %5736  ;;  %12825 = vst [vmem:[#allocation314_spill] sm:$0xff] %v10632_v56 }
 0x2b0   :  { %12823 = vst [vmem:[#allocation312_spill] sm:$0xff] %v10624_v61  ;;  %v3312_v6 = vadd.f32 %v3311_v53, %v10597_v21  ;;  %12824 = vst [vmem:[#allocation313_spill] sm:$0xff] %v10627_v41  ;;  %v3200_v34 = vpop.f32.mrf.mxu1  ;;  %v10641_v7 = vmul.f32 0.25, %v3310_v44 }
 0x2b1   :  { %12822 = vst [vmem:[#allocation311_spill] sm:$0xff] %v10621_v18  ;;  %v10630_v37 = vmax.f32 %v3684_v24, %v10618_v25  ;;  %v3669_v39 = vmax.f32 %v12826_v46, %v10621_v18  ;;  %v10638_v33 = vmul.f32 0.25, %v3199_v45  ;;  %v3201_v43 = vadd.f32 %v3200_v34, %v10490_v57  ;;  %v3313_v3 = vpop.f32.mrf.mxu0 }
 0x2b2   :  { %12828 = vst [vmem:[#allocation316_spill] sm:$0xff] %v10641_v7  ;;  %v3314_v53 = vadd.f32 %v3313_v3, %v10585_v22  ;;  %v3202_v41 = vpop.f32.mrf.mxu1  ;;  %v10650_v45 = vmul.f32 0.25, %v3312_v6  ;;  %v12832_v24 = vmax.f32 %v10279_v16, %v10276_v12 }
 0x2b3   :  { %12827 = vst [vmem:[#allocation315_spill] sm:$0xff] %v10638_v33  ;;  %v3685_v56 = vmax.f32 %v3669_v39, %v10638_v33  ;;  %v10647_v25 = vmul.f32 0.25, %v3201_v43  ;;  %v3203_v52 = vadd.f32 %v3202_v41, %v10504_v60  ;;  %v3315_v46 = vpop.f32.mrf.mxu0  ;;  %v10653_v18 = vpop.permute.xlu0 %5776 }
 0x2b4   :  { %12830 = vst [vmem:[#allocation318_spill] sm:$0xff] %v10650_v45  ;;  %v3316_v34 = vadd.f32 %v3315_v46, %v10597_v21  ;;  %12831 = vst [vmem:[#allocation319_spill] sm:$0xff] %v10653_v18  ;;  %v3206_v44 = vpop.f32.mrf.mxu1  ;;  %v10665_v6 = vmul.f32 0.25, %v3314_v53  ;;  %v12839_v18 = vmax.f32 %v10309_v48, %v10306_v42 }
 0x2b5   :  { %12829 = vst [vmem:[#allocation317_spill] sm:$0xff] %v10647_v25  ;;  %v10656_v3 = vmax.f32 %v3685_v56, %v10641_v7  ;;  %v3670_v39 = vmax.f32 %v12832_v24, %v10647_v25  ;;  %v10662_v43 = vmul.f32 0.25, %v3203_v52  ;;  %v3207_v41 = vadd.f32 %v3206_v44, %v10490_v57  ;;  %v3319_v33 = vpop.f32.mrf.mxu0  ;;  %v10670_v56 = vpop.permute.xlu1 %5780 }
 0x2b6   :  { %12834 = vst [vmem:[#allocation321_spill] sm:$0xff] %v10665_v6  ;;  %v3320_v46 = vadd.f32 %v3319_v33, %v10585_v22  ;;  %v3208_v14 = vpop.f32.mrf.mxu1  ;;  %12835 = vst [vmem:[#allocation322_spill] sm:$0xff] %v10670_v56  ;;  %v10676_v52 = vmul.f32 0.25, %v3316_v34 }
 0x2b7   :  { %12833 = vst [vmem:[#allocation320_spill] sm:$0xff] %v10662_v43  ;;  %v3686_v7 = vmax.f32 %v3670_v39, %v10662_v43  ;;  %v10673_v47 = vmul.f32 0.25, %v3207_v41  ;;  %v3209_v16 = vadd.f32 %v3208_v14, %v10504_v60  ;;  %v3321_v24 = vpop.f32.mrf.mxu0  ;;  %v10679_v44 = vpop.permute.xlu0 %5788 }
 0x2b8   :  { %12837 = vst [vmem:[#allocation324_spill] sm:$0xff] %v10676_v52  ;;  %v3322_v53 = vadd.f32 %v3321_v24, %v10597_v21  ;;  %12838 = vst [vmem:[#allocation325_spill] sm:$0xff] %v10679_v44  ;;  %v3210_v33 = vpop.f32.mrf.mxu1  ;;  %v10691_v34 = vmul.f32 0.25, %v3320_v46 }
 0x2b9   :  { %12836 = vst [vmem:[#allocation323_spill] sm:$0xff] %v10673_v47  ;;  %v10682_v25 = vmax.f32 %v3686_v7, %v10665_v6  ;;  %v3671_v39 = vmax.f32 %v12839_v18, %v10673_v47  ;;  %v10688_v41 = vmul.f32 0.25, %v3209_v16  ;;  %v3211_v14 = vadd.f32 %v3210_v33, %v10490_v57  ;;  %v3323_v43 = vpop.f32.mrf.mxu0  ;;  %v10705_v42 = vpop.permute.xlu1 %5784 }
 0x2ba   :  { %12841 = vst [vmem:[#allocation327_spill] sm:$0xff] %v10691_v34  ;;  %v3324_v24 = vadd.f32 %v3323_v43, %v10585_v22  ;;  %v3212_v56 = vpop.f32.mrf.mxu1  ;;  %v10700_v16 = vmul.f32 0.25, %v3322_v53  ;;  %12845 = vst [vmem:[#allocation331_spill] sm:$0xff] %v10705_v42  ;;  %v12852_v42 = vmax.f32 %v10354_v54, %v10346_v8 }
 0x2bb   :  { %12840 = vst [vmem:[#allocation326_spill] sm:$0xff] %v10688_v41  ;;  %v3687_v7 = vmax.f32 %v3671_v39, %v10688_v41  ;;  %v10697_v6 = vmul.f32 0.25, %v3211_v14  ;;  %v3213_v48 = vadd.f32 %v3212_v56, %v10504_v60  ;;  %v3325_v18 = vpop.f32.mrf.mxu0  ;;  %v10703_v47 = vpop.permute.xlu0 %5796  ;;  %v12846_v39 = vmax.f32 %v10329_v63, %v10321_v32 }
 0x2bc   :  { %12843 = vst [vmem:[#allocation329_spill] sm:$0xff] %v10700_v16  ;;  %v3326_v33 = vadd.f32 %v3325_v18, %v10597_v21  ;;  %12844 = vst [vmem:[#allocation330_spill] sm:$0xff] %v10703_v47  ;;  %v3216_v46 = vpop.f32.mrf.mxu1  ;;  %v10717_v41 = vmul.f32 0.25, %v3324_v24 }
 0x2bd   :  { %12842 = vst [vmem:[#allocation328_spill] sm:$0xff] %v10697_v6  ;;  %v10708_v43 = vmax.f32 %v3687_v7, %v10691_v34  ;;  %v3672_v14 = vmax.f32 %v12846_v39, %v10697_v6  ;;  %v10714_v44 = vmul.f32 0.25, %v3213_v48  ;;  %v3217_v56 = vadd.f32 %v3216_v46, %v10490_v57  ;;  %v3329_v53 = vpop.f32.mrf.mxu0 }
 0x2be   :  { %12848 = vst [vmem:[#allocation333_spill] sm:$0xff] %v10717_v41  ;;  %v3330_v18 = vadd.f32 %v3329_v53, %v10585_v22  ;;  %v3218_v47 = vpop.f32.mrf.mxu1  ;;  %v10726_v48 = vmul.f32 0.25, %v3326_v33 }
 0x2bf   :  { %12847 = vst [vmem:[#allocation332_spill] sm:$0xff] %v10714_v44  ;;  %v3688_v7 = vmax.f32 %v3672_v14, %v10714_v44  ;;  %v10723_v34 = vmul.f32 0.25, %v3217_v56  ;;  %v3219_v63 = vadd.f32 %v3218_v47, %v10504_v60  ;;  %v3331_v39 = vpop.f32.mrf.mxu0  ;;  %v10729_v6 = vpop.permute.xlu0 %5804 }
 0x2c0   :  { %12850 = vst [vmem:[#allocation335_spill] sm:$0xff] %v10726_v48  ;;  %v3332_v46 = vadd.f32 %v3331_v39, %v10597_v21  ;;  %12851 = vst [vmem:[#allocation336_spill] sm:$0xff] %v10729_v6  ;;  %v3220_v24 = vpop.f32.mrf.mxu1  ;;  %v10741_v33 = vmul.f32 0.25, %v3330_v18  ;;  %v10744_v6 = vpop.permute.xlu1 %5792 }
 0x2c1   :  { %12849 = vst [vmem:[#allocation334_spill] sm:$0xff] %v10723_v34  ;;  %v10732_v53 = vmax.f32 %v3688_v7, %v10717_v41  ;;  %v3673_v14 = vmax.f32 %v12852_v42, %v10723_v34  ;;  %v10738_v56 = vmul.f32 0.25, %v3219_v63  ;;  %v3221_v47 = vadd.f32 %v3220_v24, %v10490_v57  ;;  %v3333_v44 = vpop.f32.mrf.mxu0  ;;  %12855 = vst [vmem:[#allocation339_spill] sm:$0xff] %v10744_v6 }
 0x2c2   :  { %12854 = vst [vmem:[#allocation338_spill] sm:$0xff] %v10741_v33  ;;  %v3334_v39 = vadd.f32 %v3333_v44, %v10585_v22  ;;  %v3222_v32 = vpop.f32.mrf.mxu1  ;;  %v3054_v63 = vadd.f32 %v10079_v59, %v10116_v38  ;;  %v10754_v18 = vmul.f32 0.25, %v3332_v46  ;;  %v3056_v59 = vadd.f32 %v10082_v55, %v10126_v17 }
 0x2c3   :  { %12853 = vst [vmem:[#allocation337_spill] sm:$0xff] %v10738_v56  ;;  %v3689_v41 = vmax.f32 %v3673_v14, %v10738_v56  ;;  %v10749_v16 = vmul.f32 0.25, %v3221_v47  ;;  %v3223_v42 = vadd.f32 %v3222_v32, %v10504_v60  ;;  %v3335_v54 = vpop.f32.mrf.mxu0  ;;  %v10757_v24 = vpop.permute.xlu0 %5812  ;;  %v12860_v14 = vmax.f32 %v10379_v5, %v10371_v9 }
 0x2c4   :  { %12857 = vst [vmem:[#allocation341_spill] sm:$0xff] %v10754_v18  ;;  %v3336_v44 = vadd.f32 %v3335_v54, %v10597_v21  ;;  %12858 = vst [vmem:[#allocation342_spill] sm:$0xff] %v10757_v24  ;;  %v3226_v34 = vpop.f32.mrf.mxu1  ;;  %v10771_v46 = vmul.f32 0.25, %v3334_v39  ;;  %v3167_v55 = vadd.f32 %v10463_v4, %v10490_v57 }
 0x2c5   :  { %12856 = vst [vmem:[#allocation340_spill] sm:$0xff] %v10749_v16  ;;  %v10760_v6 = vmax.f32 %v3689_v41, %v10741_v33  ;;  %v3674_v47 = vmax.f32 %v12860_v14, %v10749_v16  ;;  %v10766_v32 = vmul.f32 0.25, %v3223_v42  ;;  %v3227_v7 = vadd.f32 %v3226_v34, %v10490_v57  ;;  %v3339_v38 = vpop.f32.mrf.mxu0 }
 0x2c6   :  { %12862 = vst [vmem:[#allocation345_spill] sm:$0xff] %v10771_v46  ;;  %v3340_v54 = vadd.f32 %v3339_v38, %v10585_v22  ;;  %v3228_v24 = vpop.f32.mrf.mxu1  ;;  %v10780_v34 = vmul.f32 0.25, %v3054_v63  ;;  %v10784_v17 = vmul.f32 0.25, %v3336_v44  ;;  %v10799_v44 = vmul.f32 0.25, %v3056_v59 }
 0x2c7   :  { %12859 = vst [vmem:[#allocation343_spill] sm:$0xff] %v10760_v6  ;;  %12861 = vst [vmem:[#allocation344_spill] sm:$0xff] %v10766_v32  ;;  %v3690_v33 = vmax.f32 %v3674_v47, %v10766_v32  ;;  %v10777_v5 = vmul.f32 0.25, %v3227_v7  ;;  %v3229_v42 = vadd.f32 %v3228_v24, %v10504_v60  ;;  %v3341_v14 = vpop.f32.mrf.mxu0  ;;  %v10787_v38 = vpop.permute.xlu0 %5820  ;;  %v12867_v7 = vmax.f32 %v10404_v62, %v10401_v30 }
 0x2c8   :  { %12864 = vst [vmem:[#allocation347_spill] sm:$0xff] %v10784_v17  ;;  %v3342_v39 = vadd.f32 %v3341_v14, %v10597_v21  ;;  %12865 = vst [vmem:[#allocation348_spill] sm:$0xff] %v10787_v38  ;;  %v3230_v16 = vpop.f32.mrf.mxu1  ;;  %v12869_v14 = vmax.f32 %v10093_v40, %v10095_v28  ;;  %v10805_v32 = vpop.permute.xlu1 %5800  ;;  %v10816_v56 = vmul.f32 0.25, %v3167_v55 }
 0x2c9   :  { %12863 = vst [vmem:[#allocation346_spill] sm:$0xff] %v10777_v5  ;;  %v10790_v41 = vmax.f32 %v3690_v33, %v10771_v46  ;;  %v3675_v24 = vmax.f32 %v12867_v7, %v10777_v5  ;;  %v10796_v63 = vmul.f32 0.25, %v3229_v42  ;;  %v3231_v47 = vadd.f32 %v3230_v16, %v10490_v57  ;;  %v3343_v4 = vpop.f32.mrf.mxu0  ;;  %12870 = vst [vmem:[#allocation351_spill] sm:$0xff] %v10805_v32 }
 0x2ca   :  { %v3631_v38 = vmax.f32 %v12869_v14, %v10780_v34  ;;  %v10807_v33 = vmul.f32 0.25, %v3340_v54  ;;  %v3344_v46 = vadd.f32 %v3343_v4, %v10585_v22  ;;  %v3232_v62 = vpop.f32.mrf.mxu1  ;;  %v3169_v14 = vadd.f32 %v10478_v13, %v10504_v60 }
 0x2cb   :  { %12866 = vst [vmem:[#allocation349_spill] sm:$0xff] %v10790_v41  ;;  %12868 = vst [vmem:[#allocation350_spill] sm:$0xff] %v10796_v63  ;;  %v3691_v16 = vmax.f32 %v3675_v24, %v10796_v63  ;;  %v10813_v7 = vmul.f32 0.25, %v3231_v47  ;;  %v3233_v59 = vadd.f32 %v3232_v62, %v10504_v60  ;;  %v3345_v5 = vpop.f32.mrf.mxu0  ;;  %v10820_v54 = vmul.f32 0.25, %v3342_v39  ;;  %v10823_v32 = vpop.permute.xlu0 %5828 }
 0x2cc   :  { %12871 = vst [vmem:[#allocation352_spill] sm:$0xff] %v10807_v33  ;;  %v3346_v4 = vadd.f32 %v3345_v5, %v10597_v21  ;;  %12874 = vst [vmem:[#allocation355_spill] sm:$0xff] %v10823_v32  ;;  %v3236_v30 = vpop.f32.mrf.mxu1  ;;  %v12876_v24 = vmax.f32 %v10429_v27, %v10426_v23  ;;  %v3647_v39 = vmax.f32 %v3631_v38, %v10799_v44  ;;  %v10838_v32 = vmul.f32 0.25, %v3344_v46 }
 0x2cd   :  { %12872 = vst [vmem:[#allocation353_spill] sm:$0xff] %v10813_v7  ;;  %12873 = vst [vmem:[#allocation354_spill] sm:$0xff] %v10820_v54  ;;  %v10826_v42 = vmax.f32 %v3691_v16, %v10807_v33  ;;  %v10832_v55 = vmul.f32 0.25, %v3233_v59  ;;  %v3237_v62 = vadd.f32 %v3236_v30, %v10490_v57  ;;  %v3349_v13 = vpop.f32.mrf.mxu0  ;;  %v3280_v5 = vadd.f32 %v10469_v49, %v10585_v22  ;;  %v10850_v49 = vpop.permute.xlu1 %5808 }
 0x2ce   :  { %v3676_v47 = vmax.f32 %v12876_v24, %v10813_v7  ;;  %12878 = vst [vmem:[#allocation358_spill] sm:$0xff] %v10838_v32  ;;  %v3350_v16 = vadd.f32 %v3349_v13, %v10585_v22  ;;  %v3238_v33 = vpop.f32.mrf.mxu1  ;;  %v3663_v38 = vmax.f32 %v3647_v39, %v10816_v56  ;;  %v10848_v7 = vmul.f32 0.25, %v3169_v14  ;;  %12880 = vst [vmem:[#allocation360_spill] sm:$0xff] %v10850_v49 }
 0x2cf   :  { %12875 = vst [vmem:[#allocation356_spill] sm:$0xff] %v10826_v42  ;;  %12877 = vst [vmem:[#allocation357_spill] sm:$0xff] %v10832_v55  ;;  %v10844_v59 = vmul.f32 0.25, %v3237_v62  ;;  %v3239_v30 = vadd.f32 %v3238_v33, %v10504_v60  ;;  %v3351_v24 = vpop.f32.mrf.mxu0  ;;  %v10852_v46 = vmul.f32 0.25, %v3346_v4  ;;  %v10864_v14 = vmul.f32 0.25, %v3280_v5  ;;  %v10868_v49 = vpop.permute.xlu0 %5836 }
 0x2d0   :  { %v3692_v27 = vmax.f32 %v3676_v47, %v10832_v55  ;;  %v12883_v47 = vmax.f32 %v10457_v15, %v10454_v19  ;;  %v3352_v33 = vadd.f32 %v3351_v24, %v10597_v21  ;;  %v3240_v55 = vpop.f32.mrf.mxu1  ;;  %v3282_v4 = vadd.f32 %v10492_v11, %v10597_v21  ;;  %12885 = vst [vmem:[#allocation364_spill] sm:$0xff] %v10868_v49 }
 0x2d1   :  { %12879 = vst [vmem:[#allocation359_spill] sm:$0xff] %v10844_v59  ;;  %12881 = vst [vmem:[#allocation361_spill] sm:$0xff] %v10852_v46  ;;  %v10861_v63 = vmul.f32 0.25, %v3239_v30  ;;  %v3353_v39 = vpop.f32.mrf.mxu0  ;;  %v10875_v30 = vmul.f32 0.25, %v3350_v16 }
 0x2d2   :  { %v10855_v13 = vmax.f32 %v3692_v27, %v10838_v32  ;;  %v3677_v62 = vmax.f32 %v12883_v47, %v10844_v59  ;;  %v3241_v27 = vadd.f32 %v3240_v55, %v10490_v57  ;;  %v3284_v32 = vadd.f32 %v10507_v29, %v10585_v22  ;;  %v3242_v47 = vpop.f32.mrf.mxu1 }
 0x2d3   :  { %12884 = vst [vmem:[#allocation363_spill] sm:$0xff] %v10861_v63  ;;  %12886 = vst [vmem:[#allocation365_spill] sm:$0xff] %v10875_v30  ;;  %v3355_v5 = vpop.f32.mrf.mxu0  ;;  %v3679_v59 = vmax.f32 %v3663_v38, %v10848_v7  ;;  %v3354_v11 = vadd.f32 %v3353_v39, %v10585_v22  ;;  %v3243_v57 = vadd.f32 %v3242_v47, %v10504_v60  ;;  %v10887_v16 = vmul.f32 0.25, %v3352_v33 }
 0x2d4   :  { %12882 = vst [vmem:[#allocation362_spill] sm:$0xff] %v10855_v13  ;;  %v3693_v24 = vmax.f32 %v3677_v62, %v10861_v63  ;;  %v10879_v19 = vmul.f32 0.25, %v3241_v27  ;;  %v3286_v29 = vadd.f32 %v10517_v1, %v10597_v21  ;;  %v3290_v55 = vadd.f32 %v10527_v20, %v10585_v22  ;;  %v6476_v15 = vpop.f32.mrf.mxu1  ;;  %v10894_v27 = vpop.permute.xlu1 %5816 }
 0x2d5   :  { %12888 = vst [vmem:[#allocation367_spill] sm:$0xff] %v10887_v16  ;;  %v3294_v38 = vadd.f32 %v10549_v50, %v10585_v22  ;;  %12890 = vst [vmem:[#allocation369_spill] sm:$0xff] %v10894_v27  ;;  %v12891_v60 = vmax.f32 %v10499_v58, %v10496_v35  ;;  %v10900_v1 = vmul.f32 0.25, %v3243_v57  ;;  %v3356_v20 = vadd.f32 %v3355_v5, %v10597_v21  ;;  %v10912_v50 = vld [vmem:[%s12259_s5 + $0x8] ss:$0 sm:$0xff]  ;;  %v10918_v5 = vpop.permute.xlu0 %5876  ;;  %v12902_v35 = vld [vmem:[#allocation300_spill] sm:$0xff] }
 0x2d6   :  { %12887 = vst [vmem:[#allocation366_spill] sm:$0xff] %v10879_v19  ;;  %v10890_v62 = vmax.f32 %v3693_v24, %v10875_v30  ;;  %v10903_v33 = vmul.f32 0.25, %v3282_v4  ;;  %v10905_v47 = vmul.f32 0.25, %v3284_v32  ;;  %v6477_v49 = vpop.f32.mrf.mxu1  ;;  %v3695_v58 = vmax.f32 %v3679_v59, %v10864_v14 }
 0x2d7   :  { %v3678_v39 = vmax.f32 %v12891_v60, %v10879_v19  ;;  %12892 = vst [vmem:[#allocation370_spill] sm:$0xff] %v10900_v1  ;;  %v10915_v60 = vmul.f32 0.25, %v3354_v11  ;;  %v6478_v4 = vadd.f32 %v6477_v49, %v6476_v15  ;;  %v10920_v32 = vmul.f32 0.25, %v3286_v29  ;;  %v12898_v29 = vld [vmem:[#allocation296_spill] sm:$0xff] }
 0x2d8   :  { %12889 = vst [vmem:[#allocation368_spill] sm:$0xff] %v10890_v62  ;;  %v12894_v24 = vmax.f32 %v10522_v0, %v10524_v51  ;;  %v10926_v30 = vmul.f32 0.25, %v3290_v55  ;;  %v3292_v63 = vadd.f32 %v10536_v36, %v10597_v21  ;;  %v6479_v59 = vpop.f32.mrf.mxu1  ;;  %v10930_v11 = vmul.f32 0.25, %v3294_v38  ;;  %v12899_v38 = vld [vmem:[#allocation302_spill] sm:$0xff] }
 0x2d9   :  { %12893 = vst [vmem:[#allocation371_spill] sm:$0xff] %v10915_v60  ;;  %v3694_v57 = vmax.f32 %v3678_v39, %v10900_v1  ;;  %v10932_v27 = vmul.f32 0.25, %v3356_v20  ;;  %v3393_v49 = vadd.f32 %v6478_v4, %v10912_v50  ;;  %v12897_v0 = vmax.f32 %v10544_v2, %v10546_v31 }
 0x2da   :  { %v3696_v19 = vmax.f32 %v12894_v24, %v10905_v47  ;;  %v3296_v55 = vadd.f32 %v12898_v29, %v10597_v21  ;;  %v3300_v36 = vadd.f32 %v10572_v10, %v10585_v22  ;;  %v3302_v20 = vadd.f32 %v12899_v38, %v10597_v21  ;;  %v6480_v24 = vpop.f32.mrf.mxu1  ;;  %v12901_v29 = vld [vmem:[#allocation299_spill] sm:$0xff] }
 0x2db   :  { %12895 = vst [vmem:[#allocation372_spill] sm:$0xff] %v10932_v27  ;;  %v10935_v39 = vmax.f32 %v3694_v57, %v10915_v60  ;;  %v10942_v15 = vmax.f32 %v12897_v0, %v10926_v30  ;;  %v3711_v57 = vmax.f32 %v3695_v58, %v10903_v33  ;;  %v10951_v60 = vpop.permute.xlu1 %5824  ;;  %v3463_v2 = vmul.f32 0.25, %v3393_v49  ;;  %v10966_v58 = vpop.permute.xlu0 %5888  ;;  %v12907_v27 = vld [vmem:[#allocation304_spill] sm:$0xff] }
 0x2dc   :  { %12900 = vst [vmem:[#allocation296_spill] sm:$0xff] %v10951_v60  ;;  %v6481_v0 = vadd.f32 %v6480_v24, %v6479_v59  ;;  %v10955_v1 = vmul.f32 0.25, %v3292_v63  ;;  %v12903_v16 = vmax.f32 %v12901_v29, %v12902_v35  ;;  %v6482_v22 = vpop.f32.mrf.mxu1  ;;  %v3712_v21 = vmax.f32 %v3696_v19, %v10920_v32  ;;  %12904 = vst [vmem:[#allocation302_spill] sm:$0xff] %v10966_v58 }
 0x2dd   :  { %12896 = vst [vmem:[#allocation373_spill] sm:$0xff] %v10935_v39  ;;  %v10964_v38 = vmax.f32 %v3711_v57, %v3463_v2  ;;  %v10971_v63 = vmul.f32 0.25, %v3296_v55  ;;  %v10973_v49 = vmul.f32 0.25, %v3300_v36  ;;  %v10975_v24 = vmul.f32 0.25, %v3302_v20 }
 0x2de   :  { %v10961_v10 = vmax.f32 %v12903_v16, %v10930_v11  ;;  %v3396_v60 = vadd.f32 %v6481_v0, %v10912_v50  ;;  %v3713_v59 = vmax.f32 %v10942_v15, %v10955_v1  ;;  %v6483_v16 = vpop.f32.mrf.mxu1 }
 0x2df   :  { %12905 = vst [vmem:[#allocation299_spill] sm:$0xff] %v10973_v49  ;;  %12906 = vst [vmem:[#allocation300_spill] sm:$0xff] %v10975_v24  ;;  %v3743_v29 = vsub.f32 %v10093_v40, %v10964_v38  ;;  %v3791_v19 = vsub.f32 %v10095_v28, %v10964_v38  ;;  %v3839_v57 = vsub.f32 %v10780_v34, %v10964_v38  ;;  %v12908_v40 = vld [vmem:[#allocation305_spill] sm:$0xff]  ;;  %v10994_v28 = vpop.permute.xlu1 %5832 }
 0x2e0   :  { %v3887_v0 = vsub.f32 %v10799_v44, %v10964_v38  ;;  %v3714_v15 = vmax.f32 %v10961_v10, %v10971_v63  ;;  %v4127_v55 = vsub.f32 %v3463_v2, %v10964_v38  ;;  %v3472_v36 = vmul.f32 0.25, %v3396_v60  ;;  %v6485_v4 = vpop.f32.mrf.mxu1  ;;  %12910 = vst [vmem:[#allocation304_spill] sm:$0xff] %v10994_v28 }
 0x2e1   :  { %v6484_v20 = vadd.f32 %v6483_v16, %v6482_v22  ;;  %v12909_v39 = vmax.f32 %v12907_v27, %v12908_v40  ;;  %v3759_v34 = vmul.f32 1.442695, %v3743_v29  ;;  %v3807_v23 = vmul.f32 1.442695, %v3791_v19  ;;  %v11005_v16 = vpop.permute.xlu0 %5896  ;;  %v12912_v19 = vld [vmem:[#allocation201_spill] sm:$0xff] }
 0x2e2   :  { %v3935_v44 = vsub.f32 %v10816_v56, %v10964_v38  ;;  %v3855_v46 = vmul.f32 1.442695, %v3839_v57  ;;  %v10998_v10 = vmax.f32 %v3712_v21, %v3472_v36  ;;  %v6486_v2 = vpop.f32.mrf.mxu1  ;;  %v3983_v22 = vsub.f32 %v10848_v7, %v10964_v38  ;;  %12911 = vst [vmem:[#allocation374_spill] sm:$0xff] %v11005_v16  ;;  %v12913_v21 = vld [vmem:[#allocation202_spill] sm:$0xff]  ;;  %v12915_v7 = vld [vmem:[#allocation288_spill] sm:$0xff] }
 0x2e3   :  { %v10992_v62 = vmax.f32 %v12909_v39, %v10973_v49  ;;  %v3401_v60 = vadd.f32 %v6484_v20, %v10912_v50  ;;  %7106 = vpow2.f32 %v3759_v34  ;;  %v11003_v27 = vmul.f32 1.442695, %v3887_v0  ;;  %v12914_v20 = vld [vmem:[#allocation283_spill] sm:$0xff] }
 0x2e4   :  { %v4143_v39 = vmul.f32 1.442695, %v4127_v55  ;;  %v6487_v29 = vadd.f32 %v6486_v2, %v6485_v4  ;;  %7108 = vpow2.f32 %v3807_v23  ;;  %v3744_v56 = vsub.f32 %v12912_v19, %v10998_v10  ;;  %v6488_v13 = vpop.f32.mrf.mxu1 }
 0x2e5   :  { %v3792_v57 = vsub.f32 %v12913_v21, %v10998_v10  ;;  %v3840_v28 = vsub.f32 %v12914_v20, %v10998_v10  ;;  %v3888_v34 = vsub.f32 %v12915_v7, %v10998_v10  ;;  %v4128_v0 = vsub.f32 %v3472_v36, %v10998_v10  ;;  %v11022_v21 = vpop.permute.xlu1 %5872 }
 0x2e6   :  { %v3481_v55 = vmul.f32 0.25, %v3401_v60  ;;  %v11016_v54 = vmul.f32 1.442695, %v3935_v44  ;;  %v3715_v23 = vmax.f32 %v10992_v62, %v10975_v24  ;;  %v3761_v4 = vmul.f32 1.442695, %v3744_v56  ;;  %v6489_v19 = vpop.f32.mrf.mxu1  ;;  %v12916_v62 = vld [vmem:[#allocation205_spill] sm:$0xff] }
 0x2e7   :  { %v3809_v2 = vmul.f32 1.442695, %v3792_v57  ;;  %v11020_v16 = vmul.f32 1.442695, %v3983_v22  ;;  %7110 = vpow2.f32 %v3855_v46  ;;  %v3857_v20 = vmul.f32 1.442695, %v3840_v28 }
 0x2e8   :  { %v11024_v42 = vmax.f32 %v3713_v59, %v3481_v55  ;;  %v3404_v7 = vadd.f32 %v6487_v29, %v10912_v50  ;;  %7112 = vpow2.f32 %v4143_v39  ;;  %v11027_v36 = vmul.f32 1.442695, %v3888_v34  ;;  %v6491_v9 = vpop.f32.mrf.mxu1  ;;  %v12917_v22 = vld [vmem:[#allocation206_spill] sm:$0xff]  ;;  %v12918_v46 = vld [vmem:[#allocation209_spill] sm:$0xff]  ;;  %v11035_v59 = vpop.permute.xlu0 %5904  ;;  %v12920_v39 = vld [vmem:[#allocation212_spill] sm:$0xff] }
 0x2e9   :  { %v4145_v44 = vmul.f32 1.442695, %v4128_v0  ;;  %v6490_v60 = vadd.f32 %v6489_v19, %v6488_v13  ;;  %7114 = vpow2.f32 %v3761_v4  ;;  %12919 = vst [vmem:[#allocation201_spill] sm:$0xff] %v11035_v59  ;;  %v4031_v19 = vsub.f32 %v10864_v14, %v10964_v38  ;;  %v12922_v14 = vld [vmem:[#allocation210_spill] sm:$0xff] }
 0x2ea   :  { %v3745_v56 = vsub.f32 %v12916_v62, %v11024_v42  ;;  %v3793_v57 = vsub.f32 %v12917_v22, %v11024_v42  ;;  %v3841_v28 = vsub.f32 %v12918_v46, %v11024_v42  ;;  %7116 = vpow2.f32 %v3809_v2  ;;  %v6492_v0 = vpop.f32.mrf.mxu1 }
 0x2eb   :  { %v3889_v29 = vsub.f32 %v12920_v39, %v11024_v42  ;;  %v4129_v34 = vsub.f32 %v3481_v55, %v11024_v42  ;;  %v3490_v13 = vmul.f32 0.25, %v3404_v7  ;;  %7118 = vpow2.f32 %v3857_v20  ;;  %v11047_v39 = vpop.permute.xlu1 %5880 }
 0x2ec   :  { %v3763_v4 = vmul.f32 1.442695, %v3745_v56  ;;  %v4079_v62 = vsub.f32 %v10903_v33, %v10964_v38  ;;  %7120 = vpow2.f32 %v4145_v44  ;;  %v3811_v22 = vmul.f32 1.442695, %v3793_v57  ;;  %v6494_v59 = vpop.f32.mrf.mxu1  ;;  %12921 = vst [vmem:[#allocation202_spill] sm:$0xff] %v11047_v39  ;;  %v12923_v33 = vld [vmem:[#allocation211_spill] sm:$0xff] }
 0x2ed   :  { %v11044_v46 = vmax.f32 %v3714_v15, %v3490_v13  ;;  %v3409_v2 = vadd.f32 %v6490_v60, %v10912_v50  ;;  %v3859_v55 = vmul.f32 1.442695, %v3841_v28  ;;  %v11049_v7 = vmul.f32 1.442695, %v3889_v29  ;;  %v12924_v15 = vld [vmem:[#allocation213_spill] sm:$0xff]  ;;  %v12925_v60 = vld [vmem:[#allocation216_spill] sm:$0xff]  ;;  %v11060_v28 = vpop.permute.xlu0 %5912 }
 0x2ee   :  { %v4147_v20 = vmul.f32 1.442695, %v4129_v34  ;;  %v6493_v56 = vadd.f32 %v6492_v0, %v6491_v9  ;;  %7122 = vpow2.f32 %v3763_v4  ;;  %12926 = vst [vmem:[#allocation283_spill] sm:$0xff] %v11060_v28  ;;  %v6495_v34 = vpop.f32.mrf.mxu1  ;;  %v11062_v9 = vmul.f32 1.442695, %v4031_v19 }
 0x2ef   :  { %v3746_v17 = vsub.f32 %v12922_v14, %v11044_v46  ;;  %v3794_v38 = vsub.f32 %v12923_v33, %v11044_v46  ;;  %v3842_v44 = vsub.f32 %v12924_v15, %v11044_v46  ;;  %v3890_v57 = vsub.f32 %v12925_v60, %v11044_v46  ;;  %v11075_v8 = vpop.permute.xlu1 %5884 }
 0x2f0   :  { %v4130_v41 = vsub.f32 %v3490_v13, %v11044_v46  ;;  %v3499_v29 = vmul.f32 0.25, %v3409_v2  ;;  %v11064_v0 = vpop.eup %7106  ;;  %7124 = vpow2.f32 %v3811_v22  ;;  %v11066_v33 = vmul.f32 1.442695, %v4079_v62  ;;  %12928 = vst [vmem:[#allocation205_spill] sm:$0xff] %v11075_v8  ;;  %v12930_v22 = vld [vmem:[#allocation218_spill] sm:$0xff]  ;;  %v6497_v40 = vpop.f32.mrf.mxu1 }
 0x2f1   :  { %v3765_v4 = vmul.f32 1.442695, %v3746_v17  ;;  %v3813_v14 = vmul.f32 1.442695, %v3794_v38  ;;  %v11068_v58 = vpop.eup %7108  ;;  %7126 = vpow2.f32 %v3859_v55  ;;  %v3861_v15 = vmul.f32 1.442695, %v3842_v44  ;;  %v11090_v18 = vpop.permute.xlu0 %5920 }
 0x2f2   :  { %v11070_v60 = vmax.f32 %v3715_v23, %v3499_v29  ;;  %v3412_v13 = vadd.f32 %v6493_v56, %v10912_v50  ;;  %7128 = vpow2.f32 %v4147_v20  ;;  %v4149_v2 = vmul.f32 1.442695, %v4130_v41  ;;  %v12929_v17 = vld [vmem:[#allocation217_spill] sm:$0xff]  ;;  %v12931_v23 = vld [vmem:[#allocation219_spill] sm:$0xff]  ;;  %v12932_v41 = vld [vmem:[#allocation222_spill] sm:$0xff]  ;;  %12933 = vst [vmem:[#allocation206_spill] sm:$0xff] %v11090_v18 }
 0x2f3   :  { %v6496_v28 = vadd.f32 %v6495_v34, %v6494_v59  ;;  %v4175_v19 = vadd.f32 %v11068_v58, %v11064_v0  ;;  %7130 = vpow2.f32 %v3765_v4 }
 0x2f4   :  { %12927 = vst [vmem:[#allocation288_spill] sm:$0xff] %v11070_v60  ;;  %v3747_v62 = vsub.f32 %v12929_v17, %v11070_v60  ;;  %v3795_v55 = vsub.f32 %v12930_v22, %v11070_v60  ;;  %v3843_v38 = vsub.f32 %v12931_v23, %v11070_v60  ;;  %v11083_v44 = vpop.eup %7110  ;;  %7132 = vpow2.f32 %v3813_v14 }
 0x2f5   :  { %v3891_v59 = vsub.f32 %v12932_v41, %v11070_v60  ;;  %v4131_v20 = vsub.f32 %v3499_v29, %v11070_v60  ;;  %v3508_v56 = vmul.f32 0.25, %v3412_v13  ;;  %v11088_v34 = vpop.eup %7112  ;;  %7134 = vpow2.f32 %v3861_v15  ;;  %v11128_v39 = vpop.permute.xlu0 %5928 }
 0x2f6   :  { %v3767_v4 = vmul.f32 1.442695, %v3747_v62  ;;  %v3815_v17 = vmul.f32 1.442695, %v3795_v55  ;;  %v3863_v8 = vmul.f32 1.442695, %v3843_v38  ;;  %v11092_v22 = vpop.eup %7114  ;;  %7136 = vpow2.f32 %v4149_v2 }
 0x2f7   :  { %v4151_v23 = vmul.f32 1.442695, %v4131_v20  ;;  %v12934_v14 = vmax.f32 %v10630_v37, %v10624_v61  ;;  %v3417_v29 = vadd.f32 %v6496_v28, %v10912_v50  ;;  %v11100_v13 = vpop.eup %7116  ;;  %v11103_v15 = vadd.f32 %v11083_v44, %v4175_v19  ;;  %v12936_v62 = vld [vmem:[#allocation16_spill] sm:$0xff]  ;;  %v12937_v38 = vld [vmem:[#allocation34_spill] sm:$0xff]  ;;  %v12938_v37 = vld [vmem:[#allocation223_spill] sm:$0xff]  ;;  %v11119_v61 = vpop.permute.xlu1 %5892  ;;  %12942 = vst [vmem:[#allocation210_spill] sm:$0xff] %v11128_v39 }
 0x2f8   :  { %7138 = vpow2.f32 %v3767_v4  ;;  %v4399_v55 = vmul.f32 %v11064_v0, %v12936_v62  ;;  %v4479_v2 = vmul.f32 %v11068_v58, %v12937_v38  ;;  %v11109_v41 = vpop.eup %7118  ;;  %v12939_v28 = vld [vmem:[#allocation224_spill] sm:$0xff]  ;;  %v12940_v4 = vld [vmem:[#allocation225_spill] sm:$0xff]  ;;  %12941 = vst [vmem:[#allocation212_spill] sm:$0xff] %v11119_v61  ;;  %v11126_v60 = vmul.f32 1.442695, %v3890_v57 }
 0x2f9   :  { %v11097_v6 = vmax.f32 %v12934_v14, %v3508_v56  ;;  %7140 = vpow2.f32 %v3815_v17  ;;  %v11117_v19 = vpop.eup %7120  ;;  %v3517_v17 = vmul.f32 0.25, %v3417_v29 }
 0x2fa   :  { %7142 = vpow2.f32 %v3863_v8  ;;  %v12943_v8 = vmax.f32 %v10656_v3, %v10650_v45  ;;  %v12947_v3 = vld [vmem:[#allocation229_spill] sm:$0xff] }
 0x2fb   :  { %12935 = vst [vmem:[#allocation209_spill] sm:$0xff] %v11097_v6  ;;  %v3748_v20 = vsub.f32 %v12938_v37, %v11097_v6  ;;  %v3796_v14 = vsub.f32 %v12939_v28, %v11097_v6  ;;  %v3844_v18 = vsub.f32 %v12940_v4, %v11097_v6  ;;  %v3892_v62 = vsub.f32 %v10226_v26, %v11097_v6  ;;  %v11124_v28 = vpop.eup %7122 }
 0x2fc   :  { %v4132_v38 = vsub.f32 %v3508_v56, %v11097_v6  ;;  %7144 = vpow2.f32 %v4151_v23  ;;  %v11133_v61 = vmax.f32 %v12943_v8, %v3517_v17  ;;  %v4495_v26 = vadd.f32 %v4479_v2, %v4399_v55  ;;  %v12944_v56 = vld [vmem:[#allocation20_spill] sm:$0xff]  ;;  %v12945_v23 = vld [vmem:[#allocation154_spill] sm:$0xff]  ;;  %v12949_v55 = vld [vmem:[#allocation233_spill] sm:$0xff] }
 0x2fd   :  { %v3769_v24 = vmul.f32 1.442695, %v3748_v20  ;;  %v3817_v37 = vmul.f32 1.442695, %v3796_v14  ;;  %v3865_v49 = vmul.f32 1.442695, %v3844_v18  ;;  %7146 = vpow2.f32 %v11003_v27  ;;  %v11140_v57 = vpop.eup %7124 }
 0x2fe   :  { %v4153_v4 = vmul.f32 1.442695, %v4132_v38  ;;  %v4575_v18 = vmul.f32 %v11083_v44, %v12944_v56  ;;  %v5279_v29 = vmul.f32 %v11064_v0, %v12945_v23  ;;  %v12946_v20 = vld [vmem:[#allocation228_spill] sm:$0xff]  ;;  %v3797_v38 = vsub.f32 %v12947_v3, %v11133_v61  ;;  %v12948_v8 = vld [vmem:[#allocation230_spill] sm:$0xff]  ;;  %v12952_v2 = vld [vmem:[#allocation157_spill] sm:$0xff] }
 0x2ff   :  { %7148 = vpow2.f32 %v3769_v24  ;;  %v3749_v14 = vsub.f32 %v12946_v20, %v11133_v61  ;;  %v3845_v27 = vsub.f32 %v12948_v8, %v11133_v61  ;;  %v11148_v24 = vpop.eup %7126  ;;  %v4133_v0 = vsub.f32 %v3517_v17, %v11133_v61  ;;  %v11157_v20 = vpop.permute.xlu1 %5900 }
 0x300   :  { %7150 = vpow2.f32 %v3817_v37  ;;  %v11153_v56 = vadd.f32 %v4575_v18, %v4495_v26  ;;  %v6498_v37 = vpop.f32.mrf.mxu1  ;;  %v11155_v23 = vpop.eup %7128  ;;  %12950 = vst [vmem:[#allocation211_spill] sm:$0xff] %v11157_v20  ;;  %v3819_v39 = vmul.f32 1.442695, %v3797_v38  ;;  %v11161_v6 = vmul.f32 1.442695, %v3891_v59 }
 0x301   :  { %7152 = vpow2.f32 %v3865_v49  ;;  %v3771_v3 = vmul.f32 1.442695, %v3749_v14  ;;  %v3867_v45 = vmul.f32 1.442695, %v3845_v27  ;;  %v11159_v8 = vpop.eup %7130  ;;  %v4155_v49 = vmul.f32 1.442695, %v4133_v0  ;;  %v5969_v20 = vpop.permute.xlu0 %5968 }
 0x302   :  { %7154 = vpow2.f32 %v4153_v4  ;;  %12951 = vst [vmem:[#allocation213_spill] sm:$0xff] %v11161_v6  ;;  %v5359_v17 = vmul.f32 %v11068_v58, %v12952_v2  ;;  %v11166_v26 = vpop.eup %7132  ;;  %v11168_v18 = vmul.f32 1.442695, %v3892_v62  ;;  %v12954_v4 = vld [vmem:[#allocation185_spill] sm:$0xff]  ;;  %v6499_v38 = vadd.f32 %v6498_v37, %v6497_v40  ;;  %v12955_v0 = vld [vmem:[#allocation290_spill] sm:$0xff]  ;;  %v12957_v62 = vld [vmem:[#allocation111_spill] sm:$0xff] }
 0x303   :  { %7156 = vpow2.f32 %v11016_v54  ;;  %v5455_v14 = vmul.f32 %v11083_v44, %v12954_v4  ;;  %v11172_v27 = vpop.eup %7134  ;;  %v3936_v54 = vsub.f32 %v12955_v0, %v10998_v10  ;;  %v3984_v58 = vsub.f32 %v10524_v51, %v10998_v10 }
 0x304   :  { %12953 = vst [vmem:[#allocation216_spill] sm:$0xff] %v11168_v18  ;;  %7158 = vpow2.f32 %v3771_v3  ;;  %v5375_v59 = vadd.f32 %v5359_v17, %v5279_v29  ;;  %v11178_v2 = vpop.eup %7136  ;;  %v11182_v3 = vmul.f32 %v11088_v34, %v12957_v62  ;;  %v3420_v44 = vadd.f32 %v6499_v38, %v10912_v50  ;;  %v11196_v17 = vpop.permute.xlu1 %5908 }
 0x305   :  { %7160 = vpow2.f32 %v3819_v39  ;;  %12956 = vst [vmem:[#allocation217_spill] sm:$0xff] %v11178_v2  ;;  %v4032_v40 = vsub.f32 %v10905_v47, %v10998_v10  ;;  %v11187_v39 = vpop.eup %7138  ;;  %v11190_v37 = vmul.f32 %v11088_v34, %v5969_v20  ;;  %v4080_v51 = vsub.f32 %v10920_v32, %v10998_v10  ;;  %12960 = vst [vmem:[#allocation222_spill] sm:$0xff] %v11196_v17  ;;  %v12963_v32 = vld [vmem:[#allocation10_spill] sm:$0xff]  ;;  %v12967_v17 = vld [vmem:[#allocation141_spill] sm:$0xff] }
 0x306   :  { %7162 = vpow2.f32 %v3867_v45  ;;  %12958 = vst [vmem:[#allocation218_spill] sm:$0xff] %v11187_v39  ;;  %v5471_v29 = vadd.f32 %v5455_v14, %v5375_v59  ;;  %v11194_v45 = vpop.eup %7140  ;;  %v3526_v4 = vmul.f32 0.25, %v3420_v44  ;;  %v3953_v38 = vmul.f32 1.442695, %v3936_v54 }
 0x307   :  { %7164 = vpow2.f32 %v4155_v49  ;;  %12959 = vst [vmem:[#allocation219_spill] sm:$0xff] %v11194_v45  ;;  %v4001_v0 = vmul.f32 1.442695, %v3984_v58  ;;  %v11199_v47 = vpop.eup %7142  ;;  %v4176_v20 = vadd.f32 %v11100_v13, %v11092_v22  ;;  %v12962_v49 = vld [vmem:[#allocation19_spill] sm:$0xff]  ;;  %v4480_v10 = vmul.f32 %v11100_v13, %v12963_v32  ;;  %v6500_v45 = vpop.f32.mrf.mxu1 }
 0x308   :  { %7166 = vpow2.f32 %v11020_v16  ;;  %12961 = vst [vmem:[#allocation16_spill] sm:$0xff] %v11199_v47  ;;  %v4400_v14 = vmul.f32 %v11092_v22, %v12962_v49  ;;  %v12965_v16 = vmax.f32 %v10682_v25, %v10676_v52  ;;  %v4049_v58 = vmul.f32 1.442695, %v4032_v40  ;;  %v12970_v40 = vld [vmem:[#allocation190_spill] sm:$0xff] }
 0x309   :  { %7168 = vpow2.f32 %v11062_v9  ;;  %v11208_v59 = vpop.eup %7144  ;;  %v12966_v9 = vld [vmem:[#allocation50_spill] sm:$0xff]  ;;  %v11220_v49 = vadd.f32 %v11109_v41, %v4176_v20  ;;  %v5280_v18 = vmul.f32 %v11092_v22, %v12967_v17  ;;  %v12973_v20 = vld [vmem:[#allocation235_spill] sm:$0xff]  ;;  %v6501_v48 = vpop.f32.mrf.mxu1 }
 0x30a   :  { %12964 = vst [vmem:[#allocation34_spill] sm:$0xff] %v11208_v59  ;;  %7170 = vpow2.f32 %v11066_v33  ;;  %v11214_v54 = vmax.f32 %v12965_v16, %v3526_v4  ;;  %v4576_v62 = vmul.f32 %v11109_v41, %v12966_v9  ;;  %v7147_v44 = vpop.eup %7146  ;;  %v4496_v32 = vadd.f32 %v4480_v10, %v4400_v14  ;;  %v12969_v16 = vld [vmem:[#allocation70_spill] sm:$0xff]  ;;  %v12974_v10 = vld [vmem:[#allocation236_spill] sm:$0xff] }
 0x30b   :  { %7172 = vpow2.f32 %v11027_v36  ;;  %v4207_v25 = vadd.f32 %v7147_v44, %v11103_v15  ;;  %v4671_v52 = vmul.f32 %v7147_v44, %v12969_v16  ;;  %v5551_v59 = vmul.f32 %v7147_v44, %v12970_v40  ;;  %v12971_v9 = vld [vmem:[#allocation234_spill] sm:$0xff]  ;;  %v11242_v44 = vpop.permute.xlu1 %5916 }
 0x30c   :  { %v11224_v33 = vpop.eup %7148  ;;  %v3750_v47 = vsub.f32 %v12971_v9, %v11214_v54  ;;  %v3798_v14 = vsub.f32 %v12973_v20, %v11214_v54  ;;  %v3846_v22 = vsub.f32 %v12974_v10, %v11214_v54  ;;  %v4134_v15 = vsub.f32 %v3526_v4, %v11214_v54  ;;  %12976 = vst [vmem:[#allocation20_spill] sm:$0xff] %v11242_v44  ;;  %v12977_v4 = vld [vmem:[#allocation171_spill] sm:$0xff] }
 0x30d   :  { %12968 = vst [vmem:[#allocation223_spill] sm:$0xff] %v11224_v33  ;;  %v11231_v36 = vpop.eup %7150  ;;  %v4687_v40 = vadd.f32 %v4671_v52, %v11153_v56  ;;  %v5567_v9 = vadd.f32 %v5551_v59, %v5471_v29  ;;  %7174 = vpow2.f32 %v3953_v38  ;;  %v4097_v10 = vmul.f32 1.442695, %v4080_v51  ;;  %v12978_v56 = vld [vmem:[#allocation57_spill] sm:$0xff]  ;;  %v12979_v38 = vld [vmem:[#allocation238_spill] sm:$0xff]  ;;  %v12980_v51 = vld [vmem:[#allocation140_spill] sm:$0xff] }
 0x30e   :  { %12972 = vst [vmem:[#allocation224_spill] sm:$0xff] %v11231_v36  ;;  %v11240_v16 = vpop.eup %7152  ;;  %v3773_v33 = vmul.f32 1.442695, %v3750_v47  ;;  %v3821_v20 = vmul.f32 1.442695, %v3798_v14  ;;  %7176 = vpow2.f32 %v4001_v0  ;;  %v4592_v2 = vadd.f32 %v4576_v62, %v4496_v32  ;;  %v12981_v32 = vld [vmem:[#allocation175_spill] sm:$0xff] }
 0x30f   :  { %12975 = vst [vmem:[#allocation225_spill] sm:$0xff] %v11240_v16  ;;  %v11245_v36 = vpop.eup %7154  ;;  %v3869_v39 = vmul.f32 1.442695, %v3846_v22  ;;  %v4157_v17 = vmul.f32 1.442695, %v4134_v15  ;;  %v5360_v16 = vmul.f32 %v11100_v13, %v12977_v4  ;;  %v11257_v0 = vmul.f32 %v11117_v19, %v12980_v51 }
 0x310   :  { %v7157_v6 = vpop.eup %7156  ;;  %7178 = vpow2.f32 %v3773_v33  ;;  %v5456_v13 = vmul.f32 %v11109_v41, %v12981_v32  ;;  %v6502_v22 = vadd.f32 %v6501_v48, %v6500_v45  ;;  %v12990_v48 = vld [vmem:[#allocation65_spill] sm:$0xff] }
 0x311   :  { %v11249_v44 = vpop.eup %7158  ;;  %v4223_v52 = vadd.f32 %v7157_v6, %v4207_v25  ;;  %v4767_v29 = vmul.f32 %v7157_v6, %v12978_v56  ;;  %v5647_v47 = vmul.f32 %v7157_v6, %v12979_v38  ;;  %7180 = vpow2.f32 %v3821_v20  ;;  %v11265_v6 = vpop.permute.xlu1 %5924  ;;  %v12985_v20 = vld [vmem:[#allocation293_spill] sm:$0xff]  ;;  %v12987_v56 = vld [vmem:[#allocation266_spill] sm:$0xff] }
 0x312   :  { %v11253_v59 = vpop.eup %7160  ;;  %7182 = vpow2.f32 %v3869_v39  ;;  %v5376_v62 = vadd.f32 %v5360_v16, %v5280_v18  ;;  %12984 = vst [vmem:[#allocation229_spill] sm:$0xff] %v11265_v6  ;;  %v3937_v4 = vsub.f32 %v12985_v20, %v11024_v42  ;;  %v3985_v18 = vsub.f32 %v10546_v31, %v11024_v42  ;;  %v12988_v31 = vld [vmem:[#allocation114_spill] sm:$0xff]  ;;  %v12992_v6 = vld [vmem:[#allocation200_spill] sm:$0xff] }
 0x313   :  { %v11261_v33 = vpop.eup %7162  ;;  %v4783_v14 = vadd.f32 %v4767_v29, %v4687_v40  ;;  %v5663_v25 = vadd.f32 %v5647_v47, %v5567_v9  ;;  %7184 = vpow2.f32 %v4157_v17  ;;  %v3425_v41 = vadd.f32 %v6502_v22, %v10912_v50 }
 0x314   :  { %12982 = vst [vmem:[#allocation154_spill] sm:$0xff] %v11261_v33  ;;  %v11263_v15 = vpop.eup %7164  ;;  %7186 = vpow2.f32 %v4049_v58  ;;  %v5472_v39 = vadd.f32 %v5456_v13, %v5376_v62  ;;  %v12986_v58 = vld [vmem:[#allocation122_spill] sm:$0xff]  ;;  %v3955_v32 = vmul.f32 1.442695, %v3937_v4  ;;  %v12994_v4 = vld [vmem:[#allocation329_spill] sm:$0xff] }
 0x315   :  { %12983 = vst [vmem:[#allocation228_spill] sm:$0xff] %v11263_v15  ;;  %v7167_v16 = vpop.eup %7166  ;;  %7188 = vpow2.f32 %v4097_v10  ;;  %v12989_v10 = vld [vmem:[#allocation319_spill] sm:$0xff]  ;;  %v11281_v62 = vmul.f32 0.25, %v3425_v41 }
 0x316   :  { %v7169_v45 = vpop.eup %7168  ;;  %v4239_v40 = vadd.f32 %v7167_v16, %v4223_v52  ;;  %v4863_v9 = vmul.f32 %v7167_v16, %v12986_v58  ;;  %v5743_v29 = vmul.f32 %v7167_v16, %v12987_v56  ;;  %7190 = vpow2.f32 %v11049_v7  ;;  %v12991_v56 = vld [vmem:[#allocation39_spill] sm:$0xff] }
 0x317   :  { %v7171_v38 = vpop.eup %7170  ;;  %v4959_v47 = vmul.f32 %v7169_v45, %v12988_v31  ;;  %v5839_v51 = vmul.f32 %v7169_v45, %v12989_v10  ;;  %v11288_v31 = vpop.permute.xlu1 %5932  ;;  %7192 = vpow2.f32 %v3955_v32  ;;  %v13000_v32 = vld [vmem:[#allocation239_spill] sm:$0xff] }
 0x318   :  { %v7173_v13 = vpop.eup %7172  ;;  %v4255_v22 = vadd.f32 %v7169_v45, %v4239_v40  ;;  %v4879_v20 = vadd.f32 %v4863_v9, %v4783_v14  ;;  %v5055_v17 = vmul.f32 %v7171_v38, %v12990_v48  ;;  %v5759_v52 = vadd.f32 %v5743_v29, %v5663_v25  ;;  %12993 = vst [vmem:[#allocation230_spill] sm:$0xff] %v11288_v31 }
 0x319   :  { %v5935_v58 = vmul.f32 %v7171_v38, %v11022_v21  ;;  %v4208_v16 = vadd.f32 %v7173_v13, %v11220_v49  ;;  %v4672_v7 = vmul.f32 %v7173_v13, %v12991_v56  ;;  %v5552_v15 = vmul.f32 %v7173_v13, %v12992_v6  ;;  %v12999_v56 = vld [vmem:[#allocation286_spill] sm:$0xff] }
 0x31a   :  { %v4271_v10 = vadd.f32 %v7171_v38, %v4255_v22  ;;  %v4975_v41 = vadd.f32 %v4959_v47, %v4879_v20  ;;  %v5855_v33 = vadd.f32 %v5839_v51, %v5759_v52  ;;  %v12995_v14 = vmax.f32 %v10708_v43, %v12994_v4  ;;  %v7175_v25 = vpop.eup %7174  ;;  %v12996_v47 = vld [vmem:[#allocation94_spill] sm:$0xff]  ;;  %v12997_v22 = vld [vmem:[#allocation83_spill] sm:$0xff]  ;;  %v12998_v43 = vld [vmem:[#allocation220_spill] sm:$0xff] }
 0x31b   :  { %v4688_v48 = vadd.f32 %v4672_v7, %v4592_v2  ;;  %v5568_v21 = vadd.f32 %v5552_v15, %v5472_v39  ;;  %v4003_v49 = vmul.f32 1.442695, %v3985_v18  ;;  %v7177_v40 = vpop.eup %7176  ;;  %v4224_v13 = vadd.f32 %v7175_v25, %v4208_v16  ;;  %v13001_v16 = vld [vmem:[#allocation240_spill] sm:$0xff] }
 0x31c   :  { %v11294_v45 = vmax.f32 %v12995_v14, %v11281_v62  ;;  %v4287_v9 = vadd.f32 %v11088_v34, %v4271_v10  ;;  %v5071_v6 = vadd.f32 %v5055_v17, %v4975_v41  ;;  %v5951_v29 = vadd.f32 %v5935_v58, %v5855_v33  ;;  %v5973_v41 = vpop.permute.xlu1 %5972 }
 0x31d   :  { %v11297_v38 = vpop.eup %7178  ;;  %v4768_v51 = vmul.f32 %v7175_v25, %v12996_v47  ;;  %v4864_v20 = vmul.f32 %v7177_v40, %v12997_v22  ;;  %v5648_v52 = vmul.f32 %v7175_v25, %v12998_v43  ;;  %v5744_v14 = vmul.f32 %v7177_v40, %v12999_v56  ;;  %v13004_v22 = vld [vmem:[#allocation53_spill] sm:$0xff] }
 0x31e   :  { %v11303_v2 = vpop.eup %7180  ;;  %7194 = vrcp.f32 %v4287_v9  ;;  %v11306_v15 = vadd.f32 %v11182_v3, %v5071_v6  ;;  %v11309_v34 = vadd.f32 %v11190_v37, %v5951_v29  ;;  %v4240_v33 = vadd.f32 %v7177_v40, %v4224_v13  ;;  %v13002_v3 = vld [vmem:[#allocation243_spill] sm:$0xff]  ;;  %v13003_v37 = vld [vmem:[#allocation246_spill] sm:$0xff] }
 0x31f   :  { %v11311_v39 = vpop.eup %7182  ;;  %v4784_v18 = vadd.f32 %v4768_v51, %v4688_v48  ;;  %v5664_v17 = vadd.f32 %v5648_v52, %v5568_v21  ;;  %v3751_v58 = vsub.f32 %v13000_v32, %v11294_v45  ;;  %v3799_v7 = vsub.f32 %v13001_v16, %v11294_v45  ;;  %v13005_v52 = vld [vmem:[#allocation322_spill] sm:$0xff] }
 0x320   :  { %v11317_v10 = vpop.eup %7184  ;;  %v3847_v25 = vsub.f32 %v13002_v3, %v11294_v45  ;;  %v4135_v40 = vsub.f32 %v11281_v62, %v11294_v45  ;;  %7196 = vpow2.f32 %v4003_v49  ;;  %v13006_v3 = vld [vmem:[#allocation136_spill] sm:$0xff]  ;;  %v6032_v62 = vmul.f32 %v11117_v19, %v5973_v41 }
 0x321   :  { %v7187_v48 = vpop.eup %7186  ;;  %v4880_v21 = vadd.f32 %v4864_v20, %v4784_v18  ;;  %v5760_v6 = vadd.f32 %v5744_v14, %v5664_v17  ;;  %v3775_v29 = vmul.f32 1.442695, %v3751_v58  ;;  %v3823_v13 = vmul.f32 1.442695, %v3799_v7 }
 0x322   :  { %v7189_v47 = vpop.eup %7188  ;;  %v4256_v51 = vadd.f32 %v7187_v48, %v4240_v33  ;;  %v4960_v43 = vmul.f32 %v7187_v48, %v13004_v22  ;;  %v5840_v56 = vmul.f32 %v7187_v48, %v13005_v52  ;;  %v3871_v32 = vmul.f32 1.442695, %v3847_v25  ;;  %v13013_v22 = vld [vmem:[#allocation22_spill] sm:$0xff] }
 0x323   :  { %v7191_v16 = vpop.eup %7190  ;;  %v5056_v31 = vmul.f32 %v7189_v47, %v13006_v3  ;;  %v5936_v9 = vmul.f32 %v7189_v47, %v10918_v5  ;;  %7198 = vpow2.f32 %v3775_v29  ;;  %v4159_v18 = vmul.f32 1.442695, %v4135_v40 }
 0x324   :  { %v4272_v49 = vadd.f32 %v7189_v47, %v4256_v51  ;;  %v4976_v20 = vadd.f32 %v4960_v43, %v4880_v21  ;;  %v5856_v14 = vadd.f32 %v5840_v56, %v5760_v6  ;;  %7200 = vpow2.f32 %v3823_v13  ;;  %v6503_v21 = vpop.f32.mrf.mxu1  ;;  %v13011_v13 = vld [vmem:[#allocation11_spill] sm:$0xff]  ;;  %v13014_v56 = vld [vmem:[#allocation41_spill] sm:$0xff] }
 0x325   :  { %7202 = vpow2.f32 %v3871_v32  ;;  %v13007_v33 = vsub.f32 %v10926_v30, %v11024_v42  ;;  %v13008_v58 = vsub.f32 %v10955_v1, %v11024_v42  ;;  %v4177_v41 = vadd.f32 %v11140_v57, %v11124_v28  ;;  %v13010_v30 = vld [vmem:[#allocation2_spill] sm:$0xff]  ;;  %v7193_v1 = vpop.eup %7192 }
 0x326   :  { %v4288_v25 = vadd.f32 %v11117_v19, %v4272_v49  ;;  %v5072_v5 = vadd.f32 %v5056_v31, %v4976_v20  ;;  %v5952_v48 = vadd.f32 %v5936_v9, %v5856_v14  ;;  %v13009_v6 = vsub.f32 %v12949_v55, %v11133_v61  ;;  %v13016_v14 = vld [vmem:[#allocation60_spill] sm:$0xff] }
 0x327   :  { %v4051_v17 = vmul.f32 1.442695, %v13007_v33  ;;  %v4099_v7 = vmul.f32 1.442695, %v13008_v58  ;;  %7204 = vpow2.f32 %v4159_v18  ;;  %v4401_v29 = vmul.f32 %v11124_v28, %v13010_v30 }
 0x328   :  { %v11342_v40 = vmul.f32 1.442695, %v13009_v6  ;;  %v4481_v42 = vmul.f32 %v11140_v57, %v13011_v13  ;;  %7206 = vrcp.f32 %v4288_v25  ;;  %v11349_v19 = vadd.f32 %v11257_v0, %v5072_v5  ;;  %v13015_v0 = vld [vmem:[#allocation143_spill] sm:$0xff] }
 0x329   :  { %v11351_v31 = vadd.f32 %v6032_v62, %v5952_v48  ;;  %v4193_v9 = vadd.f32 %v11148_v24, %v4177_v41  ;;  %v13012_v55 = vsub.f32 %v10276_v12, %v11214_v54  ;;  %7208 = vpow2.f32 %v4051_v17  ;;  %v6504_v62 = vpop.f32.mrf.mxu1  ;;  %v13017_v12 = vld [vmem:[#allocation107_spill] sm:$0xff]  ;;  %v13019_v48 = vld [vmem:[#allocation177_spill] sm:$0xff] }
 0x32a   :  { %v4497_v51 = vadd.f32 %v4481_v42, %v4401_v29  ;;  %v4577_v43 = vmul.f32 %v11148_v24, %v13013_v22  ;;  %7210 = vpow2.f32 %v4099_v7  ;;  %v4673_v32 = vmul.f32 %v7191_v16, %v13014_v56  ;;  %v13018_v17 = vld [vmem:[#allocation159_spill] sm:$0xff]  ;;  %v13020_v29 = vld [vmem:[#allocation192_spill] sm:$0xff] }
 0x32b   :  { %v11357_v47 = vmul.f32 1.442695, %v13012_v55  ;;  %v4209_v52 = vadd.f32 %v7191_v16, %v4193_v9  ;;  %v5281_v3 = vmul.f32 %v11124_v28, %v13015_v0  ;;  %v7195_v49 = vpop.eup %7194  ;;  %v4769_v18 = vmul.f32 %v7193_v1, %v13016_v14  ;;  %v13022_v9 = vld [vmem:[#allocation226_spill] sm:$0xff]  ;;  %v13024_v14 = vld [vmem:[#allocation272_spill] sm:$0xff] }
 0x32c   :  { %v4593_v20 = vadd.f32 %v4577_v43, %v4497_v51  ;;  %v11367_v33 = vmul.f32 %v11155_v23, %v13017_v12  ;;  %v5361_v58 = vmul.f32 %v11140_v57, %v13018_v17  ;;  %v5183_v7 = vmul.f32 %v7195_v49, %v11306_v15  ;;  %v13021_v15 = vld [vmem:[#allocation85_spill] sm:$0xff] }
 0x32d   :  { %v6063_v25 = vmul.f32 %v7195_v49, %v11309_v34  ;;  %v4225_v5 = vadd.f32 %v7193_v1, %v4209_v52  ;;  %v5457_v28 = vmul.f32 %v11148_v24, %v13019_v48  ;;  %v7197_v41 = vpop.eup %7196  ;;  %v5553_v13 = vmul.f32 %v7191_v16, %v13020_v29  ;;  %v5977_v24 = vpop.permute.xlu1 %5976  ;;  %v13028_v48 = vld [vmem:[#allocation3_spill] sm:$0xff] }
 0x32e   :  { %v4689_v6 = vadd.f32 %v4673_v32, %v4593_v20  ;;  %v5377_v30 = vadd.f32 %v5361_v58, %v5281_v3  ;;  %v6505_v42 = vadd.f32 %v6504_v62, %v6503_v21  ;;  %5199 = vst [vmem:[%s12260_s6] sm:$0xff] %v5183_v7  ;;  %v4865_v34 = vmul.f32 %v7197_v41, %v13021_v15  ;;  %v13023_v21 = vld [vmem:[#allocation295_spill] sm:$0xff] }
 0x32f   :  { %6079 = vst [vmem:[%s12260_s6 + $0x8] sm:$0xff] %v6063_v25  ;;  %v4241_v57 = vadd.f32 %v7197_v41, %v4225_v5  ;;  %v5649_v55 = vmul.f32 %v7193_v1, %v13022_v9  ;;  %7212 = vpow2.f32 %v11126_v60  ;;  %v3938_v43 = vsub.f32 %v13023_v21, %v11044_v46 }
 0x330   :  { %v4785_v51 = vadd.f32 %v4769_v18, %v4689_v6  ;;  %v5473_v22 = vadd.f32 %v5457_v28, %v5377_v30  ;;  %v3428_v16 = vadd.f32 %v6505_v42, %v10912_v50  ;;  %v11388_v52 = vpop.eup %7198  ;;  %v3986_v56 = vsub.f32 %v12902_v35, %v11044_v46 }
 0x331   :  { %v4034_v32 = vsub.f32 %v10930_v11, %v11044_v46  ;;  %v4082_v1 = vsub.f32 %v10971_v63, %v11044_v46  ;;  %v4178_v60 = vadd.f32 %v11166_v26, %v11159_v8  ;;  %v11398_v0 = vpop.eup %7200  ;;  %v3957_v49 = vmul.f32 1.442695, %v3938_v43  ;;  %v13025_v63 = vld [vmem:[#allocation335_spill] sm:$0xff] }
 0x332   :  { %v4881_v50 = vadd.f32 %v4865_v34, %v4785_v51  ;;  %v5569_v3 = vadd.f32 %v5553_v13, %v5473_v22  ;;  %v3544_v62 = vmul.f32 0.25, %v3428_v16  ;;  %v11400_v20 = vpop.eup %7202  ;;  %v5745_v18 = vmul.f32 %v7197_v41, %v13024_v14  ;;  %v13029_v41 = vld [vmem:[#allocation36_spill] sm:$0xff]  ;;  %v13032_v34 = vld [vmem:[#allocation247_spill] sm:$0xff]  ;;  %v13033_v22 = vld [vmem:[#allocation249_spill] sm:$0xff] }
 0x333   :  { %v6033_v35 = vmul.f32 %v11155_v23, %v5977_v24  ;;  %v4005_v12 = vmul.f32 1.442695, %v3986_v56  ;;  %v4194_v11 = vadd.f32 %v11172_v27, %v4178_v60  ;;  %v13026_v46 = vmax.f32 %v10732_v53, %v13025_v63  ;;  %v13030_v13 = vld [vmem:[#allocation244_spill] sm:$0xff]  ;;  %v13031_v53 = vld [vmem:[#allocation245_spill] sm:$0xff]  ;;  %v13035_v60 = vld [vmem:[#allocation331_spill] sm:$0xff] }
 0x334   :  { %v5665_v17 = vadd.f32 %v5649_v55, %v5569_v3  ;;  %7214 = vpow2.f32 %v3957_v49  ;;  %v4053_v7 = vmul.f32 1.442695, %v4034_v32  ;;  %v11410_v25 = vpop.eup %7204  ;;  %v4101_v5 = vmul.f32 1.442695, %v4082_v1  ;;  %v13034_v32 = vld [vmem:[#allocation117_spill] sm:$0xff]  ;;  %v13037_v14 = vld [vmem:[#allocation202_spill] sm:$0xff] }
 0x335   :  { %v11408_v58 = vmax.f32 %v13026_v46, %v3544_v62  ;;  %13027 = vst [vmem:[#allocation233_spill] sm:$0xff] %v11410_v25  ;;  %7216 = vpow2.f32 %v4005_v12  ;;  %v4402_v28 = vmul.f32 %v11159_v8, %v13028_v48  ;;  %v4482_v6 = vmul.f32 %v11166_v26, %v13029_v41  ;;  %v7207_v30 = vpop.eup %7206 }
 0x336   :  { %v5761_v29 = vadd.f32 %v5745_v18, %v5665_v17  ;;  %v7209_v55 = vpop.eup %7208  ;;  %v5184_v24 = vmul.f32 %v7207_v30, %v11349_v19  ;;  %v6064_v51 = vmul.f32 %v7207_v30, %v11351_v31  ;;  %v13036_v19 = vld [vmem:[#allocation89_spill] sm:$0xff] }
 0x337   :  { %v3752_v42 = vsub.f32 %v13030_v13, %v11408_v58  ;;  %v3800_v15 = vsub.f32 %v13031_v53, %v11408_v58  ;;  %v3848_v9 = vsub.f32 %v13032_v34, %v11408_v58  ;;  %v4136_v21 = vsub.f32 %v3544_v62, %v11408_v58  ;;  %v7211_v43 = vpop.eup %7210  ;;  %v13038_v13 = vld [vmem:[#allocation24_spill] sm:$0xff] }
 0x338   :  { %v4257_v56 = vadd.f32 %v7209_v55, %v4241_v57  ;;  %v4961_v1 = vmul.f32 %v7209_v55, %v13034_v32  ;;  %v5841_v3 = vmul.f32 %v7209_v55, %v13035_v60  ;;  %5200 = vst [vmem:[%s12260_s6 + $0x10] sm:$0xff] %v5184_v24  ;;  %6080 = vst [vmem:[%s12260_s6 + $0x18] sm:$0xff] %v6064_v51  ;;  %v6506_v57 = vpop.f32.mrf.mxu1  ;;  %v13039_v51 = vld [vmem:[#allocation74_spill] sm:$0xff]  ;;  %v13042_v32 = vld [vmem:[#allocation161_spill] sm:$0xff] }
 0x339   :  { %v3777_v49 = vmul.f32 1.442695, %v3752_v42  ;;  %v5057_v31 = vmul.f32 %v7211_v43, %v13036_v19  ;;  %v5937_v18 = vmul.f32 %v7211_v43, %v13037_v14  ;;  %v3825_v62 = vmul.f32 1.442695, %v3800_v15  ;;  %v13043_v60 = vld [vmem:[#allocation109_spill] sm:$0xff] }
 0x33a   :  { %v3873_v12 = vmul.f32 1.442695, %v3848_v9  ;;  %v4273_v17 = vadd.f32 %v7211_v43, %v4257_v56  ;;  %v4977_v46 = vadd.f32 %v4961_v1, %v4881_v50  ;;  %v5857_v48 = vadd.f32 %v5841_v3, %v5761_v29  ;;  %v6507_v50 = vpop.f32.mrf.mxu1  ;;  %v13044_v3 = vld [vmem:[#allocation217_spill] sm:$0xff] }
 0x33b   :  { %7218 = vpow2.f32 %v3777_v49  ;;  %v4161_v41 = vmul.f32 1.442695, %v4136_v21  ;;  %v4498_v30 = vadd.f32 %v4482_v6, %v4402_v28  ;;  %v4578_v42 = vmul.f32 %v11172_v27, %v13038_v13  ;;  %v13040_v6 = vld [vmem:[#allocation156_spill] sm:$0xff]  ;;  %v13046_v14 = vld [vmem:[#allocation213_spill] sm:$0xff] }
 0x33c   :  { %7220 = vpow2.f32 %v3825_v62  ;;  %v7213_v53 = vpop.eup %7212  ;;  %v4289_v34 = vadd.f32 %v11155_v23, %v4273_v17  ;;  %v5073_v55 = vadd.f32 %v5057_v31, %v4977_v46  ;;  %v5953_v24 = vadd.f32 %v5937_v18, %v5857_v48  ;;  %v13048_v18 = vld [vmem:[#allocation301_spill] sm:$0xff]  ;;  %v13050_v17 = vld [vmem:[#allocation63_spill] sm:$0xff]  ;;  %v13051_v48 = vld [vmem:[#allocation194_spill] sm:$0xff] }
 0x33d   :  { %7222 = vpow2.f32 %v3873_v12  ;;  %v4210_v15 = vadd.f32 %v7213_v53, %v4194_v11  ;;  %v4594_v9 = vadd.f32 %v4578_v42, %v4498_v30  ;;  %v4674_v43 = vmul.f32 %v7213_v53, %v13039_v51  ;;  %v13049_v62 = vld [vmem:[#allocation305_spill] sm:$0xff] }
 0x33e   :  { %7224 = vpow2.f32 %v4161_v41  ;;  %v11442_v29 = vadd.f32 %v11367_v33, %v5073_v55  ;;  %v11444_v28 = vadd.f32 %v6033_v35, %v5953_v24  ;;  %v5282_v21 = vmul.f32 %v11159_v8, %v13040_v6  ;;  %v13045_v35 = vld [vmem:[#allocation187_spill] sm:$0xff]  ;;  %v13052_v30 = vld [vmem:[#allocation125_spill] sm:$0xff] }
 0x33f   :  { %7226 = vrcp.f32 %v4289_v34  ;;  %v13041_v23 = vsub.f32 %v13003_v37, %v11294_v45  ;;  %v4690_v11 = vadd.f32 %v4674_v43, %v4594_v9  ;;  %v5362_v1 = vmul.f32 %v11166_v26, %v13042_v32  ;;  %v13047_v37 = vld [vmem:[#allocation288_spill] sm:$0xff]  ;;  %v13053_v34 = vld [vmem:[#allocation242_spill] sm:$0xff] }
 0x340   :  { %7228 = vpow2.f32 %v4053_v7  ;;  %v11457_v33 = vmul.f32 %v13044_v3, %v13043_v60  ;;  %v5458_v49 = vmul.f32 %v11172_v27, %v13045_v35  ;;  %v6508_v19 = vadd.f32 %v6507_v50, %v6506_v57  ;;  %v11471_v27 = vld [vmem:[%s12259_s5 + $0x8] ss:$0 sm:$0xff]  ;;  %v13057_v60 = vld [vmem:[#allocation341_spill] sm:$0xff] }
 0x341   :  { %v11451_v56 = vmul.f32 1.442695, %v13041_v23  ;;  %7230 = vpow2.f32 %v4101_v5  ;;  %v7215_v8 = vpop.eup %7214  ;;  %v5378_v31 = vadd.f32 %v5362_v1, %v5282_v21  ;;  %v3939_v7 = vsub.f32 %v13048_v18, %v13047_v37  ;;  %v13055_v21 = vld [vmem:[#allocation300_spill] sm:$0xff]  ;;  %v13056_v1 = vld [vmem:[#allocation343_spill] sm:$0xff]  ;;  %v13061_v18 = vld [vmem:[#allocation278_spill] sm:$0xff] }
 0x342   :  { %7232 = vpow2.f32 %v13046_v14  ;;  %v3987_v12 = vsub.f32 %v13049_v62, %v13047_v37  ;;  %v7217_v26 = vpop.eup %7216  ;;  %v4226_v5 = vadd.f32 %v7215_v8, %v4210_v15  ;;  %v4770_v46 = vmul.f32 %v7215_v8, %v13050_v17  ;;  %v13063_v17 = vld [vmem:[#allocation251_spill] sm:$0xff] }
 0x343   :  { %v5554_v41 = vmul.f32 %v7213_v53, %v13051_v48  ;;  %v3433_v57 = vadd.f32 %v11471_v27, %v6508_v19  ;;  %v4866_v13 = vmul.f32 %v7217_v26, %v13052_v30  ;;  %v5474_v42 = vadd.f32 %v5458_v49, %v5378_v31  ;;  %v13054_v53 = vld [vmem:[#allocation299_spill] sm:$0xff]  ;;  %v13059_v19 = vld [vmem:[#allocation218_spill] sm:$0xff]  ;;  %v13064_v48 = vld [vmem:[#allocation252_spill] sm:$0xff] }
 0x344   :  { %v5650_v55 = vmul.f32 %v7215_v8, %v13053_v34  ;;  %v3959_v24 = vmul.f32 1.442695, %v3939_v7  ;;  %v4242_v9 = vadd.f32 %v7217_v26, %v4226_v5  ;;  %v4786_v51 = vadd.f32 %v4770_v46, %v4690_v11  ;;  %v13060_v8 = vld [vmem:[#allocation219_spill] sm:$0xff] }
 0x345   :  { %v3553_v15 = vmul.f32 0.25, %v3433_v57  ;;  %v4007_v43 = vmul.f32 1.442695, %v3987_v12  ;;  %v5570_v50 = vadd.f32 %v5554_v41, %v5474_v42  ;;  %v4035_v6 = vsub.f32 %v13054_v53, %v13047_v37  ;;  %v13065_v57 = vld [vmem:[#allocation253_spill] sm:$0xff] }
 0x346   :  { %7234 = vpow2.f32 %v3959_v24  ;;  %v4083_v23 = vsub.f32 %v13055_v21, %v13047_v37  ;;  %v4882_v32 = vadd.f32 %v4866_v13, %v4786_v51  ;;  %v13058_v35 = vmax.f32 %v13056_v1, %v13057_v60  ;;  %v5981_v37 = vpop.permute.xlu0 %5980  ;;  %v13066_v13 = vld [vmem:[#allocation255_spill] sm:$0xff]  ;;  %v13068_v24 = vld [vmem:[#allocation16_spill] sm:$0xff] }
 0x347   :  { %7236 = vpow2.f32 %v4007_v43  ;;  %v4179_v11 = vadd.f32 %v13060_v8, %v13059_v19  ;;  %v5666_v14 = vadd.f32 %v5650_v55, %v5570_v50  ;;  %v5746_v7 = vmul.f32 %v7217_v26, %v13061_v18  ;;  %v13079_v60 = vld [vmem:[#allocation43_spill] sm:$0xff] }
 0x348   :  { %v11483_v49 = vmax.f32 %v13058_v35, %v3553_v15  ;;  %v11487_v31 = vpop.eup %7218  ;;  %v4055_v62 = vmul.f32 1.442695, %v4035_v6  ;;  %v4103_v12 = vmul.f32 1.442695, %v4083_v23  ;;  %v13070_v6 = vld [vmem:[#allocation21_spill] sm:$0xff]  ;;  %v6034_v1 = vmul.f32 %v13044_v3, %v5981_v37 }
 0x349   :  { %v11490_v5 = vpop.eup %7220  ;;  %v5762_v26 = vadd.f32 %v5746_v7, %v5666_v14  ;;  %v4195_v51 = vadd.f32 %v13068_v24, %v4179_v11  ;;  %v4403_v21 = vmul.f32 %v13059_v19, %v13070_v6  ;;  %v13074_v6 = vld [vmem:[#allocation325_spill] sm:$0xff] }
 0x34a   :  { %13062 = vst [vmem:[#allocation157_spill] sm:$0xff] %v11490_v5  ;;  %v3753_v46 = vsub.f32 %v13063_v17, %v11483_v49  ;;  %v3801_v41 = vsub.f32 %v13064_v48, %v11483_v49  ;;  %v3849_v30 = vsub.f32 %v13065_v57, %v11483_v49  ;;  %v11500_v34 = vpop.eup %7222  ;;  %v4137_v55 = vsub.f32 %v3553_v15, %v11483_v49  ;;  %v13071_v17 = vld [vmem:[#allocation12_spill] sm:$0xff]  ;;  %v13081_v5 = vld [vmem:[#allocation173_spill] sm:$0xff] }
 0x34b   :  { %13067 = vst [vmem:[#allocation185_spill] sm:$0xff] %v11500_v34  ;;  %7238 = vpow2.f32 %v4055_v62  ;;  %v11504_v43 = vpop.eup %7224  ;;  %v4483_v14 = vmul.f32 %v13060_v8, %v13071_v17  ;;  %v13072_v62 = vld [vmem:[#allocation52_spill] sm:$0xff] }
 0x34c   :  { %13069 = vst [vmem:[#allocation290_spill] sm:$0xff] %v11504_v43  ;;  %v3779_v50 = vmul.f32 1.442695, %v3753_v46  ;;  %v3827_v53 = vmul.f32 1.442695, %v3801_v41  ;;  %7240 = vpow2.f32 %v4103_v12  ;;  %v7227_v23 = vpop.eup %7226  ;;  %v4579_v12 = vmul.f32 %v13068_v24, %v13072_v62  ;;  %v13073_v41 = vld [vmem:[#allocation120_spill] sm:$0xff] }
 0x34d   :  { %v3875_v35 = vmul.f32 1.442695, %v3849_v30  ;;  %v4163_v18 = vmul.f32 1.442695, %v4137_v55  ;;  %v7229_v15 = vpop.eup %7228  ;;  %v5185_v7 = vmul.f32 %v7227_v23, %v11442_v29  ;;  %v6065_v11 = vmul.f32 %v7227_v23, %v11444_v28  ;;  %v13075_v30 = vld [vmem:[#allocation142_spill] sm:$0xff]  ;;  %v13077_v29 = vld [vmem:[#allocation103_spill] sm:$0xff] }
 0x34e   :  { %7242 = vpow2.f32 %v3779_v50  ;;  %v7231_v46 = vpop.eup %7230  ;;  %v4258_v48 = vadd.f32 %v7229_v15, %v4242_v9  ;;  %v4962_v57 = vmul.f32 %v7229_v15, %v13073_v41  ;;  %v5842_v37 = vmul.f32 %v7229_v15, %v13074_v6  ;;  %v13076_v55 = vld [vmem:[#allocation34_spill] sm:$0xff]  ;;  %v13078_v9 = vld [vmem:[#allocation205_spill] sm:$0xff]  ;;  %v6509_v15 = vpop.f32.mrf.mxu1 }
 0x34f   :  { %v11519_v42 = vmul.f32 %v13076_v55, %v13075_v30  ;;  %v7233_v17 = vpop.eup %7232  ;;  %5201 = vst [vmem:[%s12260_s6 + $0x20] sm:$0xff] %v5185_v7  ;;  %6081 = vst [vmem:[%s12260_s6 + $0x28] sm:$0xff] %v6065_v11  ;;  %v5058_v28 = vmul.f32 %v7231_v46, %v13077_v29  ;;  %v5938_v50 = vmul.f32 %v7231_v46, %v13078_v9  ;;  %7244 = vpow2.f32 %v3827_v53  ;;  %v13080_v7 = vld [vmem:[#allocation145_spill] sm:$0xff]  ;;  %v13088_v9 = vld [vmem:[#allocation216_spill] sm:$0xff] }
 0x350   :  { %v4499_v23 = vadd.f32 %v4483_v14, %v4403_v21  ;;  %v4274_v62 = vadd.f32 %v7231_v46, %v4258_v48  ;;  %v4978_v41 = vadd.f32 %v4962_v57, %v4882_v32  ;;  %v5858_v6 = vadd.f32 %v5842_v37, %v5762_v26  ;;  %v13082_v32 = vld [vmem:[#allocation178_spill] sm:$0xff]  ;;  %v13084_v48 = vld [vmem:[#allocation99_spill] sm:$0xff] }
 0x351   :  { %7246 = vpow2.f32 %v3875_v35  ;;  %v4211_v30 = vadd.f32 %v7233_v17, %v4195_v51  ;;  %v4675_v43 = vmul.f32 %v7233_v17, %v13079_v60  ;;  %v5283_v34 = vmul.f32 %v13059_v19, %v13080_v7  ;;  %v13083_v51 = vld [vmem:[#allocation204_spill] sm:$0xff] }
 0x352   :  { %v4595_v16 = vadd.f32 %v4579_v12, %v4499_v23  ;;  %v4290_v11 = vadd.f32 %v13044_v3, %v4274_v62  ;;  %v5074_v25 = vadd.f32 %v5058_v28, %v4978_v41  ;;  %v5954_v29 = vadd.f32 %v5938_v50, %v5858_v6  ;;  %v6510_v12 = vpop.f32.mrf.mxu1  ;;  %v13091_v41 = vld [vmem:[#allocation309_spill] sm:$0xff] }
 0x353   :  { %v5363_v53 = vmul.f32 %v13060_v8, %v13081_v5  ;;  %v7235_v21 = vpop.eup %7234  ;;  %7248 = vpow2.f32 %v4163_v18  ;;  %v5459_v26 = vmul.f32 %v13068_v24, %v13082_v32  ;;  %v5555_v35 = vmul.f32 %v7233_v17, %v13083_v51  ;;  %v13085_v8 = vld [vmem:[#allocation87_spill] sm:$0xff]  ;;  %v13094_v32 = vld [vmem:[#allocation90_spill] sm:$0xff] }
 0x354   :  { %v4691_v14 = vadd.f32 %v4675_v43, %v4595_v16  ;;  %v7237_v60 = vpop.eup %7236  ;;  %7250 = vrcp.f32 %v4290_v11  ;;  %v11539_v19 = vadd.f32 %v11457_v33, %v5074_v25  ;;  %v11541_v3 = vadd.f32 %v6034_v1, %v5954_v29  ;;  %v13086_v16 = vld [vmem:[#allocation231_spill] sm:$0xff]  ;;  %v13089_v33 = vld [vmem:[#allocation209_spill] sm:$0xff] }
 0x355   :  { %v4227_v46 = vadd.f32 %v7235_v21, %v4211_v30  ;;  %v4771_v57 = vmul.f32 %v7235_v21, %v13084_v48  ;;  %v4867_v5 = vmul.f32 %v7237_v60, %v13085_v8  ;;  %v5379_v18 = vadd.f32 %v5363_v53, %v5283_v34  ;;  %v13087_v24 = vld [vmem:[#allocation291_spill] sm:$0xff] }
 0x356   :  { %v5651_v43 = vmul.f32 %v7235_v21, %v13086_v16  ;;  %v5747_v28 = vmul.f32 %v7237_v60, %v13087_v24  ;;  %v6511_v17 = vadd.f32 %v6510_v12, %v6509_v15  ;;  %7252 = vpow2.f32 %v13088_v9  ;;  %v13090_v1 = vld [vmem:[#allocation307_spill] sm:$0xff]  ;;  %v13097_v9 = vld [vmem:[#allocation312_spill] sm:$0xff] }
 0x357   :  { %v4243_v37 = vadd.f32 %v7237_v60, %v4227_v46  ;;  %v4787_v23 = vadd.f32 %v4771_v57, %v4691_v14  ;;  %v5475_v25 = vadd.f32 %v5459_v26, %v5379_v18  ;;  %v3940_v62 = vsub.f32 %v13090_v1, %v13089_v33  ;;  %v13092_v34 = vld [vmem:[#allocation91_spill] sm:$0xff]  ;;  %v13095_v14 = vld [vmem:[#allocation302_spill] sm:$0xff] }
 0x358   :  { %v7239_v50 = vpop.eup %7238  ;;  %v3988_v6 = vsub.f32 %v13091_v41, %v13089_v33  ;;  %v13093_v29 = vld [vmem:[#allocation339_spill] sm:$0xff]  ;;  %v3436_v21 = vadd.f32 %v11471_v27, %v6511_v17  ;;  %v4084_v17 = vsub.f32 %v13097_v9, %v13089_v33  ;;  %v13102_v41 = vld [vmem:[#allocation224_spill] sm:$0xff] }
 0x359   :  { %v7241_v30 = vpop.eup %7240  ;;  %v4259_v7 = vadd.f32 %v7239_v50, %v4243_v37  ;;  %v4963_v11 = vmul.f32 %v7239_v50, %v13092_v34  ;;  %v5843_v53 = vmul.f32 %v7239_v50, %v13093_v29  ;;  %v4883_v15 = vadd.f32 %v4867_v5, %v4787_v23  ;;  %v13096_v37 = vld [vmem:[#allocation310_spill] sm:$0xff]  ;;  %v13098_v50 = vld [vmem:[#allocation349_spill] sm:$0xff]  ;;  %v13099_v23 = vld [vmem:[#allocation347_spill] sm:$0xff] }
 0x35a   :  { %v5059_v51 = vmul.f32 %v7241_v30, %v13094_v32  ;;  %v5571_v12 = vadd.f32 %v5555_v35, %v5475_v25  ;;  %v5939_v26 = vmul.f32 %v7241_v30, %v13095_v14  ;;  %v3562_v48 = vmul.f32 0.25, %v3436_v21  ;;  %v13104_v21 = vld [vmem:[#allocation258_spill] sm:$0xff]  ;;  %v13105_v32 = vld [vmem:[#allocation259_spill] sm:$0xff] }
 0x35b   :  { %v11557_v60 = vpop.eup %7242  ;;  %v4275_v46 = vadd.f32 %v7241_v30, %v4259_v7  ;;  %v3961_v57 = vmul.f32 1.442695, %v3940_v62  ;;  %v4009_v8 = vmul.f32 1.442695, %v3988_v6  ;;  %v4979_v18 = vadd.f32 %v4963_v11, %v4883_v15  ;;  %v13101_v62 = vld [vmem:[#allocation223_spill] sm:$0xff]  ;;  %v13103_v11 = vld [vmem:[#allocation257_spill] sm:$0xff] }
 0x35c   :  { %v5667_v16 = vadd.f32 %v5651_v43, %v5571_v12  ;;  %v4036_v24 = vsub.f32 %v13096_v37, %v13089_v33  ;;  %v11563_v5 = vpop.eup %7244  ;;  %v13100_v25 = vmax.f32 %v13098_v50, %v13099_v23  ;;  %v4180_v6 = vadd.f32 %v13102_v41, %v13101_v62  ;;  %v5985_v33 = vpop.permute.xlu1 %5984 }
 0x35d   :  { %v4291_v35 = vadd.f32 %v13076_v55, %v4275_v46  ;;  %7254 = vpow2.f32 %v3961_v57  ;;  %v5075_v30 = vadd.f32 %v5059_v51, %v4979_v18  ;;  %v13106_v57 = vld [vmem:[#allocation261_spill] sm:$0xff]  ;;  %v6035_v50 = vmul.f32 %v13076_v55, %v5985_v33  ;;  %v13126_v51 = vld [vmem:[#allocation356_spill] sm:$0xff] }
 0x35e   :  { %v11569_v1 = vmax.f32 %v13100_v25, %v3562_v48  ;;  %v11573_v43 = vpop.eup %7246  ;;  %v5763_v7 = vadd.f32 %v5747_v28, %v5667_v16  ;;  %7256 = vpow2.f32 %v4009_v8  ;;  %v4057_v34 = vmul.f32 1.442695, %v4036_v24  ;;  %v6512_v24 = vpop.f32.mrf.mxu1 }
 0x35f   :  { %7258 = vrcp.f32 %v4291_v35  ;;  %v5171_v14 = vadd.f32 %v11519_v42, %v5075_v30  ;;  %v13107_v30 = vld [vmem:[#allocation225_spill] sm:$0xff]  ;;  %v13110_v55 = vsub.f32 %v13033_v22, %v11408_v58 }
 0x360   :  { %v3754_v29 = vsub.f32 %v13103_v11, %v11569_v1  ;;  %v3802_v15 = vsub.f32 %v13104_v21, %v11569_v1  ;;  %v3850_v12 = vsub.f32 %v13105_v32, %v11569_v1  ;;  %v5859_v46 = vadd.f32 %v5843_v53, %v5763_v7  ;;  %v11585_v8 = vpop.eup %7248  ;;  %v6513_v33 = vpop.f32.mrf.mxu1  ;;  %v13112_v32 = vld [vmem:[#allocation26_spill] sm:$0xff] }
 0x361   :  { %v4138_v28 = vsub.f32 %v3562_v48, %v11569_v1  ;;  %7260 = vpow2.f32 %v4057_v34  ;;  %v7251_v9 = vpop.eup %7250  ;;  %v4105_v11 = vmul.f32 1.442695, %v4084_v17  ;;  %v4196_v48 = vadd.f32 %v13107_v30, %v4180_v6 }
 0x362   :  { %v3781_v18 = vmul.f32 1.442695, %v3754_v29  ;;  %v3829_v16 = vmul.f32 1.442695, %v3802_v15  ;;  %v3877_v37 = vmul.f32 1.442695, %v3850_v12  ;;  %v5955_v35 = vadd.f32 %v5939_v26, %v5859_v46 }
 0x363   :  { %v4165_v25 = vmul.f32 1.442695, %v4138_v28  ;;  %v5186_v42 = vmul.f32 %v7251_v9, %v11539_v19  ;;  %v6066_v53 = vmul.f32 %v7251_v9, %v11541_v3  ;;  %v7253_v7 = vpop.eup %7252  ;;  %v13108_v29 = vld [vmem:[#allocation4_spill] sm:$0xff]  ;;  %v13109_v15 = vld [vmem:[#allocation38_spill] sm:$0xff]  ;;  %v11598_v17 = vmul.f32 1.442695, %v13110_v55 }
 0x364   :  { %7262 = vpow2.f32 %v3781_v18  ;;  %v6051_v21 = vadd.f32 %v6035_v50, %v5955_v35  ;;  %v4404_v34 = vmul.f32 %v13101_v62, %v13108_v29  ;;  %v4484_v26 = vmul.f32 %v13102_v41, %v13109_v15  ;;  %v13113_v46 = vld [vmem:[#allocation158_spill] sm:$0xff]  ;;  %v13114_v18 = vld [vmem:[#allocation76_spill] sm:$0xff]  ;;  %v13115_v9 = vld [vmem:[#allocation163_spill] sm:$0xff] }
 0x365   :  { %7264 = vpow2.f32 %v3829_v16  ;;  %5202 = vst [vmem:[%s12260_s6 + $0x30] sm:$0xff] %v5186_v42  ;;  %6082 = vst [vmem:[%s12260_s6 + $0x38] sm:$0xff] %v6066_v53  ;;  %v13111_v19 = vsub.f32 %v13066_v13, %v11483_v49  ;;  %v4212_v6 = vadd.f32 %v7253_v7, %v4196_v48  ;;  %v4580_v12 = vmul.f32 %v13107_v30, %v13112_v32  ;;  %v13116_v13 = vld [vmem:[#allocation189_spill] sm:$0xff]  ;;  %v13118_v29 = vld [vmem:[#allocation311_spill] sm:$0xff] }
 0x366   :  { %7266 = vpow2.f32 %v3877_v37  ;;  %v4500_v22 = vadd.f32 %v4484_v26, %v4404_v34  ;;  %v5284_v28 = vmul.f32 %v13101_v62, %v13113_v46  ;;  %v4676_v16 = vmul.f32 %v7253_v7, %v13114_v18  ;;  %v13117_v42 = vld [vmem:[#allocation33_spill] sm:$0xff]  ;;  %v13119_v62 = vld [vmem:[#allocation315_spill] sm:$0xff]  ;;  %v13120_v15 = vld [vmem:[#allocation316_spill] sm:$0xff] }
 0x367   :  { %v11609_v3 = vmul.f32 1.442695, %v13111_v19  ;;  %7268 = vpow2.f32 %v4165_v25  ;;  %v5364_v35 = vmul.f32 %v13102_v41, %v13115_v9  ;;  %v5460_v50 = vmul.f32 %v13107_v30, %v13116_v13  ;;  %v13121_v19 = vld [vmem:[#allocation318_spill] sm:$0xff]  ;;  %v13124_v9 = vld [vmem:[#allocation127_spill] sm:$0xff]  ;;  %v13125_v13 = vld [vmem:[#allocation285_spill] sm:$0xff] }
 0x368   :  { %7270 = vpow2.f32 %v4105_v11  ;;  %v4596_v37 = vadd.f32 %v4580_v12, %v4500_v22  ;;  %v5556_v53 = vmul.f32 %v7253_v7, %v13117_v42  ;;  %v6514_v25 = vadd.f32 %v6513_v33, %v6512_v24  ;;  %v13122_v22 = vld [vmem:[#allocation66_spill] sm:$0xff] }
 0x369   :  { %7272 = vpow2.f32 %v11342_v40  ;;  %v5380_v48 = vadd.f32 %v5364_v35, %v5284_v28  ;;  %v3941_v34 = vsub.f32 %v13118_v29, %v11133_v61  ;;  %v3989_v11 = vsub.f32 %v13119_v62, %v11133_v61  ;;  %v13123_v46 = vld [vmem:[#allocation250_spill] sm:$0xff] }
 0x36a   :  { %v4037_v26 = vsub.f32 %v13120_v15, %v11133_v61  ;;  %v7255_v41 = vpop.eup %7254  ;;  %v4692_v55 = vadd.f32 %v4676_v16, %v4596_v37  ;;  %v3441_v30 = vadd.f32 %v11471_v27, %v6514_v25  ;;  %v4085_v7 = vsub.f32 %v13121_v19, %v11133_v61 }
 0x36b   :  { %v4181_v40 = vadd.f32 %v11253_v59, %v11249_v44  ;;  %v7257_v24 = vpop.eup %7256  ;;  %v4228_v33 = vadd.f32 %v7255_v41, %v4212_v6  ;;  %v4772_v32 = vmul.f32 %v7255_v41, %v13122_v22  ;;  %v5476_v12 = vadd.f32 %v5460_v50, %v5380_v48  ;;  %v13127_v6 = vld [vmem:[#allocation354_spill] sm:$0xff]  ;;  %v13129_v48 = vld [vmem:[#allocation124_spill] sm:$0xff] }
 0x36c   :  { %v5652_v28 = vmul.f32 %v7255_v41, %v13123_v46  ;;  %v7259_v18 = vpop.eup %7258  ;;  %v4868_v35 = vmul.f32 %v7257_v24, %v13124_v9  ;;  %v5748_v16 = vmul.f32 %v7257_v24, %v13125_v13  ;;  %v3571_v37 = vmul.f32 0.25, %v3441_v30  ;;  %v13134_v9 = vld [vmem:[#allocation268_spill] sm:$0xff] }
 0x36d   :  { %v3963_v42 = vmul.f32 1.442695, %v3941_v34  ;;  %v5187_v25 = vmul.f32 %v7259_v18, %v5171_v14  ;;  %v6067_v29 = vmul.f32 %v7259_v18, %v6051_v21  ;;  %v4244_v61 = vadd.f32 %v7257_v24, %v4228_v33  ;;  %v13132_v24 = vld [vmem:[#allocation264_spill] sm:$0xff] }
 0x36e   :  { %v4788_v62 = vadd.f32 %v4772_v32, %v4692_v55  ;;  %v7261_v15 = vpop.eup %7260  ;;  %v5572_v19 = vadd.f32 %v5556_v53, %v5476_v12  ;;  %v13128_v23 = vmax.f32 %v13126_v51, %v13127_v6  ;;  %v4011_v50 = vmul.f32 1.442695, %v3989_v11  ;;  %v13130_v53 = vld [vmem:[#allocation330_spill] sm:$0xff]  ;;  %v13131_v11 = vld [vmem:[#allocation263_spill] sm:$0xff]  ;;  %v13133_v32 = vld [vmem:[#allocation265_spill] sm:$0xff] }
 0x36f   :  { %7274 = vpow2.f32 %v3963_v42  ;;  %5203 = vst [vmem:[%s12260_s6 + $0x40] sm:$0xff] %v5187_v25  ;;  %6083 = vst [vmem:[%s12260_s6 + $0x48] sm:$0xff] %v6067_v29  ;;  %v4260_v14 = vadd.f32 %v7261_v15, %v4244_v61  ;;  %v4964_v34 = vmul.f32 %v7261_v15, %v13129_v48  ;;  %v5844_v41 = vmul.f32 %v7261_v15, %v13130_v53  ;;  %v13135_v15 = vld [vmem:[#allocation71_spill] sm:$0xff] }
 0x370   :  { %v11640_v22 = vmax.f32 %v13128_v23, %v3571_v37  ;;  %v4884_v21 = vadd.f32 %v4868_v35, %v4788_v62  ;;  %v5989_v23 = vpop.permute.xlu0 %5988  ;;  %v5668_v51 = vadd.f32 %v5652_v28, %v5572_v19  ;;  %7276 = vpow2.f32 %v4011_v50  ;;  %v13137_v50 = vld [vmem:[#allocation23_spill] sm:$0xff] }
 0x371   :  { %v11650_v55 = vpop.eup %7262  ;;  %v5156_v19 = vmul.f32 %v11245_v36, %v13135_v15  ;;  %v6036_v48 = vmul.f32 %v11245_v36, %v5989_v23  ;;  %v4107_v23 = vmul.f32 1.442695, %v4085_v7  ;;  %v13140_v15 = vld [vmem:[#allocation13_spill] sm:$0xff] }
 0x372   :  { %v3755_v30 = vsub.f32 %v13131_v11, %v11640_v22  ;;  %v3803_v33 = vsub.f32 %v13132_v24, %v11640_v22  ;;  %v3851_v12 = vsub.f32 %v13133_v32, %v11640_v22  ;;  %v11658_v46 = vpop.eup %7264  ;;  %v4980_v18 = vadd.f32 %v4964_v34, %v4884_v21  ;;  %v13136_v34 = vld [vmem:[#allocation154_spill] sm:$0xff]  ;;  %v13138_v32 = vld [vmem:[#allocation67_spill] sm:$0xff] }
 0x373   :  { %v3899_v35 = vsub.f32 %v13134_v9, %v11640_v22  ;;  %v4139_v13 = vsub.f32 %v3571_v37, %v11640_v22  ;;  %v11663_v42 = vpop.eup %7266  ;;  %v5764_v28 = vadd.f32 %v5748_v16, %v5668_v51  ;;  %v4197_v53 = vadd.f32 %v13136_v34, %v4181_v40  ;;  %v6515_v51 = vpop.f32.mrf.mxu1  ;;  %v13139_v9 = vld [vmem:[#allocation212_spill] sm:$0xff] }
 0x374   :  { %v3783_v25 = vmul.f32 1.442695, %v3755_v30  ;;  %v3831_v29 = vmul.f32 1.442695, %v3803_v33  ;;  %v3879_v61 = vmul.f32 1.442695, %v3851_v12  ;;  %v11665_v62 = vpop.eup %7268  ;;  %v4405_v16 = vmul.f32 %v11249_v44, %v13137_v50 }
 0x375   :  { %v4167_v21 = vmul.f32 1.442695, %v4139_v13  ;;  %v7271_v11 = vpop.eup %7270  ;;  %v5860_v24 = vadd.f32 %v5844_v41, %v5764_v28  ;;  %v4059_v37 = vmul.f32 1.442695, %v4037_v26  ;;  %v4485_v40 = vmul.f32 %v11253_v59, %v13140_v15  ;;  %v6516_v7 = vpop.f32.mrf.mxu1  ;;  %v13147_v15 = vld [vmem:[#allocation104_spill] sm:$0xff] }
 0x376   :  { %7278 = vpow2.f32 %v3783_v25  ;;  %v7273_v30 = vpop.eup %7272  ;;  %v4276_v33 = vadd.f32 %v7271_v11, %v4260_v14  ;;  %v5060_v12 = vmul.f32 %v7271_v11, %v13138_v32  ;;  %v5940_v6 = vmul.f32 %v7271_v11, %v13139_v9  ;;  %v13142_v11 = vld [vmem:[#allocation56_spill] sm:$0xff] }
 0x377   :  { %7280 = vpow2.f32 %v3831_v29  ;;  %v4213_v13 = vadd.f32 %v7273_v30, %v4197_v53  ;;  %v13141_v25 = vsub.f32 %v13106_v57, %v11569_v1  ;;  %v4501_v50 = vadd.f32 %v4485_v40, %v4405_v16  ;;  %v13146_v32 = vld [vmem:[#allocation180_spill] sm:$0xff] }
 0x378   :  { %7282 = vpow2.f32 %v3879_v61  ;;  %v4292_v41 = vadd.f32 %v11245_v36, %v4276_v33  ;;  %v5076_v26 = vadd.f32 %v5060_v12, %v4980_v18  ;;  %v5956_v28 = vadd.f32 %v5940_v6, %v5860_v24  ;;  %v13143_v36 = vld [vmem:[#allocation147_spill] sm:$0xff]  ;;  %v13145_v24 = vld [vmem:[#allocation174_spill] sm:$0xff]  ;;  %v13148_v40 = vld [vmem:[#allocation208_spill] sm:$0xff] }
 0x379   :  { %7284 = vpow2.f32 %v4167_v21  ;;  %v11681_v14 = vmul.f32 1.442695, %v13141_v25  ;;  %v4581_v29 = vmul.f32 %v13136_v34, %v13142_v11  ;;  %v5285_v6 = vmul.f32 %v11249_v44, %v13143_v36  ;;  %v13144_v21 = vld [vmem:[#allocation45_spill] sm:$0xff]  ;;  %v13152_v11 = vld [vmem:[#allocation324_spill] sm:$0xff] }
 0x37a   :  { %7286 = vpow2.f32 %v4059_v37  ;;  %v11685_v61 = vadd.f32 %v5156_v19, %v5076_v26  ;;  %v11687_v53 = vadd.f32 %v6036_v48, %v5956_v28  ;;  %v4677_v57 = vmul.f32 %v7273_v30, %v13144_v21  ;;  %v13153_v36 = vld [vmem:[#allocation92_spill] sm:$0xff] }
 0x37b   :  { %7288 = vrcp.f32 %v4292_v41  ;;  %v4597_v18 = vadd.f32 %v4581_v29, %v4501_v50  ;;  %v5365_v37 = vmul.f32 %v11253_v59, %v13145_v24  ;;  %v11694_v33 = vmul.f32 1.442695, %v3899_v35  ;;  %v13149_v59 = vld [vmem:[#allocation317_spill] sm:$0xff]  ;;  %v13150_v35 = vld [vmem:[#allocation320_spill] sm:$0xff] }
 0x37c   :  { %7290 = vpow2.f32 %v4107_v23  ;;  %v7275_v16 = vpop.eup %7274  ;;  %v5461_v12 = vmul.f32 %v13136_v34, %v13146_v32  ;;  %v6517_v19 = vadd.f32 %v6516_v7, %v6515_v51  ;;  %v5557_v41 = vmul.f32 %v7273_v30, %v13148_v40 }
 0x37d   :  { %7292 = vpow2.f32 %v11357_v47  ;;  %v4229_v48 = vadd.f32 %v7275_v16, %v4213_v13  ;;  %v4693_v9 = vadd.f32 %v4677_v57, %v4597_v18  ;;  %v4773_v44 = vmul.f32 %v7275_v16, %v13147_v15  ;;  %v7277_v50 = vpop.eup %7276  ;;  %v13151_v47 = vld [vmem:[#allocation321_spill] sm:$0xff]  ;;  %v13155_v18 = vld [vmem:[#allocation228_spill] sm:$0xff] }
 0x37e   :  { %v5381_v23 = vadd.f32 %v5365_v37, %v5285_v6  ;;  %v3444_v26 = vadd.f32 %v11471_v27, %v6517_v19  ;;  %v3942_v28 = vsub.f32 %v13149_v59, %v11214_v54  ;;  %v3990_v25 = vsub.f32 %v13150_v35, %v11214_v54  ;;  %v13154_v6 = vld [vmem:[#allocation144_spill] sm:$0xff]  ;;  %v13156_v37 = vld [vmem:[#allocation237_spill] sm:$0xff] }
 0x37f   :  { %v4789_v34 = vadd.f32 %v4773_v44, %v4693_v9  ;;  %v4038_v13 = vsub.f32 %v13151_v47, %v11214_v54  ;;  %v4086_v29 = vsub.f32 %v13152_v11, %v11214_v54  ;;  %v4245_v7 = vadd.f32 %v7277_v50, %v4229_v48  ;;  %v13158_v44 = vld [vmem:[#allocation362_spill] sm:$0xff] }
 0x380   :  { %v5477_v51 = vadd.f32 %v5461_v12, %v5381_v23  ;;  %v4869_v30 = vmul.f32 %v7277_v50, %v13153_v36  ;;  %v11713_v21 = vmul.f32 %v13155_v18, %v13154_v6  ;;  %v3580_v57 = vmul.f32 0.25, %v3444_v26  ;;  %v13159_v23 = vld [vmem:[#allocation361_spill] sm:$0xff]  ;;  %v13166_v47 = vld [vmem:[#allocation270_spill] sm:$0xff] }
 0x381   :  { %v5653_v32 = vmul.f32 %v7275_v16, %v13156_v37  ;;  %v3965_v19 = vmul.f32 1.442695, %v3942_v28  ;;  %v4013_v9 = vmul.f32 1.442695, %v3990_v25  ;;  %v13160_v40 = vmax.f32 %v13158_v44, %v13159_v23  ;;  %v13165_v25 = vld [vmem:[#allocation269_spill] sm:$0xff] }
 0x382   :  { %v5573_v24 = vadd.f32 %v5557_v41, %v5477_v51  ;;  %v4885_v15 = vadd.f32 %v4869_v30, %v4789_v34  ;;  %v4061_v48 = vmul.f32 1.442695, %v4038_v13  ;;  %v4182_v59 = vadd.f32 %v11303_v2, %v11297_v38  ;;  %v13163_v41 = vld [vmem:[#allocation294_spill] sm:$0xff]  ;;  %v13167_v13 = vld [vmem:[#allocation271_spill] sm:$0xff] }
 0x383   :  { %v11716_v12 = vpop.eup %7278  ;;  %v11721_v54 = vmax.f32 %v13160_v40, %v3580_v57  ;;  %v5749_v51 = vmul.f32 %v7277_v50, %v13163_v41  ;;  %7294 = vpow2.f32 %v3965_v19  ;;  %v4109_v16 = vmul.f32 1.442695, %v4086_v29  ;;  %v13168_v30 = vld [vmem:[#allocation274_spill] sm:$0xff]  ;;  %v13170_v29 = vld [vmem:[#allocation5_spill] sm:$0xff]  ;;  %v13171_v41 = vld [vmem:[#allocation40_spill] sm:$0xff] }
 0x384   :  { %13157 = vst [vmem:[#allocation111_spill] sm:$0xff] %v11716_v12  ;;  %v11725_v35 = vpop.eup %7280  ;;  %v5669_v26 = vadd.f32 %v5653_v32, %v5573_v24  ;;  %7296 = vpow2.f32 %v4013_v9  ;;  %v4198_v50 = vadd.f32 %v11311_v39, %v4182_v59  ;;  %v4406_v32 = vmul.f32 %v11297_v38, %v13170_v29 }
 0x385   :  { %13161 = vst [vmem:[#allocation19_spill] sm:$0xff] %v11721_v54  ;;  %13162 = vst [vmem:[#allocation10_spill] sm:$0xff] %v11725_v35  ;;  %v11728_v28 = vpop.eup %7282  ;;  %v3756_v34 = vsub.f32 %v13165_v25, %v11721_v54  ;;  %v3804_v11 = vsub.f32 %v13166_v47, %v11721_v54  ;;  %v3852_v36 = vsub.f32 %v13167_v13, %v11721_v54  ;;  %7298 = vpow2.f32 %v4061_v48  ;;  %v5993_v48 = vpop.permute.xlu1 %5992 }
 0x386   :  { %13164 = vst [vmem:[#allocation50_spill] sm:$0xff] %v11728_v28  ;;  %v3900_v6 = vsub.f32 %v13168_v30, %v11721_v54  ;;  %v11738_v37 = vpop.eup %7284  ;;  %v5765_v24 = vadd.f32 %v5749_v51, %v5669_v26  ;;  %v4140_v40 = vsub.f32 %v3580_v57, %v11721_v54  ;;  %v4486_v25 = vmul.f32 %v11303_v2, %v13171_v41  ;;  %v13172_v30 = vld [vmem:[#allocation95_spill] sm:$0xff]  ;;  %v6518_v28 = vpop.f32.mrf.mxu1 }
 0x387   :  { %13169 = vst [vmem:[#allocation141_spill] sm:$0xff] %v11738_v37  ;;  %v7287_v19 = vpop.eup %7286  ;;  %v3785_v44 = vmul.f32 1.442695, %v3756_v34  ;;  %v13173_v37 = vld [vmem:[#allocation351_spill] sm:$0xff]  ;;  %v3833_v9 = vmul.f32 1.442695, %v3804_v11 }
 0x388   :  { %v7289_v47 = vpop.eup %7288  ;;  %v4261_v13 = vadd.f32 %v7287_v19, %v4245_v7  ;;  %v4965_v23 = vmul.f32 %v7287_v19, %v13172_v30  ;;  %v5845_v26 = vmul.f32 %v7287_v19, %v13173_v37  ;;  %v3881_v34 = vmul.f32 1.442695, %v3852_v36  ;;  %v13174_v41 = vld [vmem:[#allocation55_spill] sm:$0xff] }
 0x389   :  { %v7291_v51 = vpop.eup %7290  ;;  %v5188_v59 = vmul.f32 %v7289_v47, %v11685_v61  ;;  %v6068_v29 = vmul.f32 %v7289_v47, %v11687_v53  ;;  %7300 = vpow2.f32 %v3785_v44  ;;  %v13175_v61 = vld [vmem:[#allocation374_spill] sm:$0xff]  ;;  %v4169_v11 = vmul.f32 1.442695, %v4140_v40  ;;  %v13179_v40 = vld [vmem:[#allocation165_spill] sm:$0xff] }
 0x38a   :  { %v7293_v57 = vpop.eup %7292  ;;  %v4277_v54 = vadd.f32 %v7291_v51, %v4261_v13  ;;  %v4981_v35 = vadd.f32 %v4965_v23, %v4885_v15  ;;  %v5061_v12 = vmul.f32 %v7291_v51, %v13174_v41  ;;  %v5861_v7 = vadd.f32 %v5845_v26, %v5765_v24  ;;  %v13176_v15 = vld [vmem:[#allocation28_spill] sm:$0xff]  ;;  %v6519_v26 = vpop.f32.mrf.mxu1 }
 0x38b   :  { %5204 = vst [vmem:[%s12260_s6 + $0x50] sm:$0xff] %v5188_v59  ;;  %6084 = vst [vmem:[%s12260_s6 + $0x58] sm:$0xff] %v6068_v29  ;;  %v5941_v53 = vmul.f32 %v7291_v51, %v13175_v61  ;;  %v4214_v36 = vadd.f32 %v7293_v57, %v4198_v50  ;;  %v4502_v37 = vadd.f32 %v4486_v25, %v4406_v32  ;;  %7302 = vpow2.f32 %v3833_v9  ;;  %v13177_v13 = vld [vmem:[#allocation80_spill] sm:$0xff]  ;;  %v13180_v9 = vld [vmem:[#allocation191_spill] sm:$0xff] }
 0x38c   :  { %v4293_v19 = vadd.f32 %v13155_v18, %v4277_v54  ;;  %v5077_v44 = vadd.f32 %v5061_v12, %v4981_v35  ;;  %v4582_v23 = vmul.f32 %v11311_v39, %v13176_v15  ;;  %v6037_v47 = vmul.f32 %v13155_v18, %v5993_v48  ;;  %v13178_v32 = vld [vmem:[#allocation160_spill] sm:$0xff]  ;;  %v13181_v48 = vld [vmem:[#allocation197_spill] sm:$0xff] }
 0x38d   :  { %v5957_v24 = vadd.f32 %v5941_v53, %v5861_v7  ;;  %7304 = vpow2.f32 %v3881_v34  ;;  %v4678_v30 = vmul.f32 %v7293_v57, %v13177_v13  ;;  %v5286_v54 = vmul.f32 %v11297_v38, %v13178_v32  ;;  %v13182_v7 = vld [vmem:[#allocation323_spill] sm:$0xff]  ;;  %v13184_v53 = vld [vmem:[#allocation69_spill] sm:$0xff] }
 0x38e   :  { %7306 = vrcp.f32 %v4293_v19  ;;  %v11764_v51 = vadd.f32 %v11713_v21, %v5077_v44  ;;  %v4598_v50 = vadd.f32 %v4582_v23, %v4502_v37  ;;  %v11768_v35 = vmul.f32 1.442695, %v3900_v6  ;;  %v13183_v6 = vld [vmem:[#allocation326_spill] sm:$0xff]  ;;  %v13185_v44 = vld [vmem:[#allocation327_spill] sm:$0xff] }
 0x38f   :  { %v6053_v12 = vadd.f32 %v6037_v47, %v5957_v24  ;;  %7308 = vpow2.f32 %v4109_v16  ;;  %v5366_v25 = vmul.f32 %v11303_v2, %v13179_v40  ;;  %v5462_v59 = vmul.f32 %v11311_v39, %v13180_v9  ;;  %v13186_v47 = vld [vmem:[#allocation129_spill] sm:$0xff] }
 0x390   :  { %7310 = vpow2.f32 %v4169_v11  ;;  %v4694_v18 = vadd.f32 %v4678_v30, %v4598_v50  ;;  %v6520_v29 = vadd.f32 %v6519_v26, %v6518_v28  ;;  %v7295_v34 = vpop.eup %7294  ;;  %v5558_v41 = vmul.f32 %v7293_v57, %v13181_v48  ;;  %v13187_v30 = vld [vmem:[#allocation256_spill] sm:$0xff]  ;;  %v13188_v26 = vld [vmem:[#allocation126_spill] sm:$0xff] }
 0x391   :  { %v5382_v21 = vadd.f32 %v5366_v25, %v5286_v54  ;;  %v3943_v38 = vsub.f32 %v13182_v7, %v11294_v45  ;;  %v3991_v61 = vsub.f32 %v13183_v6, %v11294_v45  ;;  %v4230_v16 = vadd.f32 %v7295_v34, %v4214_v36  ;;  %v7297_v11 = vpop.eup %7296  ;;  %v13189_v54 = vld [vmem:[#allocation289_spill] sm:$0xff]  ;;  %v13190_v48 = vld [vmem:[#allocation368_spill] sm:$0xff]  ;;  %v13191_v7 = vld [vmem:[#allocation367_spill] sm:$0xff] }
 0x392   :  { %v4774_v37 = vmul.f32 %v7295_v34, %v13184_v53  ;;  %v3449_v2 = vadd.f32 %v11471_v27, %v6520_v29  ;;  %7312 = vpow2.f32 %v11451_v56  ;;  %v4039_v57 = vsub.f32 %v13185_v44, %v11294_v45  ;;  %v7299_v15 = vpop.eup %7298  ;;  %v13193_v6 = vld [vmem:[#allocation336_spill] sm:$0xff] }
 0x393   :  { %v5478_v39 = vadd.f32 %v5462_v59, %v5382_v21  ;;  %v3967_v28 = vmul.f32 1.442695, %v3943_v38  ;;  %v4015_v19 = vmul.f32 1.442695, %v3991_v61  ;;  %v4246_v23 = vadd.f32 %v7297_v11, %v4230_v16 }
 0x394   :  { %v4790_v24 = vadd.f32 %v4774_v37, %v4694_v18  ;;  %v4870_v13 = vmul.f32 %v7297_v11, %v13186_v47  ;;  %v5654_v36 = vmul.f32 %v7295_v34, %v13187_v30  ;;  %v4966_v50 = vmul.f32 %v7299_v15, %v13188_v26  ;;  %v5997_v30 = vpop.permute.xlu0 %5996 }
 0x395   :  { %v5574_v32 = vadd.f32 %v5558_v41, %v5478_v39  ;;  %v5750_v40 = vmul.f32 %v7297_v11, %v13189_v54  ;;  %v3589_v56 = vmul.f32 0.25, %v3449_v2  ;;  %v4262_v9 = vadd.f32 %v7299_v15, %v4246_v23  ;;  %v13194_v2 = vld [vmem:[#allocation275_spill] sm:$0xff]  ;;  %v13195_v39 = vld [vmem:[#allocation276_spill] sm:$0xff] }
 0x396   :  { %v11788_v25 = vpop.eup %7300  ;;  %v4886_v59 = vadd.f32 %v4870_v13, %v4790_v24  ;;  %7314 = vpow2.f32 %v3967_v28  ;;  %v4063_v29 = vmul.f32 1.442695, %v4039_v57  ;;  %v13192_v18 = vmax.f32 %v13190_v48, %v13191_v7 }
 0x397   :  { %v5670_v21 = vadd.f32 %v5654_v36, %v5574_v32  ;;  %7316 = vpow2.f32 %v4015_v19  ;;  %v4087_v34 = vsub.f32 %v12994_v4, %v11294_v45  ;;  %v5846_v61 = vmul.f32 %v7299_v15, %v13193_v6  ;;  %v13196_v19 = vld [vmem:[#allocation277_spill] sm:$0xff]  ;;  %v13197_v45 = vld [vmem:[#allocation112_spill] sm:$0xff] }
 0x398   :  { %v11793_v38 = vmax.f32 %v13192_v18, %v3589_v56  ;;  %v4982_v41 = vadd.f32 %v4966_v50, %v4886_v59  ;;  %7318 = vpow2.f32 %v4063_v29  ;;  %v4183_v16 = vadd.f32 %v11398_v0, %v11388_v52  ;;  %v11800_v53 = vpop.eup %7302  ;;  %v13198_v15 = vld [vmem:[#allocation280_spill] sm:$0xff]  ;;  %v6521_v18 = vpop.f32.mrf.mxu1 }
 0x399   :  { %v5766_v37 = vadd.f32 %v5750_v40, %v5670_v21  ;;  %v5158_v57 = vmul.f32 %v11317_v10, %v13197_v45  ;;  %v13199_v21 = vld [vmem:[#allocation25_spill] sm:$0xff] }
 0x39a   :  { %v3757_v11 = vsub.f32 %v13194_v2, %v11793_v38  ;;  %v3805_v28 = vsub.f32 %v13195_v39, %v11793_v38  ;;  %v3853_v44 = vsub.f32 %v13196_v19, %v11793_v38  ;;  %v11808_v4 = vpop.eup %7304  ;;  %v3901_v23 = vsub.f32 %v13198_v15, %v11793_v38  ;;  %v13200_v2 = vld [vmem:[#allocation116_spill] sm:$0xff]  ;;  %v13201_v39 = vld [vmem:[#allocation211_spill] sm:$0xff] }
 0x39b   :  { %v4141_v24 = vsub.f32 %v3589_v56, %v11793_v38  ;;  %v4199_v47 = vadd.f32 %v11400_v20, %v4183_v16  ;;  %v7307_v13 = vpop.eup %7306  ;;  %v5862_v36 = vadd.f32 %v5846_v61, %v5766_v37  ;;  %v4407_v48 = vmul.f32 %v11388_v52, %v13199_v21  ;;  %v13202_v61 = vld [vmem:[#allocation14_spill] sm:$0xff] }
 0x39c   :  { %v3787_v26 = vmul.f32 1.442695, %v3757_v11  ;;  %v3835_v50 = vmul.f32 1.442695, %v3805_v28  ;;  %v3883_v32 = vmul.f32 1.442695, %v3853_v44  ;;  %v7309_v54 = vpop.eup %7308  ;;  %v5189_v40 = vmul.f32 %v7307_v13, %v11764_v51 }
 0x39d   :  { %v6069_v59 = vmul.f32 %v7307_v13, %v6053_v12  ;;  %v4171_v29 = vmul.f32 1.442695, %v4141_v24  ;;  %v11819_v6 = vpop.eup %7310  ;;  %v4278_v56 = vadd.f32 %v7309_v54, %v4262_v9  ;;  %v5062_v16 = vmul.f32 %v7309_v54, %v13200_v2  ;;  %v13203_v24 = vld [vmem:[#allocation58_spill] sm:$0xff] }
 0x39e   :  { %v5942_v19 = vmul.f32 %v7309_v54, %v13201_v39  ;;  %7320 = vpow2.f32 %v3787_v26  ;;  %5205 = vst [vmem:[%s12260_s6 + $0x60] sm:$0xff] %v5189_v40  ;;  %v6038_v51 = vmul.f32 %v11317_v10, %v5997_v30  ;;  %v4111_v12 = vmul.f32 1.442695, %v4087_v34  ;;  %v6522_v26 = vpop.f32.mrf.mxu1 }
 0x39f   :  { %6085 = vst [vmem:[%s12260_s6 + $0x68] sm:$0xff] %v6069_v59  ;;  %7322 = vpow2.f32 %v3835_v50  ;;  %v4487_v9 = vmul.f32 %v11398_v0, %v13202_v61  ;;  %v7313_v37 = vpop.eup %7312  ;;  %v4294_v11 = vadd.f32 %v11317_v10, %v4278_v56  ;;  %v5078_v28 = vadd.f32 %v5062_v16, %v4982_v41  ;;  %v13204_v50 = vld [vmem:[#allocation149_spill] sm:$0xff]  ;;  %v13205_v41 = vld [vmem:[#allocation47_spill] sm:$0xff] }
 0x3a0   :  { %v5958_v44 = vadd.f32 %v5942_v19, %v5862_v36  ;;  %7324 = vpow2.f32 %v3883_v32  ;;  %v4215_v45 = vadd.f32 %v7313_v37, %v4199_v47  ;;  %v4583_v13 = vmul.f32 %v11400_v20, %v13203_v24  ;;  %v13206_v32 = vld [vmem:[#allocation176_spill] sm:$0xff]  ;;  %v13210_v61 = vld [vmem:[#allocation215_spill] sm:$0xff] }
 0x3a1   :  { %7326 = vpow2.f32 %v4171_v29  ;;  %v4503_v15 = vadd.f32 %v4487_v9, %v4407_v48  ;;  %v11835_v30 = vadd.f32 %v5158_v57, %v5078_v28  ;;  %v5287_v54 = vmul.f32 %v11388_v52, %v13204_v50  ;;  %v13207_v29 = vld [vmem:[#allocation182_spill] sm:$0xff]  ;;  %v13208_v52 = vld [vmem:[#allocation108_spill] sm:$0xff]  ;;  %v13211_v9 = vld [vmem:[#allocation241_spill] sm:$0xff] }
 0x3a2   :  { %7328 = vrcp.f32 %v4294_v11  ;;  %v11837_v34 = vadd.f32 %v6038_v51, %v5958_v44  ;;  %v4679_v36 = vmul.f32 %v7313_v37, %v13205_v41  ;;  %v5367_v47 = vmul.f32 %v11398_v0, %v13206_v32  ;;  %v13209_v51 = vld [vmem:[#allocation96_spill] sm:$0xff]  ;;  %v13212_v44 = vld [vmem:[#allocation297_spill] sm:$0xff] }
 0x3a3   :  { %7330 = vpow2.f32 %v4111_v12  ;;  %v4599_v10 = vadd.f32 %v4583_v13, %v4503_v15  ;;  %v7315_v40 = vpop.eup %7314  ;;  %v11844_v59 = vmul.f32 1.442695, %v3901_v23  ;;  %v5463_v21 = vmul.f32 %v11400_v20, %v13207_v29  ;;  %v13213_v15 = vld [vmem:[#allocation93_spill] sm:$0xff]  ;;  %v13214_v13 = vld [vmem:[#allocation328_spill] sm:$0xff] }
 0x3a4   :  { %v6523_v57 = vadd.f32 %v6522_v26, %v6521_v18  ;;  %7332 = vpow2.f32 %v11598_v17  ;;  %v7317_v48 = vpop.eup %7316  ;;  %v4231_v56 = vadd.f32 %v7315_v40, %v4215_v45  ;;  %v4775_v16 = vmul.f32 %v7315_v40, %v13208_v52  ;;  %v13215_v50 = vld [vmem:[#allocation332_spill] sm:$0xff]  ;;  %v13217_v32 = vld [vmem:[#allocation373_spill] sm:$0xff] }
 0x3a5   :  { %v4695_v2 = vadd.f32 %v4679_v36, %v4599_v10  ;;  %v5383_v39 = vadd.f32 %v5367_v47, %v5287_v54  ;;  %v7319_v19 = vpop.eup %7318  ;;  %v4871_v12 = vmul.f32 %v7317_v48, %v13209_v51  ;;  %v5559_v0 = vmul.f32 %v7313_v37, %v13210_v61  ;;  %v13218_v47 = vld [vmem:[#allocation372_spill] sm:$0xff]  ;;  %v13220_v51 = vld [vmem:[#allocation157_spill] sm:$0xff] }
 0x3a6   :  { %v5655_v23 = vmul.f32 %v7315_v40, %v13211_v9  ;;  %v3452_v11 = vadd.f32 %v11471_v27, %v6523_v57  ;;  %v4247_v28 = vadd.f32 %v7317_v48, %v4231_v56  ;;  %v5751_v17 = vmul.f32 %v7317_v48, %v13212_v44  ;;  %v13216_v27 = vld [vmem:[#allocation333_spill] sm:$0xff] }
 0x3a7   :  { %v4791_v20 = vadd.f32 %v4775_v16, %v4695_v2  ;;  %v5479_v18 = vadd.f32 %v5463_v21, %v5383_v39  ;;  %v4967_v45 = vmul.f32 %v7319_v19, %v13213_v15  ;;  %v3944_v26 = vsub.f32 %v13214_v13, %v11408_v58  ;;  %v6001_v2 = vpop.permute.xlu1 %6000  ;;  %v13226_v15 = vld [vmem:[#allocation233_spill] sm:$0xff] }
 0x3a8   :  { %v11856_v24 = vmul.f32 0.25, %v3452_v11  ;;  %v3992_v54 = vsub.f32 %v13215_v50, %v11408_v58  ;;  %v4263_v37 = vadd.f32 %v7319_v19, %v4247_v28  ;;  %v4040_v36 = vsub.f32 %v13216_v27, %v11408_v58  ;;  %v13222_v11 = vld [vmem:[#allocation282_spill] sm:$0xff] }
 0x3a9   :  { %v4887_v10 = vadd.f32 %v4871_v12, %v4791_v20  ;;  %v5575_v41 = vadd.f32 %v5559_v0, %v5479_v18  ;;  %v13219_v40 = vmax.f32 %v13217_v32, %v13218_v47  ;;  %v3969_v21 = vmul.f32 1.442695, %v3944_v26  ;;  %v13221_v0 = vld [vmem:[#allocation281_spill] sm:$0xff]  ;;  %v13223_v20 = vld [vmem:[#allocation284_spill] sm:$0xff] }
 0x3aa   :  { %v4017_v57 = vmul.f32 1.442695, %v3992_v54  ;;  %v4088_v48 = vsub.f32 %v13025_v63, %v11408_v58  ;;  %v4065_v39 = vmul.f32 1.442695, %v4040_v36  ;;  %v4184_v12 = vadd.f32 %v13220_v51, %v11487_v31  ;;  %v13224_v58 = vld [vmem:[#allocation287_spill] sm:$0xff]  ;;  %v13227_v26 = vld [vmem:[#allocation360_spill] sm:$0xff] }
 0x3ab   :  { %v11868_v29 = vmax.f32 %v13219_v40, %v11856_v24  ;;  %v11872_v56 = vpop.eup %7320  ;;  %v4983_v52 = vadd.f32 %v4967_v45, %v4887_v10  ;;  %v5671_v16 = vadd.f32 %v5655_v23, %v5575_v41  ;;  %v13225_v23 = vld [vmem:[#allocation146_spill] sm:$0xff]  ;;  %v5847_v50 = vmul.f32 %v7319_v19, %v13227_v26 }
 0x3ac   :  { %v11876_v61 = vpop.eup %7322  ;;  %v5159_v45 = vmul.f32 %v13226_v15, %v13225_v23  ;;  %7334 = vpow2.f32 %v3969_v21  ;;  %v6039_v10 = vmul.f32 %v13226_v15, %v6001_v2  ;;  %v4113_v21 = vmul.f32 1.442695, %v4088_v48 }
 0x3ad   :  { %v3758_v9 = vsub.f32 %v13221_v0, %v11868_v29  ;;  %v3806_v28 = vsub.f32 %v13222_v11, %v11868_v29  ;;  %v3854_v63 = vsub.f32 %v13223_v20, %v11868_v29  ;;  %v3902_v18 = vsub.f32 %v13224_v58, %v11868_v29  ;;  %v11886_v44 = vpop.eup %7324 }
 0x3ae   :  { %v5767_v13 = vadd.f32 %v5751_v17, %v5671_v16  ;;  %v11891_v54 = vpop.eup %7326  ;;  %7336 = vpow2.f32 %v4017_v57  ;;  %v4142_v0 = vsub.f32 %v11856_v24, %v11868_v29  ;;  %v13228_v16 = vld [vmem:[#allocation185_spill] sm:$0xff] }
 0x3af   :  { %v3789_v41 = vmul.f32 1.442695, %v3758_v9  ;;  %v3837_v27 = vmul.f32 1.442695, %v3806_v28  ;;  %v7329_v36 = vpop.eup %7328  ;;  %v3885_v40 = vmul.f32 1.442695, %v3854_v63  ;;  %7338 = vpow2.f32 %v4065_v39 }
 0x3b0   :  { %v5863_v32 = vadd.f32 %v5847_v50, %v5767_v13  ;;  %v7331_v11 = vpop.eup %7330  ;;  %v5190_v17 = vmul.f32 %v7329_v36, %v11835_v30  ;;  %v6070_v19 = vmul.f32 %v7329_v36, %v11837_v34  ;;  %v4200_v20 = vadd.f32 %v13228_v16, %v4184_v12  ;;  %v13229_v9 = vld [vmem:[#allocation102_spill] sm:$0xff]  ;;  %v13230_v57 = vld [vmem:[#allocation201_spill] sm:$0xff] }
 0x3b1   :  { %v7333_v58 = vpop.eup %7332  ;;  %v4279_v2 = vadd.f32 %v7331_v11, %v4263_v37  ;;  %v5063_v28 = vmul.f32 %v7331_v11, %v13229_v9  ;;  %v5943_v23 = vmul.f32 %v7331_v11, %v13230_v57  ;;  %7340 = vpow2.f32 %v3789_v41  ;;  %v13231_v34 = vld [vmem:[#allocation6_spill] sm:$0xff]  ;;  %v13240_v57 = vld [vmem:[#allocation199_spill] sm:$0xff] }
 0x3b2   :  { %5206 = vst [vmem:[%s12260_s6 + $0x70] sm:$0xff] %v5190_v17  ;;  %6086 = vst [vmem:[%s12260_s6 + $0x78] sm:$0xff] %v6070_v19  ;;  %7342 = vpow2.f32 %v3837_v27  ;;  %v4216_v30 = vadd.f32 %v7333_v58, %v4200_v20  ;;  %v4408_v48 = vmul.f32 %v11487_v31, %v13231_v34  ;;  %v13232_v39 = vld [vmem:[#allocation42_spill] sm:$0xff]  ;;  %v11912_v26 = vmul.f32 1.442695, %v3902_v18  ;;  %v6005_v20 = vpop.permute.xlu0 %6004 }
 0x3b3   :  { %v4488_v37 = vmul.f32 %v13220_v51, %v13232_v39  ;;  %v4295_v12 = vadd.f32 %v13226_v15, %v4279_v2  ;;  %v5079_v63 = vadd.f32 %v5063_v28, %v4983_v52  ;;  %v5959_v13 = vadd.f32 %v5943_v23, %v5863_v32  ;;  %v13233_v41 = vld [vmem:[#allocation30_spill] sm:$0xff]  ;;  %v13235_v15 = vld [vmem:[#allocation119_spill] sm:$0xff]  ;;  %v13239_v28 = vld [vmem:[#allocation193_spill] sm:$0xff] }
 0x3b4   :  { %7344 = vpow2.f32 %v3885_v40  ;;  %v4584_v36 = vmul.f32 %v13228_v16, %v13233_v41  ;;  %v13234_v17 = vld [vmem:[#allocation82_spill] sm:$0xff] }
 0x3b5   :  { %7346 = vpow2.f32 %v4113_v21  ;;  %v4504_v50 = vadd.f32 %v4488_v37, %v4408_v48  ;;  %v11916_v27 = vadd.f32 %v5159_v45, %v5079_v63  ;;  %v11918_v11 = vadd.f32 %v6039_v10, %v5959_v13  ;;  %v13236_v52 = vld [vmem:[#allocation290_spill] sm:$0xff]  ;;  %v13238_v21 = vld [vmem:[#allocation167_spill] sm:$0xff]  ;;  %v13242_v37 = vld [vmem:[#allocation337_spill] sm:$0xff] }
 0x3b6   :  { %7348 = vrcp.f32 %v4295_v12  ;;  %v4680_v19 = vmul.f32 %v7333_v58, %v13234_v17  ;;  %v11923_v32 = vmul.f32 %v13236_v52, %v13235_v15  ;;  %v13237_v18 = vld [vmem:[#allocation162_spill] sm:$0xff]  ;;  %v5368_v2 = vmul.f32 %v13220_v51, %v13238_v21 }
 0x3b7   :  { %v4600_v9 = vadd.f32 %v4584_v36, %v4504_v50  ;;  %v5288_v40 = vmul.f32 %v11487_v31, %v13237_v18  ;;  %v5464_v45 = vmul.f32 %v13228_v16, %v13239_v28  ;;  %v5560_v10 = vmul.f32 %v7333_v58, %v13240_v57  ;;  %v13241_v23 = vld [vmem:[#allocation334_spill] sm:$0xff]  ;;  %v13244_v16 = vld [vmem:[#allocation341_spill] sm:$0xff] }
 0x3b8   :  { %7350 = vpow2.f32 %v11609_v3  ;;  %v3945_v34 = vsub.f32 %v13241_v23, %v11483_v49  ;;  %v3993_v12 = vsub.f32 %v13242_v37, %v11483_v49  ;;  %v13243_v31 = vld [vmem:[#allocation338_spill] sm:$0xff]  ;;  %v11940_v51 = vmul.f32 %v13236_v52, %v6005_v20  ;;  %v13247_v20 = vld [vmem:[#allocation15_spill] sm:$0xff] }
 0x3b9   :  { %v4696_v48 = vadd.f32 %v4680_v19, %v4600_v9  ;;  %v5384_v39 = vadd.f32 %v5368_v2, %v5288_v40  ;;  %v4041_v63 = vsub.f32 %v13243_v31, %v11483_v49  ;;  %v4089_v58 = vsub.f32 %v13244_v16, %v11483_v49  ;;  %v7335_v50 = vpop.eup %7334  ;;  %v13245_v19 = vld [vmem:[#allocation27_spill] sm:$0xff]  ;;  %v13246_v40 = vld [vmem:[#allocation72_spill] sm:$0xff] }
 0x3ba   :  { %v3971_v13 = vmul.f32 1.442695, %v3945_v34  ;;  %v4185_v3 = vadd.f32 %v11563_v5, %v11557_v60  ;;  %v4019_v36 = vmul.f32 1.442695, %v3993_v12  ;;  %v4409_v9 = vmul.f32 %v11557_v60, %v13245_v19  ;;  %v13248_v49 = vld [vmem:[#allocation131_spill] sm:$0xff]  ;;  %v13249_v34 = vld [vmem:[#allocation262_spill] sm:$0xff] }
 0x3bb   :  { %v5480_v41 = vadd.f32 %v5464_v45, %v5384_v39  ;;  %v4067_v17 = vmul.f32 1.442695, %v4041_v63  ;;  %v7337_v15 = vpop.eup %7336  ;;  %v4232_v18 = vadd.f32 %v7335_v50, %v4216_v30  ;;  %v4776_v21 = vmul.f32 %v7335_v50, %v13246_v40  ;;  %v13250_v12 = vld [vmem:[#allocation128_spill] sm:$0xff] }
 0x3bc   :  { %7352 = vpow2.f32 %v3971_v13  ;;  %v4489_v2 = vmul.f32 %v11563_v5, %v13247_v20  ;;  %v7339_v28 = vpop.eup %7338  ;;  %v4872_v57 = vmul.f32 %v7337_v15, %v13248_v49  ;;  %v5656_v37 = vmul.f32 %v7335_v50, %v13249_v34  ;;  %v13251_v63 = vld [vmem:[#allocation292_spill] sm:$0xff]  ;;  %v13252_v50 = vld [vmem:[#allocation62_spill] sm:$0xff]  ;;  %v13254_v34 = vld [vmem:[#allocation151_spill] sm:$0xff] }
 0x3bd   :  { %v5576_v23 = vadd.f32 %v5560_v10, %v5480_v41  ;;  %7354 = vpow2.f32 %v4019_v36  ;;  %v4248_v45 = vadd.f32 %v7337_v15, %v4232_v18  ;;  %v4792_v39 = vadd.f32 %v4776_v21, %v4696_v48  ;;  %v13253_v21 = vld [vmem:[#allocation342_spill] sm:$0xff] }
 0x3be   :  { %v4968_v31 = vmul.f32 %v7339_v28, %v13250_v12  ;;  %v5752_v16 = vmul.f32 %v7337_v15, %v13251_v63  ;;  %v11955_v30 = vpop.eup %7340  ;;  %7356 = vpow2.f32 %v4067_v17  ;;  %v4115_v13 = vmul.f32 1.442695, %v4089_v58  ;;  %v13257_v12 = vld [vmem:[#allocation73_spill] sm:$0xff] }
 0x3bf   :  { %v5672_v19 = vadd.f32 %v5656_v37, %v5576_v23  ;;  %v4201_v40 = vadd.f32 %v11573_v43, %v4185_v3  ;;  %v11958_v20 = vpop.eup %7342  ;;  %v4264_v49 = vadd.f32 %v7339_v28, %v4248_v45  ;;  %v4888_v10 = vadd.f32 %v4872_v57, %v4792_v39  ;;  %v13255_v37 = vld [vmem:[#allocation148_spill] sm:$0xff] }
 0x3c0   :  { %v4505_v41 = vadd.f32 %v4489_v2, %v4409_v9  ;;  %v4585_v36 = vmul.f32 %v11573_v43, %v13252_v50  ;;  %v5848_v15 = vmul.f32 %v7339_v28, %v13253_v21  ;;  %7358 = vpow2.f32 %v4115_v13  ;;  %v13256_v9 = vld [vmem:[#allocation179_spill] sm:$0xff]  ;;  %v13258_v28 = vld [vmem:[#allocation222_spill] sm:$0xff] }
 0x3c1   :  { %v11962_v48 = vpop.eup %7344  ;;  %v5768_v18 = vadd.f32 %v5752_v16, %v5672_v19  ;;  %v5289_v17 = vmul.f32 %v11557_v60, %v13254_v34  ;;  %v4984_v23 = vadd.f32 %v4968_v31, %v4888_v10  ;;  %v11969_v45 = vmul.f32 %v11585_v8, %v13255_v37  ;;  %v13259_v10 = vld [vmem:[#allocation184_spill] sm:$0xff] }
 0x3c2   :  { %v7347_v58 = vpop.eup %7346  ;;  %v4601_v3 = vadd.f32 %v4585_v36, %v4505_v41  ;;  %v5369_v2 = vmul.f32 %v11563_v5, %v13256_v9  ;;  %v5465_v41 = vmul.f32 %v11573_v43, %v13259_v10  ;;  %7360 = vpow2.f32 %v11681_v14  ;;  %v13261_v43 = vld [vmem:[#allocation221_spill] sm:$0xff]  ;;  %v13262_v14 = vld [vmem:[#allocation340_spill] sm:$0xff] }
 0x3c3   :  { %v7349_v57 = vpop.eup %7348  ;;  %v4280_v39 = vadd.f32 %v7347_v58, %v4264_v49  ;;  %v5064_v63 = vmul.f32 %v7347_v58, %v13257_v12  ;;  %v5864_v16 = vadd.f32 %v5848_v15, %v5768_v18  ;;  %v5944_v19 = vmul.f32 %v7347_v58, %v13258_v28  ;;  %v13263_v37 = vld [vmem:[#allocation344_spill] sm:$0xff]  ;;  %v13265_v12 = vld [vmem:[#allocation347_spill] sm:$0xff] }
 0x3c4   :  { %v5191_v13 = vmul.f32 %v7349_v57, %v11916_v27  ;;  %v6071_v60 = vmul.f32 %v7349_v57, %v11918_v11  ;;  %v5385_v31 = vadd.f32 %v5369_v2, %v5289_v17  ;;  %v13260_v11 = vld [vmem:[#allocation49_spill] sm:$0xff]  ;;  %v3946_v17 = vsub.f32 %v13262_v14, %v11569_v1 }
 0x3c5   :  { %v7351_v50 = vpop.eup %7350  ;;  %v4296_v36 = vadd.f32 %v13236_v52, %v4280_v39  ;;  %v5080_v21 = vadd.f32 %v5064_v63, %v4984_v23  ;;  %v5960_v5 = vadd.f32 %v5944_v19, %v5864_v16  ;;  %v3994_v9 = vsub.f32 %v13263_v37, %v11569_v1  ;;  %v13267_v19 = vld [vmem:[#allocation113_spill] sm:$0xff] }
 0x3c6   :  { %5207 = vst [vmem:[%s12260_s6 + $0x80] sm:$0xff] %v5191_v13  ;;  %6087 = vst [vmem:[%s12260_s6 + $0x88] sm:$0xff] %v6071_v60  ;;  %v4217_v27 = vadd.f32 %v7351_v50, %v4201_v40  ;;  %v4681_v49 = vmul.f32 %v7351_v50, %v13260_v11  ;;  %v5481_v18 = vadd.f32 %v5465_v41, %v5385_v31  ;;  %v13264_v40 = vld [vmem:[#allocation345_spill] sm:$0xff]  ;;  %v3973_v39 = vmul.f32 1.442695, %v3946_v17  ;;  %v13268_v60 = vld [vmem:[#allocation248_spill] sm:$0xff]  ;;  %v6009_v11 = vpop.permute.xlu1 %6008 }
 0x3c7   :  { %v5561_v15 = vmul.f32 %v7351_v50, %v13261_v43  ;;  %7362 = vrcp.f32 %v4296_v36  ;;  %v5176_v52 = vadd.f32 %v11923_v32, %v5080_v21  ;;  %v6056_v34 = vadd.f32 %v11940_v51, %v5960_v5  ;;  %v13266_v51 = vld [vmem:[#allocation7_spill] sm:$0xff]  ;;  %v13269_v41 = vld [vmem:[#allocation101_spill] sm:$0xff] }
 0x3c8   :  { %v4697_v58 = vadd.f32 %v4681_v49, %v4601_v3  ;;  %v4042_v2 = vsub.f32 %v13264_v40, %v11569_v1  ;;  %v4090_v63 = vsub.f32 %v13265_v12, %v11569_v1  ;;  %v4186_v32 = vadd.f32 %v11658_v46, %v11650_v55  ;;  %v13270_v36 = vld [vmem:[#allocation303_spill] sm:$0xff] }
 0x3c9   :  { %v5577_v23 = vadd.f32 %v5561_v15, %v5481_v18  ;;  %v7353_v57 = vpop.eup %7352  ;;  %v4410_v16 = vmul.f32 %v11650_v55, %v13266_v51  ;;  %v4021_v10 = vmul.f32 1.442695, %v3994_v9  ;;  %7364 = vpow2.f32 %v3973_v39  ;;  %v13271_v15 = vld [vmem:[#allocation97_spill] sm:$0xff]  ;;  %v13273_v39 = vld [vmem:[#allocation59_spill] sm:$0xff] }
 0x3ca   :  { %v7355_v28 = vpop.eup %7354  ;;  %v4233_v3 = vadd.f32 %v7353_v57, %v4217_v27  ;;  %v4777_v13 = vmul.f32 %v7353_v57, %v13267_v19  ;;  %v5657_v31 = vmul.f32 %v7353_v57, %v13268_v60  ;;  %v4069_v5 = vmul.f32 1.442695, %v4042_v2  ;;  %v13272_v27 = vld [vmem:[#allocation369_spill] sm:$0xff]  ;;  %v13275_v60 = vld [vmem:[#allocation283_spill] sm:$0xff] }
 0x3cb   :  { %v4873_v50 = vmul.f32 %v7355_v28, %v13269_v41  ;;  %v5753_v21 = vmul.f32 %v7355_v28, %v13270_v36  ;;  %v7357_v1 = vpop.eup %7356  ;;  %7366 = vpow2.f32 %v4021_v10  ;;  %v4117_v37 = vmul.f32 1.442695, %v4090_v63  ;;  %v13276_v10 = vld [vmem:[#allocation32_spill] sm:$0xff]  ;;  %v13278_v36 = vld [vmem:[#allocation169_spill] sm:$0xff] }
 0x3cc   :  { %v4249_v49 = vadd.f32 %v7355_v28, %v4233_v3  ;;  %v4793_v18 = vadd.f32 %v4777_v13, %v4697_v58  ;;  %v5673_v43 = vadd.f32 %v5657_v31, %v5577_v23  ;;  %v4969_v14 = vmul.f32 %v7357_v1, %v13271_v15  ;;  %v13274_v58 = vld [vmem:[#allocation44_spill] sm:$0xff] }
 0x3cd   :  { %v5849_v17 = vmul.f32 %v7357_v1, %v13272_v27  ;;  %7368 = vpow2.f32 %v4069_v5  ;;  %v7359_v40 = vpop.eup %7358  ;;  %v4202_v51 = vadd.f32 %v11663_v42, %v4186_v32  ;;  %v6041_v19 = vmul.f32 %v11585_v8, %v6009_v11 }
 0x3ce   :  { %v4265_v9 = vadd.f32 %v7357_v1, %v4249_v49  ;;  %v4889_v57 = vadd.f32 %v4873_v50, %v4793_v18  ;;  %v5769_v12 = vadd.f32 %v5753_v21, %v5673_v43  ;;  %v5065_v2 = vmul.f32 %v7359_v40, %v13273_v39  ;;  %v13277_v50 = vld [vmem:[#allocation164_spill] sm:$0xff]  ;;  %v13279_v18 = vld [vmem:[#allocation195_spill] sm:$0xff] }
 0x3cf   :  { %7370 = vpow2.f32 %v4117_v37  ;;  %v4490_v23 = vmul.f32 %v11658_v46, %v13274_v58  ;;  %v5945_v31 = vmul.f32 %v7359_v40, %v13275_v60  ;;  %v4586_v41 = vmul.f32 %v11663_v42, %v13276_v10  ;;  %v7361_v5 = vpop.eup %7360  ;;  %v13283_v58 = vld [vmem:[#allocation346_spill] sm:$0xff] }
 0x3d0   :  { %v4281_v28 = vadd.f32 %v7359_v40, %v4265_v9  ;;  %v4985_v3 = vadd.f32 %v4969_v14, %v4889_v57  ;;  %v5865_v13 = vadd.f32 %v5849_v17, %v5769_v12  ;;  %v5290_v32 = vmul.f32 %v11650_v55, %v13277_v50  ;;  %v13288_v60 = vld [vmem:[#allocation10_spill] sm:$0xff]  ;;  %v13289_v50 = vld [vmem:[#allocation29_spill] sm:$0xff] }
 0x3d1   :  { %v4506_v63 = vadd.f32 %v4490_v23, %v4410_v16  ;;  %v5370_v21 = vmul.f32 %v11658_v46, %v13278_v36  ;;  %v5466_v43 = vmul.f32 %v11663_v42, %v13279_v18  ;;  %v4218_v15 = vadd.f32 %v7361_v5, %v4202_v51  ;;  %v13280_v16 = vld [vmem:[#allocation84_spill] sm:$0xff]  ;;  %v13281_v46 = vld [vmem:[#allocation203_spill] sm:$0xff]  ;;  %v13282_v42 = vld [vmem:[#allocation121_spill] sm:$0xff] }
 0x3d2   :  { %v4297_v1 = vadd.f32 %v11585_v8, %v4281_v28  ;;  %v5081_v11 = vadd.f32 %v5065_v2, %v4985_v3  ;;  %v5961_v49 = vadd.f32 %v5945_v31, %v5865_v13  ;;  %v4682_v27 = vmul.f32 %v7361_v5, %v13280_v16  ;;  %v6013_v2 = vpop.permute.xlu0 %6012  ;;  %v13287_v13 = vld [vmem:[#allocation111_spill] sm:$0xff]  ;;  %v13290_v36 = vld [vmem:[#allocation17_spill] sm:$0xff] }
 0x3d3   :  { %v4602_v14 = vadd.f32 %v4586_v41, %v4506_v63  ;;  %v5386_v17 = vadd.f32 %v5370_v21, %v5290_v32  ;;  %v5562_v9 = vmul.f32 %v7361_v5, %v13281_v46  ;;  %v5162_v51 = vmul.f32 %v11665_v62, %v13282_v42  ;;  %v13292_v18 = vld [vmem:[#allocation267_spill] sm:$0xff]  ;;  %v13293_v16 = vld [vmem:[#allocation133_spill] sm:$0xff] }
 0x3d4   :  { %v7363_v37 = vpop.eup %7362  ;;  %7372 = vrcp.f32 %v4297_v1  ;;  %v12026_v55 = vadd.f32 %v11969_v45, %v5081_v11  ;;  %v12028_v40 = vadd.f32 %v6041_v19, %v5961_v49  ;;  %v3947_v23 = vsub.f32 %v13283_v58, %v11640_v22  ;;  %v13284_v45 = vld [vmem:[#allocation350_spill] sm:$0xff]  ;;  %v13291_v11 = vld [vmem:[#allocation75_spill] sm:$0xff] }
 0x3d5   :  { %v5192_v8 = vmul.f32 %v7363_v37, %v5176_v52  ;;  %v6072_v57 = vmul.f32 %v7363_v37, %v6056_v34  ;;  %v4698_v12 = vadd.f32 %v4682_v27, %v4602_v14  ;;  %v5482_v39 = vadd.f32 %v5466_v43, %v5386_v17  ;;  %v13285_v34 = vld [vmem:[#allocation352_spill] sm:$0xff]  ;;  %v13294_v17 = vld [vmem:[#allocation298_spill] sm:$0xff] }
 0x3d6   :  { %7374 = vpow2.f32 %v11694_v33  ;;  %v3995_v28 = vsub.f32 %v13284_v45, %v11640_v22  ;;  %v4043_v19 = vsub.f32 %v13285_v34, %v11640_v22  ;;  %v13286_v33 = vld [vmem:[#allocation354_spill] sm:$0xff]  ;;  %v4187_v31 = vadd.f32 %v13288_v60, %v13287_v13  ;;  %v7365_v63 = vpop.eup %7364 }
 0x3d7   :  { %5208 = vst [vmem:[%s12260_s6 + $0x90] sm:$0xff] %v5192_v8  ;;  %6088 = vst [vmem:[%s12260_s6 + $0x98] sm:$0xff] %v6072_v57  ;;  %v5578_v52 = vadd.f32 %v5562_v9, %v5482_v39  ;;  %v4091_v3 = vsub.f32 %v13286_v33, %v11640_v22  ;;  %v3975_v10 = vmul.f32 1.442695, %v3947_v23  ;;  %v4411_v32 = vmul.f32 %v13287_v13, %v13289_v50  ;;  %v13295_v58 = vld [vmem:[#allocation130_spill] sm:$0xff] }
 0x3d8   :  { %v4023_v41 = vmul.f32 1.442695, %v3995_v28  ;;  %v4491_v21 = vmul.f32 %v13288_v60, %v13290_v36  ;;  %v7367_v5 = vpop.eup %7366  ;;  %v4234_v1 = vadd.f32 %v7365_v63, %v4218_v15  ;;  %v4778_v49 = vmul.f32 %v7365_v63, %v13291_v11  ;;  %v13296_v23 = vld [vmem:[#allocation50_spill] sm:$0xff]  ;;  %v13298_v36 = vld [vmem:[#allocation77_spill] sm:$0xff] }
 0x3d9   :  { %v5658_v43 = vmul.f32 %v7365_v63, %v13292_v18  ;;  %v6042_v22 = vmul.f32 %v11665_v62, %v6013_v2  ;;  %v4874_v27 = vmul.f32 %v7367_v5, %v13293_v16  ;;  %v5754_v37 = vmul.f32 %v7367_v5, %v13294_v17  ;;  %v13297_v63 = vld [vmem:[#allocation348_spill] sm:$0xff] }
 0x3da   :  { %v7369_v14 = vpop.eup %7368  ;;  %7376 = vpow2.f32 %v3975_v10  ;;  %v4071_v46 = vmul.f32 1.442695, %v4043_v19  ;;  %v4250_v9 = vadd.f32 %v7367_v5, %v4234_v1  ;;  %v4794_v8 = vadd.f32 %v4778_v49, %v4698_v12  ;;  %v13299_v10 = vld [vmem:[#allocation20_spill] sm:$0xff]  ;;  %v13303_v49 = vld [vmem:[#allocation153_spill] sm:$0xff] }
 0x3db   :  { %v5674_v57 = vadd.f32 %v5658_v43, %v5578_v52  ;;  %v4119_v39 = vmul.f32 1.442695, %v4091_v3  ;;  %v4970_v15 = vmul.f32 %v7369_v14, %v13295_v58  ;;  %7378 = vpow2.f32 %v4023_v41  ;;  %v13300_v12 = vld [vmem:[#allocation64_spill] sm:$0xff]  ;;  %v13304_v43 = vld [vmem:[#allocation181_spill] sm:$0xff]  ;;  %v6017_v58 = vpop.permute.xlu1 %6016 }
 0x3dc   :  { %v7371_v42 = vpop.eup %7370  ;;  %v4203_v45 = vadd.f32 %v13296_v23, %v4187_v31  ;;  %v4507_v28 = vadd.f32 %v4491_v21, %v4411_v32  ;;  %v4266_v34 = vadd.f32 %v7369_v14, %v4250_v9  ;;  %v4890_v2 = vadd.f32 %v4874_v27, %v4794_v8  ;;  %v13301_v31 = vld [vmem:[#allocation150_spill] sm:$0xff]  ;;  %v13302_v32 = vld [vmem:[#allocation141_spill] sm:$0xff] }
 0x3dd   :  { %v5770_v33 = vadd.f32 %v5754_v37, %v5674_v57  ;;  %v5850_v50 = vmul.f32 %v7369_v14, %v13297_v63  ;;  %v5066_v11 = vmul.f32 %v7371_v42, %v13298_v36  ;;  %v5946_v19 = vmul.f32 %v7371_v42, %v13299_v10  ;;  %v13311_v63 = vld [vmem:[#allocation358_spill] sm:$0xff]  ;;  %v13312_v36 = vld [vmem:[#allocation361_spill] sm:$0xff] }
 0x3de   :  { %7380 = vpow2.f32 %v4071_v46  ;;  %v4587_v52 = vmul.f32 %v13296_v23, %v13300_v12  ;;  %v4282_v3 = vadd.f32 %v7371_v42, %v4266_v34  ;;  %v4986_v5 = vadd.f32 %v4970_v15, %v4890_v2  ;;  %v13305_v46 = vld [vmem:[#allocation186_spill] sm:$0xff]  ;;  %v13307_v15 = vld [vmem:[#allocation353_spill] sm:$0xff] }
 0x3df   :  { %v5866_v1 = vadd.f32 %v5850_v50, %v5770_v33  ;;  %7382 = vpow2.f32 %v4119_v39  ;;  %v12068_v21 = vmul.f32 %v13302_v32, %v13301_v31  ;;  %v5291_v18 = vmul.f32 %v13287_v13, %v13303_v49  ;;  %v13310_v2 = vld [vmem:[#allocation357_spill] sm:$0xff] }
 0x3e0   :  { %v4603_v41 = vadd.f32 %v4587_v52, %v4507_v28  ;;  %v5371_v14 = vmul.f32 %v13288_v60, %v13304_v43  ;;  %v4298_v27 = vadd.f32 %v11665_v62, %v4282_v3  ;;  %v5082_v17 = vadd.f32 %v5066_v11, %v4986_v5  ;;  %v13306_v62 = vld [vmem:[#allocation19_spill] sm:$0xff] }
 0x3e1   :  { %v7373_v16 = vpop.eup %7372  ;;  %v5962_v37 = vadd.f32 %v5946_v19, %v5866_v1  ;;  %v5467_v9 = vmul.f32 %v13296_v23, %v13305_v46  ;;  %7384 = vpow2.f32 %v11768_v35  ;;  %v3948_v28 = vsub.f32 %v13307_v15, %v13306_v62  ;;  %v13308_v35 = vld [vmem:[#allocation51_spill] sm:$0xff]  ;;  %v13313_v1 = vld [vmem:[#allocation8_spill] sm:$0xff] }
 0x3e2   :  { %v5193_v8 = vmul.f32 %v7373_v16, %v12026_v55  ;;  %v6073_v57 = vmul.f32 %v7373_v16, %v12028_v40  ;;  %v5387_v39 = vadd.f32 %v5371_v14, %v5291_v18  ;;  %7386 = vrcp.f32 %v4298_v27  ;;  %v13314_v18 = vld [vmem:[#allocation115_spill] sm:$0xff]  ;;  %v13315_v14 = vld [vmem:[#allocation254_spill] sm:$0xff] }
 0x3e3   :  { %v7375_v42 = vpop.eup %7374  ;;  %v12080_v13 = vadd.f32 %v5162_v51, %v5082_v17  ;;  %v12082_v60 = vadd.f32 %v6042_v22, %v5962_v37  ;;  %v13309_v51 = vld [vmem:[#allocation227_spill] sm:$0xff]  ;;  %v3977_v22 = vmul.f32 1.442695, %v3948_v28  ;;  %v3996_v33 = vsub.f32 %v13310_v2, %v13306_v62  ;;  %v13316_v37 = vld [vmem:[#allocation46_spill] sm:$0xff]  ;;  %v13319_v28 = vld [vmem:[#allocation308_spill] sm:$0xff] }
 0x3e4   :  { %5209 = vst [vmem:[%s12260_s6 + $0xa0] sm:$0xff] %v5193_v8  ;;  %6089 = vst [vmem:[%s12260_s6 + $0xa8] sm:$0xff] %v6073_v57  ;;  %v4219_v55 = vadd.f32 %v7375_v42, %v4203_v45  ;;  %v4683_v40 = vmul.f32 %v7375_v42, %v13308_v35  ;;  %v5483_v23 = vadd.f32 %v5467_v9, %v5387_v39  ;;  %v13317_v9 = vld [vmem:[#allocation35_spill] sm:$0xff]  ;;  %v13321_v2 = vld [vmem:[#allocation98_spill] sm:$0xff] }
 0x3e5   :  { %v5563_v34 = vmul.f32 %v7375_v42, %v13309_v51  ;;  %v4044_v50 = vsub.f32 %v13311_v63, %v13306_v62  ;;  %v4092_v11 = vsub.f32 %v13312_v36, %v13306_v62  ;;  %v6043_v12 = vmul.f32 %v13302_v32, %v6017_v58  ;;  %v13318_v42 = vld [vmem:[#allocation106_spill] sm:$0xff]  ;;  %v13323_v36 = vld [vmem:[#allocation100_spill] sm:$0xff] }
 0x3e6   :  { %v4699_v10 = vadd.f32 %v4683_v40, %v4603_v41  ;;  %v4188_v45 = vadd.f32 %v11800_v53, %v11788_v25  ;;  %7388 = vpow2.f32 %v3977_v22  ;;  %v4025_v3 = vmul.f32 1.442695, %v3996_v33  ;;  %v13320_v40 = vld [vmem:[#allocation79_spill] sm:$0xff]  ;;  %v13322_v63 = vld [vmem:[#allocation166_spill] sm:$0xff] }
 0x3e7   :  { %v5579_v19 = vadd.f32 %v5563_v34, %v5483_v23  ;;  %v7377_v52 = vpop.eup %7376  ;;  %v4073_v5 = vmul.f32 1.442695, %v4044_v50  ;;  %v4412_v31 = vmul.f32 %v11788_v25, %v13313_v1  ;;  %v4121_v17 = vmul.f32 1.442695, %v4092_v11  ;;  %v13325_v1 = vld [vmem:[#allocation170_spill] sm:$0xff] }
 0x3e8   :  { %v4235_v49 = vadd.f32 %v7377_v52, %v4219_v55  ;;  %v4779_v43 = vmul.f32 %v7377_v52, %v13314_v18  ;;  %v5659_v16 = vmul.f32 %v7377_v52, %v13315_v14  ;;  %v4204_v41 = vadd.f32 %v11808_v4, %v4188_v45  ;;  %v7379_v27 = vpop.eup %7378 }
 0x3e9   :  { %7390 = vpow2.f32 %v4025_v3  ;;  %v4492_v46 = vmul.f32 %v11800_v53, %v13316_v37  ;;  %v4588_v8 = vmul.f32 %v11808_v4, %v13317_v9  ;;  %v4875_v58 = vmul.f32 %v7379_v27, %v13318_v42  ;;  %v13328_v9 = vld [vmem:[#allocation86_spill] sm:$0xff] }
 0x3ea   :  { %v4251_v57 = vadd.f32 %v7379_v27, %v4235_v49  ;;  %v4795_v39 = vadd.f32 %v4779_v43, %v4699_v10  ;;  %v5675_v62 = vadd.f32 %v5659_v16, %v5579_v19  ;;  %v5755_v55 = vmul.f32 %v7379_v27, %v13319_v28  ;;  %v13324_v19 = vld [vmem:[#allocation296_spill] sm:$0xff]  ;;  %v13326_v43 = vld [vmem:[#allocation206_spill] sm:$0xff] }
 0x3eb   :  { %v7381_v15 = vpop.eup %7380  ;;  %7392 = vpow2.f32 %v4073_v5  ;;  %v4508_v35 = vadd.f32 %v4492_v46, %v4412_v31  ;;  %v12116_v23 = vmul.f32 %v11819_v6, %v13320_v40  ;;  %v5292_v50 = vmul.f32 %v11788_v25, %v13322_v63  ;;  %v13327_v16 = vld [vmem:[#allocation196_spill] sm:$0xff] }
 0x3ec   :  { %v7383_v51 = vpop.eup %7382  ;;  %v4267_v34 = vadd.f32 %v7381_v15, %v4251_v57  ;;  %v4891_v22 = vadd.f32 %v4875_v58, %v4795_v39  ;;  %v4971_v33 = vmul.f32 %v7381_v15, %v13321_v2  ;;  %v5771_v10 = vadd.f32 %v5755_v55, %v5675_v62  ;;  %v13329_v62 = vld [vmem:[#allocation207_spill] sm:$0xff]  ;;  %v13332_v55 = vld [vmem:[#allocation365_spill] sm:$0xff]  ;;  %v13334_v2 = vld [vmem:[#allocation78_spill] sm:$0xff] }
 0x3ed   :  { %v5067_v11 = vmul.f32 %v7383_v51, %v13323_v36  ;;  %v5851_v45 = vmul.f32 %v7381_v15, %v13324_v19  ;;  %7394 = vpow2.f32 %v4121_v17  ;;  %v4604_v5 = vadd.f32 %v4588_v8, %v4508_v35  ;;  %v13331_v15 = vld [vmem:[#allocation363_spill] sm:$0xff] }
 0x3ee   :  { %v4283_v52 = vadd.f32 %v7383_v51, %v4267_v34  ;;  %v4987_v3 = vadd.f32 %v4971_v33, %v4891_v22  ;;  %v5372_v31 = vmul.f32 %v11800_v53, %v13325_v1  ;;  %v7385_v49 = vpop.eup %7384  ;;  %v5947_v14 = vmul.f32 %v7383_v51, %v13326_v43  ;;  %v13333_v34 = vld [vmem:[#allocation31_spill] sm:$0xff] }
 0x3ef   :  { %v5867_v18 = vadd.f32 %v5851_v45, %v5771_v10  ;;  %v5468_v27 = vmul.f32 %v11808_v4, %v13327_v16  ;;  %7396 = vpow2.f32 %v11844_v59  ;;  %v7387_v25 = vpop.eup %7386  ;;  %v4220_v17 = vadd.f32 %v7385_v49, %v4204_v41  ;;  %v13338_v16 = vld [vmem:[#allocation18_spill] sm:$0xff] }
 0x3f0   :  { %v4299_v37 = vadd.f32 %v13302_v32, %v4283_v52  ;;  %v5083_v46 = vadd.f32 %v5067_v11, %v4987_v3  ;;  %v4684_v57 = vmul.f32 %v7385_v49, %v13328_v9  ;;  %v5194_v8 = vmul.f32 %v7387_v25, %v12080_v13  ;;  %v13340_v9 = vld [vmem:[#allocation355_spill] sm:$0xff] }
 0x3f1   :  { %v6074_v53 = vmul.f32 %v7387_v25, %v12082_v60  ;;  %v5963_v39 = vadd.f32 %v5947_v14, %v5867_v18  ;;  %v5388_v42 = vadd.f32 %v5372_v31, %v5292_v50  ;;  %v5564_v59 = vmul.f32 %v7385_v49, %v13329_v62  ;;  %v13330_v60 = vld [vmem:[#allocation359_spill] sm:$0xff]  ;;  %v13335_v50 = vld [vmem:[#allocation273_spill] sm:$0xff]  ;;  %v6021_v49 = vpop.permute.xlu0 %6020  ;;  %v13337_v18 = vld [vmem:[#allocation306_spill] sm:$0xff] }
 0x3f2   :  { %7398 = vrcp.f32 %v4299_v37  ;;  %v12134_v58 = vadd.f32 %v12068_v21, %v5083_v46  ;;  %v4700_v4 = vadd.f32 %v4684_v57, %v4604_v5  ;;  %5210 = vst [vmem:[%s12260_s6 + $0xb0] sm:$0xff] %v5194_v8  ;;  %v3949_v41 = vsub.f32 %v13330_v60, %v11793_v38  ;;  %v13339_v46 = vld [vmem:[#allocation132_spill] sm:$0xff] }
 0x3f3   :  { %6090 = vst [vmem:[%s12260_s6 + $0xb8] sm:$0xff] %v6074_v53  ;;  %v6059_v32 = vadd.f32 %v6043_v12, %v5963_v39  ;;  %v5484_v13 = vadd.f32 %v5468_v27, %v5388_v42  ;;  %v3997_v21 = vsub.f32 %v13331_v15, %v11793_v38  ;;  %v7389_v28 = vpop.eup %7388  ;;  %v4045_v35 = vsub.f32 %v13332_v55, %v11793_v38  ;;  %v13341_v42 = vld [vmem:[#allocation68_spill] sm:$0xff] }
 0x3f4   :  { %v4093_v40 = vsub.f32 %v13191_v7, %v11793_v38  ;;  %v4189_v51 = vadd.f32 %v11876_v61, %v11872_v56  ;;  %v4413_v12 = vmul.f32 %v11872_v56, %v13333_v34  ;;  %v4236_v22 = vadd.f32 %v7389_v28, %v4220_v17  ;;  %v13336_v38 = vld [vmem:[#allocation135_spill] sm:$0xff] }
 0x3f5   :  { %v4780_v33 = vmul.f32 %v7389_v28, %v13334_v2  ;;  %v5580_v63 = vadd.f32 %v5564_v59, %v5484_v13  ;;  %v5660_v36 = vmul.f32 %v7389_v28, %v13335_v50  ;;  %v3979_v10 = vmul.f32 1.442695, %v3949_v41  ;;  %v13342_v13 = vld [vmem:[#allocation123_spill] sm:$0xff]  ;;  %v13343_v28 = vld [vmem:[#allocation229_spill] sm:$0xff] }
 0x3f6   :  { %v7391_v11 = vpop.eup %7390  ;;  %v4027_v19 = vmul.f32 1.442695, %v3997_v21  ;;  %v4075_v45 = vmul.f32 1.442695, %v4045_v35  ;;  %v4205_v52 = vadd.f32 %v11886_v44, %v4189_v51  ;;  %v4123_v14 = vmul.f32 1.442695, %v4093_v40 }
 0x3f7   :  { %v4252_v3 = vadd.f32 %v7391_v11, %v4236_v22  ;;  %v4796_v7 = vadd.f32 %v4780_v33, %v4700_v4  ;;  %v4876_v5 = vmul.f32 %v7391_v11, %v13336_v38  ;;  %v5676_v1 = vadd.f32 %v5660_v36, %v5580_v63  ;;  %v13344_v22 = vld [vmem:[#allocation54_spill] sm:$0xff]  ;;  %v13345_v33 = vld [vmem:[#allocation155_spill] sm:$0xff] }
 0x3f8   :  { %v7393_v31 = vpop.eup %7392  ;;  %v5756_v43 = vmul.f32 %v7391_v11, %v13337_v18  ;;  %7400 = vpow2.f32 %v3979_v10  ;;  %v4493_v27 = vmul.f32 %v11876_v61, %v13338_v16  ;;  %v4589_v4 = vmul.f32 %v11886_v44, %v13341_v42  ;;  %v13346_v50 = vld [vmem:[#allocation183_spill] sm:$0xff]  ;;  %v13352_v18 = vld [vmem:[#allocation9_spill] sm:$0xff]  ;;  %v13356_v42 = vld [vmem:[#allocation260_spill] sm:$0xff] }
 0x3f9   :  { %v4268_v25 = vadd.f32 %v7393_v31, %v4252_v3  ;;  %v4892_v37 = vadd.f32 %v4876_v5, %v4796_v7  ;;  %v4972_v17 = vmul.f32 %v7393_v31, %v13339_v46  ;;  %v5852_v57 = vmul.f32 %v7393_v31, %v13340_v9  ;;  %v13348_v5 = vld [vmem:[#allocation232_spill] sm:$0xff] }
 0x3fa   :  { %v7395_v8 = vpop.eup %7394  ;;  %v5772_v53 = vadd.f32 %v5756_v43, %v5676_v1  ;;  %7402 = vpow2.f32 %v4027_v19  ;;  %v4509_v39 = vadd.f32 %v4493_v27, %v4413_v12  ;;  %v6044_v41 = vmul.f32 %v11819_v6, %v6021_v49  ;;  %v13347_v19 = vld [vmem:[#allocation188_spill] sm:$0xff] }
 0x3fb   :  { %v4284_v62 = vadd.f32 %v7395_v8, %v4268_v25  ;;  %v4988_v59 = vadd.f32 %v4972_v17, %v4892_v37  ;;  %v5068_v60 = vmul.f32 %v7395_v8, %v13342_v13  ;;  %v5948_v55 = vmul.f32 %v7395_v8, %v13343_v28  ;;  %v13357_v13 = vld [vmem:[#allocation168_spill] sm:$0xff] }
 0x3fc   :  { %v7397_v15 = vpop.eup %7396  ;;  %v5868_v21 = vadd.f32 %v5852_v57, %v5772_v53  ;;  %7404 = vpow2.f32 %v4075_v45  ;;  %v4605_v35 = vadd.f32 %v4589_v4, %v4509_v39  ;;  %v5293_v63 = vmul.f32 %v11872_v56, %v13345_v33  ;;  %v13355_v53 = vld [vmem:[#allocation118_spill] sm:$0xff] }
 0x3fd   :  { %v4300_v40 = vadd.f32 %v11819_v6, %v4284_v62  ;;  %v5084_v51 = vadd.f32 %v5068_v60, %v4988_v59  ;;  %7406 = vpow2.f32 %v4123_v14  ;;  %v4221_v34 = vadd.f32 %v7397_v15, %v4205_v52  ;;  %v13353_v14 = vld [vmem:[#allocation48_spill] sm:$0xff] }
 0x3fe   :  { %v5964_v12 = vadd.f32 %v5948_v55, %v5868_v21  ;;  %v4685_v2 = vmul.f32 %v7397_v15, %v13344_v22  ;;  %v5373_v36 = vmul.f32 %v11876_v61, %v13346_v50  ;;  %v4173_v10 = vmul.f32 1.442695, %v4142_v0  ;;  %v13349_v61 = vld [vmem:[#allocation366_spill] sm:$0xff] }
 0x3ff   :  { %v7399_v11 = vpop.eup %7398  ;;  %7408 = vrcp.f32 %v4300_v40  ;;  %v5180_v6 = vadd.f32 %v12116_v23, %v5084_v51  ;;  %v5469_v45 = vmul.f32 %v11886_v44, %v13347_v19  ;;  %v5565_v1 = vmul.f32 %v7397_v15, %v13348_v5  ;;  %v13350_v44 = vld [vmem:[#allocation370_spill] sm:$0xff]  ;;  %v13351_v23 = vld [vmem:[#allocation371_spill] sm:$0xff]  ;;  %v13359_v40 = vld [vmem:[#allocation313_spill] sm:$0xff] }
 0x400   :  { %v5195_v52 = vmul.f32 %v7399_v11, %v12134_v58  ;;  %v6075_v3 = vmul.f32 %v7399_v11, %v6059_v32  ;;  %v6060_v7 = vadd.f32 %v6044_v41, %v5964_v12  ;;  %v4701_v38 = vadd.f32 %v4685_v2, %v4605_v35  ;;  %v13358_v21 = vld [vmem:[#allocation110_spill] sm:$0xff]  ;;  %v13362_v11 = vld [vmem:[#allocation304_spill] sm:$0xff] }
 0x401   :  { %v5389_v56 = vadd.f32 %v5373_v36, %v5293_v63  ;;  %7410 = vpow2.f32 %v11912_v26  ;;  %v3950_v24 = vsub.f32 %v13349_v61, %v11868_v29  ;;  %v3998_v0 = vsub.f32 %v13350_v44, %v11868_v29  ;;  %v13361_v63 = vld [vmem:[#allocation105_spill] sm:$0xff]  ;;  %v6025_v36 = vpop.permute.xlu1 %6024 }
 0x402   :  { %5211 = vst [vmem:[%s12260_s6 + $0xc0] sm:$0xff] %v5195_v52  ;;  %6091 = vst [vmem:[%s12260_s6 + $0xc8] sm:$0xff] %v6075_v3  ;;  %v4046_v58 = vsub.f32 %v13351_v23, %v11868_v29  ;;  %v4094_v26 = vsub.f32 %v13218_v47, %v11868_v29  ;;  %v4190_v32 = vadd.f32 %v11958_v20, %v11955_v30  ;;  %v13354_v29 = vld [vmem:[#allocation37_spill] sm:$0xff]  ;;  %v13363_v52 = vld [vmem:[#allocation198_spill] sm:$0xff] }
 0x403   :  { %v5485_v31 = vadd.f32 %v5469_v45, %v5389_v56  ;;  %v3981_v49 = vmul.f32 1.442695, %v3950_v24  ;;  %v4414_v43 = vmul.f32 %v11955_v30, %v13352_v18  ;;  %v4494_v16 = vmul.f32 %v11958_v20, %v13353_v14  ;;  %v13367_v18 = vld [vmem:[#allocation88_spill] sm:$0xff]  ;;  %v13368_v14 = vld [vmem:[#allocation214_spill] sm:$0xff] }
 0x404   :  { %v4029_v27 = vmul.f32 1.442695, %v3998_v0  ;;  %v4077_v25 = vmul.f32 1.442695, %v4046_v58  ;;  %v4125_v37 = vmul.f32 1.442695, %v4094_v26  ;;  %v4206_v46 = vadd.f32 %v11962_v48, %v4190_v32 }
 0x405   :  { %v7401_v17 = vpop.eup %7400  ;;  %v5581_v9 = vadd.f32 %v5565_v1, %v5485_v31  ;;  %7412 = vpow2.f32 %v3981_v49  ;;  %v4510_v47 = vadd.f32 %v4494_v16, %v4414_v43  ;;  %v4590_v57 = vmul.f32 %v11962_v48, %v13354_v29  ;;  %v13364_v1 = vld [vmem:[#allocation61_spill] sm:$0xff]  ;;  %v13366_v31 = vld [vmem:[#allocation152_spill] sm:$0xff] }
 0x406   :  { %v4237_v8 = vadd.f32 %v7401_v17, %v4221_v34  ;;  %v4781_v39 = vmul.f32 %v7401_v17, %v13355_v53  ;;  %v5661_v4 = vmul.f32 %v7401_v17, %v13356_v42  ;;  %7414 = vpow2.f32 %v4029_v27  ;;  %v13360_v34 = vld [vmem:[#allocation172_spill] sm:$0xff]  ;;  %v13369_v29 = vld [vmem:[#allocation81_spill] sm:$0xff] }
 0x407   :  { %v7403_v62 = vpop.eup %7402  ;;  %7416 = vpow2.f32 %v4077_v25  ;;  %v4606_v59 = vadd.f32 %v4590_v57, %v4510_v47  ;;  %v5294_v60 = vmul.f32 %v11955_v30, %v13357_v13  ;;  %v5374_v12 = vmul.f32 %v11958_v20, %v13360_v34  ;;  %v13365_v20 = vld [vmem:[#allocation210_spill] sm:$0xff]  ;;  %v13371_v42 = vld [vmem:[#allocation137_spill] sm:$0xff] }
 0x408   :  { %v4253_v41 = vadd.f32 %v7403_v62, %v4237_v8  ;;  %v4797_v15 = vadd.f32 %v4781_v39, %v4701_v38  ;;  %v4877_v28 = vmul.f32 %v7403_v62, %v13358_v21  ;;  %v5677_v55 = vadd.f32 %v5661_v4, %v5581_v9  ;;  %v13370_v8 = vld [vmem:[#allocation279_spill] sm:$0xff]  ;;  %v13373_v21 = vld [vmem:[#allocation134_spill] sm:$0xff] }
 0x409   :  { %v7405_v35 = vpop.eup %7404  ;;  %v5757_v51 = vmul.f32 %v7403_v62, %v13359_v40  ;;  %7418 = vpow2.f32 %v4125_v37  ;;  %v5390_v45 = vadd.f32 %v5374_v12, %v5294_v60  ;;  %v5470_v3 = vmul.f32 %v11962_v48, %v13363_v52  ;;  %v13372_v60 = vld [vmem:[#allocation314_spill] sm:$0xff] }
 0x40a   :  { %v7407_v22 = vpop.eup %7406  ;;  %7420 = vpow2.f32 %v4173_v10  ;;  %v4269_v2 = vadd.f32 %v7405_v35, %v4253_v41  ;;  %v4893_v33 = vadd.f32 %v4877_v28, %v4797_v15  ;;  %v4973_v50 = vmul.f32 %v7405_v35, %v13361_v63  ;;  %v13375_v12 = vld [vmem:[#allocation138_spill] sm:$0xff] }
 0x40b   :  { %v5773_v30 = vadd.f32 %v5757_v51, %v5677_v55  ;;  %v5853_v19 = vmul.f32 %v7405_v35, %v13362_v11  ;;  %v5069_v61 = vmul.f32 %v7407_v22, %v13364_v1  ;;  %v5949_v24 = vmul.f32 %v7407_v22, %v13365_v20  ;;  %v13374_v51 = vld [vmem:[#allocation364_spill] sm:$0xff]  ;;  %v13377_v11 = vld [vmem:[#allocation139_spill] sm:$0xff] }
 0x40c   :  { %v7409_v38 = vpop.eup %7408  ;;  %v4285_v56 = vadd.f32 %v7407_v22, %v4269_v2  ;;  %v4989_v5 = vadd.f32 %v4973_v50, %v4893_v33  ;;  %v5486_v23 = vadd.f32 %v5470_v3, %v5390_v45  ;;  %v5165_v49 = vmul.f32 %v11891_v54, %v13366_v31  ;;  %v13376_v50 = vld [vmem:[#allocation230_spill] sm:$0xff] }
 0x40d   :  { %v5196_v10 = vmul.f32 %v7409_v38, %v5180_v6  ;;  %v6076_v44 = vmul.f32 %v7409_v38, %v6060_v7  ;;  %v5869_v0 = vadd.f32 %v5853_v19, %v5773_v30  ;;  %v6045_v48 = vmul.f32 %v11891_v54, %v6025_v36  ;;  %v6029_v30 = vpop.permute.xlu0 %6028 }
 0x40e   :  { %v7411_v58 = vpop.eup %7410  ;;  %v4301_v26 = vadd.f32 %v11891_v54, %v4285_v56  ;;  %v5085_v32 = vadd.f32 %v5069_v61, %v4989_v5 }
 0x40f   :  { %5212 = vst [vmem:[%s12260_s6 + $0xd0] sm:$0xff] %v5196_v10  ;;  %6092 = vst [vmem:[%s12260_s6 + $0xd8] sm:$0xff] %v6076_v44  ;;  %v5965_v6 = vadd.f32 %v5949_v24, %v5869_v0  ;;  %v4222_v7 = vadd.f32 %v7411_v58, %v4206_v46  ;;  %v4686_v43 = vmul.f32 %v7411_v58, %v13367_v18 }
 0x410   :  { %v5566_v16 = vmul.f32 %v7411_v58, %v13368_v14  ;;  %7422 = vrcp.f32 %v4301_v26  ;;  %v5181_v27 = vadd.f32 %v5165_v49, %v5085_v32 }
 0x411   :  { %v6061_v25 = vadd.f32 %v6045_v48, %v5965_v6  ;;  %v4702_v37 = vadd.f32 %v4686_v43, %v4606_v59 }
 0x412   :  { %v5582_v17 = vadd.f32 %v5566_v16, %v5486_v23  ;;  %v7413_v54 = vpop.eup %7412 }
 0x413   :  { %v7415_v9 = vpop.eup %7414  ;;  %v4238_v47 = vadd.f32 %v7413_v54, %v4222_v7  ;;  %v4782_v57 = vmul.f32 %v7413_v54, %v13369_v29  ;;  %v5662_v53 = vmul.f32 %v7413_v54, %v13370_v8 }
 0x414   :  { %v7417_v39 = vpop.eup %7416  ;;  %v4878_v4 = vmul.f32 %v7415_v9, %v13371_v42  ;;  %v5758_v41 = vmul.f32 %v7415_v9, %v13372_v60 }
 0x415   :  { %v4254_v46 = vadd.f32 %v7415_v9, %v4238_v47  ;;  %v4798_v62 = vadd.f32 %v4782_v57, %v4702_v37  ;;  %v5678_v13 = vadd.f32 %v5662_v53, %v5582_v17  ;;  %v4974_v28 = vmul.f32 %v7417_v39, %v13373_v21 }
 0x416   :  { %v7419_v15 = vpop.eup %7418  ;;  %v5854_v34 = vmul.f32 %v7417_v39, %v13374_v51 }
 0x417   :  { %v7421_v59 = vpop.eup %7420  ;;  %v4270_v55 = vadd.f32 %v7417_v39, %v4254_v46  ;;  %v4894_v35 = vadd.f32 %v4878_v4, %v4798_v62  ;;  %v5774_v40 = vadd.f32 %v5758_v41, %v5678_v13  ;;  %v5070_v22 = vmul.f32 %v7419_v15, %v13375_v12 }
 0x418   :  { %v5950_v36 = vmul.f32 %v7419_v15, %v13376_v50  ;;  %v5166_v19 = vmul.f32 %v7421_v59, %v13377_v11  ;;  %v6046_v38 = vmul.f32 %v7421_v59, %v6029_v30 }
 0x419   :  { %v4286_v2 = vadd.f32 %v7419_v15, %v4270_v55  ;;  %v4990_v33 = vadd.f32 %v4974_v28, %v4894_v35  ;;  %v5870_v63 = vadd.f32 %v5854_v34, %v5774_v40 }
 0x41b   :  { %v4302_v45 = vadd.f32 %v7421_v59, %v4286_v2  ;;  %v5086_v52 = vadd.f32 %v5070_v22, %v4990_v33  ;;  %v5966_v3 = vadd.f32 %v5950_v36, %v5870_v63 }
 0x41d   :  { %v7423_v56 = vpop.eup %7422  ;;  %7424 = vrcp.f32 %v4302_v45  ;;  %v5182_v5 = vadd.f32 %v5166_v19, %v5086_v52  ;;  %v6062_v1 = vadd.f32 %v6046_v38, %v5966_v3 }
 0x41e   :  { %v5197_v61 = vmul.f32 %v7423_v56, %v5181_v27  ;;  %v6077_v20 = vmul.f32 %v7423_v56, %v6061_v25 }
 0x420   :  { %5213 = vst [vmem:[%s12260_s6 + $0xe0] sm:$0xff] %v5197_v61  ;;  %6093 = vst [vmem:[%s12260_s6 + $0xe8] sm:$0xff] %v6077_v20 }
 0x42a   :  { %v7425_v24 = vpop.eup %7424 }
 0x42b   :  { %v5198_v10 = vmul.f32 %v7425_v24, %v5182_v5  ;;  %v6078_v44 = vmul.f32 %v7425_v24, %v6062_v1 }
 0x42d   :  { %5214 = vst [vmem:[%s12260_s6 + $0xf0] sm:$0xff] %v5198_v10  ;;  %6094 = vst [vmem:[%s12260_s6 + $0xf8] sm:$0xff] %v6078_v44 }

</bundles_post_ra>
